<compile_context>
chip_gen: v6e
topology: v6e:2x2x1
jax: 0.10.0
libtpu: 0.0.40
codegen_flags: <defaults>
</compile_context>

<pallas_src>
import functools
import math

import numpy as np

import jax
import jax.numpy as jnp
from jax.experimental import pallas as pl
from jax.experimental.pallas import tpu as pltpu


# ----------------------------------------------------------------------------
# Kernel
# ----------------------------------------------------------------------------
def _window_attention_kernel(x_ref, wqkv_ref, bqkv_ref, bias_ref, wproj_ref,
                             bproj_ref, o_ref, *, num_heads, scale):
    """One grid step = one tile of `TB` windows.

    x_ref:     (TB, N, C)       input windows
    wqkv_ref:  (C, 3C)          fused qkv weight, [in, out]
    bqkv_ref:  (1, 3C)
    bias_ref:  (BB, H*N, N)     rel-pos bias (+ window mask); BB is 1 or TB
    wproj_ref: (C, C)           output projection, [in, out]
    bproj_ref: (1, C)
    o_ref:     (TB, N, C)
    """
    TB, N, C = x_ref.shape
    H = num_heads
    hd = C // H

    # ---- fused QKV projection: one tall lane-dense MXU matmul --------------
    x = x_ref[...].reshape(TB * N, C)
    qkv = jnp.dot(x, wqkv_ref[...], preferred_element_type=jnp.float32)
    qkv = qkv + bqkv_ref[...]                          # (TB*N, 3C) fp32
    # The 3C feature axis is laid out [3, H, hd] (same as the PyTorch
    # reshape), so q/k/v of head h are static lane slices of qkv.

    # ---- per-head attention, accumulating the output projection ------------
    acc = None
    for h in range(H):
        q_h = qkv[:, h * hd:(h + 1) * hd].reshape(TB, N, hd) * scale
        k_h = qkv[:, C + h * hd:C + (h + 1) * hd].reshape(TB, N, hd)
        v_h = qkv[:, 2 * C + h * hd:2 * C + (h + 1) * hd].reshape(TB, N, hd)

        # scores (TB, N, N), fp32 accumulation on the MXU
        attn = jnp.einsum('bnd,bmd->bnm', q_h, k_h,
                          preferred_element_type=jnp.float32)
        # relative-position bias (+ mask); broadcasts over windows if BB == 1
        attn = attn + bias_ref[:, h * N:(h + 1) * N, :]
        attn = jax.nn.softmax(attn, axis=-1)

        # context (TB, N, hd), then fold this head's slice of the output
        # projection into the accumulator (== concat(heads) @ Wproj).
        ctx = jnp.einsum('bnm,bmd->bnd', attn, v_h,
                         preferred_element_type=jnp.float32)
        part = jnp.dot(ctx.reshape(TB * N, hd),
                       wproj_ref[h * hd:(h + 1) * hd, :],
                       preferred_element_type=jnp.float32)
        acc = part if acc is None else acc + part

    out = acc + bproj_ref[...]
    o_ref[...] = out.reshape(TB, N, C).astype(o_ref.dtype)


# ----------------------------------------------------------------------------
# Host-side helpers
# ----------------------------------------------------------------------------
def _relative_position_index(Wh, Ww):
    """Same construction as the PyTorch module (static, numpy)."""
    coords = np.stack(np.meshgrid(np.arange(Wh), np.arange(Ww), indexing='ij'))
    coords_flat = coords.reshape(2, -1)                           # (2, N)
    rel = coords_flat[:, :, None] - coords_flat[:, None, :]       # (2, N, N)
    rel = rel.transpose(1, 2, 0).astype(np.int64)
    rel[:, :, 0] += Wh - 1
    rel[:, :, 1] += Ww - 1
    rel[:, :, 0] *= 2 * Ww - 1
    return np.asarray(rel.sum(-1), dtype=np.int32)                # (N, N)


def window_attention_pallas(x, params, window_size, num_heads, mask=None, *,
                            tile_b=8):
    """x: (B_, N, C), mask: (nW, N, N) or None -> (B_, N, C)."""
    B_, N, C = x.shape
    H = num_heads
    assert C % H == 0
    hd = C // H
    scale = float(hd) ** -0.5
    Wh, Ww = window_size
    assert N == Wh * Ww

    # --- relative position bias gather (parameter-sized, done once) ---------
    rel_index = _relative_position_index(Wh, Ww)                  # (N, N)
    rel_bias = jnp.take(params['bias_table'],
                        jnp.asarray(rel_index.reshape(-1)), axis=0)
    rel_bias = rel_bias.reshape(N, N, H).transpose(2, 0, 1)       # (H, N, N)
    rel_bias = rel_bias.astype(jnp.float32)

    if mask is None:
        nW = 1
        bias = rel_bias[None]                                     # (1, H, N, N)
    else:
        nW = mask.shape[0]
        assert B_ % nW == 0
        bias = rel_bias[None] + mask[:, None].astype(jnp.float32)  # (nW,H,N,N)
    bias = bias.reshape(bias.shape[0], H * N, N)                  # (*, H*N, N)

    # --- windows-per-step tile: always a divisor of B_ (and nW if masked) ---
    tile_b = max(1, min(int(tile_b), B_))
    tile_b = math.gcd(tile_b, B_)
    if mask is not None:
        tile_b = math.gcd(tile_b, nW)
    grid = (B_ // tile_b,)

    if mask is None:
        bias_block = (1, H * N, N)
        bias_index = lambda i: (0, 0, 0)
    else:
        blocks_w = nW // tile_b
        bias_block = (tile_b, H * N, N)
        bias_index = lambda i: (i % blocks_w, 0, 0)   # window idx = b % nW

    bqkv = params['b_qkv'].reshape(1, 3 * C)
    bproj = params['b_proj'].reshape(1, C)

    kernel = functools.partial(_window_attention_kernel,
                               num_heads=H, scale=scale)

    return pl.pallas_call(
        kernel,
        out_shape=jax.ShapeDtypeStruct((B_, N, C), x.dtype),
        grid_spec=pltpu.PrefetchScalarGridSpec(
            num_scalar_prefetch=0,
            grid=grid,
            in_specs=[
                pl.BlockSpec((tile_b, N, C), lambda i: (i, 0, 0)),  # x tile
                # constant-index operands: resident across grid steps
                pl.BlockSpec((C, 3 * C), lambda i: (0, 0)),         # Wqkv
                pl.BlockSpec((1, 3 * C), lambda i: (0, 0)),         # bqkv
                pl.BlockSpec(bias_block, bias_index),               # bias(+mask)
                pl.BlockSpec((C, C), lambda i: (0, 0)),             # Wproj
                pl.BlockSpec((1, C), lambda i: (0, 0)),             # bproj
            ],
            out_specs=pl.BlockSpec((tile_b, N, C), lambda i: (i, 0, 0)),
        ),
        compiler_params=pltpu.CompilerParams(
            dimension_semantics=("parallel",),          # megacore / v7x 2-TC
            vmem_limit_bytes=48 * 1024 * 1024,          # headroom on v7x 64MiB
        ),
    )(x, params['w_qkv'], bqkv, bias, params['w_proj'], bproj)


def init_window_attention_params(key, dim, window_size, num_heads,
                                 dtype=jnp.float32):
    """Deterministic synthetic params (nn.Linear-style uniform init); weights
    stored transposed as [in, out]."""
    Wh, Ww = window_size
    num_rel = (2 * Wh - 1) * (2 * Ww - 1)
    k1, k2, k3, k4, k5 = jax.random.split(key, 5)
    bound = 1.0 / math.sqrt(dim)
    uni = lambda k, shape: jax.random.uniform(k, shape, minval=-bound,
                                              maxval=bound, dtype=dtype)
    return {
        'w_qkv': uni(k1, (dim, 3 * dim)),
        'b_qkv': uni(k2, (3 * dim,)),
        'w_proj': uni(k3, (dim, dim)),
        'b_proj': uni(k4, (dim,)),
        # ~ trunc_normal(std=0.02) (synthetic)
        'bias_table': (0.02 * jax.random.normal(k5, (num_rel, num_heads))
                       ).astype(dtype),
    }


def window_attention_reference(x, params, window_size, num_heads, mask=None):
    """Pure-JAX mirror of the PyTorch forward (high-precision matmuls)."""
    B_, N, C = x.shape
    H = num_heads
    hd = C // H
    scale = float(hd) ** -0.5
    Wh, Ww = window_size
    prec = jax.lax.Precision.HIGHEST

    qkv = jnp.einsum('bnc,cd->bnd', x, params['w_qkv'],
                     precision=prec) + params['b_qkv']
    qkv = qkv.reshape(B_, N, 3, H, hd).transpose(2, 0, 3, 1, 4)
    q, k, v = qkv[0] * scale, qkv[1], qkv[2]                  # (B_, H, N, hd)

    attn = jnp.einsum('bhnd,bhmd->bhnm', q, k, precision=prec)

    rel_index = _relative_position_index(Wh, Ww)
    rel_bias = jnp.take(params['bias_table'],
                        jnp.asarray(rel_index.reshape(-1)), axis=0)
    rel_bias = rel_bias.reshape(N, N, H).transpose(2, 0, 1)
    attn = attn + rel_bias[None]

    if mask is not None:
        nW = mask.shape[0]
        attn = attn.reshape(B_ // nW, nW, H, N, N) + mask[None, :, None]
        attn = attn.reshape(B_, H, N, N)
    attn = jax.nn.softmax(attn, axis=-1)

    out = jnp.einsum('bhnm,bhmd->bhnd', attn, v, precision=prec)
    out = out.transpose(0, 2, 1, 3).reshape(B_, N, C)
    return jnp.einsum('bnc,cd->bnd', out, params['w_proj'],
                      precision=prec) + params['b_proj']


# ----------------------------------------------------------------------------
# Self-test
# ----------------------------------------------------------------------------
if __name__ == "__main__":
    key = jax.random.PRNGKey(0)
    k_x, k_p, k_m = jax.random.split(key, 3)

    dim = 128                      # lane-dense C (multiple of 128)
    num_heads = 4                  # head_dim = 32
    window_size = (8, 8)           # N = 64 (multiple of 8)
    N = window_size[0] * window_size[1]
    B, nW = 2, 2
    B_ = B * nW                    # 4 windows total

    x = jax.random.normal(k_x, (B_, N, dim), dtype=jnp.float32)
    params = init_window_attention_params(k_p, dim, window_size, num_heads)

    # --- plain W-MSA (mask=None) --------------------------------------------
    out = window_attention_pallas(x, params, window_size, num_heads,
                                  mask=None, tile_b=4)
    out = jax.block_until_ready(out)
    ref = window_attention_reference(x, params, window_size, num_heads)
    assert out.shape == (B_, N, dim)
    assert jnp.allclose(out, ref, atol=1e-3, rtol=1e-3), "mismatch (no mask)"

    # --- shifted-window style mask (0 / -100 per window) ---------------------
    mask = jnp.where(jax.random.bernoulli(k_m, 0.5, (nW, N, N)),
                     0.0, -100.0).astype(jnp.float32)
    out_m = window_attention_pallas(x, params, window_size, num_heads,
                                    mask=mask, tile_b=2)
    out_m = jax.block_until_ready(out_m)
    ref_m = window_attention_reference(x, params, window_size, num_heads,
                                       mask=mask)
    assert jnp.allclose(out_m, ref_m, atol=1e-3, rtol=1e-3), "mismatch (mask)"

    print("KERNEL_OK")
</pallas_src>

<mosaic_0001>
module attributes {stable_mosaic.version = 11 : i64} {
  func.func @_window_attention_kernel(%arg0: i32, %arg1: memref<4x64x128xf32, #tpu.memory_space<vmem>>, %arg2: memref<128x384xf32, #tpu.memory_space<vmem>>, %arg3: memref<1x384xf32, #tpu.memory_space<vmem>>, %arg4: memref<1x256x64xf32, #tpu.memory_space<vmem>>, %arg5: memref<128x128xf32, #tpu.memory_space<vmem>>, %arg6: memref<1x128xf32, #tpu.memory_space<vmem>>, %arg7: memref<4x64x128xf32, #tpu.memory_space<vmem>>) attributes {dimension_semantics = [#tpu.dimension_semantics<parallel>], iteration_bounds = array<i64: 1>, scalar_prefetch = 0 : i64, scratch_operands = 0 : i64, tpu.core_type = #tpu.core_type<tc>, window_params = [{transform_indices = @transform_0, window_bounds = array<i64: 4, 64, 128>}, {pipeline_mode = #tpu.pipeline_mode<synchronous>, transform_indices = @transform_1, window_bounds = array<i64: 128, 384>}, {pipeline_mode = #tpu.pipeline_mode<synchronous>, transform_indices = @transform_2, window_bounds = array<i64: 1, 384>}, {pipeline_mode = #tpu.pipeline_mode<synchronous>, transform_indices = @transform_3, window_bounds = array<i64: 1, 256, 64>}, {pipeline_mode = #tpu.pipeline_mode<synchronous>, transform_indices = @transform_4, window_bounds = array<i64: 128, 128>}, {pipeline_mode = #tpu.pipeline_mode<synchronous>, transform_indices = @transform_5, window_bounds = array<i64: 1, 128>}, {transform_indices = @transform_6, window_bounds = array<i64: 4, 64, 128>}]} {
    %c0 = arith.constant 0 : index
    %c0_0 = arith.constant 0 : index
    %c0_1 = arith.constant 0 : index
    %0 = vector.load %arg1[%c0, %c0_0, %c0_1] : memref<4x64x128xf32, #tpu.memory_space<vmem>>, vector<4x64x128xf32>
    %1 = vector.shape_cast %0 : vector<4x64x128xf32> to vector<256x128xf32>
    %c0_2 = arith.constant 0 : index
    %c0_3 = arith.constant 0 : index
    %2 = vector.load %arg2[%c0_2, %c0_3] : memref<128x384xf32, #tpu.memory_space<vmem>>, vector<128x384xf32>
    %cst = arith.constant dense<0.000000e+00> : vector<256x384xf32>
    %3 = tpu.matmul %1, %2, %cst {dimension_numbers = #tpu.dot_dimension_numbers<[1], [0], [0], [1], [0, 0, 1, 1], [], []>} : vector<256x128xf32>, vector<128x384xf32>, vector<256x384xf32> -> vector<256x384xf32>
    %c0_4 = arith.constant 0 : index
    %c0_5 = arith.constant 0 : index
    %4 = vector.load %arg3[%c0_4, %c0_5] : memref<1x384xf32, #tpu.memory_space<vmem>>, vector<1x384xf32>
    %5 = vector.broadcast %4 : vector<1x384xf32> to vector<256x384xf32>
    %6 = arith.addf %3, %5 : vector<256x384xf32>
    %7 = vector.extract_strided_slice %6 {offsets = [0, 0], sizes = [256, 32], strides = [1, 1]} : vector<256x384xf32> to vector<256x32xf32>
    %8 = vector.shape_cast %7 : vector<256x32xf32> to vector<4x64x32xf32>
    %cst_6 = arith.constant 0.176776692 : f32
    %9 = vector.broadcast %cst_6 : f32 to vector<4x64x32xf32>
    %10 = arith.mulf %8, %9 : vector<4x64x32xf32>
    %11 = vector.extract_strided_slice %6 {offsets = [0, 128], sizes = [256, 32], strides = [1, 1]} : vector<256x384xf32> to vector<256x32xf32>
    %12 = vector.shape_cast %11 : vector<256x32xf32> to vector<4x64x32xf32>
    %13 = vector.extract_strided_slice %6 {offsets = [0, 256], sizes = [256, 32], strides = [1, 1]} : vector<256x384xf32> to vector<256x32xf32>
    %14 = vector.shape_cast %13 : vector<256x32xf32> to vector<4x64x32xf32>
    "tpu.trace_start"() <{level = 10 : i32, message = "bnd,bmd->bnm"}> : () -> ()
    %cst_7 = arith.constant dense<0.000000e+00> : vector<4x64x64xf32>
    %15 = tpu.matmul %10, %12, %cst_7 {dimension_numbers = #tpu.dot_dimension_numbers<[2], [2], [1], [1], [0, 0, 0, 1, 1, 1], [0], [0]>} : vector<4x64x32xf32>, vector<4x64x32xf32>, vector<4x64x64xf32> -> vector<4x64x64xf32>
    "tpu.trace_stop"() : () -> ()
    %c0_8 = arith.constant 0 : index
    %c0_9 = arith.constant 0 : index
    %c0_10 = arith.constant 0 : index
    %16 = vector.load %arg4[%c0_8, %c0_9, %c0_10] : memref<1x256x64xf32, #tpu.memory_space<vmem>>, vector<1x64x64xf32>
    %17 = vector.broadcast %16 : vector<1x64x64xf32> to vector<4x64x64xf32>
    %18 = arith.addf %15, %17 : vector<4x64x64xf32>
    %cst_11 = arith.constant dense<0xFF800000> : vector<4x64xf32>
    %19 = vector.multi_reduction <maximumf>, %18, %cst_11 [2] : vector<4x64x64xf32> to vector<4x64xf32>
    %cst_12 = arith.constant 0xFF800000 : f32
    %20 = vector.broadcast %cst_12 : f32 to vector<4x64xf32>
    %21 = arith.maximumf %20, %19 : vector<4x64xf32>
    %22 = vector.shape_cast %21 : vector<4x64xf32> to vector<4x64x1xf32>
    %23 = vector.broadcast %22 : vector<4x64x1xf32> to vector<4x64x64xf32>
    %24 = arith.subf %18, %23 : vector<4x64x64xf32>
    %25 = math.exp %24 : vector<4x64x64xf32>
    %cst_13 = arith.constant dense<0.000000e+00> : vector<4x64xf32>
    %26 = vector.multi_reduction <add>, %25, %cst_13 [2] : vector<4x64x64xf32> to vector<4x64xf32>
    %27 = vector.shape_cast %26 : vector<4x64xf32> to vector<4x64x1xf32>
    %28 = vector.broadcast %27 : vector<4x64x1xf32> to vector<4x64x64xf32>
    %29 = arith.divf %25, %28 : vector<4x64x64xf32>
    "tpu.trace_start"() <{level = 10 : i32, message = "bnm,bmd->bnd"}> : () -> ()
    %cst_14 = arith.constant dense<0.000000e+00> : vector<4x64x32xf32>
    %30 = tpu.matmul %29, %14, %cst_14 {dimension_numbers = #tpu.dot_dimension_numbers<[2], [1], [1], [2], [0, 0, 0, 1, 1, 2], [0], [0]>} : vector<4x64x64xf32>, vector<4x64x32xf32>, vector<4x64x32xf32> -> vector<4x64x32xf32>
    "tpu.trace_stop"() : () -> ()
    %31 = vector.shape_cast %30 : vector<4x64x32xf32> to vector<256x32xf32>
    %c0_15 = arith.constant 0 : index
    %c0_16 = arith.constant 0 : index
    %32 = vector.load %arg5[%c0_15, %c0_16] : memref<128x128xf32, #tpu.memory_space<vmem>>, vector<32x128xf32>
    %cst_17 = arith.constant dense<0.000000e+00> : vector<256x128xf32>
    %33 = tpu.matmul %31, %32, %cst_17 {dimension_numbers = #tpu.dot_dimension_numbers<[1], [0], [0], [1], [0, 0, 1, 1], [], []>} : vector<256x32xf32>, vector<32x128xf32>, vector<256x128xf32> -> vector<256x128xf32>
    %34 = vector.extract_strided_slice %6 {offsets = [0, 32], sizes = [256, 32], strides = [1, 1]} : vector<256x384xf32> to vector<256x32xf32>
    %35 = vector.shape_cast %34 : vector<256x32xf32> to vector<4x64x32xf32>
    %cst_18 = arith.constant 0.176776692 : f32
    %36 = vector.broadcast %cst_18 : f32 to vector<4x64x32xf32>
    %37 = arith.mulf %35, %36 : vector<4x64x32xf32>
    %38 = vector.extract_strided_slice %6 {offsets = [0, 160], sizes = [256, 32], strides = [1, 1]} : vector<256x384xf32> to vector<256x32xf32>
    %39 = vector.shape_cast %38 : vector<256x32xf32> to vector<4x64x32xf32>
    %40 = vector.extract_strided_slice %6 {offsets = [0, 288], sizes = [256, 32], strides = [1, 1]} : vector<256x384xf32> to vector<256x32xf32>
    %41 = vector.shape_cast %40 : vector<256x32xf32> to vector<4x64x32xf32>
    "tpu.trace_start"() <{level = 10 : i32, message = "bnd,bmd->bnm"}> : () -> ()
    %cst_19 = arith.constant dense<0.000000e+00> : vector<4x64x64xf32>
    %42 = tpu.matmul %37, %39, %cst_19 {dimension_numbers = #tpu.dot_dimension_numbers<[2], [2], [1], [1], [0, 0, 0, 1, 1, 1], [0], [0]>} : vector<4x64x32xf32>, vector<4x64x32xf32>, vector<4x64x64xf32> -> vector<4x64x64xf32>
    "tpu.trace_stop"() : () -> ()
    %c0_20 = arith.constant 0 : index
    %c64 = arith.constant 64 : index
    %c0_21 = arith.constant 0 : index
    %43 = vector.load %arg4[%c0_20, %c64, %c0_21] : memref<1x256x64xf32, #tpu.memory_space<vmem>>, vector<1x64x64xf32>
    %44 = vector.broadcast %43 : vector<1x64x64xf32> to vector<4x64x64xf32>
    %45 = arith.addf %42, %44 : vector<4x64x64xf32>
    %cst_22 = arith.constant dense<0xFF800000> : vector<4x64xf32>
    %46 = vector.multi_reduction <maximumf>, %45, %cst_22 [2] : vector<4x64x64xf32> to vector<4x64xf32>
    %cst_23 = arith.constant 0xFF800000 : f32
    %47 = vector.broadcast %cst_23 : f32 to vector<4x64xf32>
    %48 = arith.maximumf %47, %46 : vector<4x64xf32>
    %49 = vector.shape_cast %48 : vector<4x64xf32> to vector<4x64x1xf32>
    %50 = vector.broadcast %49 : vector<4x64x1xf32> to vector<4x64x64xf32>
    %51 = arith.subf %45, %50 : vector<4x64x64xf32>
    %52 = math.exp %51 : vector<4x64x64xf32>
    %cst_24 = arith.constant dense<0.000000e+00> : vector<4x64xf32>
    %53 = vector.multi_reduction <add>, %52, %cst_24 [2] : vector<4x64x64xf32> to vector<4x64xf32>
    %54 = vector.shape_cast %53 : vector<4x64xf32> to vector<4x64x1xf32>
    %55 = vector.broadcast %54 : vector<4x64x1xf32> to vector<4x64x64xf32>
    %56 = arith.divf %52, %55 : vector<4x64x64xf32>
    "tpu.trace_start"() <{level = 10 : i32, message = "bnm,bmd->bnd"}> : () -> ()
    %cst_25 = arith.constant dense<0.000000e+00> : vector<4x64x32xf32>
    %57 = tpu.matmul %56, %41, %cst_25 {dimension_numbers = #tpu.dot_dimension_numbers<[2], [1], [1], [2], [0, 0, 0, 1, 1, 2], [0], [0]>} : vector<4x64x64xf32>, vector<4x64x32xf32>, vector<4x64x32xf32> -> vector<4x64x32xf32>
    "tpu.trace_stop"() : () -> ()
    %58 = vector.shape_cast %57 : vector<4x64x32xf32> to vector<256x32xf32>
    %c32 = arith.constant 32 : index
    %c0_26 = arith.constant 0 : index
    %59 = vector.load %arg5[%c32, %c0_26] : memref<128x128xf32, #tpu.memory_space<vmem>>, vector<32x128xf32>
    %cst_27 = arith.constant dense<0.000000e+00> : vector<256x128xf32>
    %60 = tpu.matmul %58, %59, %cst_27 {dimension_numbers = #tpu.dot_dimension_numbers<[1], [0], [0], [1], [0, 0, 1, 1], [], []>} : vector<256x32xf32>, vector<32x128xf32>, vector<256x128xf32> -> vector<256x128xf32>
    %61 = arith.addf %33, %60 : vector<256x128xf32>
    %62 = vector.extract_strided_slice %6 {offsets = [0, 64], sizes = [256, 32], strides = [1, 1]} : vector<256x384xf32> to vector<256x32xf32>
    %63 = vector.shape_cast %62 : vector<256x32xf32> to vector<4x64x32xf32>
    %cst_28 = arith.constant 0.176776692 : f32
    %64 = vector.broadcast %cst_28 : f32 to vector<4x64x32xf32>
    %65 = arith.mulf %63, %64 : vector<4x64x32xf32>
    %66 = vector.extract_strided_slice %6 {offsets = [0, 192], sizes = [256, 32], strides = [1, 1]} : vector<256x384xf32> to vector<256x32xf32>
    %67 = vector.shape_cast %66 : vector<256x32xf32> to vector<4x64x32xf32>
    %68 = vector.extract_strided_slice %6 {offsets = [0, 320], sizes = [256, 32], strides = [1, 1]} : vector<256x384xf32> to vector<256x32xf32>
    %69 = vector.shape_cast %68 : vector<256x32xf32> to vector<4x64x32xf32>
    "tpu.trace_start"() <{level = 10 : i32, message = "bnd,bmd->bnm"}> : () -> ()
    %cst_29 = arith.constant dense<0.000000e+00> : vector<4x64x64xf32>
    %70 = tpu.matmul %65, %67, %cst_29 {dimension_numbers = #tpu.dot_dimension_numbers<[2], [2], [1], [1], [0, 0, 0, 1, 1, 1], [0], [0]>} : vector<4x64x32xf32>, vector<4x64x32xf32>, vector<4x64x64xf32> -> vector<4x64x64xf32>
    "tpu.trace_stop"() : () -> ()
    %c0_30 = arith.constant 0 : index
    %c128 = arith.constant 128 : index
    %c0_31 = arith.constant 0 : index
    %71 = vector.load %arg4[%c0_30, %c128, %c0_31] : memref<1x256x64xf32, #tpu.memory_space<vmem>>, vector<1x64x64xf32>
    %72 = vector.broadcast %71 : vector<1x64x64xf32> to vector<4x64x64xf32>
    %73 = arith.addf %70, %72 : vector<4x64x64xf32>
    %cst_32 = arith.constant dense<0xFF800000> : vector<4x64xf32>
    %74 = vector.multi_reduction <maximumf>, %73, %cst_32 [2] : vector<4x64x64xf32> to vector<4x64xf32>
    %cst_33 = arith.constant 0xFF800000 : f32
    %75 = vector.broadcast %cst_33 : f32 to vector<4x64xf32>
    %76 = arith.maximumf %75, %74 : vector<4x64xf32>
    %77 = vector.shape_cast %76 : vector<4x64xf32> to vector<4x64x1xf32>
    %78 = vector.broadcast %77 : vector<4x64x1xf32> to vector<4x64x64xf32>
    %79 = arith.subf %73, %78 : vector<4x64x64xf32>
    %80 = math.exp %79 : vector<4x64x64xf32>
    %cst_34 = arith.constant dense<0.000000e+00> : vector<4x64xf32>
    %81 = vector.multi_reduction <add>, %80, %cst_34 [2] : vector<4x64x64xf32> to vector<4x64xf32>
    %82 = vector.shape_cast %81 : vector<4x64xf32> to vector<4x64x1xf32>
    %83 = vector.broadcast %82 : vector<4x64x1xf32> to vector<4x64x64xf32>
    %84 = arith.divf %80, %83 : vector<4x64x64xf32>
    "tpu.trace_start"() <{level = 10 : i32, message = "bnm,bmd->bnd"}> : () -> ()
    %cst_35 = arith.constant dense<0.000000e+00> : vector<4x64x32xf32>
    %85 = tpu.matmul %84, %69, %cst_35 {dimension_numbers = #tpu.dot_dimension_numbers<[2], [1], [1], [2], [0, 0, 0, 1, 1, 2], [0], [0]>} : vector<4x64x64xf32>, vector<4x64x32xf32>, vector<4x64x32xf32> -> vector<4x64x32xf32>
    "tpu.trace_stop"() : () -> ()
    %86 = vector.shape_cast %85 : vector<4x64x32xf32> to vector<256x32xf32>
    %c64_36 = arith.constant 64 : index
    %c0_37 = arith.constant 0 : index
    %87 = vector.load %arg5[%c64_36, %c0_37] : memref<128x128xf32, #tpu.memory_space<vmem>>, vector<32x128xf32>
    %cst_38 = arith.constant dense<0.000000e+00> : vector<256x128xf32>
    %88 = tpu.matmul %86, %87, %cst_38 {dimension_numbers = #tpu.dot_dimension_numbers<[1], [0], [0], [1], [0, 0, 1, 1], [], []>} : vector<256x32xf32>, vector<32x128xf32>, vector<256x128xf32> -> vector<256x128xf32>
    %89 = arith.addf %61, %88 : vector<256x128xf32>
    %90 = vector.extract_strided_slice %6 {offsets = [0, 96], sizes = [256, 32], strides = [1, 1]} : vector<256x384xf32> to vector<256x32xf32>
    %91 = vector.shape_cast %90 : vector<256x32xf32> to vector<4x64x32xf32>
    %cst_39 = arith.constant 0.176776692 : f32
    %92 = vector.broadcast %cst_39 : f32 to vector<4x64x32xf32>
    %93 = arith.mulf %91, %92 : vector<4x64x32xf32>
    %94 = vector.extract_strided_slice %6 {offsets = [0, 224], sizes = [256, 32], strides = [1, 1]} : vector<256x384xf32> to vector<256x32xf32>
    %95 = vector.shape_cast %94 : vector<256x32xf32> to vector<4x64x32xf32>
    %96 = vector.extract_strided_slice %6 {offsets = [0, 352], sizes = [256, 32], strides = [1, 1]} : vector<256x384xf32> to vector<256x32xf32>
    %97 = vector.shape_cast %96 : vector<256x32xf32> to vector<4x64x32xf32>
    "tpu.trace_start"() <{level = 10 : i32, message = "bnd,bmd->bnm"}> : () -> ()
    %cst_40 = arith.constant dense<0.000000e+00> : vector<4x64x64xf32>
    %98 = tpu.matmul %93, %95, %cst_40 {dimension_numbers = #tpu.dot_dimension_numbers<[2], [2], [1], [1], [0, 0, 0, 1, 1, 1], [0], [0]>} : vector<4x64x32xf32>, vector<4x64x32xf32>, vector<4x64x64xf32> -> vector<4x64x64xf32>
    "tpu.trace_stop"() : () -> ()
    %c0_41 = arith.constant 0 : index
    %c192 = arith.constant 192 : index
    %c0_42 = arith.constant 0 : index
    %99 = vector.load %arg4[%c0_41, %c192, %c0_42] : memref<1x256x64xf32, #tpu.memory_space<vmem>>, vector<1x64x64xf32>
    %100 = vector.broadcast %99 : vector<1x64x64xf32> to vector<4x64x64xf32>
    %101 = arith.addf %98, %100 : vector<4x64x64xf32>
    %cst_43 = arith.constant dense<0xFF800000> : vector<4x64xf32>
    %102 = vector.multi_reduction <maximumf>, %101, %cst_43 [2] : vector<4x64x64xf32> to vector<4x64xf32>
    %cst_44 = arith.constant 0xFF800000 : f32
    %103 = vector.broadcast %cst_44 : f32 to vector<4x64xf32>
    %104 = arith.maximumf %103, %102 : vector<4x64xf32>
    %105 = vector.shape_cast %104 : vector<4x64xf32> to vector<4x64x1xf32>
    %106 = vector.broadcast %105 : vector<4x64x1xf32> to vector<4x64x64xf32>
    %107 = arith.subf %101, %106 : vector<4x64x64xf32>
    %108 = math.exp %107 : vector<4x64x64xf32>
    %cst_45 = arith.constant dense<0.000000e+00> : vector<4x64xf32>
    %109 = vector.multi_reduction <add>, %108, %cst_45 [2] : vector<4x64x64xf32> to vector<4x64xf32>
    %110 = vector.shape_cast %109 : vector<4x64xf32> to vector<4x64x1xf32>
    %111 = vector.broadcast %110 : vector<4x64x1xf32> to vector<4x64x64xf32>
    %112 = arith.divf %108, %111 : vector<4x64x64xf32>
    "tpu.trace_start"() <{level = 10 : i32, message = "bnm,bmd->bnd"}> : () -> ()
    %cst_46 = arith.constant dense<0.000000e+00> : vector<4x64x32xf32>
    %113 = tpu.matmul %112, %97, %cst_46 {dimension_numbers = #tpu.dot_dimension_numbers<[2], [1], [1], [2], [0, 0, 0, 1, 1, 2], [0], [0]>} : vector<4x64x64xf32>, vector<4x64x32xf32>, vector<4x64x32xf32> -> vector<4x64x32xf32>
    "tpu.trace_stop"() : () -> ()
    %114 = vector.shape_cast %113 : vector<4x64x32xf32> to vector<256x32xf32>
    %c96 = arith.constant 96 : index
    %c0_47 = arith.constant 0 : index
    %115 = vector.load %arg5[%c96, %c0_47] : memref<128x128xf32, #tpu.memory_space<vmem>>, vector<32x128xf32>
    %cst_48 = arith.constant dense<0.000000e+00> : vector<256x128xf32>
    %116 = tpu.matmul %114, %115, %cst_48 {dimension_numbers = #tpu.dot_dimension_numbers<[1], [0], [0], [1], [0, 0, 1, 1], [], []>} : vector<256x32xf32>, vector<32x128xf32>, vector<256x128xf32> -> vector<256x128xf32>
    %117 = arith.addf %89, %116 : vector<256x128xf32>
    %c0_49 = arith.constant 0 : index
    %c0_50 = arith.constant 0 : index
    %118 = vector.load %arg6[%c0_49, %c0_50] : memref<1x128xf32, #tpu.memory_space<vmem>>, vector<1x128xf32>
    %119 = vector.broadcast %118 : vector<1x128xf32> to vector<256x128xf32>
    %120 = arith.addf %117, %119 : vector<256x128xf32>
    %121 = vector.shape_cast %120 : vector<256x128xf32> to vector<4x64x128xf32>
    %c0_51 = arith.constant 0 : index
    %c0_52 = arith.constant 0 : index
    %c0_53 = arith.constant 0 : index
    %122 = vector.load %arg7[%c0_51, %c0_52, %c0_53] : memref<4x64x128xf32, #tpu.memory_space<vmem>>, vector<4x64x128xf32>
    tpu.vector_store %arg7[%c0_51, %c0_52, %c0_53], %121 {strides = array<i32>} : memref<4x64x128xf32, #tpu.memory_space<vmem>>, vector<4x64x128xf32>,
    return
  }
  func.func @transform_0(%arg0: i32) -> (i32, i32, i32) {
    %c0_i32 = arith.constant 0 : i32
    %c0_i32_0 = arith.constant 0 : i32
    %c0_i32_1 = arith.constant 0 : i32
    return %arg0, %c0_i32, %c0_i32_0 : i32, i32, i32
  }
  func.func @transform_1(%arg0: i32) -> (i32, i32) {
    %c0_i32 = arith.constant 0 : i32
    %c0_i32_0 = arith.constant 0 : i32
    %c0_i32_1 = arith.constant 0 : i32
    return %c0_i32, %c0_i32_0 : i32, i32
  }
  func.func @transform_2(%arg0: i32) -> (i32, i32) {
    %c0_i32 = arith.constant 0 : i32
    %c0_i32_0 = arith.constant 0 : i32
    %c0_i32_1 = arith.constant 0 : i32
    return %c0_i32, %c0_i32_0 : i32, i32
  }
  func.func @transform_3(%arg0: i32) -> (i32, i32, i32) {
    %c0_i32 = arith.constant 0 : i32
    %c0_i32_0 = arith.constant 0 : i32
    %c0_i32_1 = arith.constant 0 : i32
    %c0_i32_2 = arith.constant 0 : i32
    return %c0_i32, %c0_i32_0, %c0_i32_1 : i32, i32, i32
  }
  func.func @transform_4(%arg0: i32) -> (i32, i32) {
    %c0_i32 = arith.constant 0 : i32
    %c0_i32_0 = arith.constant 0 : i32
    %c0_i32_1 = arith.constant 0 : i32
    return %c0_i32, %c0_i32_0 : i32, i32
  }
  func.func @transform_5(%arg0: i32) -> (i32, i32) {
    %c0_i32 = arith.constant 0 : i32
    %c0_i32_0 = arith.constant 0 : i32
    %c0_i32_1 = arith.constant 0 : i32
    return %c0_i32, %c0_i32_0 : i32, i32
  }
  func.func @transform_6(%arg0: i32) -> (i32, i32, i32) {
    %c0_i32 = arith.constant 0 : i32
    %c0_i32_0 = arith.constant 0 : i32
    %c0_i32_1 = arith.constant 0 : i32
    return %arg0, %c0_i32, %c0_i32_0 : i32, i32, i32
  }
}

</mosaic_0001>

<bundles_post_ra>
// kernel: tpu_custom_call.1
= control target key start
LH: loop header
LB: loop body
LE: loop exit
PB: predicated region body
PF: predicated region fallthrough
CT: control target
= control target key end

     0   :  { %11 = vsyncpa [#allocation3], 0  ;;  %s16281_s0 = inlined_call_operand.hbm [shape: f32[4,64,128], index: 0, kind: input, shape index: {}]   ;;  %s16282_s1 = inlined_call_operand.vmem [shape: f32[128,384], index: 1, kind: input, shape index: {}]   ;;  %s16283_s2 = inlined_call_operand.hbm [shape: f32[1,384], index: 2, kind: input, shape index: {}]   ;;  %s16284_s3 = inlined_call_operand.vmem [shape: f32[1,256,64], index: 3, kind: input, shape index: {}]   ;;  %s16285_s4 = inlined_call_operand.hbm [shape: f32[128,128], index: 4, kind: input, shape index: {}]   ;;  %s16286_s5 = inlined_call_operand.vmem [shape: f32[1,128], index: 5, kind: input, shape index: {}]   ;;  %s16287_s6 = inlined_call_operand.hbm [shape: f32[4,64,128], index: 6, kind: output, shape index: {}]  }
   0x1   :  { %12 = vsyncpa [#allocation6], 0 }
   0x2   :  { %13 = vsyncpa [#allocation4], 0  ;;  %s11626_s21 = smov [#allocation5]   ;;  %s11627_s23 = smov [#allocation2]  }
   0x3   :  { %s34_s22 = sshll.u32 %s11626_s21, 4  ;;  %s19_s24 = sshll.u32 %s11627_s23, 4  ;;  %s35_s22 = int_to_ptr.vmem [resolvable:$true] %s34_s22  ;;  %s20_s24 = int_to_ptr.vmem [resolvable:$true] %s19_s24 }
   0x4   :  { %s11548_s25 = scalar_lea.vmem %s35_s22, 48  ;;  %s11552_s26 = scalar_lea.vmem %s35_s22, 64 }
   0x5   :  { %p11549_p0 = scmp.ne.s32.totalorder %s35_s22, %s11548_s25  ;;  %p11553_p1 = scmp.lt.s32.totalorder %s35_s22, %s35_s22 }
   0x6   :  { %p11554_p2 = scmp.lt.s32.totalorder %s11552_s26, %s11548_s25 }
   0x8   :  { %p11555_p3 = por %p11554_p2, %p11553_p1 }
   0xa   :  { %p11556_p4 = pnand %p11555_p3, %p11549_p0 }
   0xc   :  { %11559 = shalt.err (!%p11556_p4)
}
   0xd   :  { %37 = dma.hbm_to_vmem [thread:$0]  %s16283_s2, 48, %s35_s22, [#allocation6]  }
   0xe   :  { %s11568_s29 = scalar_lea.vmem %s20_s24, 4096  ;;  %p11573_p6 = scmp.lt.s32.totalorder %s20_s24, %s20_s24 }
   0xf   :  { %p11569_p5 = scmp.ne.s32.totalorder %s20_s24, %s11568_s29  ;;  %p11574_p7 = scmp.lt.s32.totalorder %s11568_s29, %s11568_s29 }
  0x11   :  { %p11575_p8 = por %p11574_p7, %p11573_p6 }
  0x13   :  { %p11576_p9 = pnand %p11575_p8, %p11569_p5 }
  0x15   :  { %11579 = shalt.err (!%p11576_p9)
}
  0x16   :  { %s11628_s30 = smov 128   ;;  %s11629_s7 = smov 8  }
  0x17   :  { %25 = dma.hbm_to_vmem [thread:$0]  %s16281_s0, 4096, %s20_s24, [#allocation3], %s11628_s30, %s11628_s30, %s11629_s7  }
  0x18   :  { %s11630_s10 = smov [#allocation7]  }
  0x19   :  { %s45_s11 = sshll.u32 %s11630_s10, 4  ;;  %s46_s11 = int_to_ptr.vmem [resolvable:$true] %s45_s11 }
  0x1a   :  { %s11588_s2 = scalar_lea.vmem %s46_s11, 2048  ;;  %p11593_p11 = scmp.lt.s32.totalorder %s46_s11, %s46_s11 }
  0x1b   :  { %p11589_p10 = scmp.ne.s32.totalorder %s46_s11, %s11588_s2  ;;  %p11594_p12 = scmp.lt.s32.totalorder %s11588_s2, %s11588_s2 }
  0x1d   :  { %p11595_p13 = por %p11594_p12, %p11593_p11 }
  0x1f   :  { %p11596_p0 = pnand %p11595_p13, %p11589_p10 }
  0x21   :  { %11599 = shalt.err (!%p11596_p0)
}
  0x22   :  { %51 = dma.hbm_to_vmem [thread:$0]  %s16285_s4, 2048, %s46_s11, [#allocation6], %s11628_s30, %s11628_s30, %s11629_s7  }
  0x23   :  { %11620 = dma.done.wait [#allocation3], 4096  }
  0x24   :  { %11621 = vsyncadd [#allocation3], 4294963200 }
  0x25   :  { %11622 = dma.done.wait [#allocation6], 2096  }
  0x26   :  { %11623 = vsyncadd [#allocation6], 4294965200  ;;  %v11631_v0 = vmov 0.0   ;;  %v141_v1 = vld [vmem:[%s16282_s1 + $0x170] sm:$0xff]  ;;  %v140_v2 = vld [vmem:[%s16282_s1 + $0x168] sm:$0xff]  ;;  %vm682_vm0 = vcmask 261120  }
  0x27   :  { %224 = vmatprep.mubr.f32.mxu0 %v11631_v0  ;;  %v138_v3 = vld [vmem:[%s16282_s1 + $0x158] sm:$0xff]  ;;  %160 = vmatprep.subr.mxu0 %v141_v1  ;;  %v137_v4 = vld [vmem:[%s16282_s1 + $0x150] sm:$0xff]  ;;  %v135_v5 = vld [vmem:[%s16282_s1 + $0x140] sm:$0xff]  ;;  %vm1295_vm1 = vcmask 523264   ;;  %s11633_s16 = smov 64   ;;  %s11634_s9 = smov 32  }
  0x28   :  { %161 = vmatpush1.msra.mxu0 %v140_v2  ;;  %v134_v6 = vld [vmem:[%s16282_s1 + $0x138] sm:$0xff]  ;;  %v132_v7 = vld [vmem:[%s16282_s1 + $0x128] sm:$0xff]  ;;  %v131_v8 = vld [vmem:[%s16282_s1 + $0x120] sm:$0xff] }
  0x29   :  { %162 = vmatprep.subr.mxu0 %v138_v3  ;;  %v129_v9 = vld [vmem:[%s16282_s1 + $0x110] sm:$0xff]  ;;  %v128_v10 = vld [vmem:[%s16282_s1 + $0x108] sm:$0xff]  ;;  %v126_v11 = vld [vmem:[%s16282_s1 + $0xf8] sm:$0xff] }
  0x2a   :  { %163 = vmatpush1.msra.mxu0 %v137_v4  ;;  %v125_v12 = vld [vmem:[%s16282_s1 + $0xf0] sm:$0xff]  ;;  %v123_v13 = vld [vmem:[%s16282_s1 + $0xe0] sm:$0xff]  ;;  %v122_v15 = vld [vmem:[%s16282_s1 + $0xd8] sm:$0xff] }
  0x2b   :  { %164 = vmatprep.subr.mxu0 %v135_v5  ;;  %v11726_v14 = vld [vmem:[#allocation2] sm:$0xff]  ;;  %v120_v16 = vld [vmem:[%s16282_s1 + $0xc8] sm:$0xff]  ;;  %v117_v18 = vld [vmem:[%s16282_s1 + $0xb0] sm:$0xff] }
  0x2c   :  { %165 = vmatpush1.msra.mxu0 %v134_v6  ;;  %9842 = vmatprep.mubr.f32.mxu1 %v11726_v14  ;;  %v119_v17 = vld [vmem:[%s16282_s1 + $0xc0] sm:$0xff]  ;;  %v116_v19 = vld [vmem:[%s16282_s1 + $0xa8] sm:$0xff]  ;;  %v114_v20 = vld [vmem:[%s16282_s1 + $0x98] sm:$0xff] }
  0x2d   :  { %166 = vmatprep.subr.mxu0 %v132_v7  ;;  %v113_v21 = vld [vmem:[%s16282_s1 + $0x90] sm:$0xff]  ;;  %v111_v22 = vld [vmem:[%s16282_s1 + $0x80] sm:$0xff]  ;;  %v110_v23 = vld [vmem:[%s16282_s1 + $0x78] sm:$0xff] }
  0x2e   :  { %167 = vmatpush1.msra.mxu0 %v131_v8  ;;  %v142_v24 = vld [vmem:[%s16282_s1 + $0x178] sm:$0xff]  ;;  %v108_v25 = vld [vmem:[%s16282_s1 + $0x68] sm:$0xff]  ;;  %v139_v26 = vld [vmem:[%s16282_s1 + $0x160] sm:$0xff] }
  0x2f   :  { %168 = vmatprep.subr.mxu0 %v129_v9  ;;  %9810 = vmatprep.subr.mxu1 %v142_v24  ;;  %v107_v27 = vld [vmem:[%s16282_s1 + $0x60] sm:$0xff]  ;;  %v136_v28 = vld [vmem:[%s16282_s1 + $0x148] sm:$0xff]  ;;  %v105_v29 = vld [vmem:[%s16282_s1 + $0x50] sm:$0xff] }
  0x30   :  { %169 = vmatpush1.msra.mxu0 %v128_v10  ;;  %9811 = vmatpush3.msra.mxu1 %v142_v24  ;;  %v104_v30 = vld [vmem:[%s16282_s1 + $0x48] sm:$0xff]  ;;  %v133_v31 = vld [vmem:[%s16282_s1 + $0x130] sm:$0xff]  ;;  %v102_v32 = vld [vmem:[%s16282_s1 + $0x38] sm:$0xff] }
  0x31   :  { %170 = vmatprep.subr.mxu0 %v126_v11  ;;  %9812 = vmatprep.subr.mxu1 %v139_v26  ;;  %v101_v33 = vld [vmem:[%s16282_s1 + $0x30] sm:$0xff]  ;;  %v130_v34 = vld [vmem:[%s16282_s1 + $0x118] sm:$0xff]  ;;  %v99_v35 = vld [vmem:[%s16282_s1 + $0x20] sm:$0xff] }
  0x32   :  { %171 = vmatpush1.msra.mxu0 %v125_v12  ;;  %9813 = vmatpush3.msra.mxu1 %v139_v26  ;;  %v98_v36 = vld [vmem:[%s16282_s1 + $0x18] sm:$0xff]  ;;  %v127_v37 = vld [vmem:[%s16282_s1 + $0x100] sm:$0xff]  ;;  %v96_v38 = vld [vmem:[%s16282_s1 + $0x8] sm:$0xff] }
  0x33   :  { %172 = vmatprep.subr.mxu0 %v123_v13  ;;  %9814 = vmatprep.subr.mxu1 %v136_v28  ;;  %v95_v39 = vld [vmem:[%s16282_s1] sm:$0xff]  ;;  %v124_v40 = vld [vmem:[%s16282_s1 + $0xe8] sm:$0xff]  ;;  %v121_v41 = vld [vmem:[%s16282_s1 + $0xd0] sm:$0xff] }
  0x34   :  { %173 = vmatpush1.msra.mxu0 %v122_v15  ;;  %9815 = vmatpush3.msra.mxu1 %v136_v28  ;;  %v118_v42 = vld [vmem:[%s16282_s1 + $0xb8] sm:$0xff]  ;;  %v64_v43 = vld [vmem:[#allocation2 + $0x8] sm:$0xff]  ;;  %v115_v44 = vld [vmem:[%s16282_s1 + $0xa0] sm:$0xff] }
  0x35   :  { %174 = vmatprep.subr.mxu0 %v120_v16  ;;  %9816 = vmatprep.subr.mxu1 %v133_v31  ;;  %v112_v45 = vld [vmem:[%s16282_s1 + $0x88] sm:$0xff]  ;;  %v65_v46 = vld [vmem:[#allocation2 + $0x10] sm:$0xff]  ;;  %v106_v48 = vld [vmem:[%s16282_s1 + $0x58] sm:$0xff] }
  0x36   :  { %175 = vmatpush1.msra.mxu0 %v119_v17  ;;  %9817 = vmatpush3.msra.mxu1 %v133_v31  ;;  %v109_v47 = vld [vmem:[%s16282_s1 + $0x70] sm:$0xff]  ;;  %v66_v49 = vld [vmem:[#allocation2 + $0x18] sm:$0xff]  ;;  %v103_v50 = vld [vmem:[%s16282_s1 + $0x40] sm:$0xff] }
  0x37   :  { %176 = vmatprep.subr.mxu0 %v117_v18  ;;  %9818 = vmatprep.subr.mxu1 %v130_v34  ;;  %v100_v51 = vld [vmem:[%s16282_s1 + $0x28] sm:$0xff]  ;;  %v67_v52 = vld [vmem:[#allocation2 + $0x20] sm:$0xff]  ;;  %v97_v53 = vld [vmem:[%s16282_s1 + $0x10] sm:$0xff]  ;;  %v145_v18 = vlaneseq  ;;  %s11632_s1 = smov 96  }
  0x38   :  { %177 = vmatpush1.msra.mxu0 %v116_v19  ;;  %9819 = vmatpush3.msra.mxu1 %v130_v34  ;;  %v68_v54 = vld [vmem:[#allocation2 + $0x28] sm:$0xff]  ;;  %v69_v55 = vld [vmem:[#allocation2 + $0x30] sm:$0xff]  ;;  %v70_v56 = vld [vmem:[#allocation2 + $0x38] sm:$0xff] }
  0x39   :  { %178 = vmatprep.subr.mxu0 %v114_v20  ;;  %9820 = vmatprep.subr.mxu1 %v127_v37  ;;  %v71_v57 = vld [vmem:[#allocation2 + $0x40] sm:$0xff]  ;;  %v72_v58 = vld [vmem:[#allocation2 + $0x48] sm:$0xff]  ;;  %v73_v59 = vld [vmem:[#allocation2 + $0x50] sm:$0xff]  ;;  %v11866_v19 = vshrl.u32 %v145_v18, 7 }
  0x3a   :  { %179 = vmatpush1.msra.mxu0 %v113_v21  ;;  %9821 = vmatpush3.msra.mxu1 %v127_v37  ;;  %v74_v60 = vld [vmem:[#allocation2 + $0x58] sm:$0xff]  ;;  %v75_v61 = vld [vmem:[#allocation2 + $0x60] sm:$0xff]  ;;  %v76_v62 = vld [vmem:[#allocation2 + $0x68] sm:$0xff] }
  0x3b   :  { %180 = vmatprep.subr.mxu0 %v111_v22  ;;  %9822 = vmatprep.subr.mxu1 %v124_v40  ;;  %v77_v63 = vld [vmem:[#allocation2 + $0x70] sm:$0xff]  ;;  %v78_v1 = vld [vmem:[#allocation2 + $0x78] sm:$0xff]  ;;  %v79_v2 = vld [vmem:[#allocation2 + $0x80] sm:$0xff]  ;;  %v147_v20 = vsub.s32 0, %v11866_v19  ;;  %v151_v22 = vsub.s32 1, %v11866_v19 }
  0x3c   :  { %181 = vmatpush1.msra.mxu0 %v110_v23  ;;  %9823 = vmatpush3.msra.mxu1 %v124_v40  ;;  %v80_v3 = vld [vmem:[#allocation2 + $0x88] sm:$0xff]  ;;  %v81_v4 = vld [vmem:[#allocation2 + $0x90] sm:$0xff]  ;;  %v82_v5 = vld [vmem:[#allocation2 + $0x98] sm:$0xff] }
  0x3d   :  { %182 = vmatprep.subr.mxu0 %v108_v25  ;;  %9824 = vmatprep.subr.mxu1 %v121_v41  ;;  %v83_v6 = vld [vmem:[#allocation2 + $0xa0] sm:$0xff]  ;;  %v84_v7 = vld [vmem:[#allocation2 + $0xa8] sm:$0xff]  ;;  %v85_v8 = vld [vmem:[#allocation2 + $0xb0] sm:$0xff] }
  0x3e   :  { %183 = vmatpush1.msra.mxu0 %v107_v27  ;;  %9825 = vmatpush3.msra.mxu1 %v121_v41  ;;  %v86_v9 = vld [vmem:[#allocation2 + $0xb8] sm:$0xff]  ;;  %v87_v10 = vld [vmem:[#allocation2 + $0xc0] sm:$0xff]  ;;  %v88_v11 = vld [vmem:[#allocation2 + $0xc8] sm:$0xff] }
  0x3f   :  { %184 = vmatprep.subr.mxu0 %v105_v29  ;;  %9826 = vmatprep.subr.mxu1 %v118_v42  ;;  %v89_v12 = vld [vmem:[#allocation2 + $0xd0] sm:$0xff]  ;;  %v90_v13 = vld [vmem:[#allocation2 + $0xd8] sm:$0xff]  ;;  %v92_v15 = vld [vmem:[#allocation2 + $0xe8] sm:$0xff] }
  0x40   :  { %185 = vmatpush1.msra.mxu0 %v104_v30  ;;  %9827 = vmatpush3.msra.mxu1 %v118_v42  ;;  %v93_v16 = vld [vmem:[#allocation2 + $0xf0] sm:$0xff]  ;;  %v94_v17 = vld [vmem:[#allocation2 + $0xf8] sm:$0xff]  ;;  %v11869_v21 = vld [vmem:[#allocation5] sm:$0x7] }
  0x41   :  { %186 = vmatprep.subr.mxu0 %v102_v32  ;;  %9828 = vmatprep.subr.mxu1 %v115_v44  ;;  %v11873_v23 = vrot.slane %v11869_v21, %v147_v20  ;;  %v11876_v24 = vrot.slane %v11869_v21, %v151_v22 }
  0x42   :  { %187 = vmatpush1.msra.mxu0 %v101_v33  ;;  %9829 = vmatpush3.msra.mxu1 %v115_v44 }
  0x43   :  { %188 = vmatprep.subr.mxu0 %v99_v35  ;;  %9830 = vmatprep.subr.mxu1 %v112_v45 }
  0x44   :  { %189 = vmatpush1.msra.mxu0 %v98_v36  ;;  %9831 = vmatpush3.msra.mxu1 %v112_v45 }
  0x45   :  { %190 = vmatprep.subr.mxu0 %v96_v38  ;;  %9832 = vmatprep.subr.mxu1 %v109_v47 }
  0x46   :  { %191 = vmatpush1.msra.mxu0 %v95_v39  ;;  %9833 = vmatpush3.msra.mxu1 %v109_v47 }
  0x47   :  { %225 = vmatmul.mubr.f32.vlgmr.msra.gmra.mxu0 %v11726_v14  ;;  %9834 = vmatprep.subr.mxu1 %v106_v48  ;;  %v91_v14 = vld [vmem:[#allocation2 + $0xe0] sm:$0xff] }
  0x48   :  { %230 = vmatprep.mubr.f32.mxu0 %v11631_v0  ;;  %9835 = vmatpush3.msra.mxu1 %v106_v48 }
  0x49   :  { %9836 = vmatprep.subr.mxu1 %v103_v50 }
  0x4a   :  { %9837 = vmatpush3.msra.mxu1 %v103_v50 }
  0x4b   :  { %231 = vmatmul.mubr.f32.gmra.mxu0 %v64_v43  ;;  %9838 = vmatprep.subr.mxu1 %v100_v51 }
  0x4c   :  { %236 = vmatprep.mubr.f32.mxu0 %v11631_v0  ;;  %9839 = vmatpush3.msra.mxu1 %v100_v51 }
  0x4d   :  { %9840 = vmatprep.subr.mxu1 %v97_v53 }
  0x4e   :  { %9841 = vmatpush3.msra.mxu1 %v97_v53 }
  0x4f   :  { %237 = vmatmul.mubr.f32.gmra.mxu0 %v65_v46  ;;  %9843 = vmatmul.mubr.f32.vlgmr.msra.gmra.mxu1 %v64_v43 }
  0x50   :  { %242 = vmatprep.mubr.f32.mxu0 %v11631_v0  ;;  %9845 = vmatprep.mubr.f32.mxu1 %v65_v46 }
  0x53   :  { %243 = vmatmul.mubr.f32.gmra.mxu0 %v66_v49  ;;  %9846 = vmatmul.mubr.f32.gmra.mxu1 %v66_v49 }
  0x54   :  { %248 = vmatprep.mubr.f32.mxu0 %v11631_v0  ;;  %9848 = vmatprep.mubr.f32.mxu1 %v67_v52 }
  0x57   :  { %249 = vmatmul.mubr.f32.gmra.mxu0 %v67_v52  ;;  %9849 = vmatmul.mubr.f32.gmra.mxu1 %v68_v54 }
  0x58   :  { %254 = vmatprep.mubr.f32.mxu0 %v11631_v0  ;;  %9851 = vmatprep.mubr.f32.mxu1 %v69_v55 }
  0x5b   :  { %255 = vmatmul.mubr.f32.gmra.mxu0 %v68_v54  ;;  %9852 = vmatmul.mubr.f32.gmra.mxu1 %v70_v56 }
  0x5c   :  { %260 = vmatprep.mubr.f32.mxu0 %v11631_v0  ;;  %9854 = vmatprep.mubr.f32.mxu1 %v71_v57 }
  0x5f   :  { %261 = vmatmul.mubr.f32.gmra.mxu0 %v69_v55  ;;  %9855 = vmatmul.mubr.f32.gmra.mxu1 %v72_v58 }
  0x60   :  { %266 = vmatprep.mubr.f32.mxu0 %v11631_v0  ;;  %9857 = vmatprep.mubr.f32.mxu1 %v73_v59 }
  0x63   :  { %267 = vmatmul.mubr.f32.gmra.mxu0 %v70_v56  ;;  %9858 = vmatmul.mubr.f32.gmra.mxu1 %v74_v60 }
  0x64   :  { %272 = vmatprep.mubr.f32.mxu0 %v11631_v0  ;;  %9860 = vmatprep.mubr.f32.mxu1 %v75_v61 }
  0x67   :  { %273 = vmatmul.mubr.f32.gmra.mxu0 %v71_v57  ;;  %9861 = vmatmul.mubr.f32.gmra.mxu1 %v76_v62 }
  0x68   :  { %278 = vmatprep.mubr.f32.mxu0 %v11631_v0  ;;  %9863 = vmatprep.mubr.f32.mxu1 %v77_v63 }
  0x6b   :  { %279 = vmatmul.mubr.f32.gmra.mxu0 %v72_v58  ;;  %9864 = vmatmul.mubr.f32.gmra.mxu1 %v78_v1 }
  0x6c   :  { %284 = vmatprep.mubr.f32.mxu0 %v11631_v0  ;;  %9866 = vmatprep.mubr.f32.mxu1 %v79_v2 }
  0x6f   :  { %285 = vmatmul.mubr.f32.gmra.mxu0 %v73_v59  ;;  %9867 = vmatmul.mubr.f32.gmra.mxu1 %v80_v3 }
  0x70   :  { %290 = vmatprep.mubr.f32.mxu0 %v11631_v0  ;;  %9869 = vmatprep.mubr.f32.mxu1 %v81_v4 }
  0x73   :  { %291 = vmatmul.mubr.f32.gmra.mxu0 %v74_v60  ;;  %9870 = vmatmul.mubr.f32.gmra.mxu1 %v82_v5 }
  0x74   :  { %296 = vmatprep.mubr.f32.mxu0 %v11631_v0  ;;  %9872 = vmatprep.mubr.f32.mxu1 %v83_v6 }
  0x77   :  { %297 = vmatmul.mubr.f32.gmra.mxu0 %v75_v61  ;;  %9873 = vmatmul.mubr.f32.gmra.mxu1 %v84_v7 }
  0x78   :  { %302 = vmatprep.mubr.f32.mxu0 %v11631_v0  ;;  %9875 = vmatprep.mubr.f32.mxu1 %v85_v8 }
  0x7b   :  { %303 = vmatmul.mubr.f32.gmra.mxu0 %v76_v62  ;;  %9876 = vmatmul.mubr.f32.gmra.mxu1 %v86_v9 }
  0x7c   :  { %308 = vmatprep.mubr.f32.mxu0 %v11631_v0  ;;  %9878 = vmatprep.mubr.f32.mxu1 %v87_v10 }
  0x7f   :  { %309 = vmatmul.mubr.f32.gmra.mxu0 %v77_v63  ;;  %9879 = vmatmul.mubr.f32.gmra.mxu1 %v88_v11 }
  0x80   :  { %314 = vmatprep.mubr.f32.mxu0 %v11631_v0  ;;  %9881 = vmatprep.mubr.f32.mxu1 %v89_v12 }
  0x83   :  { %315 = vmatmul.mubr.f32.gmra.mxu0 %v78_v1  ;;  %9882 = vmatmul.mubr.f32.gmra.mxu1 %v90_v13 }
  0x84   :  { %320 = vmatprep.mubr.f32.mxu0 %v11631_v0  ;;  %9884 = vmatprep.mubr.f32.mxu1 %v91_v14 }
  0x87   :  { %321 = vmatmul.mubr.f32.gmra.mxu0 %v79_v2  ;;  %9885 = vmatmul.mubr.f32.gmra.mxu1 %v92_v15 }
  0x88   :  { %326 = vmatprep.mubr.f32.mxu0 %v11631_v0  ;;  %9887 = vmatprep.mubr.f32.mxu1 %v93_v16 }
  0x8b   :  { %327 = vmatmul.mubr.f32.gmra.mxu0 %v80_v3  ;;  %9888 = vmatmul.mubr.f32.gmra.mxu1 %v94_v17 }
  0x8c   :  { %332 = vmatprep.mubr.f32.mxu0 %v11631_v0 }
  0x8f   :  { %333 = vmatmul.mubr.f32.gmra.mxu0 %v81_v4 }
  0x90   :  { %338 = vmatprep.mubr.f32.mxu0 %v11631_v0 }
  0x93   :  { %339 = vmatmul.mubr.f32.gmra.mxu0 %v82_v5 }
  0x94   :  { %344 = vmatprep.mubr.f32.mxu0 %v11631_v0 }
  0x97   :  { %345 = vmatmul.mubr.f32.gmra.mxu0 %v83_v6 }
  0x98   :  { %350 = vmatprep.mubr.f32.mxu0 %v11631_v0 }
  0x9b   :  { %351 = vmatmul.mubr.f32.gmra.mxu0 %v84_v7 }
  0x9c   :  { %356 = vmatprep.mubr.f32.mxu0 %v11631_v0 }
  0x9f   :  { %357 = vmatmul.mubr.f32.gmra.mxu0 %v85_v8 }
  0xa0   :  { %362 = vmatprep.mubr.f32.mxu0 %v11631_v0 }
  0xa3   :  { %363 = vmatmul.mubr.f32.gmra.mxu0 %v86_v9 }
  0xa4   :  { %368 = vmatprep.mubr.f32.mxu0 %v11631_v0 }
  0xa7   :  { %369 = vmatmul.mubr.f32.gmra.mxu0 %v87_v10 }
  0xa8   :  { %374 = vmatprep.mubr.f32.mxu0 %v11631_v0 }
  0xab   :  { %375 = vmatmul.mubr.f32.gmra.mxu0 %v88_v11 }
  0xac   :  { %380 = vmatprep.mubr.f32.mxu0 %v11631_v0 }
  0xaf   :  { %381 = vmatmul.mubr.f32.gmra.mxu0 %v89_v12 }
  0xb0   :  { %386 = vmatprep.mubr.f32.mxu0 %v11631_v0 }
  0xb3   :  { %387 = vmatmul.mubr.f32.gmra.mxu0 %v90_v13 }
  0xb4   :  { %392 = vmatprep.mubr.f32.mxu0 %v11631_v0 }
  0xb7   :  { %393 = vmatmul.mubr.f32.gmra.mxu0 %v91_v14 }
  0xb8   :  { %398 = vmatprep.mubr.f32.mxu0 %v11631_v0 }
  0xbb   :  { %399 = vmatmul.mubr.f32.gmra.mxu0 %v92_v15 }
  0xbc   :  { %404 = vmatprep.mubr.f32.mxu0 %v11631_v0 }
  0xbf   :  { %405 = vmatmul.mubr.f32.gmra.mxu0 %v93_v16 }
  0xc0   :  { %410 = vmatprep.mubr.f32.mxu0 %v11631_v0 }
  0xc3   :  { %411 = vmatmul.mubr.f32.gmra.mxu0 %v94_v17 }
 0x107   :  { %v226_v25 = vpop.f32.mrf.mxu0 }
 0x108   :  { %v227_v26 = vadd.f32 %v226_v25, %v11873_v23 }
 0x109   :  { %v228_v0 = vpop.f32.mrf.mxu0 }
 0x10a   :  { %v11879_v27 = vmul.f32 0.17677669, %v227_v26  ;;  %v11882_v28 = vadd.f32 %v228_v0, %v11876_v24 }
 0x10b   :  { %v232_v29 = vpop.f32.mrf.mxu0 }
 0x10c   :  { %16508 = vst [vmem:[#allocation12_spill] sm:$0xff] %v11879_v27  ;;  %16509 = vst [vmem:[#allocation13_spill] sm:$0xff] %v11882_v28  ;;  %v233_v30 = vadd.f32 %v232_v29, %v11873_v23  ;;  %2192 = vrot.lane.b32.xlu0 %v11882_v28, %s11632_s1  ;;  %9906 = vmatprep.mubr.msk.f32.mxu1 %vm682_vm0, %v11879_v27 }
 0x10d   :  { %v234_v31 = vpop.f32.mrf.mxu0 }
 0x10e   :  { %v11889_v32 = vmul.f32 0.17677669, %v233_v30  ;;  %v11896_v35 = vadd.f32 %v234_v31, %v11876_v24 }
 0x10f   :  { %v238_v33 = vpop.f32.mrf.mxu0 }
 0x110   :  { %16510 = vst [vmem:[#allocation14_spill] sm:$0xff] %v11889_v32  ;;  %2178 = vrot.lane.b32.xlu1 %v11889_v32, %s11632_s1  ;;  %2176 = vrot.lane.b32.xlu0 %v11879_v27, %s11632_s1  ;;  %16511 = vst [vmem:[#allocation15_spill] sm:$0xff] %v11896_v35  ;;  %v239_v39 = vadd.f32 %v238_v33, %v11873_v23 }
 0x111   :  { %v240_v34 = vpop.f32.mrf.mxu0 }
 0x112   :  { %v11903_v40 = vadd.f32 %v240_v34, %v11876_v24  ;;  %v11911_v44 = vmul.f32 0.17677669, %v239_v39  ;;  %v12053_v39 = vpop.f32.mrf.mxu1 }
 0x113   :  { %v244_v36 = vpop.f32.mrf.mxu0 }
 0x114   :  { %v245_v37 = vadd.f32 %v244_v36, %v11873_v23  ;;  %2194 = vrot.lane.b32.xlu0 %v11896_v35, %s11632_s1  ;;  %16512 = vst [vmem:[#allocation16_spill] sm:$0xff] %v11903_v40  ;;  %16514 = vst [vmem:[#allocation18_spill] sm:$0xff] %v11911_v44 }
 0x115   :  { %v246_v38 = vpop.f32.mrf.mxu0 }
 0x116   :  { %v11905_v41 = vmul.f32 0.17677669, %v245_v37  ;;  %v11922_v49 = vadd.f32 %v246_v38, %v11876_v24 }
 0x117   :  { %v250_v42 = vpop.f32.mrf.mxu0 }
 0x118   :  { %16513 = vst [vmem:[#allocation17_spill] sm:$0xff] %v11905_v41  ;;  %2182 = vrot.lane.b32.xlu1 %v11905_v41, %s11632_s1  ;;  %2196 = vrot.lane.b32.xlu0 %v11903_v40, %s11632_s1  ;;  %16516 = vst [vmem:[#allocation20_spill] sm:$0xff] %v11922_v49  ;;  %v251_v50 = vadd.f32 %v250_v42, %v11873_v23 }
 0x119   :  { %v252_v43 = vpop.f32.mrf.mxu0 }
 0x11a   :  { %v11914_v45 = vadd.f32 %v252_v43, %v11876_v24  ;;  %v11931_v54 = vmul.f32 0.17677669, %v251_v50 }
 0x11b   :  { %v256_v46 = vpop.f32.mrf.mxu0 }
 0x11c   :  { %16515 = vst [vmem:[#allocation19_spill] sm:$0xff] %v11914_v45  ;;  %v257_v47 = vadd.f32 %v256_v46, %v11873_v23  ;;  %2200 = vrot.lane.b32.xlu1 %v11914_v45, %s11632_s1  ;;  %2180 = vrot.lane.b32.xlu0 %v11911_v44, %s11632_s1  ;;  %16518 = vst [vmem:[#allocation22_spill] sm:$0xff] %v11931_v54 }
 0x11d   :  { %v258_v48 = vpop.f32.mrf.mxu0 }
 0x11e   :  { %v11925_v51 = vmul.f32 0.17677669, %v257_v47  ;;  %v11947_v61 = vadd.f32 %v258_v48, %v11876_v24  ;;  %v12063_v47 = vpop.f32.mrf.mxu1 }
 0x11f   :  { %v262_v52 = vpop.f32.mrf.mxu0 }
 0x120   :  { %16517 = vst [vmem:[#allocation21_spill] sm:$0xff] %v11925_v51  ;;  %2186 = vrot.lane.b32.xlu1 %v11925_v51, %s11632_s1  ;;  %2198 = vrot.lane.b32.xlu0 %v11922_v49, %s11632_s1  ;;  %16522 = vst [vmem:[#allocation26_spill] sm:$0xff] %v11947_v61  ;;  %v263_v62 = vadd.f32 %v262_v52, %v11873_v23  ;;  %v12077_v52 = vpop.f32.mrf.mxu1 }
 0x121   :  { %v264_v53 = vpop.f32.mrf.mxu0 }
 0x122   :  { %v11934_v55 = vadd.f32 %v264_v53, %v11876_v24  ;;  %v11960_v2 = vmul.f32 0.17677669, %v263_v62 }
 0x123   :  { %v268_v56 = vpop.f32.mrf.mxu0 }
 0x124   :  { %16519 = vst [vmem:[#allocation23_spill] sm:$0xff] %v11934_v55  ;;  %v269_v57 = vadd.f32 %v268_v56, %v11873_v23  ;;  %2204 = vrot.lane.b32.xlu1 %v11934_v55, %s11632_s1  ;;  %2184 = vrot.lane.b32.xlu0 %v11931_v54, %s11632_s1  ;;  %16523 = vst [vmem:[#allocation27_spill] sm:$0xff] %v11960_v2  ;;  %v12085_v56 = vpop.f32.mrf.mxu1 }
 0x125   :  { %v270_v58 = vpop.f32.mrf.mxu0 }
 0x126   :  { %v11941_v59 = vmul.f32 0.17677669, %v269_v57  ;;  %v11944_v60 = vadd.f32 %v270_v58, %v11876_v24  ;;  %v12095_v58 = vpop.f32.mrf.mxu1 }
 0x127   :  { %v274_v63 = vpop.f32.mrf.mxu0 }
 0x128   :  { %16520 = vst [vmem:[#allocation24_spill] sm:$0xff] %v11941_v59  ;;  %16521 = vst [vmem:[#allocation25_spill] sm:$0xff] %v11944_v60  ;;  %9890 = vmatprep.subr.msk.mxu1 %vm682_vm0, %v11944_v60  ;;  %2190 = vrot.lane.b32.xlu1 %v11941_v59, %s11632_s1  ;;  %v275_v9 = vadd.f32 %v274_v63, %v11873_v23  ;;  %v12101_v63 = vpop.f32.mrf.mxu1 }
 0x129   :  { %2202 = vrot.lane.b32.xlu0 %v11947_v61, %s11632_s1  ;;  %v276_v1 = vpop.f32.mrf.mxu0  ;;  %9891 = vmatpush3.xpose.msk.msra.mxu1 %vm682_vm0, %v11944_v60 }
 0x12a   :  { %9892 = vmatprep.subr.msk.mxu1 %vm682_vm0, %v11934_v55  ;;  %v11981_v10 = vadd.f32 %v276_v1, %v11876_v24  ;;  %v11992_v15 = vmul.f32 0.17677669, %v275_v9 }
 0x12b   :  { %v280_v3 = vpop.f32.mrf.mxu0 }
 0x12c   :  { %v281_v4 = vadd.f32 %v280_v3, %v11873_v23  ;;  %16525 = vst [vmem:[#allocation29_spill] sm:$0xff] %v11981_v10  ;;  %16527 = vst [vmem:[#allocation31_spill] sm:$0xff] %v11992_v15 }
 0x12d   :  { %2188 = vrot.lane.b32.xlu0 %v11960_v2, %s11632_s1  ;;  %v282_v5 = vpop.f32.mrf.mxu0  ;;  %9893 = vmatpush3.xpose.msk.msra.mxu1 %vm682_vm0, %v11934_v55 }
 0x12e   :  { %v11967_v6 = vmul.f32 0.17677669, %v281_v4  ;;  %9894 = vmatprep.subr.msk.mxu1 %vm682_vm0, %v11947_v61  ;;  %v12008_v20 = vadd.f32 %v282_v5, %v11876_v24  ;;  %v12112_v4 = vpop.f32.mrf.mxu1 }
 0x12f   :  { %v286_v7 = vpop.f32.mrf.mxu0 }
 0x130   :  { %16524 = vst [vmem:[#allocation28_spill] sm:$0xff] %v11967_v6  ;;  %2347 = vrot.lane.b32.xlu1 %v11967_v6, %s11632_s1  ;;  %16529 = vst [vmem:[#allocation33_spill] sm:$0xff] %v12008_v20  ;;  %v287_v0 = vadd.f32 %v286_v7, %v11873_v23  ;;  %v12120_v7 = vpop.f32.mrf.mxu1 }
 0x131   :  { %2206 = vrot.lane.b32.xlu0 %v11944_v60, %s11632_s1  ;;  %v288_v8 = vpop.f32.mrf.mxu0  ;;  %9895 = vmatpush3.xpose.msk.msra.mxu1 %vm682_vm0, %v11947_v61 }
 0x132   :  { %9896 = vmatprep.subr.msk.mxu1 %vm682_vm0, %v11914_v45  ;;  %v12025_v29 = vadd.f32 %v288_v8, %v11876_v24  ;;  %v12040_v34 = vmul.f32 0.17677669, %v287_v0 }
 0x133   :  { %v292_v11 = vpop.f32.mrf.mxu0 }
 0x134   :  { %v293_v12 = vadd.f32 %v292_v11, %v11873_v23  ;;  %16531 = vst [vmem:[#allocation35_spill] sm:$0xff] %v12025_v29  ;;  %16533 = vst [vmem:[#allocation37_spill] sm:$0xff] %v12040_v34  ;;  %v12131_v11 = vpop.f32.mrf.mxu1 }
 0x135   :  { %2361 = vrot.lane.b32.xlu0 %v11981_v10, %s11632_s1  ;;  %v294_v13 = vpop.f32.mrf.mxu0  ;;  %9897 = vmatpush3.xpose.msk.msra.mxu1 %vm682_vm0, %v11914_v45 }
 0x136   :  { %v11988_v14 = vmul.f32 0.17677669, %v293_v12  ;;  %9898 = vmatprep.subr.msk.mxu1 %vm682_vm0, %v11922_v49  ;;  %v12056_v42 = vadd.f32 %v294_v13, %v11876_v24  ;;  %v12139_v13 = vpop.f32.mrf.mxu1 }
 0x137   :  { %v11994_v16 = vpop.f32.mrf.mxu0 }
 0x138   :  { %16526 = vst [vmem:[#allocation30_spill] sm:$0xff] %v11988_v14  ;;  %2351 = vrot.lane.b32.xlu1 %v11988_v14, %s11632_s1  ;;  %16535 = vst [vmem:[#allocation39_spill] sm:$0xff] %v12056_v42  ;;  %v12146_v0 = vpop.f32.mrf.mxu1 }
 0x139   :  { %2345 = vrot.lane.b32.xlu0 %v11992_v15, %s11632_s1  ;;  %v300_v17 = vpop.f32.mrf.mxu0  ;;  %9899 = vmatpush3.xpose.msk.msra.mxu1 %vm682_vm0, %v11922_v49 }
 0x13a   :  { %v12003_v18 = vadd.f32 %v300_v17, %v11876_v24  ;;  %9900 = vmatprep.subr.msk.mxu1 %vm682_vm0, %v11903_v40 }
 0x13b   :  { %v12010_v22 = vpop.f32.mrf.mxu0 }
 0x13c   :  { %16528 = vst [vmem:[#allocation32_spill] sm:$0xff] %v12003_v18  ;;  %2369 = vrot.lane.b32.xlu1 %v12003_v18, %s11632_s1 }
 0x13d   :  { %2363 = vrot.lane.b32.xlu0 %v12008_v20, %s11632_s1  ;;  %v306_v25 = vpop.f32.mrf.mxu0  ;;  %9901 = vmatpush3.xpose.msk.msra.mxu1 %vm682_vm0, %v11903_v40 }
 0x13e   :  { %v12019_v26 = vadd.f32 %v306_v25, %v11876_v24  ;;  %9902 = vmatprep.subr.msk.mxu1 %vm682_vm0, %v11896_v35 }
 0x13f   :  { %v12027_v30 = vpop.f32.mrf.mxu0 }
 0x140   :  { %16530 = vst [vmem:[#allocation34_spill] sm:$0xff] %v12019_v26  ;;  %2371 = vrot.lane.b32.xlu1 %v12019_v26, %s11632_s1 }
 0x141   :  { %2365 = vrot.lane.b32.xlu0 %v12025_v29, %s11632_s1  ;;  %v312_v31 = vpop.f32.mrf.mxu0  ;;  %9903 = vmatpush3.xpose.msk.msra.mxu1 %vm682_vm0, %v11896_v35 }
 0x142   :  { %v12036_v33 = vadd.f32 %v312_v31, %v11876_v24  ;;  %9904 = vmatprep.subr.msk.mxu1 %vm682_vm0, %v11882_v28 }
 0x143   :  { %v12042_v36 = vpop.f32.mrf.mxu0 }
 0x144   :  { %16532 = vst [vmem:[#allocation36_spill] sm:$0xff] %v12036_v33  ;;  %2373 = vrot.lane.b32.xlu1 %v12036_v33, %s11632_s1 }
 0x145   :  { %2349 = vrot.lane.b32.xlu0 %v12040_v34, %s11632_s1  ;;  %v318_v37 = vpop.f32.mrf.mxu0  ;;  %9905 = vmatpush3.xpose.msk.msra.mxu1 %vm682_vm0, %v11882_v28 }
 0x146   :  { %v12051_v38 = vadd.f32 %v318_v37, %v11876_v24  ;;  %v12154_v37 = vpop.f32.mrf.mxu1 }
 0x147   :  { %v322_v43 = vpop.f32.mrf.mxu0 }
 0x148   :  { %16534 = vst [vmem:[#allocation38_spill] sm:$0xff] %v12051_v38  ;;  %v323_v46 = vadd.f32 %v322_v43, %v11873_v23  ;;  %2375 = vrot.lane.b32.xlu1 %v12051_v38, %s11632_s1  ;;  %9918 = vmatprep.subr.msk.mxu1 %vm682_vm0, %v12051_v38 }
 0x149   :  { %2367 = vrot.lane.b32.xlu0 %v12056_v42, %s11632_s1  ;;  %9907 = vmatmul.mubr.msk.f32.vlgmr.msra.gmra.mxu1 %vm682_vm0, %v11889_v32  ;;  %v12069_v48 = vpop.f32.mrf.mxu0 }
 0x14a   :  { %v12071_v50 = vmul.f32 0.17677669, %v323_v46  ;;  %9909 = vmatprep.mubr.msk.f32.mxu1 %vm682_vm0, %v11911_v44  ;;  %9919 = vmatpush3.xpose.msk.msra.mxu1 %vm682_vm0, %v12051_v38 }
 0x14b   :  { %9920 = vmatprep.subr.msk.mxu1 %vm682_vm0, %v12036_v33  ;;  %v12081_v53 = vpop.f32.mrf.mxu0 }
 0x14c   :  { %16536 = vst [vmem:[#allocation40_spill] sm:$0xff] %v12071_v50  ;;  %9962 = vmatprep.mubr.msk.f32.mxu0 %vm682_vm0, %v12071_v50 }
 0x14d   :  { %9910 = vmatmul.mubr.msk.f32.gmra.mxu1 %vm682_vm0, %v11905_v41  ;;  %v12089_v57 = vpop.f32.mrf.mxu0 }
 0x14e   :  { %9912 = vmatprep.mubr.msk.f32.mxu1 %vm682_vm0, %v11931_v54  ;;  %9921 = vmatpush3.xpose.msk.msra.mxu1 %vm682_vm0, %v12036_v33  ;;  %v12301_v38 = vadd.f32 %v12089_v57, %v11876_v24 }
 0x14f   :  { %9922 = vmatprep.subr.msk.mxu1 %vm682_vm0, %v12019_v26  ;;  %v12099_v62 = vpop.f32.mrf.mxu0 }
 0x150   :  { %16554 = vst [vmem:[#allocation58_spill] sm:$0xff] %v12301_v38 }
 0x151   :  { %9913 = vmatmul.mubr.msk.f32.gmra.mxu1 %vm682_vm0, %v11925_v51  ;;  %v336_v1 = vpop.f32.mrf.mxu0 }
 0x152   :  { %v12106_v3 = vadd.f32 %v336_v1, %v11876_v24  ;;  %9915 = vmatprep.mubr.msk.f32.mxu1 %vm682_vm0, %v11960_v2  ;;  %9923 = vmatpush3.xpose.msk.msra.mxu1 %vm682_vm0, %v12019_v26  ;;  %v12161_v1 = vpop.f32.mrf.mxu1  ;;  %v155_v2 = vsub.s32 2, %v11866_v19 }
 0x153   :  { %9924 = vmatprep.subr.msk.mxu1 %vm682_vm0, %v12003_v18  ;;  %v12116_v5 = vpop.f32.mrf.mxu0 }
 0x154   :  { %16537 = vst [vmem:[#allocation41_spill] sm:$0xff] %v12106_v3  ;;  %2534 = vrot.lane.b32.xlu0 %v12106_v3, %s11632_s1  ;;  %v12188_v19 = vrot.slane %v11869_v21, %v155_v2 }
 0x155   :  { %9916 = vmatmul.mubr.msk.f32.gmra.mxu1 %vm682_vm0, %v11941_v59  ;;  %v342_v8 = vpop.f32.mrf.mxu0 }
 0x156   :  { %v12125_v9 = vadd.f32 %v342_v8, %v11876_v24  ;;  %9925 = vmatpush3.xpose.msk.msra.mxu1 %vm682_vm0, %v12003_v18  ;;  %9934 = vmatprep.mubr.msk.f32.mxu1 %vm682_vm0, %v11992_v15 }
 0x157   :  { %9926 = vmatprep.subr.msk.mxu1 %vm682_vm0, %v12056_v42  ;;  %v12135_v12 = vpop.f32.mrf.mxu0 }
 0x158   :  { %16538 = vst [vmem:[#allocation42_spill] sm:$0xff] %v12125_v9  ;;  %2536 = vrot.lane.b32.xlu0 %v12125_v9, %s11632_s1 }
 0x159   :  { %v348_v17 = vpop.f32.mrf.mxu0 }
 0x15a   :  { %v12142_v25 = vadd.f32 %v348_v17, %v11876_v24  ;;  %9927 = vmatpush3.xpose.msk.msra.mxu1 %vm682_vm0, %v12056_v42  ;;  %v12169_v17 = vpop.f32.mrf.mxu1  ;;  %v299_v42 = vadd.f32 %v11994_v16, %v11873_v23 }
 0x15b   :  { %9928 = vmatprep.subr.msk.mxu1 %vm682_vm0, %v12025_v29  ;;  %v12150_v31 = vpop.f32.mrf.mxu0 }
 0x15c   :  { %16539 = vst [vmem:[#allocation43_spill] sm:$0xff] %v12142_v25  ;;  %2538 = vrot.lane.b32.xlu1 %v12142_v25, %s11632_s1  ;;  %v12177_v59 = vpop.f32.mrf.mxu1 }
 0x15d   :  { %v354_v43 = vpop.f32.mrf.mxu0 }
 0x15e   :  { %v12157_v46 = vadd.f32 %v354_v43, %v11876_v24  ;;  %9929 = vmatpush3.xpose.msk.msra.mxu1 %vm682_vm0, %v12025_v29  ;;  %v12185_v51 = vpop.f32.mrf.mxu1 }
 0x15f   :  { %9930 = vmatprep.subr.msk.mxu1 %vm682_vm0, %v12008_v20  ;;  %v12165_v8 = vpop.f32.mrf.mxu0 }
 0x160   :  { %16540 = vst [vmem:[#allocation44_spill] sm:$0xff] %v12157_v46  ;;  %2540 = vrot.lane.b32.xlu1 %v12157_v46, %s11632_s1 }
 0x161   :  { %v360_v15 = vpop.f32.mrf.mxu0 }
 0x162   :  { %v12173_v43 = vadd.f32 %v360_v15, %v11876_v24  ;;  %9931 = vmatpush3.xpose.msk.msra.mxu1 %vm682_vm0, %v12008_v20  ;;  %v9868_v20 = vpop.f32.mrf.mxu1 }
 0x163   :  { %9932 = vmatprep.subr.msk.mxu1 %vm682_vm0, %v11981_v10  ;;  %v12181_v54 = vpop.f32.mrf.mxu0  ;;  %v12196_v41 = vadd.f32 %v9868_v20, %v12188_v19  ;;  %v305_v20 = vadd.f32 %v12010_v22, %v11873_v23 }
 0x164   :  { %16541 = vst [vmem:[#allocation45_spill] sm:$0xff] %v12173_v43  ;;  %2542 = vrot.lane.b32.xlu1 %v12173_v43, %s11632_s1  ;;  %v12204_v21 = vpop.f32.mrf.mxu1 }
 0x165   :  { %v366_v29 = vpop.f32.mrf.mxu0  ;;  %16543 = vst [vmem:[#allocation47_spill] sm:$0xff] %v12196_v41 }
 0x166   :  { %v12191_v15 = vadd.f32 %v366_v29, %v11876_v24  ;;  %9933 = vmatpush3.xpose.msk.msra.mxu1 %vm682_vm0, %v11981_v10  ;;  %v9871_v16 = vpop.f32.mrf.mxu1 }
 0x167   :  { %v370_v44 = vpop.f32.mrf.mxu0  ;;  %v12221_v10 = vadd.f32 %v9871_v16, %v12188_v19 }
 0x168   :  { %16542 = vst [vmem:[#allocation46_spill] sm:$0xff] %v12191_v15  ;;  %9946 = vmatprep.subr.msk.mxu0 %vm682_vm0, %v12191_v15  ;;  %2544 = vrot.lane.b32.xlu1 %v12191_v15, %s11632_s1  ;;  %v12227_v27 = vpop.f32.mrf.mxu1 }
 0x169   :  { %9935 = vmatmul.mubr.msk.f32.vlgmr.msra.gmra.mxu1 %vm682_vm0, %v11967_v6  ;;  %v12208_v2 = vpop.f32.mrf.mxu0  ;;  %9947 = vmatpush3.xpose.msk.msra.mxu0 %vm682_vm0, %v12191_v15  ;;  %16544 = vst [vmem:[#allocation48_spill] sm:$0xff] %v12221_v10  ;;  %v12223_v6 = vmul.f32 0.17677669, %v299_v42  ;;  %v311_v15 = vadd.f32 %v12027_v30, %v11873_v23  ;;  %v12239_v42 = vmul.f32 0.17677669, %v305_v20  ;;  %v317_v30 = vadd.f32 %v12042_v36, %v11873_v23 }
 0x16a   :  { %9937 = vmatprep.mubr.msk.f32.mxu1 %vm682_vm0, %v12040_v34  ;;  %9948 = vmatprep.subr.msk.mxu0 %vm682_vm0, %v12173_v43  ;;  %v9874_v22 = vpop.f32.mrf.mxu1 }
 0x16b   :  { %v12218_v29 = vpop.f32.mrf.mxu0  ;;  %16545 = vst [vmem:[#allocation49_spill] sm:$0xff] %v12223_v6  ;;  %16546 = vst [vmem:[#allocation50_spill] sm:$0xff] %v12239_v42  ;;  %v12248_v32 = vmul.f32 0.17677669, %v311_v15  ;;  %v12265_v15 = vmul.f32 0.17677669, %v317_v30 }
 0x16c   :  { %v12251_v28 = vpop.f32.mrf.mxu1 }
 0x16d   :  { %9938 = vmatmul.mubr.msk.f32.gmra.mxu1 %vm682_vm0, %v11988_v14  ;;  %v12231_v34 = vpop.f32.mrf.mxu0  ;;  %9949 = vmatpush3.xpose.msk.msra.mxu0 %vm682_vm0, %v12173_v43  ;;  %v12246_v14 = vadd.f32 %v9874_v22, %v12188_v19  ;;  %16548 = vst [vmem:[#allocation52_spill] sm:$0xff] %v12248_v32  ;;  %v371_v43 = vadd.f32 %v370_v44, %v11873_v23  ;;  %16549 = vst [vmem:[#allocation53_spill] sm:$0xff] %v12265_v15 }
 0x16e   :  { %9940 = vmatprep.mubr.msk.f32.mxu1 %vm682_vm0, %v12223_v6  ;;  %9950 = vmatprep.subr.msk.mxu0 %vm682_vm0, %v12157_v46  ;;  %v12263_v36 = vpop.f32.mrf.mxu1 }
 0x16f   :  { %v12243_v16 = vpop.f32.mrf.mxu0  ;;  %16547 = vst [vmem:[#allocation51_spill] sm:$0xff] %v12246_v14  ;;  %v12269_v20 = vmul.f32 0.17677669, %v371_v43 }
 0x170   :  { %v12271_v22 = vpop.f32.mrf.mxu1 }
 0x171   :  { %9941 = vmatmul.mubr.msk.f32.gmra.mxu1 %vm682_vm0, %v12239_v42  ;;  %v12255_v18 = vpop.f32.mrf.mxu0  ;;  %9951 = vmatpush3.xpose.msk.msra.mxu0 %vm682_vm0, %v12157_v46  ;;  %16550 = vst [vmem:[#allocation54_spill] sm:$0xff] %v12269_v20 }
 0x172   :  { %9943 = vmatprep.mubr.msk.f32.mxu1 %vm682_vm0, %v12248_v32  ;;  %9952 = vmatprep.subr.msk.mxu0 %vm682_vm0, %v12142_v25  ;;  %v9880_v30 = vpop.f32.mrf.mxu1 }
 0x173   :  { %v12267_v44 = vpop.f32.mrf.mxu0  ;;  %v12286_v43 = vadd.f32 %v9880_v30, %v12188_v19 }
 0x174   :  { %v12288_v26 = vpop.f32.mrf.mxu1 }
 0x175   :  { %9944 = vmatmul.mubr.msk.f32.gmra.mxu1 %vm682_vm0, %v12265_v15  ;;  %v12275_v46 = vpop.f32.mrf.mxu0  ;;  %9953 = vmatpush3.xpose.msk.msra.mxu0 %vm682_vm0, %v12142_v25  ;;  %16551 = vst [vmem:[#allocation55_spill] sm:$0xff] %v12286_v43  ;;  %16552 = vst [vmem:[#allocation56_spill] sm:$0xff] %v12288_v26  ;;  %v347_v26 = vadd.f32 %v12135_v12, %v11873_v23  ;;  %v353_v12 = vadd.f32 %v12150_v31, %v11873_v23 }
 0x176   :  { %9954 = vmatprep.subr.msk.mxu0 %vm682_vm0, %v12125_v9  ;;  %9990 = vmatprep.mubr.msk.f32.mxu1 %vm682_vm0, %v12269_v20  ;;  %v9883_v25 = vpop.f32.mrf.mxu1  ;;  %v12401_v31 = vadd.f32 %v12101_v63, %v12188_v19  ;;  %v12419_v63 = vadd.f32 %v12077_v52, %v12188_v19  ;;  %v12440_v52 = vadd.f32 %v12053_v39, %v12188_v19 }
 0x177   :  { %v12283_v35 = vpop.f32.mrf.mxu0  ;;  %v12297_v49 = vadd.f32 %v9883_v25, %v12188_v19  ;;  %v12316_v25 = vadd.f32 %v12069_v48, %v11876_v24  ;;  %v335_v48 = vadd.f32 %v12099_v62, %v11873_v23  ;;  %v12460_v39 = vadd.f32 %v12263_v36, %v12188_v19 }
 0x178   :  { %v12303_v30 = vpop.f32.mrf.mxu1  ;;  %16570 = vst [vmem:[#allocation74_spill] sm:$0xff] %v12401_v31  ;;  %16573 = vst [vmem:[#allocation77_spill] sm:$0xff] %v12419_v63  ;;  %v12487_v36 = vadd.f32 %v12177_v59, %v12188_v19  ;;  %v395_v59 = vadd.f32 %v12283_v35, %v11873_v23  ;;  %v12521_v35 = vadd.f32 %v12169_v17, %v12188_v19 }
 0x179   :  { %v396_v40 = vpop.f32.mrf.mxu0  ;;  %9955 = vmatpush3.xpose.msk.msra.mxu0 %vm682_vm0, %v12125_v9  ;;  %16553 = vst [vmem:[#allocation57_spill] sm:$0xff] %v12297_v49  ;;  %16555 = vst [vmem:[#allocation59_spill] sm:$0xff] %v12303_v30  ;;  %v12347_v62 = vmul.f32 0.17677669, %v335_v48  ;;  %v12377_v48 = vadd.f32 %v12095_v58, %v12188_v19  ;;  %v365_v58 = vadd.f32 %v12181_v54, %v11873_v23 }
 0x17a   :  { %9956 = vmatprep.subr.msk.mxu0 %vm682_vm0, %v12106_v3  ;;  %v9886_v9 = vpop.f32.mrf.mxu1  ;;  %16557 = vst [vmem:[#allocation61_spill] sm:$0xff] %v12316_v25  ;;  %16576 = vst [vmem:[#allocation80_spill] sm:$0xff] %v12440_v52  ;;  %v12545_v17 = vadd.f32 %v12154_v37, %v12188_v19  ;;  %v12567_v37 = vadd.f32 %v12139_v13, %v12188_v19 }
 0x17b   :  { %v12294_v33 = vpop.f32.mrf.mxu0  ;;  %v12312_v60 = vadd.f32 %v9886_v9, %v12188_v19  ;;  %v12329_v9 = vadd.f32 %v12112_v4, %v12188_v19  ;;  %16562 = vst [vmem:[#allocation66_spill] sm:$0xff] %v12347_v62  ;;  %16566 = vst [vmem:[#allocation70_spill] sm:$0xff] %v12377_v48  ;;  %v12413_v54 = vmul.f32 0.17677669, %v365_v58 }
 0x17c   :  { %16579 = vst [vmem:[#allocation83_spill] sm:$0xff] %v12460_v39  ;;  %16582 = vst [vmem:[#allocation86_spill] sm:$0xff] %v12487_v36 }
 0x17d   :  { %v402_v61 = vpop.f32.mrf.mxu0  ;;  %9957 = vmatpush3.xpose.msk.msra.mxu0 %vm682_vm0, %v12106_v3  ;;  %16556 = vst [vmem:[#allocation60_spill] sm:$0xff] %v12312_v60  ;;  %v329_v3 = vadd.f32 %v12081_v53, %v11873_v23  ;;  %16559 = vst [vmem:[#allocation63_spill] sm:$0xff] %v12329_v9 }
 0x17e   :  { %9958 = vmatprep.subr.msk.mxu0 %vm682_vm0, %v12301_v38  ;;  %16572 = vst [vmem:[#allocation76_spill] sm:$0xff] %v12413_v54  ;;  %16588 = vst [vmem:[#allocation92_spill] sm:$0xff] %v12521_v35 }
 0x17f   :  { %v12309_v45 = vpop.f32.mrf.mxu0  ;;  %v12339_v53 = vmul.f32 0.17677669, %v329_v3  ;;  %v12357_v3 = vadd.f32 %v12120_v7, %v12188_v19  ;;  %v359_v7 = vadd.f32 %v12165_v8, %v11873_v23  ;;  %v12405_v8 = vadd.f32 %v396_v40, %v11876_v24  ;;  %16592 = vst [vmem:[#allocation96_spill] sm:$0xff] %v12545_v17  ;;  %16597 = vst [vmem:[#allocation101_spill] sm:$0xff] %v12567_v37 }
 0x180   :  { %v12425_v40 = vadd.f32 %v12275_v46, %v11876_v24  ;;  %v12450_v46 = vadd.f32 %v12063_v47, %v12188_v19  ;;  %v12477_v47 = vadd.f32 %v12208_v2, %v11876_v24  ;;  %v389_v2 = vadd.f32 %v12267_v44, %v11873_v23 }
 0x181   :  { %v408_v57 = vpop.f32.mrf.mxu0  ;;  %9959 = vmatpush3.xpose.msk.msra.mxu0 %vm682_vm0, %v12301_v38  ;;  %16560 = vst [vmem:[#allocation64_spill] sm:$0xff] %v12339_v53  ;;  %16563 = vst [vmem:[#allocation67_spill] sm:$0xff] %v12357_v3  ;;  %v401_v44 = vadd.f32 %v12294_v33, %v11873_v23 }
 0x182   :  { %v12323_v55 = vadd.f32 %v408_v57, %v11876_v24  ;;  %9960 = vmatprep.subr.msk.mxu0 %vm682_vm0, %v12316_v25  ;;  %v341_v57 = vadd.f32 %v12116_v5, %v11873_v23  ;;  %16571 = vst [vmem:[#allocation75_spill] sm:$0xff] %v12405_v8  ;;  %16574 = vst [vmem:[#allocation78_spill] sm:$0xff] %v12425_v40 }
 0x183   :  { %v12333_v20 = vpop.f32.mrf.mxu0  ;;  %16578 = vst [vmem:[#allocation82_spill] sm:$0xff] %v12450_v46  ;;  %16581 = vst [vmem:[#allocation85_spill] sm:$0xff] %v12477_v47  ;;  %v12539_v33 = vmul.f32 0.17677669, %v401_v44  ;;  %v12586_v44 = vld [vmem:[%s16284_s3 + $0x8] sm:$0xff] }
 0x184   :  { %16558 = vst [vmem:[#allocation62_spill] sm:$0xff] %v12323_v55  ;;  %2711 = vrot.lane.b32.xlu1 %v12323_v55, %s11632_s1  ;;  %v12363_v5 = vmul.f32 0.17677669, %v341_v57  ;;  %v12381_v57 = vadd.f32 %v402_v61, %v11876_v24  ;;  %v12397_v61 = vmul.f32 0.17677669, %v359_v7  ;;  %v383_v7 = vadd.f32 %v12243_v16, %v11873_v23 }
 0x185   :  { %v414_v43 = vpop.f32.mrf.mxu0  ;;  %9961 = vmatpush3.xpose.msk.msra.mxu0 %vm682_vm0, %v12316_v25  ;;  %v12510_v16 = vadd.f32 %v12161_v1, %v12188_v19  ;;  %v407_v1 = vadd.f32 %v12309_v45, %v11873_v23  ;;  %16591 = vst [vmem:[#allocation95_spill] sm:$0xff] %v12539_v33  ;;  %v413_v45 = vadd.f32 %v12333_v20, %v11873_v23 }
 0x186   :  { %v12344_v4 = vadd.f32 %v414_v43, %v11876_v24  ;;  %10002 = vmatprep.subr.mxu0 %v12329_v9  ;;  %16564 = vst [vmem:[#allocation68_spill] sm:$0xff] %v12363_v5  ;;  %v12371_v43 = vmul.f32 0.17677669, %v347_v26  ;;  %16567 = vst [vmem:[#allocation71_spill] sm:$0xff] %v12381_v57  ;;  %v12390_v26 = vmul.f32 0.17677669, %v353_v12  ;;  %v12431_v12 = vadd.f32 %v12085_v56, %v12188_v19 }
 0x187   :  { %16569 = vst [vmem:[#allocation73_spill] sm:$0xff] %v12397_v61  ;;  %v12446_v56 = vadd.f32 %v12255_v18, %v11876_v24  ;;  %v12466_v18 = vadd.f32 %v12231_v34, %v11876_v24  ;;  %v377_v34 = vadd.f32 %v12218_v29, %v11873_v23  ;;  %v12499_v29 = vadd.f32 %v12185_v51, %v12188_v19 }
 0x188   :  { %16561 = vst [vmem:[#allocation65_spill] sm:$0xff] %v12344_v4  ;;  %9963 = vmatmul.mubr.msk.f32.vlgmr.msra.gmra.mxu0 %vm682_vm0, %v12339_v53  ;;  %9974 = vmatprep.subr.msk.mxu1 %vm682_vm0, %v12344_v4  ;;  %16565 = vst [vmem:[#allocation69_spill] sm:$0xff] %v12371_v43  ;;  %v12502_v58 = vmul.f32 0.17677669, %v383_v7  ;;  %v12515_v51 = vmul.f32 0.17677669, %v389_v2  ;;  %v12533_v7 = vadd.f32 %v12146_v0, %v12188_v19  ;;  %v12550_v2 = vpop.f32.mrf.mxu1 }
 0x189   :  { %9965 = vmatprep.mubr.msk.f32.mxu0 %vm682_vm0, %v12347_v62  ;;  %9975 = vmatpush3.xpose.msk.msra.mxu1 %vm682_vm0, %v12344_v4  ;;  %16568 = vst [vmem:[#allocation72_spill] sm:$0xff] %v12390_v26  ;;  %16575 = vst [vmem:[#allocation79_spill] sm:$0xff] %v12431_v12  ;;  %v12493_v24 = vmul.f32 0.17677669, %v377_v34  ;;  %v12524_v34 = vmul.f32 0.17677669, %v395_v59  ;;  %v12557_v59 = vadd.f32 %v12131_v11, %v12188_v19 }
 0x18a   :  { %9976 = vmatprep.subr.msk.mxu1 %vm682_vm0, %v12323_v55  ;;  %2713 = vrot.lane.b32.xlu1 %v12344_v4, %s11632_s1  ;;  %16577 = vst [vmem:[#allocation81_spill] sm:$0xff] %v12446_v56  ;;  %16580 = vst [vmem:[#allocation84_spill] sm:$0xff] %v12466_v18  ;;  %v12548_v0 = vmul.f32 0.17677669, %v407_v1  ;;  %v12563_v23 = vmul.f32 0.17677669, %v413_v45  ;;  %v9889_v20 = vpop.f32.mrf.mxu1 }
 0x18b   :  { %10003 = vmatpush3.msra.mxu0 %v12329_v9  ;;  %16583 = vst [vmem:[#allocation87_spill] sm:$0xff] %v12493_v24  ;;  %16584 = vst [vmem:[#allocation88_spill] sm:$0xff] %v12499_v29  ;;  %v12574_v11 = vadd.f32 %v9889_v20, %v12188_v19  ;;  %v12591_v45 = vld [vmem:[%s16284_s3] sm:$0xff]  ;;  %v12599_v4 = vld [vmem:[%s16284_s3 + $0x18] sm:$0xff] }
 0x18c   :  { %9966 = vmatmul.mubr.msk.f32.gmra.mxu0 %vm682_vm0, %v12363_v5  ;;  %10004 = vmatprep.subr.mxu0 %v12357_v3  ;;  %16585 = vst [vmem:[#allocation89_spill] sm:$0xff] %v12502_v58  ;;  %16586 = vst [vmem:[#allocation90_spill] sm:$0xff] %v12510_v16  ;;  %v12581_v13 = vpop.f32.mrf.mxu1 }
 0x18d   :  { %9968 = vmatprep.mubr.msk.f32.mxu0 %vm682_vm0, %v12371_v43  ;;  %9977 = vmatpush3.xpose.msk.msra.mxu1 %vm682_vm0, %v12323_v55  ;;  %16587 = vst [vmem:[#allocation91_spill] sm:$0xff] %v12515_v51  ;;  %16589 = vst [vmem:[#allocation93_spill] sm:$0xff] %v12524_v34 }
 0x18e   :  { %9978 = vmatprep.subr.msk.mxu1 %vm682_vm0, %v12381_v57  ;;  %10005 = vmatpush3.msra.mxu0 %v12357_v3  ;;  %16590 = vst [vmem:[#allocation94_spill] sm:$0xff] %v12533_v7  ;;  %16593 = vst [vmem:[#allocation97_spill] sm:$0xff] %v12548_v0 }
 0x18f   :  { %10006 = vmatprep.subr.mxu0 %v12377_v48  ;;  %16594 = vst [vmem:[#allocation98_spill] sm:$0xff] %v12550_v2  ;;  %16595 = vst [vmem:[#allocation99_spill] sm:$0xff] %v12557_v59 }
 0x190   :  { %9969 = vmatmul.mubr.msk.f32.gmra.mxu0 %vm682_vm0, %v12390_v26  ;;  %16596 = vst [vmem:[#allocation100_spill] sm:$0xff] %v12563_v23  ;;  %16598 = vst [vmem:[#allocation102_spill] sm:$0xff] %v12574_v11 }
 0x191   :  { %9971 = vmatprep.mubr.msk.f32.mxu0 %vm682_vm0, %v12397_v61  ;;  %9979 = vmatpush3.xpose.msk.msra.mxu1 %vm682_vm0, %v12381_v57  ;;  %16599 = vst [vmem:[#allocation103_spill] sm:$0xff] %v12581_v13  ;;  %v12707_v61 = vpop.permute.xlu1 %2178 }
 0x192   :  { %9980 = vmatprep.subr.msk.mxu1 %vm682_vm0, %v12405_v8  ;;  %10007 = vmatpush3.msra.mxu0 %v12377_v48  ;;  %16603 = vst [vmem:[#allocation107_spill] sm:$0xff] %v12707_v61 }
 0x193   :  { %10008 = vmatprep.subr.mxu0 %v12401_v31 }
 0x194   :  { %9972 = vmatmul.mubr.msk.f32.gmra.mxu0 %vm682_vm0, %v12413_v54 }
 0x195   :  { %9981 = vmatpush3.xpose.msk.msra.mxu1 %vm682_vm0, %v12405_v8  ;;  %10009 = vmatpush3.msra.mxu0 %v12401_v31 }
 0x196   :  { %9982 = vmatprep.subr.msk.mxu1 %vm682_vm0, %v12425_v40  ;;  %10010 = vmatprep.subr.mxu0 %v12419_v63 }
 0x197   :  { %10011 = vmatpush3.msra.mxu0 %v12419_v63  ;;  %v12647_v63 = vld [vmem:[%s16284_s3 + $0x30] sm:$0xff] }
 0x198   :  { %10012 = vmatprep.subr.mxu0 %v12431_v12 }
 0x199   :  { %9983 = vmatpush3.xpose.msk.msra.mxu1 %vm682_vm0, %v12425_v40  ;;  %10013 = vmatpush3.msra.mxu0 %v12431_v12  ;;  %v12642_v12 = vld [vmem:[%s16284_s3 + $0x38] sm:$0xff] }
 0x19a   :  { %9984 = vmatprep.subr.msk.mxu1 %vm682_vm0, %v12446_v56  ;;  %10014 = vmatprep.subr.mxu0 %v12440_v52 }
 0x19b   :  { %10015 = vmatpush3.msra.mxu0 %v12440_v52 }
 0x19c   :  { %10016 = vmatprep.subr.mxu0 %v12450_v46 }
 0x19d   :  { %9985 = vmatpush3.xpose.msk.msra.mxu1 %vm682_vm0, %v12446_v56  ;;  %10017 = vmatpush3.msra.mxu0 %v12450_v46 }
 0x19e   :  { %9986 = vmatprep.subr.msk.mxu1 %vm682_vm0, %v12466_v18  ;;  %10058 = vmatprep.subr.mxu0 %v12460_v39 }
 0x1a1   :  { %9987 = vmatpush3.xpose.msk.msra.mxu1 %vm682_vm0, %v12466_v18 }
 0x1a2   :  { %9988 = vmatprep.subr.msk.mxu1 %vm682_vm0, %v12477_v47 }
 0x1a5   :  { %9989 = vmatpush3.xpose.msk.msra.mxu1 %vm682_vm0, %v12477_v47 }
 0x1a6   :  { %10030 = vmatprep.subr.mxu1 %v12487_v36 }
 0x1a8   :  { %9991 = vmatmul.mubr.msk.f32.vlgmr.msra.gmra.mxu1 %vm682_vm0, %v12493_v24 }
 0x1a9   :  { %9993 = vmatprep.mubr.msk.f32.mxu1 %vm682_vm0, %v12502_v58  ;;  %10031 = vmatpush3.msra.mxu1 %v12487_v36 }
 0x1aa   :  { %10032 = vmatprep.subr.mxu1 %v12499_v29 }
 0x1ab   :  { %10033 = vmatpush3.msra.mxu1 %v12499_v29 }
 0x1ac   :  { %9994 = vmatmul.mubr.msk.f32.gmra.mxu1 %vm682_vm0, %v12515_v51  ;;  %10034 = vmatprep.subr.mxu1 %v12510_v16 }
 0x1ad   :  { %9996 = vmatprep.mubr.msk.f32.mxu1 %vm682_vm0, %v12524_v34  ;;  %10035 = vmatpush3.msra.mxu1 %v12510_v16 }
 0x1ae   :  { %10036 = vmatprep.subr.mxu1 %v12521_v35 }
 0x1af   :  { %10037 = vmatpush3.msra.mxu1 %v12521_v35 }
 0x1b0   :  { %9997 = vmatmul.mubr.msk.f32.gmra.mxu1 %vm682_vm0, %v12539_v33  ;;  %10038 = vmatprep.subr.mxu1 %v12533_v7 }
 0x1b1   :  { %9999 = vmatprep.mubr.msk.f32.mxu1 %vm682_vm0, %v12548_v0  ;;  %10039 = vmatpush3.msra.mxu1 %v12533_v7  ;;  %v12609_v7 = vld [vmem:[%s16284_s3 + $0x10] sm:$0xff] }
 0x1b2   :  { %10040 = vmatprep.subr.mxu1 %v12545_v17 }
 0x1b3   :  { %10041 = vmatpush3.msra.mxu1 %v12545_v17 }
 0x1b4   :  { %10000 = vmatmul.mubr.msk.f32.gmra.mxu1 %vm682_vm0, %v12563_v23  ;;  %10042 = vmatprep.subr.mxu1 %v12557_v59 }
 0x1b5   :  { %10043 = vmatpush3.msra.mxu1 %v12557_v59 }
 0x1b6   :  { %10044 = vmatprep.subr.mxu1 %v12567_v37 }
 0x1b7   :  { %10045 = vmatpush3.msra.mxu1 %v12567_v37 }
 0x1b8   :  { %10086 = vmatprep.subr.mxu1 %v12574_v11 }
 0x209   :  { %v9908_v1 = vpop.f32.mrf.mxu1 }
 0x20a   :  { %v12594_v20 = vadd.f32 %v9908_v1, %v12586_v44 }
 0x20b   :  { %v797_v55 = vpop.f32.mrf.mxu1 }
 0x20c   :  { %v12602_v37 = vadd.f32 %v797_v55, %v12591_v45  ;;  %v1299_v59 = vsel %vm1295_vm1, %v12594_v20, -inf }
 0x20d   :  { %1300 = vmax.xlane.f32.xlu0 %v1299_v59  ;;  %v9911_v17 = vpop.f32.mrf.mxu1  ;;  %v12624_v59 = vld [vmem:[%s16284_s3 + $0x28] sm:$0xff] }
 0x20e   :  { %v12612_v1 = vadd.f32 %v9911_v17, %v12599_v4  ;;  %v1296_v29 = vsel %vm1295_vm1, %v12602_v37, -inf  ;;  %v12629_v17 = vld [vmem:[%s16284_s3 + $0x20] sm:$0xff] }
 0x20f   :  { %v807_v35 = vpop.f32.mrf.mxu1 }
 0x210   :  { %v12615_v16 = vadd.f32 %v807_v35, %v12609_v7  ;;  %v1305_v55 = vsel %vm1295_vm1, %v12612_v1, -inf }
 0x211   :  { %1306 = vmax.xlane.f32.xlu1 %v1305_v55  ;;  %v9914_v36 = vpop.f32.mrf.mxu1  ;;  %1297 = vmax.xlane.f32.xlu0 %v1296_v29 }
 0x212   :  { %v12632_v46 = vadd.f32 %v9914_v36, %v12624_v59  ;;  %v1302_v55 = vsel %vm1295_vm1, %v12615_v16, -inf }
 0x213   :  { %v817_v35 = vpop.f32.mrf.mxu1 }
 0x214   :  { %v12635_v52 = vadd.f32 %v817_v35, %v12629_v17  ;;  %v1311_v3 = vsel %vm1295_vm1, %v12632_v46, -inf }
 0x215   :  { %v9917_v29 = vpop.f32.mrf.mxu1  ;;  %1303 = vmax.xlane.f32.xlu1 %v1302_v55 }
 0x216   :  { %v1308_v36 = vsel %vm1295_vm1, %v12635_v52, -inf  ;;  %v12652_v31 = vadd.f32 %v9917_v29, %v12642_v12 }
 0x217   :  { %v827_v35 = vpop.f32.mrf.mxu1  ;;  %1309 = vmax.xlane.f32.xlu0 %v1308_v36 }
 0x218   :  { %v12655_v48 = vadd.f32 %v827_v35, %v12647_v63  ;;  %v1317_v9 = vsel %vm1295_vm1, %v12652_v31, -inf }
 0x219   :  { %1312 = vmax.xlane.f32.xlu1 %v1311_v3  ;;  %v12671_v3 = vpop.permute.xlu0 %2192 }
 0x21a   :  { %v1314_v55 = vsel %vm1295_vm1, %v12655_v48, -inf  ;;  %16600 = vst [vmem:[#allocation104_spill] sm:$0xff] %v12671_v3 }
 0x21b   :  { %1315 = vmax.xlane.f32.xlu0 %v1314_v55 }
 0x21d   :  { %1318 = vmax.xlane.f32.xlu1 %v1317_v9 }
 0x229   :  { %v9936_v23 = vpop.f32.mrf.mxu1 }
 0x22a   :  { %v12664_v36 = vadd.f32 %v9936_v23, %v12586_v44 }
 0x22b   :  { %v950_v29 = vpop.f32.mrf.mxu1 }
 0x22c   :  { %v12667_v35 = vadd.f32 %v950_v29, %v12591_v45  ;;  %v1323_v0 = vsel %vm1295_vm1, %v12664_v36, -inf }
 0x22d   :  { %v9939_v33 = vpop.f32.mrf.mxu1  ;;  %1324 = vmax.xlane.f32.xlu0 %v1323_v0  ;;  %v12686_v0 = vpop.permute.xlu0 %2176 }
 0x22e   :  { %v12674_v55 = vadd.f32 %v9939_v33, %v12599_v4  ;;  %v1320_v29 = vsel %vm1295_vm1, %v12667_v35, -inf  ;;  %16601 = vst [vmem:[#allocation105_spill] sm:$0xff] %v12686_v0 }
 0x22f   :  { %v960_v34 = vpop.f32.mrf.mxu1 }
 0x230   :  { %v12677_v9 = vadd.f32 %v960_v34, %v12609_v7  ;;  %v1329_v23 = vsel %vm1295_vm1, %v12674_v55, -inf }
 0x231   :  { %v9942_v51 = vpop.f32.mrf.mxu1  ;;  %1330 = vmax.xlane.f32.xlu1 %v1329_v23  ;;  %1321 = vmax.xlane.f32.xlu0 %v1320_v29  ;;  %v12705_v54 = vpop.permute.xlu0 %2194 }
 0x232   :  { %v12684_v3 = vadd.f32 %v9942_v51, %v12624_v59  ;;  %v1326_v24 = vsel %vm1295_vm1, %v12677_v9, -inf  ;;  %16602 = vst [vmem:[#allocation106_spill] sm:$0xff] %v12705_v54 }
 0x233   :  { %v970_v33 = vpop.f32.mrf.mxu1 }
 0x234   :  { %v12689_v58 = vadd.f32 %v970_v33, %v12629_v17  ;;  %v1335_v34 = vsel %vm1295_vm1, %v12684_v3, -inf }
 0x235   :  { %v9945_v47 = vpop.f32.mrf.mxu1  ;;  %1336 = vmax.xlane.f32.xlu1 %v1335_v34  ;;  %1327 = vmax.xlane.f32.xlu0 %v1326_v24  ;;  %v12711_v24 = vpop.permute.xlu1 %2182 }
 0x236   :  { %v12696_v23 = vadd.f32 %v9945_v47, %v12642_v12  ;;  %v1332_v0 = vsel %vm1295_vm1, %v12689_v58, -inf  ;;  %16604 = vst [vmem:[#allocation108_spill] sm:$0xff] %v12711_v24  ;;  %v12713_v34 = vpop.permute.xlu0 %2196 }
 0x237   :  { %v980_v51 = vpop.f32.mrf.mxu1  ;;  %16605 = vst [vmem:[#allocation109_spill] sm:$0xff] %v12713_v34 }
 0x238   :  { %v12699_v29 = vadd.f32 %v980_v51, %v12647_v63  ;;  %v1341_v33 = vsel %vm1295_vm1, %v12696_v23, -inf }
 0x239   :  { %1342 = vmax.xlane.f32.xlu1 %v1341_v33  ;;  %1333 = vmax.xlane.f32.xlu0 %v1332_v0  ;;  %v12715_v51 = vpop.permute.xlu1 %2200 }
 0x23a   :  { %v1338_v47 = vsel %vm1295_vm1, %v12699_v29, -inf  ;;  %16606 = vst [vmem:[#allocation110_spill] sm:$0xff] %v12715_v51  ;;  %v12717_v18 = vpop.permute.xlu0 %2180 }
 0x23b   :  { %16607 = vst [vmem:[#allocation111_spill] sm:$0xff] %v12717_v18 }
 0x23d   :  { %1339 = vmax.xlane.f32.xlu0 %v1338_v47  ;;  %v12722_v33 = vpop.permute.xlu1 %2186 }
 0x23e   :  { %16608 = vst [vmem:[#allocation112_spill] sm:$0xff] %v12722_v33  ;;  %v12724_v61 = vpop.permute.xlu0 %2198 }
 0x23f   :  { %16609 = vst [vmem:[#allocation113_spill] sm:$0xff] %v12724_v61 }
 0x241   :  { %v12739_v51 = vpop.permute.xlu1 %2204 }
 0x242   :  { %16610 = vst [vmem:[#allocation114_spill] sm:$0xff] %v12739_v51 }
 0x248   :  { %v9964_v26 = vpop.f32.mrf.mxu0 }
 0x249   :  { %v12720_v43 = vadd.f32 %v9964_v26, %v12586_v44 }
 0x24a   :  { %v1103_v0 = vpop.f32.mrf.mxu0 }
 0x24b   :  { %v12727_v54 = vadd.f32 %v1103_v0, %v12591_v45  ;;  %v1347_v47 = vsel %vm1295_vm1, %v12720_v43, -inf  ;;  %v12741_v0 = vpop.permute.xlu0 %2184 }
 0x24c   :  { %v9967_v24 = vpop.f32.mrf.mxu0  ;;  %1348 = vmax.xlane.f32.xlu1 %v1347_v47  ;;  %16611 = vst [vmem:[#allocation115_spill] sm:$0xff] %v12741_v0  ;;  %v12755_v0 = vpop.permute.xlu1 %2190 }
 0x24d   :  { %v12732_v18 = vadd.f32 %v9967_v24, %v12599_v4  ;;  %v1344_v33 = vsel %vm1295_vm1, %v12727_v54, -inf  ;;  %16612 = vst [vmem:[#allocation116_spill] sm:$0xff] %v12755_v0 }
 0x24e   :  { %v1113_v34 = vpop.f32.mrf.mxu0 }
 0x24f   :  { %v12735_v26 = vadd.f32 %v1113_v34, %v12609_v7  ;;  %v1353_v30 = vsel %vm1295_vm1, %v12732_v18, -inf  ;;  %v12757_v5 = vpop.permute.xlu0 %2202 }
 0x250   :  { %v9970_v61 = vpop.f32.mrf.mxu0  ;;  %1345 = vmax.xlane.f32.xlu1 %v1344_v33  ;;  %16613 = vst [vmem:[#allocation117_spill] sm:$0xff] %v12757_v5  ;;  %v12769_v60 = vpop.permute.xlu1 %2347 }
 0x251   :  { %v1350_v49 = vsel %vm1295_vm1, %v12735_v26, -inf  ;;  %v12746_v24 = vadd.f32 %v9970_v61, %v12624_v59  ;;  %16614 = vst [vmem:[#allocation118_spill] sm:$0xff] %v12769_v60 }
 0x252   :  { %v1123_v47 = vpop.f32.mrf.mxu0  ;;  %1351 = vmax.xlane.f32.xlu0 %v1350_v49 }
 0x253   :  { %v12749_v34 = vadd.f32 %v1123_v47, %v12629_v17  ;;  %v1359_v47 = vsel %vm1295_vm1, %v12746_v24, -inf  ;;  %v12773_v0 = vpop.permute.xlu0 %2188 }
 0x254   :  { %v9973_v56 = vpop.f32.mrf.mxu0  ;;  %1354 = vmax.xlane.f32.xlu1 %v1353_v30  ;;  %16615 = vst [vmem:[#allocation119_spill] sm:$0xff] %v12773_v0 }
 0x255   :  { %v1356_v33 = vsel %vm1295_vm1, %v12749_v34, -inf  ;;  %v12760_v49 = vadd.f32 %v9973_v56, %v12642_v12  ;;  %v12775_v56 = vpop.permute.xlu1 %2351 }
 0x256   :  { %v1133_v51 = vpop.f32.mrf.mxu0  ;;  %1357 = vmax.xlane.f32.xlu0 %v1356_v33  ;;  %16616 = vst [vmem:[#allocation120_spill] sm:$0xff] %v12775_v56 }
 0x257   :  { %v12763_v61 = vadd.f32 %v1133_v51, %v12647_v63  ;;  %v1365_v33 = vsel %vm1295_vm1, %v12760_v49, -inf  ;;  %v12777_v51 = vpop.permute.xlu0 %2206 }
 0x258   :  { %1360 = vmax.xlane.f32.xlu1 %v1359_v47 }
 0x259   :  { %v1362_v30 = vsel %vm1295_vm1, %v12763_v61, -inf  ;;  %v12779_v5 = vpop.permute.xlu1 %2369 }
 0x25a   :  { %1363 = vmax.xlane.f32.xlu0 %v1362_v30  ;;  %16617 = vst [vmem:[#allocation121_spill] sm:$0xff] %v12779_v5 }
 0x25b   :  { %v12781_v47 = vpop.permute.xlu0 %2361 }
 0x25c   :  { %1366 = vmax.xlane.f32.xlu1 %v1365_v33  ;;  %16618 = vst [vmem:[#allocation122_spill] sm:$0xff] %v12781_v47 }
 0x25d   :  { %v12786_v60 = vpop.permute.xlu1 %2371 }
 0x25e   :  { %16619 = vst [vmem:[#allocation123_spill] sm:$0xff] %v12786_v60 }
 0x268   :  { %v9992_v2 = vpop.f32.mrf.mxu1 }
 0x269   :  { %v12784_v62 = vadd.f32 %v9992_v2, %v12586_v44  ;;  %v12798_v2 = vpop.permute.xlu0 %2345 }
 0x26a   :  { %v1256_v30 = vpop.f32.mrf.mxu1  ;;  %16620 = vst [vmem:[#allocation124_spill] sm:$0xff] %v12798_v2 }
 0x26b   :  { %v12789_v11 = vadd.f32 %v1256_v30, %v12591_v45  ;;  %v1371_v33 = vsel %vm1295_vm1, %v12784_v62, -inf  ;;  %v12805_v30 = vpop.permute.xlu1 %2373 }
 0x26c   :  { %v9995_v56 = vpop.f32.mrf.mxu1  ;;  %1372 = vmax.xlane.f32.xlu1 %v1371_v33  ;;  %16621 = vst [vmem:[#allocation125_spill] sm:$0xff] %v12805_v30 }
 0x26d   :  { %v12794_v0 = vadd.f32 %v9995_v56, %v12599_v4  ;;  %v1368_v47 = vsel %vm1295_vm1, %v12789_v11, -inf  ;;  %v12817_v2 = vpop.permute.xlu0 %2363 }
 0x26e   :  { %v1266_v5 = vpop.f32.mrf.mxu1  ;;  %1369 = vmax.xlane.f32.xlu0 %v1368_v47  ;;  %16622 = vst [vmem:[#allocation126_spill] sm:$0xff] %v12817_v2 }
 0x26f   :  { %v12801_v44 = vadd.f32 %v1266_v5, %v12609_v7  ;;  %v1377_v45 = vsel %vm1295_vm1, %v12794_v0, -inf }
 0x270   :  { %v9998_v60 = vpop.f32.mrf.mxu1  ;;  %1378 = vmax.xlane.f32.xlu1 %v1377_v45 }
 0x271   :  { %v12808_v4 = vadd.f32 %v9998_v60, %v12624_v59  ;;  %v1374_v56 = vsel %vm1295_vm1, %v12801_v44, -inf  ;;  %v12824_v59 = vpop.permute.xlu1 %2375 }
 0x272   :  { %v1276_v33 = vpop.f32.mrf.mxu1  ;;  %1375 = vmax.xlane.f32.xlu0 %v1374_v56  ;;  %16623 = vst [vmem:[#allocation127_spill] sm:$0xff] %v12824_v59 }
 0x273   :  { %v12813_v47 = vadd.f32 %v1276_v33, %v12629_v17  ;;  %v1383_v5 = vsel %vm1295_vm1, %v12808_v4, -inf }
 0x274   :  { %v10001_v7 = vpop.f32.mrf.mxu1  ;;  %1384 = vmax.xlane.f32.xlu1 %v1383_v5 }
 0x275   :  { %v12820_v45 = vadd.f32 %v10001_v7, %v12642_v12  ;;  %v1380_v60 = vsel %vm1295_vm1, %v12813_v47, -inf  ;;  %v12833_v5 = vpop.permute.xlu1 %2538  ;;  %v12835_v12 = vpop.permute.xlu0 %2365 }
 0x276   :  { %v1286_v30 = vpop.f32.mrf.mxu1  ;;  %1381 = vmax.xlane.f32.xlu0 %v1380_v60  ;;  %16624 = vst [vmem:[#allocation128_spill] sm:$0xff] %v12833_v5  ;;  %16625 = vst [vmem:[#allocation129_spill] sm:$0xff] %v12835_v12 }
 0x277   :  { %v12827_v17 = vadd.f32 %v1286_v30, %v12647_v63  ;;  %v1389_v56 = vsel %vm1295_vm1, %v12820_v45, -inf }
 0x278   :  { %1390 = vmax.xlane.f32.xlu1 %v1389_v56 }
 0x279   :  { %v1386_v33 = vsel %vm1295_vm1, %v12827_v17, -inf  ;;  %v12837_v7 = vpop.permute.xlu1 %2540  ;;  %v12839_v2 = vpop.permute.xlu0 %2349 }
 0x27a   :  { %1387 = vmax.xlane.f32.xlu0 %v1386_v33  ;;  %16626 = vst [vmem:[#allocation130_spill] sm:$0xff] %v12837_v7  ;;  %16627 = vst [vmem:[#allocation131_spill] sm:$0xff] %v12839_v2 }
 0x27d   :  { %v12841_v60 = vpop.permute.xlu1 %2542  ;;  %v12843_v63 = vpop.permute.xlu0 %2367 }
 0x27e   :  { %16628 = vst [vmem:[#allocation132_spill] sm:$0xff] %v12841_v60  ;;  %16629 = vst [vmem:[#allocation133_spill] sm:$0xff] %v12843_v63 }
 0x281   :  { %v12845_v30 = vpop.permute.xlu0 %2534  ;;  %v12847_v59 = vpop.permute.xlu1 %2544 }
 0x282   :  { %16630 = vst [vmem:[#allocation134_spill] sm:$0xff] %v12845_v30  ;;  %16631 = vst [vmem:[#allocation135_spill] sm:$0xff] %v12847_v59 }
 0x285   :  { %v12849_v56 = vpop.permute.xlu1 %2711  ;;  %v12851_v40 = vpop.permute.xlu0 %2536 }
 0x286   :  { %16632 = vst [vmem:[#allocation136_spill] sm:$0xff] %v12849_v56  ;;  %16633 = vst [vmem:[#allocation137_spill] sm:$0xff] %v12851_v40 }
 0x289   :  { %v12853_v5 = vpop.permute.xlu1 %2713 }
 0x28a   :  { %16634 = vst [vmem:[#allocation138_spill] sm:$0xff] %v12853_v5 }
 0x296   :  { %v1301_v33 = vpop.xlane.xlu0 %1300 }
 0x297   :  { %v1393_v12 = vsub.f32 %v12594_v20, %v1301_v33 }
 0x299   :  { %v1426_v7 = vmul.f32 1.442695, %v1393_v12 }
 0x29a   :  { %v1307_v13 = vpop.xlane.xlu1 %1306  ;;  %v1298_v2 = vpop.xlane.xlu0 %1297 }
 0x29b   :  { %11028 = vpow2.f32 %v1426_v7  ;;  %v1395_v60 = vsub.f32 %v12612_v1, %v1307_v13  ;;  %v1392_v63 = vsub.f32 %v12602_v37, %v1298_v2 }
 0x29d   :  { %v1430_v30 = vmul.f32 1.442695, %v1395_v60  ;;  %v1424_v53 = vmul.f32 1.442695, %v1392_v63 }
 0x29e   :  { %v1304_v59 = vpop.xlane.xlu1 %1303 }
 0x29f   :  { %11030 = vpow2.f32 %v1430_v30  ;;  %v1394_v56 = vsub.f32 %v12615_v16, %v1304_v59 }
 0x2a0   :  { %11032 = vpow2.f32 %v1424_v53  ;;  %v1310_v40 = vpop.xlane.xlu0 %1309 }
 0x2a1   :  { %v1428_v5 = vmul.f32 1.442695, %v1394_v56  ;;  %v1396_v50 = vsub.f32 %v12635_v52, %v1310_v40 }
 0x2a2   :  { %v1313_v20 = vpop.xlane.xlu1 %1312 }
 0x2a3   :  { %11034 = vpow2.f32 %v1428_v5  ;;  %v1432_v12 = vmul.f32 1.442695, %v1396_v50  ;;  %v1397_v7 = vsub.f32 %v12632_v46, %v1313_v20 }
 0x2a4   :  { %v1316_v33 = vpop.xlane.xlu0 %1315 }
 0x2a5   :  { %v1434_v13 = vmul.f32 1.442695, %v1397_v7  ;;  %v1398_v37 = vsub.f32 %v12655_v48, %v1316_v33  ;;  %11036 = vpow2.f32 %v1432_v12 }
 0x2a6   :  { %v1319_v1 = vpop.xlane.xlu1 %1318 }
 0x2a7   :  { %11038 = vpow2.f32 %v1434_v13  ;;  %v1436_v2 = vmul.f32 1.442695, %v1398_v37  ;;  %v1399_v16 = vsub.f32 %v12652_v31, %v1319_v1 }
 0x2a8   :  { %v12863_v53 = vpop.eup %11028 }
 0x2a9   :  { %v1438_v59 = vmul.f32 1.442695, %v1399_v16  ;;  %v1491_v40 = vsel %vm1295_vm1, %v12863_v53, 0.0  ;;  %11040 = vpow2.f32 %v1436_v2 }
 0x2aa   :  { %1492 = vadd.xlane.f32.xlu1 %v1491_v40 }
 0x2ab   :  { %11042 = vpow2.f32 %v1438_v59 }
 0x2ac   :  { %v12867_v50 = vpop.eup %11030 }
 0x2ad   :  { %v12869_v52 = vpop.eup %11032  ;;  %v1497_v48 = vsel %vm1295_vm1, %v12867_v50, 0.0 }
 0x2ae   :  { %1498 = vadd.xlane.f32.xlu1 %v1497_v48  ;;  %v1488_v31 = vsel %vm1295_vm1, %v12869_v52, 0.0 }
 0x2af   :  { %1489 = vadd.xlane.f32.xlu0 %v1488_v31 }
 0x2b0   :  { %v12875_v46 = vpop.eup %11034 }
 0x2b1   :  { %v1494_v5 = vsel %vm1295_vm1, %v12875_v46, 0.0 }
 0x2b2   :  { %v12879_v60 = vpop.eup %11036 }
 0x2b3   :  { %1495 = vadd.xlane.f32.xlu0 %v1494_v5  ;;  %v1500_v56 = vsel %vm1295_vm1, %v12879_v60, 0.0 }
 0x2b4   :  { %v12881_v63 = vpop.eup %11038 }
 0x2b5   :  { %v1503_v30 = vsel %vm1295_vm1, %v12881_v63, 0.0 }
 0x2b6   :  { %1504 = vadd.xlane.f32.xlu1 %v1503_v30  ;;  %v1325_v20 = vpop.xlane.xlu0 %1324  ;;  %v12887_v12 = vpop.eup %11040 }
 0x2b7   :  { %1501 = vadd.xlane.f32.xlu0 %v1500_v56  ;;  %v1401_v7 = vsub.f32 %v12664_v36, %v1325_v20  ;;  %v1506_v2 = vsel %vm1295_vm1, %v12887_v12, 0.0 }
 0x2b8   :  { %v12890_v33 = vpop.eup %11042 }
 0x2b9   :  { %v1442_v13 = vmul.f32 1.442695, %v1401_v7  ;;  %v1509_v37 = vsel %vm1295_vm1, %v12890_v33, 0.0 }
 0x2ba   :  { %1510 = vadd.xlane.f32.xlu1 %v1509_v37  ;;  %v1331_v1 = vpop.xlane.xlu1 %1330  ;;  %v1322_v16 = vpop.xlane.xlu0 %1321 }
 0x2bb   :  { %11044 = vpow2.f32 %v1442_v13  ;;  %v1403_v59 = vsub.f32 %v12674_v55, %v1331_v1  ;;  %1507 = vadd.xlane.f32.xlu0 %v1506_v2  ;;  %v1400_v40 = vsub.f32 %v12667_v35, %v1322_v16 }
 0x2bd   :  { %v1446_v48 = vmul.f32 1.442695, %v1403_v59  ;;  %v1440_v36 = vmul.f32 1.442695, %v1400_v40 }
 0x2be   :  { %v1337_v31 = vpop.xlane.xlu1 %1336  ;;  %v1328_v5 = vpop.xlane.xlu0 %1327 }
 0x2bf   :  { %11046 = vpow2.f32 %v1446_v48  ;;  %v1405_v30 = vsub.f32 %v12684_v3, %v1337_v31  ;;  %v1402_v56 = vsub.f32 %v12677_v9, %v1328_v5 }
 0x2c0   :  { %11048 = vpow2.f32 %v1440_v36 }
 0x2c1   :  { %v1450_v20 = vmul.f32 1.442695, %v1405_v30  ;;  %v1444_v7 = vmul.f32 1.442695, %v1402_v56 }
 0x2c2   :  { %v1343_v37 = vpop.xlane.xlu1 %1342  ;;  %v1334_v8 = vpop.xlane.xlu0 %1333 }
 0x2c3   :  { %11050 = vpow2.f32 %v1450_v20  ;;  %v1407_v55 = vsub.f32 %v12696_v23, %v1343_v37  ;;  %v1404_v13 = vsub.f32 %v12689_v58, %v1334_v8 }
 0x2c4   :  { %11052 = vpow2.f32 %v1444_v7 }
 0x2c5   :  { %v1454_v35 = vmul.f32 1.442695, %v1407_v55  ;;  %v1448_v1 = vmul.f32 1.442695, %v1404_v13 }
 0x2c6   :  { %v1340_v2 = vpop.xlane.xlu0 %1339 }
 0x2c7   :  { %11054 = vpow2.f32 %v1454_v35  ;;  %v1406_v16 = vsub.f32 %v12699_v29, %v1340_v2 }
 0x2c8   :  { %v12903_v3 = vpop.eup %11044  ;;  %11056 = vpow2.f32 %v1448_v1 }
 0x2c9   :  { %v1452_v9 = vmul.f32 1.442695, %v1406_v16  ;;  %v1515_v59 = vsel %vm1295_vm1, %v12903_v3, 0.0 }
 0x2ca   :  { %1516 = vadd.xlane.f32.xlu0 %v1515_v59 }
 0x2cb   :  { %11058 = vpow2.f32 %v1452_v9 }
 0x2cc   :  { %v12907_v40 = vpop.eup %11046 }
 0x2cd   :  { %v12909_v23 = vpop.eup %11048  ;;  %v1521_v8 = vsel %vm1295_vm1, %v12907_v40, 0.0 }
 0x2ce   :  { %1522 = vadd.xlane.f32.xlu1 %v1521_v8  ;;  %v1512_v58 = vsel %vm1295_vm1, %v12909_v23, 0.0 }
 0x2cf   :  { %1513 = vadd.xlane.f32.xlu0 %v1512_v58 }
 0x2d0   :  { %v12915_v29 = vpop.eup %11050 }
 0x2d1   :  { %v12917_v48 = vpop.eup %11052  ;;  %v1527_v36 = vsel %vm1295_vm1, %v12915_v29, 0.0 }
 0x2d2   :  { %1528 = vadd.xlane.f32.xlu1 %v1527_v36  ;;  %v1518_v31 = vsel %vm1295_vm1, %v12917_v48, 0.0 }
 0x2d3   :  { %1519 = vadd.xlane.f32.xlu0 %v1518_v31 }
 0x2d4   :  { %v12923_v5 = vpop.eup %11054 }
 0x2d5   :  { %v12925_v30 = vpop.eup %11056  ;;  %v1533_v56 = vsel %vm1295_vm1, %v12923_v5, 0.0  ;;  %v1349_v20 = vpop.xlane.xlu1 %1348 }
 0x2d6   :  { %1534 = vadd.xlane.f32.xlu1 %v1533_v56  ;;  %v1409_v7 = vsub.f32 %v12720_v43, %v1349_v20  ;;  %v1524_v37 = vsel %vm1295_vm1, %v12925_v30, 0.0 }
 0x2d7   :  { %1525 = vadd.xlane.f32.xlu0 %v1524_v37 }
 0x2d8   :  { %v12932_v55 = vpop.eup %11058  ;;  %v1458_v13 = vmul.f32 1.442695, %v1409_v7 }
 0x2d9   :  { %v1346_v35 = vpop.xlane.xlu1 %1345  ;;  %v1530_v1 = vsel %vm1295_vm1, %v12932_v55, 0.0 }
 0x2da   :  { %11060 = vpow2.f32 %v1458_v13  ;;  %v1408_v2 = vsub.f32 %v12727_v54, %v1346_v35 }
 0x2db   :  { %1531 = vadd.xlane.f32.xlu0 %v1530_v1  ;;  %v1352_v16 = vpop.xlane.xlu0 %1351 }
 0x2dc   :  { %v1456_v9 = vmul.f32 1.442695, %v1408_v2  ;;  %v1410_v59 = vsub.f32 %v12735_v26, %v1352_v16 }
 0x2dd   :  { %v1355_v43 = vpop.xlane.xlu1 %1354 }
 0x2de   :  { %11062 = vpow2.f32 %v1456_v9  ;;  %v1460_v8 = vmul.f32 1.442695, %v1410_v59  ;;  %v1411_v58 = vsub.f32 %v12732_v18, %v1355_v43 }
 0x2df   :  { %v1358_v36 = vpop.xlane.xlu0 %1357 }
 0x2e0   :  { %11064 = vpow2.f32 %v1460_v8  ;;  %v1462_v31 = vmul.f32 1.442695, %v1411_v58  ;;  %v1412_v56 = vsub.f32 %v12749_v34, %v1358_v36 }
 0x2e1   :  { %v1361_v20 = vpop.xlane.xlu1 %1360 }
 0x2e2   :  { %11066 = vpow2.f32 %v1462_v31  ;;  %v1464_v7 = vmul.f32 1.442695, %v1412_v56  ;;  %v1413_v54 = vsub.f32 %v12746_v24, %v1361_v20 }
 0x2e3   :  { %v1364_v37 = vpop.xlane.xlu0 %1363 }
 0x2e4   :  { %11068 = vpow2.f32 %v1464_v7  ;;  %v1466_v13 = vmul.f32 1.442695, %v1413_v54  ;;  %v1414_v26 = vsub.f32 %v12763_v61, %v1364_v37 }
 0x2e5   :  { %v1367_v35 = vpop.xlane.xlu1 %1366 }
 0x2e6   :  { %11070 = vpow2.f32 %v1466_v13  ;;  %v1468_v1 = vmul.f32 1.442695, %v1414_v26  ;;  %v1415_v18 = vsub.f32 %v12760_v49, %v1367_v35 }
 0x2e7   :  { %v12943_v2 = vpop.eup %11060 }
 0x2e8   :  { %11072 = vpow2.f32 %v1468_v1  ;;  %v1470_v16 = vmul.f32 1.442695, %v1415_v18  ;;  %v1539_v34 = vsel %vm1295_vm1, %v12943_v2, 0.0 }
 0x2e9   :  { %1540 = vadd.xlane.f32.xlu1 %v1539_v34 }
 0x2ea   :  { %11074 = vpow2.f32 %v1470_v16 }
 0x2eb   :  { %v12947_v24 = vpop.eup %11062 }
 0x2ec   :  { %v1536_v9 = vsel %vm1295_vm1, %v12947_v24, 0.0 }
 0x2ed   :  { %v12951_v61 = vpop.eup %11064  ;;  %1537 = vadd.xlane.f32.xlu1 %v1536_v9 }
 0x2ee   :  { %v1542_v49 = vsel %vm1295_vm1, %v12951_v61, 0.0 }
 0x2ef   :  { %v12955_v59 = vpop.eup %11066  ;;  %1543 = vadd.xlane.f32.xlu0 %v1542_v49 }
 0x2f0   :  { %v1545_v43 = vsel %vm1295_vm1, %v12955_v59, 0.0 }
 0x2f1   :  { %v12959_v8 = vpop.eup %11068  ;;  %1546 = vadd.xlane.f32.xlu1 %v1545_v43 }
 0x2f2   :  { %v1548_v58 = vsel %vm1295_vm1, %v12959_v8, 0.0 }
 0x2f3   :  { %v12963_v36 = vpop.eup %11070  ;;  %1549 = vadd.xlane.f32.xlu0 %v1548_v58 }
 0x2f4   :  { %v1551_v31 = vsel %vm1295_vm1, %v12963_v36, 0.0 }
 0x2f5   :  { %v12967_v56 = vpop.eup %11072  ;;  %1552 = vadd.xlane.f32.xlu1 %v1551_v31  ;;  %v1373_v20 = vpop.xlane.xlu1 %1372 }
 0x2f6   :  { %v1417_v7 = vsub.f32 %v12784_v62, %v1373_v20  ;;  %v1554_v54 = vsel %vm1295_vm1, %v12967_v56, 0.0 }
 0x2f7   :  { %v12972_v37 = vpop.eup %11074  ;;  %1555 = vadd.xlane.f32.xlu0 %v1554_v54  ;;  %v1370_v13 = vpop.xlane.xlu0 %1369 }
 0x2f8   :  { %v1474_v26 = vmul.f32 1.442695, %v1417_v7  ;;  %v1416_v35 = vsub.f32 %v12789_v11, %v1370_v13  ;;  %v1557_v1 = vsel %vm1295_vm1, %v12972_v37, 0.0 }
 0x2f9   :  { %1558 = vadd.xlane.f32.xlu1 %v1557_v1  ;;  %v1379_v49 = vpop.xlane.xlu1 %1378 }
 0x2fa   :  { %11076 = vpow2.f32 %v1474_v26  ;;  %v1472_v18 = vmul.f32 1.442695, %v1416_v35  ;;  %v1419_v20 = vsub.f32 %v12794_v0, %v1379_v49 }
 0x2fb   :  { %v1376_v11 = vpop.xlane.xlu0 %1375 }
 0x2fc   :  { %11078 = vpow2.f32 %v1472_v18  ;;  %v1418_v58 = vsub.f32 %v12801_v44, %v1376_v11  ;;  %v1478_v26 = vmul.f32 1.442695, %v1419_v20 }
 0x2fd   :  { %v1385_v31 = vpop.xlane.xlu1 %1384 }
 0x2fe   :  { %v1476_v54 = vmul.f32 1.442695, %v1418_v58  ;;  %v1421_v13 = vsub.f32 %v12808_v4, %v1385_v31 }
 0x2ff   :  { %v1382_v43 = vpop.xlane.xlu0 %1381 }
 0x300   :  { %11080 = vpow2.f32 %v1476_v54  ;;  %v1482_v18 = vmul.f32 1.442695, %v1421_v13 }
 0x301   :  { %v1391_v1 = vpop.xlane.xlu1 %1390  ;;  %11082 = vpow2.f32 %v1478_v26 }
 0x302   :  { %11084 = vpow2.f32 %v1482_v18 }
 0x303   :  { %v1388_v7 = vpop.xlane.xlu0 %1387 }
 0x304   :  { %v1422_v35 = vsub.f32 %v12827_v17, %v1388_v7 }
 0x307   :  { %v12977_v16 = vpop.eup %11076 }
 0x308   :  { %v1563_v62 = vsel %vm1295_vm1, %v12977_v16, 0.0 }
 0x309   :  { %v12981_v34 = vpop.eup %11078  ;;  %1564 = vadd.xlane.f32.xlu1 %v1563_v62  ;;  %v1420_v62 = vsub.f32 %v12813_v47, %v1382_v43 }
 0x30a   :  { %v1560_v9 = vsel %vm1295_vm1, %v12981_v34, 0.0 }
 0x30b   :  { %1561 = vadd.xlane.f32.xlu0 %v1560_v9  ;;  %v1423_v9 = vsub.f32 %v12820_v45, %v1391_v1  ;;  %v1480_v44 = vmul.f32 1.442695, %v1420_v62 }
 0x30d   :  { %v1486_v11 = vmul.f32 1.442695, %v1423_v9  ;;  %v12995_v17 = vpop.eup %11080 }
 0x30e   :  { %v12997_v58 = vpop.eup %11082  ;;  %v1566_v45 = vsel %vm1295_vm1, %v12995_v17, 0.0 }
 0x30f   :  { %v13001_v43 = vpop.eup %11084  ;;  %v1569_v31 = vsel %vm1295_vm1, %v12997_v58, 0.0 }
 0x310   :  { %v1575_v54 = vsel %vm1295_vm1, %v13001_v43, 0.0 }
 0x31a   :  { %2355 = vrot.lane.b32.xlu1 %v12239_v42, %s11632_s1 }
 0x321   :  { %2353 = vrot.lane.b32.xlu0 %v12223_v6, %s11632_s1  ;;  %v1484_v6 = vmul.f32 1.442695, %v1422_v35 }
 0x323   :  { %11086 = vpow2.f32 %v1484_v6 }
 0x324   :  { %11088 = vpow2.f32 %v1480_v44 }
 0x325   :  { %11090 = vpow2.f32 %v1486_v11 }
 0x330   :  { %v13005_v20 = vpop.eup %11086 }
 0x331   :  { %v13009_v13 = vpop.eup %11088  ;;  %v1578_v35 = vsel %vm1295_vm1, %v13005_v20, 0.0 }
 0x332   :  { %v13013_v1 = vpop.eup %11090  ;;  %v1572_v9 = vsel %vm1295_vm1, %v13009_v13, 0.0 }
 0x333   :  { %v1493_v0 = vpop.xlane.xlu1 %1492 }
 0x334   :  { %11092 = vrcp.f32 %v1493_v0 }
 0x337   :  { %v1499_v49 = vpop.xlane.xlu1 %1498 }
 0x338   :  { %v1490_v4 = vpop.xlane.xlu0 %1489 }
 0x339   :  { %11094 = vrcp.f32 %v1490_v4 }
 0x33a   :  { %11096 = vrcp.f32 %v1499_v49  ;;  %v1581_v49 = vsel %vm1295_vm1, %v13013_v1, 0.0 }
 0x33c   :  { %v1496_v47 = vpop.xlane.xlu0 %1495 }
 0x33d   :  { %11098 = vrcp.f32 %v1496_v47 }
 0x33e   :  { %1567 = vadd.xlane.f32.xlu1 %v1566_v45  ;;  %v13024_v45 = vadd.f32 %v12271_v22, %v12188_v19  ;;  %v13035_v22 = vadd.f32 %v12251_v28, %v12188_v19  ;;  %v13047_v28 = vadd.f32 %v12227_v27, %v12188_v19  ;;  %v13059_v27 = vadd.f32 %v12204_v21, %v12188_v19 }
 0x33f   :  { %v1505_v6 = vpop.xlane.xlu1 %1504 }
 0x340   :  { %11100 = vrcp.f32 %v1505_v6  ;;  %v1502_v7 = vpop.xlane.xlu0 %1501  ;;  %1570 = vadd.xlane.f32.xlu0 %v1569_v31  ;;  %16635 = vst [vmem:[#allocation139_spill] sm:$0xff] %v13024_v45  ;;  %16636 = vst [vmem:[#allocation140_spill] sm:$0xff] %v13035_v22 }
 0x341   :  { %11102 = vrcp.f32 %v1502_v7  ;;  %v11093_v62 = vpop.eup %11092  ;;  %16637 = vst [vmem:[#allocation141_spill] sm:$0xff] %v13047_v28  ;;  %16638 = vst [vmem:[#allocation142_spill] sm:$0xff] %v13059_v27 }
 0x342   :  { %1576 = vadd.xlane.f32.xlu1 %v1575_v54  ;;  %v1587_v0 = vmul.f32 %v11093_v62, %v12863_v53 }
 0x343   :  { %v1511_v26 = vpop.xlane.xlu1 %1510 }
 0x344   :  { %11104 = vrcp.f32 %v1511_v26  ;;  %v1508_v18 = vpop.xlane.xlu0 %1507  ;;  %1579 = vadd.xlane.f32.xlu0 %v1578_v35 }
 0x345   :  { %11106 = vrcp.f32 %v1508_v18 }
 0x346   :  { %v11095_v44 = vpop.eup %11094  ;;  %1573 = vadd.xlane.f32.xlu1 %v1572_v9  ;;  %v16639_v9 = vld [vmem:[#allocation75_spill] sm:$0xff] }
 0x347   :  { %v1585_v11 = vmul.f32 %v11095_v44, %v12869_v52  ;;  %v11097_v4 = vpop.eup %11096 }
 0x348   :  { %v1591_v53 = vmul.f32 %v11097_v4, %v12867_v50  ;;  %v16640_v4 = vld [vmem:[#allocation40_spill] sm:$0xff] }
 0x349   :  { %10018 = vmatprep.mubr.msk.f32.mxu0 %vm1295_vm1, %v1585_v11 }
 0x34a   :  { %v11099_v47 = vpop.eup %11098  ;;  %10019 = vmatmul.mubr.msk.f32.vlgmr.msra.gmra.mxu0 %vm1295_vm1, %v1587_v0  ;;  %1582 = vadd.xlane.f32.xlu1 %v1581_v49  ;;  %v16641_v49 = vld [vmem:[#allocation64_spill] sm:$0xff] }
 0x34b   :  { %10059 = vmatpush3.msra.mxu0 %v12460_v39  ;;  %v1589_v52 = vmul.f32 %v11099_v47, %v12875_v46 }
 0x34c   :  { %10060 = vmatprep.subr.mxu0 %v13024_v45 }
 0x34d   :  { %v11101_v6 = vpop.eup %11100  ;;  %10061 = vmatpush3.msra.mxu0 %v13024_v45  ;;  %10021 = vmatprep.mubr.msk.f32.mxu0 %vm1295_vm1, %v1589_v52 }
 0x34e   :  { %v11103_v31 = vpop.eup %11102  ;;  %10062 = vmatprep.subr.mxu0 %v12246_v14  ;;  %10022 = vmatmul.mubr.msk.f32.gmra.mxu0 %vm1295_vm1, %v1591_v53  ;;  %v1595_v46 = vmul.f32 %v11101_v6, %v12881_v63 }
 0x34f   :  { %10063 = vmatpush3.msra.mxu0 %v12246_v14  ;;  %v1593_v50 = vmul.f32 %v11103_v31, %v12879_v60  ;;  %v16642_v31 = vld [vmem:[#allocation103_spill] sm:$0xff] }
 0x350   :  { %10064 = vmatprep.subr.mxu0 %v13035_v22 }
 0x351   :  { %v11105_v7 = vpop.eup %11104  ;;  %10065 = vmatpush3.msra.mxu0 %v13035_v22  ;;  %10024 = vmatprep.mubr.msk.f32.mxu0 %vm1295_vm1, %v1593_v50  ;;  %v16644_v50 = vld [vmem:[#allocation78_spill] sm:$0xff] }
 0x352   :  { %v11107_v54 = vpop.eup %11106  ;;  %10066 = vmatprep.subr.mxu0 %v12221_v10  ;;  %10025 = vmatmul.mubr.msk.f32.gmra.mxu0 %vm1295_vm1, %v1595_v46  ;;  %v1599_v63 = vmul.f32 %v11105_v7, %v12890_v33  ;;  %v13089_v46 = vadd.f32 %v16642_v31, %v12188_v19  ;;  %v16645_v7 = vld [vmem:[#allocation102_spill] sm:$0xff] }
 0x353   :  { %10067 = vmatpush3.msra.mxu0 %v12221_v10  ;;  %v1517_v60 = vpop.xlane.xlu0 %1516  ;;  %v1597_v26 = vmul.f32 %v11107_v54, %v12887_v12  ;;  %v16646_v54 = vld [vmem:[#allocation66_spill] sm:$0xff] }
 0x354   :  { %10068 = vmatprep.subr.mxu0 %v13047_v28  ;;  %11108 = vrcp.f32 %v1517_v60  ;;  %16643 = vst [vmem:[#allocation103_spill] sm:$0xff] %v13089_v46 }
 0x355   :  { %10069 = vmatpush3.msra.mxu0 %v13047_v28  ;;  %10027 = vmatprep.mubr.msk.f32.mxu0 %vm1295_vm1, %v1597_v26  ;;  %v16647_v26 = vld [vmem:[#allocation98_spill] sm:$0xff] }
 0x356   :  { %10070 = vmatprep.subr.mxu0 %v12196_v41  ;;  %10028 = vmatmul.mubr.msk.f32.gmra.mxu0 %vm1295_vm1, %v1599_v63 }
 0x357   :  { %10071 = vmatpush3.msra.mxu0 %v12196_v41  ;;  %v1523_v33 = vpop.xlane.xlu1 %1522 }
 0x358   :  { %10072 = vmatprep.subr.mxu0 %v13059_v27  ;;  %v1514_v12 = vpop.xlane.xlu0 %1513 }
 0x359   :  { %10073 = vmatpush3.msra.mxu0 %v13059_v27  ;;  %11110 = vrcp.f32 %v1514_v12  ;;  %v16649_v12 = vld [vmem:[#allocation60_spill] sm:$0xff] }
 0x35a   :  { %10114 = vmatprep.subr.msk.mxu0 %vm682_vm0, %v12777_v51  ;;  %2532 = vrot.lane.b32.xlu0 %v12301_v38, %s11632_s1  ;;  %11112 = vrcp.f32 %v1523_v33  ;;  %v13104_v33 = vadd.f32 %v16647_v26, %v12188_v19  ;;  %v16662_v26 = vld [vmem:[#allocation76_spill] sm:$0xff] }
 0x35b   :  { %v1529_v21 = vpop.xlane.xlu1 %1528  ;;  %2709 = vrot.lane.b32.xlu1 %v12381_v57, %s11632_s1 }
 0x35c   :  { %v1520_v35 = vpop.xlane.xlu0 %1519  ;;  %16648 = vst [vmem:[#allocation98_spill] sm:$0xff] %v13104_v33 }
 0x35d   :  { %11114 = vrcp.f32 %v1520_v35 }
 0x35e   :  { %2357 = vrot.lane.b32.xlu0 %v12248_v32, %s11632_s1  ;;  %11116 = vrcp.f32 %v1529_v21  ;;  %v16651_v21 = vld [vmem:[#allocation81_spill] sm:$0xff] }
 0x35f   :  { %2359 = vrot.lane.b32.xlu1 %v12265_v15, %s11632_s1  ;;  %v1535_v62 = vpop.xlane.xlu1 %1534 }
 0x360   :  { %v1526_v18 = vpop.xlane.xlu0 %1525 }
 0x361   :  { %11118 = vrcp.f32 %v1526_v18  ;;  %v11109_v11 = vpop.eup %11108 }
 0x362   :  { %2530 = vrot.lane.b32.xlu0 %v12316_v25, %s11632_s1  ;;  %11120 = vrcp.f32 %v1535_v62  ;;  %v1603_v52 = vmul.f32 %v11109_v11, %v12903_v3 }
 0x363   :  { %2707 = vrot.lane.b32.xlu1 %v16639_v9, %s11632_s1 }
 0x364   :  { %v1532_v44 = vpop.xlane.xlu0 %1531 }
 0x365   :  { %11122 = vrcp.f32 %v1532_v44  ;;  %v16652_v44 = vld [vmem:[#allocation59_spill] sm:$0xff] }
 0x366   :  { %v11111_v0 = vpop.eup %11110  ;;  %2514 = vrot.lane.b32.xlu0 %v16640_v4, %s11632_s1  ;;  %v13120_v11 = vadd.f32 %v16652_v44, %v12188_v19  ;;  %v16665_v44 = vld [vmem:[#allocation87_spill] sm:$0xff] }
 0x367   :  { %2516 = vrot.lane.b32.xlu1 %v16641_v49, %s11632_s1  ;;  %v1601_v47 = vmul.f32 %v11111_v0, %v12909_v23  ;;  %v11113_v53 = vpop.eup %11112  ;;  %v16654_v0 = vld [vmem:[#allocation57_spill] sm:$0xff] }
 0x368   :  { %v1607_v23 = vmul.f32 %v11113_v53, %v12907_v40  ;;  %16653 = vst [vmem:[#allocation59_spill] sm:$0xff] %v13120_v11 }
 0x369   :  { %10046 = vmatprep.mubr.msk.f32.mxu1 %vm1295_vm1, %v1601_v47  ;;  %v16655_v47 = vld [vmem:[#allocation69_spill] sm:$0xff] }
 0x36a   :  { %v11115_v6 = vpop.eup %11114  ;;  %10047 = vmatmul.mubr.msk.f32.vlgmr.msra.gmra.mxu1 %vm1295_vm1, %v1603_v52  ;;  %2705 = vrot.lane.b32.xlu0 %v16644_v50, %s11632_s1  ;;  %v16656_v52 = vld [vmem:[#allocation72_spill] sm:$0xff] }
 0x36b   :  { %10087 = vmatpush3.msra.mxu1 %v16645_v7  ;;  %2518 = vrot.lane.b32.xlu1 %v16646_v54, %s11632_s1  ;;  %v1605_v3 = vmul.f32 %v11115_v6, %v12917_v48  ;;  %v11117_v63 = vpop.eup %11116  ;;  %v16650_v48 = vld [vmem:[#allocation68_spill] sm:$0xff] }
 0x36c   :  { %10088 = vmatprep.subr.mxu1 %v13089_v46  ;;  %v1611_v35 = vmul.f32 %v11117_v63, %v12915_v29  ;;  %v16657_v6 = vld [vmem:[#allocation56_spill] sm:$0xff] }
 0x36d   :  { %10089 = vmatpush3.msra.mxu1 %v13089_v46  ;;  %10049 = vmatprep.mubr.msk.f32.mxu1 %vm1295_vm1, %v1605_v3  ;;  %v13136_v31 = vadd.f32 %v16657_v6, %v12188_v19  ;;  %v16658_v3 = vld [vmem:[#allocation55_spill] sm:$0xff]  ;;  %v16666_v6 = vld [vmem:[#allocation89_spill] sm:$0xff] }
 0x36e   :  { %v11119_v60 = vpop.eup %11118  ;;  %10090 = vmatprep.subr.mxu1 %v16649_v12  ;;  %10050 = vmatmul.mubr.msk.f32.gmra.mxu1 %vm1295_vm1, %v1607_v23  ;;  %v16659_v23 = vld [vmem:[#allocation84_spill] sm:$0xff]  ;;  %v16661_v19 = vld [vmem:[#allocation127_spill] sm:$0xff] }
 0x36f   :  { %10091 = vmatpush3.msra.mxu1 %v16649_v12  ;;  %2520 = vrot.lane.b32.xlu0 %v16650_v48, %s11632_s1  ;;  %v1609_v40 = vmul.f32 %v11119_v60, %v12925_v30  ;;  %v11121_v18 = vpop.eup %11120 }
 0x370   :  { %10092 = vmatprep.subr.mxu1 %v13104_v33  ;;  %2703 = vrot.lane.b32.xlu1 %v16651_v21, %s11632_s1  ;;  %v1615_v53 = vmul.f32 %v11121_v18, %v12923_v5  ;;  %v16660_v5 = vld [vmem:[#allocation73_spill] sm:$0xff] }
 0x371   :  { %10093 = vmatpush3.msra.mxu1 %v13104_v33  ;;  %10052 = vmatprep.mubr.msk.f32.mxu1 %vm1295_vm1, %v1609_v40  ;;  %v16663_v40 = vld [vmem:[#allocation85_spill] sm:$0xff] }
 0x372   :  { %v11123_v62 = vpop.eup %11122  ;;  %10094 = vmatprep.subr.mxu1 %v16654_v0  ;;  %10053 = vmatmul.mubr.msk.f32.gmra.mxu1 %vm1295_vm1, %v1611_v35  ;;  %v1541_v30 = vpop.xlane.xlu1 %1540 }
 0x373   :  { %10095 = vmatpush3.msra.mxu1 %v16654_v0  ;;  %2522 = vrot.lane.b32.xlu0 %v16655_v47, %s11632_s1  ;;  %v1613_v29 = vmul.f32 %v11123_v62, %v12932_v55  ;;  %11124 = vrcp.f32 %v1541_v30  ;;  %v16664_v62 = vld [vmem:[#allocation54_spill] sm:$0xff] }
 0x374   :  { %10096 = vmatprep.subr.mxu1 %v13120_v11  ;;  %2524 = vrot.lane.b32.xlu1 %v16656_v52, %s11632_s1 }
 0x375   :  { %10097 = vmatpush3.msra.mxu1 %v13120_v11  ;;  %10055 = vmatprep.mubr.msk.f32.mxu1 %vm1295_vm1, %v1613_v29 }
 0x376   :  { %10098 = vmatprep.subr.mxu1 %v16658_v3  ;;  %10056 = vmatmul.mubr.msk.f32.gmra.mxu1 %vm1295_vm1, %v1615_v53  ;;  %v1538_v55 = vpop.xlane.xlu1 %1537 }
 0x377   :  { %10099 = vmatpush3.msra.mxu1 %v16658_v3  ;;  %11126 = vrcp.f32 %v1538_v55  ;;  %2701 = vrot.lane.b32.xlu0 %v16659_v23, %s11632_s1 }
 0x378   :  { %10100 = vmatprep.subr.mxu1 %v13136_v31  ;;  %2526 = vrot.lane.b32.xlu1 %v16660_v5, %s11632_s1  ;;  %v1544_v63 = vpop.xlane.xlu0 %1543 }
 0x379   :  { %10101 = vmatpush3.msra.mxu1 %v13136_v31  ;;  %11128 = vrcp.f32 %v1544_v63  ;;  %v16667_v63 = vld [vmem:[#allocation91_spill] sm:$0xff] }
 0x37a   :  { %10142 = vmatprep.subr.msk.mxu1 %vm682_vm0, %v16661_v19  ;;  %v1547_v60 = vpop.xlane.xlu1 %1546 }
 0x37b   :  { %11130 = vrcp.f32 %v1547_v60  ;;  %2528 = vrot.lane.b32.xlu0 %v16662_v26, %s11632_s1 }
 0x37c   :  { %2699 = vrot.lane.b32.xlu1 %v16663_v40, %s11632_s1  ;;  %v1550_v35 = vpop.xlane.xlu0 %1549 }
 0x37d   :  { %11132 = vrcp.f32 %v1550_v35 }
 0x37e   :  { %v1553_v18 = vpop.xlane.xlu1 %1552 }
 0x37f   :  { %11134 = vrcp.f32 %v1553_v18  ;;  %2683 = vrot.lane.b32.xlu0 %v16664_v62, %s11632_s1  ;;  %v16668_v62 = vld [vmem:[#allocation93_spill] sm:$0xff] }
 0x380   :  { %2685 = vrot.lane.b32.xlu1 %v16665_v44, %s11632_s1  ;;  %v1556_v30 = vpop.xlane.xlu0 %1555  ;;  %v11125_v53 = vpop.eup %11124  ;;  %v16669_v44 = vld [vmem:[#allocation95_spill] sm:$0xff] }
 0x381   :  { %11136 = vrcp.f32 %v1556_v30  ;;  %v1619_v18 = vmul.f32 %v11125_v53, %v12943_v2  ;;  %v16670_v53 = vld [vmem:[#allocation114_spill] sm:$0xff] }
 0x382   :  { %v1559_v29 = vpop.xlane.xlu1 %1558 }
 0x383   :  { %11138 = vrcp.f32 %v1559_v29  ;;  %2687 = vrot.lane.b32.xlu0 %v16666_v6, %s11632_s1 }
 0x384   :  { %v11127_v55 = vpop.eup %11126  ;;  %2689 = vrot.lane.b32.xlu1 %v16667_v63, %s11632_s1 }
 0x385   :  { %v1617_v60 = vmul.f32 %v11127_v55, %v12947_v24  ;;  %v16671_v55 = vld [vmem:[#allocation97_spill] sm:$0xff] }
 0x386   :  { %v11129_v35 = vpop.eup %11128 }
 0x387   :  { %2691 = vrot.lane.b32.xlu0 %v16668_v62, %s11632_s1  ;;  %10074 = vmatprep.mubr.msk.f32.mxu0 %vm1295_vm1, %v1617_v60  ;;  %v1621_v30 = vmul.f32 %v11129_v35, %v12951_v61  ;;  %v16672_v35 = vld [vmem:[#allocation100_spill] sm:$0xff] }
 0x388   :  { %v11131_v29 = vpop.eup %11130  ;;  %2693 = vrot.lane.b32.xlu1 %v16669_v44, %s11632_s1  ;;  %10075 = vmatmul.mubr.msk.f32.vlgmr.msra.gmra.mxu0 %vm1295_vm1, %v1619_v18  ;;  %v16673_v18 = vld [vmem:[#allocation117_spill] sm:$0xff] }
 0x389   :  { %10115 = vmatpush3.xpose.msk.msra.mxu0 %vm682_vm0, %v12777_v51  ;;  %10077 = vmatprep.mubr.msk.f32.mxu0 %vm1295_vm1, %v1621_v30  ;;  %v1623_v2 = vmul.f32 %v11131_v29, %v12955_v59  ;;  %v16674_v30 = vld [vmem:[#allocation63_spill] sm:$0xff] }
 0x38a   :  { %v11133_v24 = vpop.eup %11132  ;;  %10116 = vmatprep.subr.msk.mxu0 %vm682_vm0, %v16670_v53 }
 0x38b   :  { %2695 = vrot.lane.b32.xlu0 %v16671_v55, %s11632_s1  ;;  %v1625_v61 = vmul.f32 %v11133_v24, %v12959_v8  ;;  %v16675_v24 = vld [vmem:[#allocation67_spill] sm:$0xff] }
 0x38c   :  { %v11135_v60 = vpop.eup %11134  ;;  %2697 = vrot.lane.b32.xlu1 %v16672_v35, %s11632_s1  ;;  %10078 = vmatmul.mubr.msk.f32.gmra.mxu0 %vm1295_vm1, %v1623_v2  ;;  %v16676_v2 = vld [vmem:[#allocation110_spill] sm:$0xff] }
 0x38d   :  { %10117 = vmatpush3.xpose.msk.msra.mxu0 %vm682_vm0, %v16670_v53  ;;  %10080 = vmatprep.mubr.msk.f32.mxu0 %vm1295_vm1, %v1625_v61  ;;  %v1627_v51 = vmul.f32 %v11135_v60, %v12963_v36  ;;  %v16677_v61 = vld [vmem:[#allocation70_spill] sm:$0xff] }
 0x38e   :  { %v11137_v59 = vpop.eup %11136  ;;  %10118 = vmatprep.subr.msk.mxu0 %vm682_vm0, %v16673_v18 }
 0x38f   :  { %3226 = vrot.lane.b32.xlu0 %v16674_v30, %s11632_s1  ;;  %v1629_v8 = vmul.f32 %v11137_v59, %v12967_v56  ;;  %v16678_v56 = vld [vmem:[#allocation74_spill] sm:$0xff]  ;;  %v16681_v59 = vld [vmem:[#allocation77_spill] sm:$0xff] }
 0x390   :  { %v11139_v29 = vpop.eup %11138  ;;  %3224 = vrot.lane.b32.xlu1 %v16675_v24, %s11632_s1  ;;  %10081 = vmatmul.mubr.msk.f32.gmra.mxu0 %vm1295_vm1, %v1627_v51  ;;  %v16679_v51 = vld [vmem:[#allocation105_spill] sm:$0xff] }
 0x391   :  { %10119 = vmatpush3.xpose.msk.msra.mxu0 %vm682_vm0, %v16673_v18  ;;  %10083 = vmatprep.mubr.msk.f32.mxu0 %vm1295_vm1, %v1629_v8  ;;  %v1631_v36 = vmul.f32 %v11139_v29, %v12972_v37  ;;  %v16680_v37 = vld [vmem:[#allocation113_spill] sm:$0xff]  ;;  %v16682_v18 = vld [vmem:[#allocation79_spill] sm:$0xff]  ;;  %v16684_v29 = vld [vmem:[#allocation80_spill] sm:$0xff] }
 0x392   :  { %10120 = vmatprep.subr.msk.mxu0 %vm682_vm0, %v16676_v2  ;;  %v1565_v53 = vpop.xlane.xlu1 %1564  ;;  %v16683_v8 = vld [vmem:[#allocation109_spill] sm:$0xff] }
 0x393   :  { %3222 = vrot.lane.b32.xlu0 %v16677_v61, %s11632_s1  ;;  %11140 = vrcp.f32 %v1565_v53  ;;  %v16687_v53 = vld [vmem:[#allocation86_spill] sm:$0xff] }
 0x394   :  { %3220 = vrot.lane.b32.xlu1 %v16678_v56, %s11632_s1  ;;  %10084 = vmatmul.mubr.msk.f32.gmra.mxu0 %vm1295_vm1, %v1631_v36  ;;  %v1562_v60 = vpop.xlane.xlu0 %1561  ;;  %v16685_v36 = vld [vmem:[#allocation82_spill] sm:$0xff] }
 0x395   :  { %10121 = vmatpush3.xpose.msk.msra.mxu0 %vm682_vm0, %v16676_v2  ;;  %11142 = vrcp.f32 %v1562_v60  ;;  %10130 = vmatprep.mubr.msk.f32.mxu0 %vm682_vm0, %v16679_v51  ;;  %v16686_v2 = vld [vmem:[#allocation106_spill] sm:$0xff]  ;;  %v16688_v60 = vld [vmem:[#allocation88_spill] sm:$0xff] }
 0x396   :  { %10122 = vmatprep.subr.msk.mxu0 %vm682_vm0, %v16680_v37 }
 0x397   :  { %3218 = vrot.lane.b32.xlu0 %v16681_v59, %s11632_s1 }
 0x398   :  { %3216 = vrot.lane.b32.xlu1 %v16682_v18, %s11632_s1 }
 0x399   :  { %10123 = vmatpush3.xpose.msk.msra.mxu0 %vm682_vm0, %v16680_v37 }
 0x39a   :  { %10124 = vmatprep.subr.msk.mxu0 %vm682_vm0, %v16683_v8 }
 0x39b   :  { %3214 = vrot.lane.b32.xlu0 %v16684_v29, %s11632_s1  ;;  %v16689_v29 = vld [vmem:[#allocation104_spill] sm:$0xff] }
 0x39c   :  { %3212 = vrot.lane.b32.xlu1 %v16685_v36, %s11632_s1  ;;  %v16690_v36 = vld [vmem:[#allocation90_spill] sm:$0xff] }
 0x39d   :  { %10125 = vmatpush3.xpose.msk.msra.mxu0 %vm682_vm0, %v16683_v8 }
 0x39e   :  { %10126 = vmatprep.subr.msk.mxu0 %vm682_vm0, %v16686_v2 }
 0x39f   :  { %3387 = vrot.lane.b32.xlu0 %v16687_v53, %s11632_s1  ;;  %v16691_v53 = vld [vmem:[#allocation92_spill] sm:$0xff] }
 0x3a0   :  { %3385 = vrot.lane.b32.xlu1 %v16688_v60, %s11632_s1  ;;  %v11141_v51 = vpop.eup %11140  ;;  %v16693_v60 = vld [vmem:[#allocation94_spill] sm:$0xff] }
 0x3a1   :  { %10127 = vmatpush3.xpose.msk.msra.mxu0 %vm682_vm0, %v16686_v2  ;;  %v1635_v59 = vmul.f32 %v11141_v51, %v12977_v16  ;;  %v16692_v2 = vld [vmem:[#allocation135_spill] sm:$0xff]  ;;  %v16694_v16 = vld [vmem:[#allocation96_spill] sm:$0xff] }
 0x3a2   :  { %v11143_v37 = vpop.eup %11142  ;;  %10128 = vmatprep.subr.msk.mxu0 %vm682_vm0, %v16689_v29  ;;  %v16697_v51 = vld [vmem:[#allocation111_spill] sm:$0xff] }
 0x3a3   :  { %3383 = vrot.lane.b32.xlu0 %v16690_v36, %s11632_s1  ;;  %v1633_v8 = vmul.f32 %v11143_v37, %v12981_v34  ;;  %v16695_v34 = vld [vmem:[#allocation107_spill] sm:$0xff]  ;;  %v16700_v37 = vld [vmem:[#allocation101_spill] sm:$0xff] }
 0x3a4   :  { %3381 = vrot.lane.b32.xlu1 %v16691_v53, %s11632_s1 }
 0x3a5   :  { %10129 = vmatpush3.xpose.msk.msra.mxu0 %vm682_vm0, %v16689_v29  ;;  %10102 = vmatprep.mubr.msk.f32.mxu1 %vm1295_vm1, %v1633_v8  ;;  %v16696_v29 = vld [vmem:[#allocation125_spill] sm:$0xff]  ;;  %v16701_v8 = vld [vmem:[#allocation108_spill] sm:$0xff] }
 0x3a6   :  { %10170 = vmatprep.subr.msk.mxu0 %vm682_vm0, %v16692_v2  ;;  %10103 = vmatmul.mubr.msk.f32.vlgmr.msra.gmra.mxu1 %vm1295_vm1, %v1635_v59  ;;  %v16698_v59 = vld [vmem:[#allocation132_spill] sm:$0xff] }
 0x3a7   :  { %3379 = vrot.lane.b32.xlu0 %v16693_v60, %s11632_s1  ;;  %10143 = vmatpush3.xpose.msk.msra.mxu1 %vm682_vm0, %v16661_v19  ;;  %v16699_v19 = vld [vmem:[#allocation99_spill] sm:$0xff] }
 0x3a8   :  { %3377 = vrot.lane.b32.xlu1 %v16694_v16, %s11632_s1  ;;  %10131 = vmatmul.mubr.msk.f32.vlgmr.msra.gmra.mxu0 %vm682_vm0, %v16695_v34  ;;  %v16702_v34 = vld [vmem:[#allocation123_spill] sm:$0xff] }
 0x3a9   :  { %10144 = vmatprep.subr.msk.mxu1 %vm682_vm0, %v16696_v29  ;;  %10133 = vmatprep.mubr.msk.f32.mxu0 %vm682_vm0, %v16697_v51  ;;  %v16703_v51 = vld [vmem:[#allocation115_spill] sm:$0xff] }
 0x3aa   :  { %10171 = vmatpush3.xpose.msk.msra.mxu0 %vm682_vm0, %v16692_v2  ;;  %v16704_v2 = vld [vmem:[#allocation130_spill] sm:$0xff] }
 0x3ab   :  { %10172 = vmatprep.subr.msk.mxu0 %vm682_vm0, %v16698_v59  ;;  %3375 = vrot.lane.b32.xlu0 %v16699_v19, %s11632_s1  ;;  %v13495_v19 = vld [vmem:[%s16284_s3 + $0x68] sm:$0xff] }
 0x3ac   :  { %10145 = vmatpush3.xpose.msk.msra.mxu1 %vm682_vm0, %v16696_v29  ;;  %3373 = vrot.lane.b32.xlu1 %v16700_v37, %s11632_s1  ;;  %v16705_v29 = vld [vmem:[#allocation112_spill] sm:$0xff] }
 0x3ad   :  { %10134 = vmatmul.mubr.msk.f32.gmra.mxu0 %vm682_vm0, %v16701_v8  ;;  %10146 = vmatprep.subr.msk.mxu1 %vm682_vm0, %v16702_v34  ;;  %v16706_v8 = vld [vmem:[#allocation121_spill] sm:$0xff] }
 0x3ae   :  { %10136 = vmatprep.mubr.msk.f32.mxu0 %vm682_vm0, %v16703_v51  ;;  %10173 = vmatpush3.xpose.msk.msra.mxu0 %vm682_vm0, %v16698_v59  ;;  %v16707_v51 = vld [vmem:[#allocation119_spill] sm:$0xff]  ;;  %v16708_v59 = vld [vmem:[#allocation128_spill] sm:$0xff] }
 0x3af   :  { %10174 = vmatprep.subr.msk.mxu0 %vm682_vm0, %v16704_v2  ;;  %3548 = vrot.lane.b32.xlu0 %v12460_v39, %s11632_s1 }
 0x3b0   :  { %10147 = vmatpush3.xpose.msk.msra.mxu1 %vm682_vm0, %v16702_v34  ;;  %3546 = vrot.lane.b32.xlu1 %v13024_v45, %s11632_s1  ;;  %v16709_v34 = vld [vmem:[#allocation116_spill] sm:$0xff] }
 0x3b1   :  { %10137 = vmatmul.mubr.msk.f32.gmra.mxu0 %vm682_vm0, %v16705_v29  ;;  %10148 = vmatprep.subr.msk.mxu1 %vm682_vm0, %v16706_v8  ;;  %v16710_v29 = vld [vmem:[#allocation133_spill] sm:$0xff] }
 0x3b2   :  { %10139 = vmatprep.mubr.msk.f32.mxu0 %vm682_vm0, %v16707_v51  ;;  %10175 = vmatpush3.xpose.msk.msra.mxu0 %vm682_vm0, %v16704_v2  ;;  %v16711_v2 = vld [vmem:[#allocation137_spill] sm:$0xff]  ;;  %v16713_v51 = vld [vmem:[#allocation134_spill] sm:$0xff] }
 0x3b3   :  { %10176 = vmatprep.subr.msk.mxu0 %vm682_vm0, %v16708_v59  ;;  %3544 = vrot.lane.b32.xlu0 %v12246_v14, %s11632_s1 }
 0x3b4   :  { %10149 = vmatpush3.xpose.msk.msra.mxu1 %vm682_vm0, %v16706_v8  ;;  %3542 = vrot.lane.b32.xlu1 %v13035_v22, %s11632_s1  ;;  %v16712_v8 = vld [vmem:[#allocation129_spill] sm:$0xff] }
 0x3b5   :  { %10140 = vmatmul.mubr.msk.f32.gmra.mxu0 %vm682_vm0, %v16709_v34  ;;  %10150 = vmatprep.subr.msk.mxu1 %vm682_vm0, %v16710_v29  ;;  %v16715_v34 = vld [vmem:[#allocation122_spill] sm:$0xff] }
 0x3b6   :  { %10177 = vmatpush3.xpose.msk.msra.mxu0 %vm682_vm0, %v16708_v59  ;;  %v16714_v59 = vld [vmem:[#allocation126_spill] sm:$0xff] }
 0x3b7   :  { %10178 = vmatprep.subr.msk.mxu0 %vm682_vm0, %v16711_v2  ;;  %3540 = vrot.lane.b32.xlu0 %v12221_v10, %s11632_s1 }
 0x3b8   :  { %10151 = vmatpush3.xpose.msk.msra.mxu1 %vm682_vm0, %v16710_v29  ;;  %3538 = vrot.lane.b32.xlu1 %v13047_v28, %s11632_s1  ;;  %v13339_v29 = vpop.permute.xlu1 %2355 }
 0x3b9   :  { %10152 = vmatprep.subr.msk.mxu1 %vm682_vm0, %v16712_v8 }
 0x3ba   :  { %10179 = vmatpush3.xpose.msk.msra.mxu0 %vm682_vm0, %v16711_v2  ;;  %v13345_v2 = vpop.permute.xlu0 %2353 }
 0x3bb   :  { %10180 = vmatprep.subr.msk.mxu0 %vm682_vm0, %v16713_v51  ;;  %3536 = vrot.lane.b32.xlu0 %v12196_v41, %s11632_s1 }
 0x3bc   :  { %10153 = vmatpush3.xpose.msk.msra.mxu1 %vm682_vm0, %v16712_v8  ;;  %3534 = vrot.lane.b32.xlu1 %v13059_v27, %s11632_s1  ;;  %v16716_v8 = vld [vmem:[#allocation138_spill] sm:$0xff] }
 0x3bd   :  { %10154 = vmatprep.subr.msk.mxu1 %vm682_vm0, %v16714_v59 }
 0x3be   :  { %10181 = vmatpush3.xpose.msk.msra.mxu0 %vm682_vm0, %v16713_v51 }
 0x3bf   :  { %3709 = vrot.lane.b32.xlu0 %v16645_v7, %s11632_s1 }
 0x3c0   :  { %10155 = vmatpush3.xpose.msk.msra.mxu1 %vm682_vm0, %v16714_v59  ;;  %3707 = vrot.lane.b32.xlu1 %v13089_v46, %s11632_s1 }
 0x3c1   :  { %10156 = vmatprep.subr.msk.mxu1 %vm682_vm0, %v16715_v34 }
 0x3c4   :  { %10157 = vmatpush3.xpose.msk.msra.mxu1 %vm682_vm0, %v16715_v34  ;;  %3705 = vrot.lane.b32.xlu1 %v16649_v12, %s11632_s1 }
 0x3c5   :  { %10198 = vmatprep.subr.msk.mxu1 %vm682_vm0, %v16716_v8 }
 0x3c7   :  { %v1568_v51 = vpop.xlane.xlu1 %1567 }
 0x3c8   :  { %11144 = vrcp.f32 %v1568_v51  ;;  %3703 = vrot.lane.b32.xlu1 %v13104_v33, %s11632_s1 }
 0x3c9   :  { %v1571_v59 = vpop.xlane.xlu0 %1570 }
 0x3ca   :  { %11146 = vrcp.f32 %v1571_v59 }
 0x3cb   :  { %v1577_v7 = vpop.xlane.xlu1 %1576 }
 0x3cc   :  { %11148 = vrcp.f32 %v1577_v7 }
 0x3cd   :  { %v1580_v46 = vpop.xlane.xlu0 %1579 }
 0x3ce   :  { %11150 = vrcp.f32 %v1580_v46 }
 0x3cf   :  { %v1574_v34 = vpop.xlane.xlu1 %1573 }
 0x3d0   :  { %11152 = vrcp.f32 %v1574_v34 }
 0x3d1   :  { %v2533_v41 = vpop.permute.xlu0 %2532 }
 0x3d2   :  { %10182 = vmatprep.subr.msk.mxu0 %vm682_vm0, %v2533_v41 }
 0x3d3   :  { %v1583_v12 = vpop.xlane.xlu1 %1582  ;;  %10183 = vmatpush3.xpose.msk.msra.mxu0 %vm682_vm0, %v2533_v41 }
 0x3d4   :  { %11154 = vrcp.f32 %v1583_v12 }
 0x3d5   :  { %v11145_v27 = vpop.eup %11144  ;;  %v2358_v51 = vpop.permute.xlu0 %2357 }
 0x3d6   :  { %v1637_v10 = vmul.f32 %v11145_v27, %v12995_v17 }
 0x3d7   :  { %v11147_v33 = vpop.eup %11146  ;;  %v2710_v28 = vpop.permute.xlu1 %2709 }
 0x3d8   :  { %10105 = vmatprep.mubr.msk.f32.mxu1 %vm1295_vm1, %v1637_v10  ;;  %v1639_v7 = vmul.f32 %v11147_v33, %v12997_v58 }
 0x3d9   :  { %v2531_v46 = vpop.permute.xlu0 %2530  ;;  %v11149_v59 = vpop.eup %11148 }
 0x3da   :  { %10106 = vmatmul.mubr.msk.f32.gmra.mxu1 %vm1295_vm1, %v1639_v7  ;;  %10184 = vmatprep.subr.msk.mxu0 %vm682_vm0, %v2531_v46  ;;  %v1643_v10 = vmul.f32 %v11149_v59, %v13001_v43 }
 0x3db   :  { %v2360_v34 = vpop.permute.xlu1 %2359  ;;  %10185 = vmatpush3.xpose.msk.msra.mxu0 %vm682_vm0, %v2531_v46  ;;  %v11151_v41 = vpop.eup %11150 }
 0x3dc   :  { %v1645_v58 = vmul.f32 %v11151_v41, %v13005_v20  ;;  %v16718_v20 = vld [vmem:[#allocation118_spill] sm:$0xff] }
 0x3dd   :  { %v11153_v12 = vpop.eup %11152  ;;  %v2515_v14 = vpop.permute.xlu0 %2514 }
 0x3de   :  { %10186 = vmatprep.mubr.msk.f32.mxu0 %vm682_vm0, %v2515_v14  ;;  %v1641_v17 = vmul.f32 %v11153_v12, %v13009_v13  ;;  %v16717_v13 = vld [vmem:[#allocation124_spill] sm:$0xff] }
 0x3df   :  { %v2708_v27 = vpop.permute.xlu1 %2707  ;;  %v16721_v12 = vld [vmem:[#allocation120_spill] sm:$0xff] }
 0x3e0   :  { %10108 = vmatprep.mubr.msk.f32.mxu1 %vm1295_vm1, %v1641_v17 }
 0x3e1   :  { %v11155_v33 = vpop.eup %11154  ;;  %10109 = vmatmul.mubr.msk.f32.gmra.mxu1 %vm1295_vm1, %v1643_v10  ;;  %v2706_v7 = vpop.permute.xlu0 %2705 }
 0x3e2   :  { %10111 = vmatprep.mubr.msk.f32.mxu1 %vm1295_vm1, %v1645_v58  ;;  %v1647_v46 = vmul.f32 %v11155_v33, %v13013_v1  ;;  %v16719_v1 = vld [vmem:[#allocation131_spill] sm:$0xff] }
 0x3e3   :  { %v2517_v22 = vpop.permute.xlu1 %2516 }
 0x3e4   :  { %10187 = vmatmul.mubr.msk.f32.vlgmr.msra.gmra.mxu0 %vm682_vm0, %v2517_v22  ;;  %v16720_v22 = vld [vmem:[#allocation136_spill] sm:$0xff] }
 0x3e5   :  { %10112 = vmatmul.mubr.msk.f32.gmra.mxu1 %vm1295_vm1, %v1647_v46  ;;  %v2521_v14 = vpop.permute.xlu0 %2520 }
 0x3e6   :  { %10158 = vmatprep.mubr.msk.f32.mxu1 %vm682_vm0, %v16717_v13 }
 0x3e7   :  { %v2519_v43 = vpop.permute.xlu1 %2518 }
 0x3e8   :  { %10189 = vmatprep.mubr.msk.f32.mxu0 %vm682_vm0, %v2519_v43 }
 0x3e9   :  { %10159 = vmatmul.mubr.msk.f32.vlgmr.msra.gmra.mxu1 %vm682_vm0, %v16718_v20  ;;  %10190 = vmatmul.mubr.msk.f32.gmra.mxu0 %vm682_vm0, %v2521_v14  ;;  %v2523_v59 = vpop.permute.xlu0 %2522 }
 0x3ea   :  { %10199 = vmatpush3.xpose.msk.msra.mxu1 %vm682_vm0, %v16716_v8  ;;  %10161 = vmatprep.mubr.msk.f32.mxu1 %vm682_vm0, %v16719_v1 }
 0x3eb   :  { %10192 = vmatprep.mubr.msk.f32.mxu0 %vm682_vm0, %v2523_v59  ;;  %10200 = vmatprep.subr.msk.mxu1 %vm682_vm0, %v16720_v22  ;;  %v2704_v41 = vpop.permute.xlu1 %2703 }
 0x3ed   :  { %10162 = vmatmul.mubr.msk.f32.gmra.mxu1 %vm682_vm0, %v16721_v12  ;;  %v2702_v17 = vpop.permute.xlu0 %2701 }
 0x3ee   :  { %10201 = vmatpush3.xpose.msk.msra.mxu1 %vm682_vm0, %v16720_v22  ;;  %10164 = vmatprep.mubr.msk.f32.mxu1 %vm682_vm0, %v13345_v2 }
 0x3ef   :  { %10202 = vmatprep.subr.msk.mxu1 %vm682_vm0, %v2710_v28  ;;  %v2525_v8 = vpop.permute.xlu1 %2524 }
 0x3f0   :  { %10193 = vmatmul.mubr.msk.f32.gmra.mxu0 %vm682_vm0, %v2525_v8 }
 0x3f1   :  { %10165 = vmatmul.mubr.msk.f32.gmra.mxu1 %vm682_vm0, %v13339_v29  ;;  %v2529_v10 = vpop.permute.xlu0 %2528 }
 0x3f2   :  { %10203 = vmatpush3.xpose.msk.msra.mxu1 %vm682_vm0, %v2710_v28  ;;  %10167 = vmatprep.mubr.msk.f32.mxu1 %vm682_vm0, %v2358_v51 }
 0x3f3   :  { %10204 = vmatprep.subr.msk.mxu1 %vm682_vm0, %v2708_v27  ;;  %v2527_v58 = vpop.permute.xlu1 %2526 }
 0x3f4   :  { %10195 = vmatprep.mubr.msk.f32.mxu0 %vm682_vm0, %v2527_v58 }
 0x3f5   :  { %10168 = vmatmul.mubr.msk.f32.gmra.mxu1 %vm682_vm0, %v2360_v34  ;;  %10196 = vmatmul.mubr.msk.f32.gmra.mxu0 %vm682_vm0, %v2529_v10  ;;  %v2684_v2 = vpop.permute.xlu0 %2683 }
 0x3f6   :  { %10205 = vmatpush3.xpose.msk.msra.mxu1 %vm682_vm0, %v2708_v27  ;;  %10214 = vmatprep.mubr.msk.f32.mxu1 %vm682_vm0, %v2684_v2 }
 0x3f7   :  { %10206 = vmatprep.subr.msk.mxu1 %vm682_vm0, %v2706_v7  ;;  %v2700_v29 = vpop.permute.xlu1 %2699 }
 0x3f9   :  { %v2688_v28 = vpop.permute.xlu0 %2687 }
 0x3fa   :  { %10207 = vmatpush3.xpose.msk.msra.mxu1 %vm682_vm0, %v2706_v7 }
 0x3fb   :  { %10208 = vmatprep.subr.msk.mxu1 %vm682_vm0, %v2704_v41  ;;  %v2686_v51 = vpop.permute.xlu1 %2685 }
 0x3fd   :  { %v2692_v33 = vpop.permute.xlu0 %2691 }
 0x3fe   :  { %10209 = vmatpush3.xpose.msk.msra.mxu1 %vm682_vm0, %v2704_v41 }
 0x3ff   :  { %10210 = vmatprep.subr.msk.mxu1 %vm682_vm0, %v2702_v17  ;;  %v2690_v34 = vpop.permute.xlu1 %2689 }
 0x401   :  { %v2696_v46 = vpop.permute.xlu0 %2695 }
 0x402   :  { %10211 = vmatpush3.xpose.msk.msra.mxu1 %vm682_vm0, %v2702_v17 }
 0x403   :  { %10212 = vmatprep.subr.msk.mxu1 %vm682_vm0, %v2700_v29  ;;  %v2694_v27 = vpop.permute.xlu1 %2693 }
 0x405   :  { %v3227_v14 = vpop.permute.xlu0 %3226 }
 0x406   :  { %10213 = vmatpush3.xpose.msk.msra.mxu1 %vm682_vm0, %v2700_v29  ;;  %10226 = vmatprep.subr.mxu0 %v3227_v14 }
 0x407   :  { %v2698_v7 = vpop.permute.xlu1 %2697  ;;  %10227 = vmatpush3.msra.mxu0 %v3227_v14 }
 0x409   :  { %10215 = vmatmul.mubr.msk.f32.vlgmr.msra.gmra.mxu1 %vm682_vm0, %v2686_v51  ;;  %v3223_v13 = vpop.permute.xlu0 %3222 }
 0x40a   :  { %10217 = vmatprep.mubr.msk.f32.mxu1 %vm682_vm0, %v2688_v28 }
 0x40b   :  { %v3225_v43 = vpop.permute.xlu1 %3224 }
 0x40c   :  { %10228 = vmatprep.subr.mxu0 %v3225_v43 }
 0x40d   :  { %10218 = vmatmul.mubr.msk.f32.gmra.mxu1 %vm682_vm0, %v2690_v34  ;;  %10229 = vmatpush3.msra.mxu0 %v3225_v43  ;;  %v3219_v20 = vpop.permute.xlu0 %3218  ;;  %v13420_v34 = vpop.f32.mrf.mxu0 }
 0x40e   :  { %10220 = vmatprep.mubr.msk.f32.mxu1 %vm682_vm0, %v2692_v33  ;;  %10230 = vmatprep.subr.mxu0 %v3223_v13  ;;  %16722 = vst [vmem:[#allocation56_spill] sm:$0xff] %v13420_v34 }
 0x40f   :  { %v3221_v59 = vpop.permute.xlu1 %3220  ;;  %10231 = vmatpush3.msra.mxu0 %v3223_v13 }
 0x410   :  { %10232 = vmatprep.subr.mxu0 %v3221_v59 }
 0x411   :  { %10221 = vmatmul.mubr.msk.f32.gmra.mxu1 %vm682_vm0, %v2694_v27  ;;  %10233 = vmatpush3.msra.mxu0 %v3221_v59  ;;  %v3215_v1 = vpop.permute.xlu0 %3214  ;;  %v13424_v27 = vpop.f32.mrf.mxu0 }
 0x412   :  { %10223 = vmatprep.mubr.msk.f32.mxu1 %vm682_vm0, %v2696_v46  ;;  %10234 = vmatprep.subr.mxu0 %v3219_v20  ;;  %16723 = vst [vmem:[#allocation127_spill] sm:$0xff] %v13424_v27 }
 0x413   :  { %v3217_v22 = vpop.permute.xlu1 %3216  ;;  %10235 = vmatpush3.msra.mxu0 %v3219_v20 }
 0x414   :  { %10236 = vmatprep.subr.mxu0 %v3217_v22 }
 0x415   :  { %10224 = vmatmul.mubr.msk.f32.gmra.mxu1 %vm682_vm0, %v2698_v7  ;;  %10237 = vmatpush3.msra.mxu0 %v3217_v22  ;;  %v3388_v41 = vpop.permute.xlu0 %3387  ;;  %v13428_v7 = vpop.f32.mrf.mxu0 }
 0x416   :  { %10238 = vmatprep.subr.mxu0 %v3215_v1  ;;  %10254 = vmatprep.subr.mxu1 %v3388_v41  ;;  %16724 = vst [vmem:[#allocation114_spill] sm:$0xff] %v13428_v7 }
 0x417   :  { %v3213_v12 = vpop.permute.xlu1 %3212  ;;  %10239 = vmatpush3.msra.mxu0 %v3215_v1  ;;  %10255 = vmatpush3.msra.mxu1 %v3388_v41  ;;  %v13433_v43 = vpop.f32.mrf.mxu0 }
 0x418   :  { %10240 = vmatprep.subr.mxu0 %v3213_v12  ;;  %16726 = vst [vmem:[#allocation110_spill] sm:$0xff] %v13433_v43 }
 0x419   :  { %10241 = vmatpush3.msra.mxu0 %v3213_v12  ;;  %v3384_v17 = vpop.permute.xlu0 %3383  ;;  %v13435_v20 = vpop.f32.mrf.mxu0 }
 0x41a   :  { %16727 = vst [vmem:[#allocation105_spill] sm:$0xff] %v13435_v20 }
 0x41b   :  { %v3386_v8 = vpop.permute.xlu1 %3385  ;;  %v13437_v59 = vpop.f32.mrf.mxu0 }
 0x41c   :  { %10256 = vmatprep.subr.mxu1 %v3386_v8  ;;  %16728 = vst [vmem:[#allocation113_spill] sm:$0xff] %v13437_v59 }
 0x41d   :  { %10257 = vmatpush3.msra.mxu1 %v3386_v8  ;;  %v3380_v10 = vpop.permute.xlu0 %3379  ;;  %v13439_v1 = vpop.f32.mrf.mxu0 }
 0x41e   :  { %10258 = vmatprep.subr.mxu1 %v3384_v17  ;;  %16729 = vst [vmem:[#allocation109_spill] sm:$0xff] %v13439_v1  ;;  %v13513_v1 = vld [vmem:[%s16284_s3 + $0x78] sm:$0xff] }
 0x41f   :  { %v3382_v58 = vpop.permute.xlu1 %3381  ;;  %10259 = vmatpush3.msra.mxu1 %v3384_v17  ;;  %v13441_v22 = vpop.f32.mrf.mxu0 }
 0x420   :  { %10260 = vmatprep.subr.mxu1 %v3382_v58  ;;  %16730 = vst [vmem:[#allocation106_spill] sm:$0xff] %v13441_v22 }
 0x421   :  { %10261 = vmatpush3.msra.mxu1 %v3382_v58  ;;  %v3376_v2 = vpop.permute.xlu0 %3375 }
 0x422   :  { %10262 = vmatprep.subr.mxu1 %v3380_v10 }
 0x423   :  { %v3378_v29 = vpop.permute.xlu1 %3377  ;;  %10263 = vmatpush3.msra.mxu1 %v3380_v10 }
 0x424   :  { %10264 = vmatprep.subr.mxu1 %v3378_v29 }
 0x425   :  { %10265 = vmatpush3.msra.mxu1 %v3378_v29  ;;  %v13415_v28 = vpop.permute.xlu0 %3548 }
 0x426   :  { %10266 = vmatprep.subr.mxu1 %v3376_v2  ;;  %10282 = vmatprep.subr.mxu0 %v13415_v28 }
 0x427   :  { %v3374_v51 = vpop.permute.xlu1 %3373  ;;  %10267 = vmatpush3.msra.mxu1 %v3376_v2 }
 0x428   :  { %10268 = vmatprep.subr.mxu1 %v3374_v51 }
 0x429   :  { %10269 = vmatpush3.msra.mxu1 %v3374_v51  ;;  %v13418_v33 = vpop.permute.xlu0 %3544  ;;  %v13462_v51 = vld [vmem:[%s16284_s3 + $0x48] sm:$0xff] }
 0x42a   :  { %v13530_v20 = vpop.f32.mrf.mxu1 }
 0x42b   :  { %16739 = vst [vmem:[#allocation115_spill] sm:$0xff] %v13530_v20 }
 0x42c   :  { %v13539_v7 = vpop.f32.mrf.mxu1 }
 0x42d   :  { %v13422_v46 = vpop.permute.xlu0 %3540  ;;  %16740 = vst [vmem:[#allocation130_spill] sm:$0xff] %v13539_v7 }
 0x431   :  { %v13426_v14 = vpop.permute.xlu0 %3536 }
 0x435   :  { %v13430_v13 = vpop.permute.xlu0 %3709 }
 0x436   :  { %16725 = vst [vmem:[#allocation117_spill] sm:$0xff] %v13430_v13  ;;  %10310 = vmatprep.subr.mxu1 %v13430_v13 }
 0x448   :  { %v13443_v41 = vpop.f32.mrf.mxu0 }
 0x449   :  { %16731 = vst [vmem:[#allocation104_spill] sm:$0xff] %v13443_v41 }
 0x44a   :  { %v13445_v12 = vpop.f32.mrf.mxu0 }
 0x44b   :  { %16732 = vst [vmem:[#allocation135_spill] sm:$0xff] %v13445_v12 }
 0x44c   :  { %v13447_v17 = vpop.f32.mrf.mxu0 }
 0x44d   :  { %16733 = vst [vmem:[#allocation107_spill] sm:$0xff] %v13447_v17  ;;  %v13467_v17 = vld [vmem:[%s16284_s3 + $0x40] sm:$0xff] }
 0x44e   :  { %v13449_v8 = vpop.f32.mrf.mxu0 }
 0x44f   :  { %16734 = vst [vmem:[#allocation125_spill] sm:$0xff] %v13449_v8 }
 0x450   :  { %v13451_v10 = vpop.f32.mrf.mxu0 }
 0x451   :  { %16735 = vst [vmem:[#allocation111_spill] sm:$0xff] %v13451_v10 }
 0x452   :  { %v13453_v58 = vpop.f32.mrf.mxu0 }
 0x453   :  { %16736 = vst [vmem:[#allocation132_spill] sm:$0xff] %v13453_v58 }
 0x454   :  { %v13455_v2 = vpop.f32.mrf.mxu0 }
 0x455   :  { %16737 = vst [vmem:[#allocation108_spill] sm:$0xff] %v13455_v2 }
 0x456   :  { %v13457_v29 = vpop.f32.mrf.mxu0 }
 0x457   :  { %16738 = vst [vmem:[#allocation123_spill] sm:$0xff] %v13457_v29  ;;  %v13480_v29 = vld [vmem:[%s16284_s3 + $0x58] sm:$0xff] }
 0x468   :  { %v10132_v41 = vpop.f32.mrf.mxu0 }
 0x469   :  { %v13470_v8 = vadd.f32 %v10132_v41, %v13462_v51 }
 0x46a   :  { %v2306_v10 = vpop.f32.mrf.mxu0 }
 0x46b   :  { %v13473_v58 = vadd.f32 %v2306_v10, %v13467_v17  ;;  %v2855_v2 = vsel %vm1295_vm1, %v13470_v8, -inf  ;;  %v13490_v10 = vld [vmem:[%s16284_s3 + $0x50] sm:$0xff] }
 0x46c   :  { %2856 = vmax.xlane.f32.xlu1 %v2855_v2 }
 0x46d   :  { %v10135_v12 = vpop.f32.mrf.mxu0  ;;  %v2852_v39 = vsel %vm1295_vm1, %v13473_v58, -inf }
 0x46e   :  { %v13485_v41 = vadd.f32 %v10135_v12, %v13480_v29  ;;  %2853 = vmax.xlane.f32.xlu0 %v2852_v39  ;;  %v13508_v39 = vld [vmem:[%s16284_s3 + $0x60] sm:$0xff] }
 0x46f   :  { %v2316_v45 = vpop.f32.mrf.mxu0 }
 0x470   :  { %v13498_v2 = vadd.f32 %v2316_v45, %v13490_v10  ;;  %v2861_v12 = vsel %vm1295_vm1, %v13485_v41, -inf }
 0x471   :  { %v10138_v37 = vpop.f32.mrf.mxu0 }
 0x472   :  { %v13503_v60 = vadd.f32 %v10138_v37, %v13495_v19  ;;  %2862 = vmax.xlane.f32.xlu0 %v2861_v12  ;;  %v2858_v22 = vsel %vm1295_vm1, %v13498_v2, -inf  ;;  %v13528_v12 = vld [vmem:[%s16284_s3 + $0x70] sm:$0xff] }
 0x473   :  { %v2326_v16 = vpop.f32.mrf.mxu0 }
 0x474   :  { %v2867_v45 = vsel %vm1295_vm1, %v13503_v60, -inf  ;;  %v13518_v36 = vadd.f32 %v2326_v16, %v13508_v39 }
 0x475   :  { %2868 = vmax.xlane.f32.xlu1 %v2867_v45  ;;  %v10141_v37 = vpop.f32.mrf.mxu0 }
 0x476   :  { %v13523_v53 = vadd.f32 %v10141_v37, %v13513_v1  ;;  %2859 = vmax.xlane.f32.xlu0 %v2858_v22  ;;  %v2864_v37 = vsel %vm1295_vm1, %v13518_v36, -inf  ;;  %v13543_v22 = vpop.f32.mrf.mxu1 }
 0x477   :  { %v2336_v59 = vpop.f32.mrf.mxu0  ;;  %16741 = vst [vmem:[#allocation112_spill] sm:$0xff] %v13543_v22 }
 0x478   :  { %v2873_v16 = vsel %vm1295_vm1, %v13523_v53, -inf  ;;  %v13535_v45 = vadd.f32 %v2336_v59, %v13528_v12  ;;  %v13545_v20 = vpop.f32.mrf.mxu1 }
 0x479   :  { %2874 = vmax.xlane.f32.xlu1 %v2873_v16  ;;  %16742 = vst [vmem:[#allocation121_spill] sm:$0xff] %v13545_v20 }
 0x47a   :  { %2865 = vmax.xlane.f32.xlu0 %v2864_v37  ;;  %v2870_v43 = vsel %vm1295_vm1, %v13535_v45, -inf  ;;  %v13547_v34 = vpop.f32.mrf.mxu1 }
 0x47b   :  { %16743 = vst [vmem:[#allocation119_spill] sm:$0xff] %v13547_v34 }
 0x47c   :  { %v13549_v27 = vpop.f32.mrf.mxu1 }
 0x47d   :  { %16744 = vst [vmem:[#allocation128_spill] sm:$0xff] %v13549_v27 }
 0x47e   :  { %2871 = vmax.xlane.f32.xlu0 %v2870_v43  ;;  %v13551_v59 = vpop.f32.mrf.mxu1 }
 0x47f   :  { %16745 = vst [vmem:[#allocation116_spill] sm:$0xff] %v13551_v59 }
 0x480   :  { %v13553_v16 = vpop.f32.mrf.mxu1 }
 0x481   :  { %16746 = vst [vmem:[#allocation133_spill] sm:$0xff] %v13553_v16 }
 0x482   :  { %v13555_v18 = vpop.f32.mrf.mxu1 }
 0x483   :  { %16747 = vst [vmem:[#allocation137_spill] sm:$0xff] %v13555_v18 }
 0x484   :  { %v13557_v37 = vpop.f32.mrf.mxu1 }
 0x485   :  { %16748 = vst [vmem:[#allocation129_spill] sm:$0xff] %v13557_v37 }
 0x49a   :  { %v13559_v7 = vpop.f32.mrf.mxu1 }
 0x49b   :  { %16749 = vst [vmem:[#allocation134_spill] sm:$0xff] %v13559_v7 }
 0x49c   :  { %v13561_v61 = vpop.f32.mrf.mxu1 }
 0x49d   :  { %16750 = vst [vmem:[#allocation126_spill] sm:$0xff] %v13561_v61 }
 0x4a1   :  { %v13563_v43 = vpop.f32.mrf.mxu1 }
 0x4a2   :  { %16751 = vst [vmem:[#allocation122_spill] sm:$0xff] %v13563_v43 }
 0x4a3   :  { %v13565_v22 = vpop.f32.mrf.mxu1 }
 0x4a4   :  { %16752 = vst [vmem:[#allocation138_spill] sm:$0xff] %v13565_v22  ;;  %v10188_v34 = vpop.f32.mrf.mxu0 }
 0x4a5   :  { %v13567_v20 = vpop.f32.mrf.mxu1  ;;  %v13575_v37 = vadd.f32 %v10188_v34, %v13462_v51 }
 0x4a6   :  { %16753 = vst [vmem:[#allocation124_spill] sm:$0xff] %v13567_v20  ;;  %v2644_v18 = vpop.f32.mrf.mxu0 }
 0x4a7   :  { %v13569_v27 = vpop.f32.mrf.mxu1  ;;  %v13583_v22 = vadd.f32 %v2644_v18, %v13467_v17 }
 0x4a8   :  { %16754 = vst [vmem:[#allocation118_spill] sm:$0xff] %v13569_v27 }
 0x4a9   :  { %v10160_v59 = vpop.f32.mrf.mxu1  ;;  %v10191_v27 = vpop.f32.mrf.mxu0  ;;  %v2900_v18 = vsel %vm1295_vm1, %v13583_v22, -inf }
 0x4aa   :  { %v13572_v16 = vadd.f32 %v10160_v59, %v13462_v51  ;;  %v13598_v55 = vadd.f32 %v10191_v27, %v13480_v29 }
 0x4ab   :  { %v2475_v56 = vpop.f32.mrf.mxu1 }
 0x4ac   :  { %v13578_v7 = vadd.f32 %v2475_v56, %v13467_v17  ;;  %v2879_v43 = vsel %vm1295_vm1, %v13572_v16, -inf  ;;  %v2903_v56 = vsel %vm1295_vm1, %v13575_v37, -inf  ;;  %v2909_v27 = vsel %vm1295_vm1, %v13598_v55, -inf }
 0x4ad   :  { %2880 = vmax.xlane.f32.xlu1 %v2879_v43  ;;  %v10163_v20 = vpop.f32.mrf.mxu1  ;;  %v2654_v43 = vpop.f32.mrf.mxu0 }
 0x4ae   :  { %v2876_v59 = vsel %vm1295_vm1, %v13578_v7, -inf  ;;  %v13588_v34 = vadd.f32 %v10163_v20, %v13480_v29 }
 0x4af   :  { %v2485_v61 = vpop.f32.mrf.mxu1  ;;  %2877 = vmax.xlane.f32.xlu0 %v2876_v59  ;;  %v13603_v59 = vadd.f32 %v2654_v43, %v13490_v10 }
 0x4b0   :  { %v13593_v30 = vadd.f32 %v2485_v61, %v13490_v10  ;;  %v2885_v20 = vsel %vm1295_vm1, %v13588_v34, -inf }
 0x4b1   :  { %2904 = vmax.xlane.f32.xlu1 %v2903_v56  ;;  %v10166_v24 = vpop.f32.mrf.mxu1  ;;  %v10194_v56 = vpop.f32.mrf.mxu0  ;;  %v2906_v43 = vsel %vm1295_vm1, %v13603_v59, -inf }
 0x4b2   :  { %v2882_v61 = vsel %vm1295_vm1, %v13593_v30, -inf  ;;  %v13608_v62 = vadd.f32 %v10166_v24, %v13495_v19  ;;  %v13618_v6 = vadd.f32 %v10194_v56, %v13495_v19 }
 0x4b3   :  { %2901 = vmax.xlane.f32.xlu0 %v2900_v18  ;;  %v2495_v35 = vpop.f32.mrf.mxu1 }
 0x4b4   :  { %v13613_v18 = vadd.f32 %v2495_v35, %v13508_v39  ;;  %v2891_v24 = vsel %vm1295_vm1, %v13608_v62, -inf  ;;  %v2915_v56 = vsel %vm1295_vm1, %v13618_v6, -inf }
 0x4b5   :  { %2886 = vmax.xlane.f32.xlu1 %v2885_v20  ;;  %v2664_v20 = vpop.f32.mrf.mxu0  ;;  %v10169_v44 = vpop.f32.mrf.mxu1 }
 0x4b6   :  { %v2888_v35 = vsel %vm1295_vm1, %v13613_v18, -inf  ;;  %v13628_v26 = vadd.f32 %v10169_v44, %v13513_v1 }
 0x4b7   :  { %2883 = vmax.xlane.f32.xlu0 %v2882_v61  ;;  %v13623_v61 = vadd.f32 %v2664_v20, %v13508_v39  ;;  %v2505_v63 = vpop.f32.mrf.mxu1 }
 0x4b9   :  { %2910 = vmax.xlane.f32.xlu1 %v2909_v27  ;;  %v10197_v27 = vpop.f32.mrf.mxu0  ;;  %v2912_v20 = vsel %vm1295_vm1, %v13623_v61, -inf }
 0x4ba   :  { %v13638_v40 = vadd.f32 %v10197_v27, %v13513_v1 }
 0x4bb   :  { %2907 = vmax.xlane.f32.xlu0 %v2906_v43  ;;  %v13633_v43 = vadd.f32 %v2505_v63, %v13528_v12 }
 0x4bc   :  { %v2921_v63 = vsel %vm1295_vm1, %v13638_v40, -inf }
 0x4bd   :  { %2892 = vmax.xlane.f32.xlu1 %v2891_v24  ;;  %v2674_v24 = vpop.f32.mrf.mxu0 }
 0x4be   :  { %v13643_v44 = vadd.f32 %v2674_v24, %v13528_v12 }
 0x4bf   :  { %2889 = vmax.xlane.f32.xlu0 %v2888_v35  ;;  %v2897_v35 = vsel %vm1295_vm1, %v13628_v26, -inf }
 0x4c0   :  { %v2918_v27 = vsel %vm1295_vm1, %v13643_v44, -inf }
 0x4c1   :  { %2916 = vmax.xlane.f32.xlu1 %v2915_v56  ;;  %v2894_v56 = vsel %vm1295_vm1, %v13633_v43, -inf }
 0x4c3   :  { %2913 = vmax.xlane.f32.xlu0 %v2912_v20 }
 0x4c5   :  { %2898 = vmax.xlane.f32.xlu1 %v2897_v35 }
 0x4c7   :  { %2895 = vmax.xlane.f32.xlu0 %v2894_v56  ;;  %v13659_v56 = vpop.permute.xlu1 %3546 }
 0x4c9   :  { %v10216_v23 = vpop.f32.mrf.mxu1  ;;  %2922 = vmax.xlane.f32.xlu1 %v2921_v63 }
 0x4ca   :  { %v13650_v20 = vadd.f32 %v10216_v23, %v13462_v51 }
 0x4cb   :  { %v2813_v5 = vpop.f32.mrf.mxu1  ;;  %2919 = vmax.xlane.f32.xlu0 %v2918_v27 }
 0x4cc   :  { %v13655_v24 = vadd.f32 %v2813_v5, %v13467_v17  ;;  %v2927_v35 = vsel %vm1295_vm1, %v13650_v20, -inf }
 0x4cd   :  { %v10219_v47 = vpop.f32.mrf.mxu1  ;;  %2928 = vmax.xlane.f32.xlu1 %v2927_v35 }
 0x4ce   :  { %v13662_v63 = vadd.f32 %v10219_v47, %v13480_v29  ;;  %v2924_v23 = vsel %vm1295_vm1, %v13655_v24, -inf  ;;  %v13676_v29 = vpop.permute.xlu1 %3542 }
 0x4cf   :  { %v2823_v51 = vpop.f32.mrf.mxu1  ;;  %2925 = vmax.xlane.f32.xlu0 %v2924_v23 }
 0x4d0   :  { %v13667_v27 = vadd.f32 %v2823_v51, %v13490_v10  ;;  %v2933_v5 = vsel %vm1295_vm1, %v13662_v63, -inf }
 0x4d1   :  { %v10222_v17 = vpop.f32.mrf.mxu1  ;;  %2934 = vmax.xlane.f32.xlu1 %v2933_v5 }
 0x4d2   :  { %v13672_v52 = vadd.f32 %v10222_v17, %v13495_v19  ;;  %v2930_v47 = vsel %vm1295_vm1, %v13667_v27, -inf }
 0x4d3   :  { %v2833_v35 = vpop.f32.mrf.mxu1  ;;  %2931 = vmax.xlane.f32.xlu0 %v2930_v47  ;;  %v13693_v47 = vpop.permute.xlu1 %3538 }
 0x4d4   :  { %v13679_v23 = vadd.f32 %v2833_v35, %v13508_v39  ;;  %v2939_v10 = vsel %vm1295_vm1, %v13672_v52, -inf }
 0x4d5   :  { %v10225_v51 = vpop.f32.mrf.mxu1  ;;  %2940 = vmax.xlane.f32.xlu1 %v2939_v10 }
 0x4d6   :  { %v13684_v5 = vadd.f32 %v10225_v51, %v13513_v1  ;;  %v2936_v19 = vsel %vm1295_vm1, %v13679_v23, -inf }
 0x4d7   :  { %v2843_v17 = vpop.f32.mrf.mxu1  ;;  %2937 = vmax.xlane.f32.xlu0 %v2936_v19  ;;  %v13697_v1 = vpop.permute.xlu1 %3534 }
 0x4d8   :  { %v13689_v48 = vadd.f32 %v2843_v17, %v13528_v12  ;;  %v2945_v39 = vsel %vm1295_vm1, %v13684_v5, -inf }
 0x4d9   :  { %2946 = vmax.xlane.f32.xlu1 %v2945_v39 }
 0x4da   :  { %v2942_v35 = vsel %vm1295_vm1, %v13689_v48, -inf }
 0x4db   :  { %2943 = vmax.xlane.f32.xlu0 %v2942_v35  ;;  %v13699_v10 = vpop.permute.xlu1 %3707 }
 0x4dc   :  { %16755 = vst [vmem:[#allocation131_spill] sm:$0xff] %v13699_v10 }
 0x4df   :  { %v13703_v51 = vpop.permute.xlu1 %3705 }
 0x4e0   :  { %16756 = vst [vmem:[#allocation136_spill] sm:$0xff] %v13703_v51 }
 0x4e3   :  { %v13705_v12 = vpop.permute.xlu1 %3703 }
 0x4e4   :  { %16757 = vst [vmem:[#allocation120_spill] sm:$0xff] %v13705_v12 }
 0x4ea   :  { %3699 = vrot.lane.b32.xlu1 %v13120_v11, %s11632_s1 }
 0x4f1   :  { %3701 = vrot.lane.b32.xlu0 %v16654_v0, %s11632_s1 }
 0x4f5   :  { %v2857_v19 = vpop.xlane.xlu1 %2856 }
 0x4f6   :  { %v2949_v17 = vsub.f32 %v13470_v8, %v2857_v19 }
 0x4f7   :  { %v2854_v39 = vpop.xlane.xlu0 %2853 }
 0x4f8   :  { %v2948_v35 = vsub.f32 %v13473_v58, %v2854_v39  ;;  %v2982_v21 = vmul.f32 1.442695, %v2949_v17 }
 0x4fa   :  { %v2980_v50 = vmul.f32 1.442695, %v2948_v35  ;;  %11156 = vpow2.f32 %v2982_v21 }
 0x4fb   :  { %v2863_v54 = vpop.xlane.xlu0 %2862 }
 0x4fc   :  { %v2951_v10 = vsub.f32 %v13485_v41, %v2863_v54  ;;  %11158 = vpow2.f32 %v2980_v50 }
 0x4fe   :  { %v2986_v11 = vmul.f32 1.442695, %v2951_v10  ;;  %v2869_v4 = vpop.xlane.xlu1 %2868 }
 0x4ff   :  { %v2953_v12 = vsub.f32 %v13503_v60, %v2869_v4  ;;  %v2860_v51 = vpop.xlane.xlu0 %2859 }
 0x500   :  { %v2950_v0 = vsub.f32 %v13498_v2, %v2860_v51  ;;  %11160 = vpow2.f32 %v2986_v11 }
 0x501   :  { %v2990_v13 = vmul.f32 1.442695, %v2953_v12 }
 0x502   :  { %v2984_v8 = vmul.f32 1.442695, %v2950_v0  ;;  %v2875_v19 = vpop.xlane.xlu1 %2874 }
 0x503   :  { %v2955_v58 = vsub.f32 %v13523_v53, %v2875_v19  ;;  %v2866_v17 = vpop.xlane.xlu0 %2865 }
 0x504   :  { %11162 = vpow2.f32 %v2984_v8  ;;  %v2952_v39 = vsub.f32 %v13518_v36, %v2866_v17 }
 0x505   :  { %11164 = vpow2.f32 %v2990_v13  ;;  %v2994_v54 = vmul.f32 1.442695, %v2955_v58 }
 0x506   :  { %v2988_v21 = vmul.f32 1.442695, %v2952_v39 }
 0x507   :  { %v2872_v41 = vpop.xlane.xlu0 %2871  ;;  %v13717_v50 = vpop.eup %11156 }
 0x508   :  { %11166 = vpow2.f32 %v2988_v21  ;;  %v2954_v4 = vsub.f32 %v13535_v45, %v2872_v41  ;;  %v3047_v0 = vsel %vm1295_vm1, %v13717_v50, 0.0 }
 0x509   :  { %11168 = vpow2.f32 %v2994_v54  ;;  %v13719_v60 = vpop.eup %11158 }
 0x50a   :  { %v2992_v11 = vmul.f32 1.442695, %v2954_v4  ;;  %v3044_v36 = vsel %vm1295_vm1, %v13719_v60, 0.0 }
 0x50c   :  { %11170 = vpow2.f32 %v2992_v11 }
 0x50d   :  { %v13723_v53 = vpop.eup %11160 }
 0x50e   :  { %3048 = vadd.xlane.f32.xlu1 %v3047_v0  ;;  %v3053_v2 = vsel %vm1295_vm1, %v13723_v53, 0.0 }
 0x510   :  { %3045 = vadd.xlane.f32.xlu0 %v3044_v36 }
 0x511   :  { %v13727_v13 = vpop.eup %11162 }
 0x512   :  { %v13731_v45 = vpop.eup %11164  ;;  %3054 = vadd.xlane.f32.xlu1 %v3053_v2  ;;  %v3050_v10 = vsel %vm1295_vm1, %v13727_v13, 0.0 }
 0x513   :  { %v3059_v12 = vsel %vm1295_vm1, %v13731_v45, 0.0 }
 0x514   :  { %3051 = vadd.xlane.f32.xlu0 %v3050_v10 }
 0x515   :  { %v13735_v51 = vpop.eup %11166 }
 0x516   :  { %v13739_v35 = vpop.eup %11168  ;;  %3060 = vadd.xlane.f32.xlu1 %v3059_v12  ;;  %v3056_v8 = vsel %vm1295_vm1, %v13735_v51, 0.0 }
 0x517   :  { %v3065_v58 = vsel %vm1295_vm1, %v13739_v35, 0.0 }
 0x518   :  { %3057 = vadd.xlane.f32.xlu0 %v3056_v8 }
 0x519   :  { %v13743_v19 = vpop.eup %11170 }
 0x51a   :  { %3066 = vadd.xlane.f32.xlu1 %v3065_v58  ;;  %v3062_v17 = vsel %vm1295_vm1, %v13743_v19, 0.0 }
 0x51c   :  { %3063 = vadd.xlane.f32.xlu0 %v3062_v17 }
 0x536   :  { %v2881_v39 = vpop.xlane.xlu1 %2880 }
 0x537   :  { %v2957_v54 = vsub.f32 %v13572_v16, %v2881_v39 }
 0x538   :  { %v2878_v21 = vpop.xlane.xlu0 %2877 }
 0x539   :  { %v2998_v41 = vmul.f32 1.442695, %v2957_v54  ;;  %v2956_v4 = vsub.f32 %v13578_v7, %v2878_v21 }
 0x53a   :  { %v2905_v11 = vpop.xlane.xlu1 %2904 }
 0x53b   :  { %11172 = vpow2.f32 %v2998_v41  ;;  %v2996_v0 = vmul.f32 1.442695, %v2956_v4  ;;  %v2965_v36 = vsub.f32 %v13575_v37, %v2905_v11 }
 0x53c   :  { %v2902_v2 = vpop.xlane.xlu0 %2901 }
 0x53d   :  { %11174 = vpow2.f32 %v2996_v0  ;;  %v3014_v10 = vmul.f32 1.442695, %v2965_v36  ;;  %v2964_v12 = vsub.f32 %v13583_v22, %v2902_v2 }
 0x53e   :  { %v2887_v8 = vpop.xlane.xlu1 %2886 }
 0x53f   :  { %11176 = vpow2.f32 %v3014_v10  ;;  %v3012_v58 = vmul.f32 1.442695, %v2964_v12  ;;  %v2959_v17 = vsub.f32 %v13588_v34, %v2887_v8 }
 0x540   :  { %v2884_v16 = vpop.xlane.xlu0 %2883 }
 0x541   :  { %11178 = vpow2.f32 %v3012_v58  ;;  %v3002_v39 = vmul.f32 1.442695, %v2959_v17  ;;  %v2958_v7 = vsub.f32 %v13593_v30, %v2884_v16 }
 0x542   :  { %v2911_v54 = vpop.xlane.xlu1 %2910 }
 0x543   :  { %11180 = vpow2.f32 %v3002_v39  ;;  %v3000_v21 = vmul.f32 1.442695, %v2958_v7  ;;  %v2967_v37 = vsub.f32 %v13598_v55, %v2911_v54 }
 0x544   :  { %v2908_v41 = vpop.xlane.xlu0 %2907 }
 0x545   :  { %11182 = vpow2.f32 %v3000_v21  ;;  %v3018_v4 = vmul.f32 1.442695, %v2967_v37  ;;  %v2966_v22 = vsub.f32 %v13603_v59, %v2908_v41 }
 0x546   :  { %v2893_v11 = vpop.xlane.xlu1 %2892 }
 0x547   :  { %11184 = vpow2.f32 %v3018_v4  ;;  %v3016_v0 = vmul.f32 1.442695, %v2966_v22  ;;  %v2961_v34 = vsub.f32 %v13608_v62, %v2893_v11 }
 0x548   :  { %v13758_v36 = vpop.eup %11172  ;;  %v2890_v2 = vpop.xlane.xlu0 %2889 }
 0x549   :  { %11186 = vpow2.f32 %v3016_v0  ;;  %v3006_v30 = vmul.f32 1.442695, %v2961_v34  ;;  %v2960_v10 = vsub.f32 %v13613_v18, %v2890_v2  ;;  %v3071_v55 = vsel %vm1295_vm1, %v13758_v36, 0.0 }
 0x54a   :  { %v13763_v12 = vpop.eup %11174  ;;  %v2917_v8 = vpop.xlane.xlu1 %2916  ;;  %3072 = vadd.xlane.f32.xlu0 %v3071_v55 }
 0x54b   :  { %11188 = vpow2.f32 %v3006_v30  ;;  %v3004_v59 = vmul.f32 1.442695, %v2960_v10  ;;  %v2969_v58 = vsub.f32 %v13618_v6, %v2917_v8  ;;  %v3068_v62 = vsel %vm1295_vm1, %v13763_v12, 0.0 }
 0x54c   :  { %v13768_v17 = vpop.eup %11176  ;;  %3069 = vadd.xlane.f32.xlu1 %v3068_v62  ;;  %v2914_v16 = vpop.xlane.xlu0 %2913 }
 0x54d   :  { %11190 = vpow2.f32 %v3004_v59  ;;  %v3022_v18 = vmul.f32 1.442695, %v2969_v58  ;;  %v2968_v39 = vsub.f32 %v13623_v61, %v2914_v16  ;;  %v3095_v7 = vsel %vm1295_vm1, %v13768_v17, 0.0 }
 0x54e   :  { %v13773_v54 = vpop.eup %11178  ;;  %v2899_v21 = vpop.xlane.xlu1 %2898  ;;  %3096 = vadd.xlane.f32.xlu0 %v3095_v7 }
 0x54f   :  { %11192 = vpow2.f32 %v3022_v18  ;;  %v3020_v6 = vmul.f32 1.442695, %v2968_v39  ;;  %v2963_v37 = vsub.f32 %v13628_v26, %v2899_v21  ;;  %v3092_v41 = vsel %vm1295_vm1, %v13773_v54, 0.0 }
 0x550   :  { %v13778_v4 = vpop.eup %11180  ;;  %3093 = vadd.xlane.f32.xlu1 %v3092_v41  ;;  %v2896_v22 = vpop.xlane.xlu0 %2895 }
 0x551   :  { %11194 = vpow2.f32 %v3020_v6  ;;  %v3010_v61 = vmul.f32 1.442695, %v2963_v37  ;;  %v2962_v11 = vsub.f32 %v13633_v43, %v2896_v22  ;;  %v3077_v0 = vsel %vm1295_vm1, %v13778_v4, 0.0 }
 0x552   :  { %v13783_v34 = vpop.eup %11182  ;;  %v2923_v2 = vpop.xlane.xlu1 %2922  ;;  %3078 = vadd.xlane.f32.xlu0 %v3077_v0 }
 0x553   :  { %11196 = vpow2.f32 %v3010_v61  ;;  %v3008_v26 = vmul.f32 1.442695, %v2962_v11  ;;  %v2971_v30 = vsub.f32 %v13638_v40, %v2923_v2  ;;  %v3074_v10 = vsel %vm1295_vm1, %v13783_v34, 0.0 }
 0x554   :  { %v13788_v55 = vpop.eup %11184  ;;  %3075 = vadd.xlane.f32.xlu1 %v3074_v10  ;;  %v2920_v8 = vpop.xlane.xlu0 %2919 }
 0x555   :  { %11198 = vpow2.f32 %v3008_v26  ;;  %v3026_v43 = vmul.f32 1.442695, %v2971_v30  ;;  %v2970_v59 = vsub.f32 %v13643_v44, %v2920_v8  ;;  %v3101_v58 = vsel %vm1295_vm1, %v13788_v55, 0.0 }
 0x556   :  { %v13793_v62 = vpop.eup %11186  ;;  %v2929_v16 = vpop.xlane.xlu1 %2928  ;;  %3102 = vadd.xlane.f32.xlu0 %v3101_v58 }
 0x557   :  { %11200 = vpow2.f32 %v3026_v43  ;;  %v3024_v40 = vmul.f32 1.442695, %v2970_v59  ;;  %v2973_v18 = vsub.f32 %v13650_v20, %v2929_v16  ;;  %v3098_v39 = vsel %vm1295_vm1, %v13793_v62, 0.0 }
 0x558   :  { %v13798_v7 = vpop.eup %11188  ;;  %3099 = vadd.xlane.f32.xlu1 %v3098_v39  ;;  %v2926_v21 = vpop.xlane.xlu0 %2925 }
 0x559   :  { %11202 = vpow2.f32 %v3024_v40  ;;  %v3030_v44 = vmul.f32 1.442695, %v2973_v18  ;;  %v2972_v6 = vsub.f32 %v13655_v24, %v2926_v21  ;;  %v3083_v37 = vsel %vm1295_vm1, %v13798_v7, 0.0 }
 0x55a   :  { %v13803_v41 = vpop.eup %11190  ;;  %v2935_v22 = vpop.xlane.xlu1 %2934  ;;  %3084 = vadd.xlane.f32.xlu0 %v3083_v37 }
 0x55b   :  { %11204 = vpow2.f32 %v3030_v44  ;;  %v3028_v20 = vmul.f32 1.442695, %v2972_v6  ;;  %v2975_v61 = vsub.f32 %v13662_v63, %v2935_v22  ;;  %v3080_v11 = vsel %vm1295_vm1, %v13803_v41, 0.0 }
 0x55c   :  { %v13808_v0 = vpop.eup %11192  ;;  %3081 = vadd.xlane.f32.xlu1 %v3080_v11  ;;  %v2932_v2 = vpop.xlane.xlu0 %2931 }
 0x55d   :  { %11206 = vpow2.f32 %v3028_v20  ;;  %v3034_v24 = vmul.f32 1.442695, %v2975_v61  ;;  %v2974_v26 = vsub.f32 %v13667_v27, %v2932_v2  ;;  %v3107_v30 = vsel %vm1295_vm1, %v13808_v0, 0.0 }
 0x55e   :  { %v13813_v10 = vpop.eup %11194  ;;  %v2941_v8 = vpop.xlane.xlu1 %2940  ;;  %3108 = vadd.xlane.f32.xlu0 %v3107_v30 }
 0x55f   :  { %11208 = vpow2.f32 %v3034_v24  ;;  %v3032_v63 = vmul.f32 1.442695, %v2974_v26  ;;  %v2977_v43 = vsub.f32 %v13672_v52, %v2941_v8  ;;  %v3104_v59 = vsel %vm1295_vm1, %v13813_v10, 0.0 }
 0x560   :  { %v13818_v58 = vpop.eup %11196  ;;  %3105 = vadd.xlane.f32.xlu1 %v3104_v59  ;;  %v2938_v16 = vpop.xlane.xlu0 %2937 }
 0x561   :  { %11210 = vpow2.f32 %v3032_v63  ;;  %v3038_v27 = vmul.f32 1.442695, %v2977_v43  ;;  %v2976_v40 = vsub.f32 %v13679_v23, %v2938_v16  ;;  %v3089_v18 = vsel %vm1295_vm1, %v13818_v58, 0.0 }
 0x562   :  { %v13823_v39 = vpop.eup %11198  ;;  %v2947_v21 = vpop.xlane.xlu1 %2946  ;;  %3090 = vadd.xlane.f32.xlu0 %v3089_v18 }
 0x563   :  { %11212 = vpow2.f32 %v3038_v27  ;;  %v3036_v52 = vmul.f32 1.442695, %v2976_v40  ;;  %v2979_v44 = vsub.f32 %v13684_v5, %v2947_v21  ;;  %v3086_v6 = vsel %vm1295_vm1, %v13823_v39, 0.0 }
 0x564   :  { %v13828_v37 = vpop.eup %11200  ;;  %3087 = vadd.xlane.f32.xlu1 %v3086_v6  ;;  %v2944_v22 = vpop.xlane.xlu0 %2943 }
 0x565   :  { %11214 = vpow2.f32 %v3036_v52  ;;  %v3042_v23 = vmul.f32 1.442695, %v2979_v44  ;;  %v2978_v20 = vsub.f32 %v13689_v48, %v2944_v22  ;;  %v3113_v61 = vsel %vm1295_vm1, %v13828_v37, 0.0  ;;  %v16758_v22 = vld [vmem:[#allocation23_spill] sm:$0xff] }
 0x566   :  { %v13833_v11 = vpop.eup %11202  ;;  %3114 = vadd.xlane.f32.xlu0 %v3113_v61  ;;  %v13879_v61 = vpop.permute.xlu1 %3699 }
 0x567   :  { %11216 = vpow2.f32 %v3042_v23  ;;  %v3040_v2 = vmul.f32 1.442695, %v2978_v20  ;;  %v3110_v5 = vsel %vm1295_vm1, %v13833_v11, 0.0  ;;  %v16759_v23 = vld [vmem:[#allocation25_spill] sm:$0xff]  ;;  %v16760_v20 = vld [vmem:[#allocation19_spill] sm:$0xff] }
 0x568   :  { %v13837_v24 = vpop.eup %11204  ;;  %3111 = vadd.xlane.f32.xlu1 %v3110_v5  ;;  %v13883_v5 = vpop.permute.xlu0 %3701 }
 0x569   :  { %11218 = vpow2.f32 %v3040_v2  ;;  %v3119_v26 = vsel %vm1295_vm1, %v13837_v24, 0.0  ;;  %v16761_v2 = vld [vmem:[#allocation26_spill] sm:$0xff] }
 0x56a   :  { %v13841_v30 = vpop.eup %11206  ;;  %3120 = vadd.xlane.f32.xlu0 %v3119_v26  ;;  %v16762_v26 = vld [vmem:[#allocation38_spill] sm:$0xff] }
 0x56b   :  { %v3116_v48 = vsel %vm1295_vm1, %v13841_v30, 0.0 }
 0x56c   :  { %v13845_v8 = vpop.eup %11208  ;;  %3117 = vadd.xlane.f32.xlu1 %v3116_v48 }
 0x56d   :  { %v3125_v63 = vsel %vm1295_vm1, %v13845_v8, 0.0 }
 0x56e   :  { %v13849_v43 = vpop.eup %11210  ;;  %3126 = vadd.xlane.f32.xlu0 %v3125_v63  ;;  %v16763_v63 = vld [vmem:[#allocation20_spill] sm:$0xff] }
 0x56f   :  { %v3122_v59 = vsel %vm1295_vm1, %v13849_v43, 0.0 }
 0x570   :  { %v13853_v16 = vpop.eup %11212  ;;  %3123 = vadd.xlane.f32.xlu1 %v3122_v59  ;;  %v16764_v59 = vld [vmem:[#allocation36_spill] sm:$0xff] }
 0x571   :  { %v3131_v27 = vsel %vm1295_vm1, %v13853_v16, 0.0 }
 0x572   :  { %v13857_v40 = vpop.eup %11214  ;;  %3132 = vadd.xlane.f32.xlu0 %v3131_v27 }
 0x573   :  { %v3128_v18 = vsel %vm1295_vm1, %v13857_v40, 0.0 }
 0x574   :  { %v13861_v21 = vpop.eup %11216  ;;  %3129 = vadd.xlane.f32.xlu1 %v3128_v18 }
 0x575   :  { %v3137_v52 = vsel %vm1295_vm1, %v13861_v21, 0.0 }
 0x576   :  { %v13865_v44 = vpop.eup %11218  ;;  %3138 = vadd.xlane.f32.xlu0 %v3137_v52  ;;  %v16765_v52 = vld [vmem:[#allocation16_spill] sm:$0xff] }
 0x577   :  { %v3134_v6 = vsel %vm1295_vm1, %v13865_v44, 0.0 }
 0x578   :  { %3135 = vadd.xlane.f32.xlu1 %v3134_v6  ;;  %v16766_v6 = vld [vmem:[#allocation34_spill] sm:$0xff] }
 0x589   :  { %3695 = vrot.lane.b32.xlu1 %v13136_v31, %s11632_s1 }
 0x58c   :  { %3697 = vrot.lane.b32.xlu0 %v16658_v3, %s11632_s1 }
 0x58d   :  { %4530 = vrot.lane.b32.xlu1 %v16758_v22, %s11633_s16 }
 0x590   :  { %4532 = vrot.lane.b32.xlu0 %v16759_v23, %s11633_s16  ;;  %v16767_v23 = vld [vmem:[#allocation15_spill] sm:$0xff] }
 0x591   :  { %4526 = vrot.lane.b32.xlu1 %v16760_v20, %s11633_s16 }
 0x594   :  { %4528 = vrot.lane.b32.xlu0 %v16761_v2, %s11633_s16 }
 0x595   :  { %4701 = vrot.lane.b32.xlu1 %v16762_v26, %s11633_s16 }
 0x597   :  { %v3049_v48 = vpop.xlane.xlu1 %3048 }
 0x598   :  { %4524 = vrot.lane.b32.xlu0 %v16763_v63, %s11633_s16  ;;  %11220 = vrcp.f32 %v3049_v48  ;;  %v16768_v48 = vld [vmem:[#allocation32_spill] sm:$0xff] }
 0x599   :  { %4699 = vrot.lane.b32.xlu1 %v16764_v59, %s11633_s16  ;;  %v3046_v27 = vpop.xlane.xlu0 %3045  ;;  %v16769_v59 = vld [vmem:[#allocation13_spill] sm:$0xff] }
 0x59a   :  { %11222 = vrcp.f32 %v3046_v27 }
 0x59b   :  { %v3055_v18 = vpop.xlane.xlu1 %3054 }
 0x59c   :  { %4522 = vrot.lane.b32.xlu0 %v16765_v52, %s11633_s16  ;;  %11224 = vrcp.f32 %v3055_v18  ;;  %v16770_v18 = vld [vmem:[#allocation14_spill] sm:$0xff] }
 0x59d   :  { %4697 = vrot.lane.b32.xlu1 %v16766_v6, %s11633_s16  ;;  %v3052_v2 = vpop.xlane.xlu0 %3051 }
 0x59e   :  { %11226 = vrcp.f32 %v3052_v2 }
 0x59f   :  { %v3061_v26 = vpop.xlane.xlu1 %3060 }
 0x5a0   :  { %4520 = vrot.lane.b32.xlu0 %v16767_v23, %s11633_s16  ;;  %11228 = vrcp.f32 %v3061_v26  ;;  %v16771_v23 = vld [vmem:[#allocation12_spill] sm:$0xff] }
 0x5a1   :  { %4695 = vrot.lane.b32.xlu1 %v16768_v48, %s11633_s16  ;;  %v3058_v63 = vpop.xlane.xlu0 %3057 }
 0x5a2   :  { %11230 = vrcp.f32 %v3058_v63  ;;  %v16772_v63 = vld [vmem:[#allocation46_spill] sm:$0xff] }
 0x5a3   :  { %v3067_v27 = vpop.xlane.xlu1 %3066 }
 0x5a4   :  { %4518 = vrot.lane.b32.xlu0 %v16769_v59, %s11633_s16  ;;  %11232 = vrcp.f32 %v3067_v27 }
 0x5a5   :  { %4504 = vrot.lane.b32.xlu1 %v16770_v18, %s11633_s16  ;;  %v3064_v6 = vpop.xlane.xlu0 %3063  ;;  %v11221_v2 = vpop.eup %11220 }
 0x5a6   :  { %11234 = vrcp.f32 %v3064_v6  ;;  %v3143_v48 = vmul.f32 %v11221_v2, %v13717_v50  ;;  %v16773_v6 = vld [vmem:[#allocation39_spill] sm:$0xff]  ;;  %v16780_v2 = vld [vmem:[#allocation44_spill] sm:$0xff] }
 0x5a7   :  { %v11223_v3 = vpop.eup %11222 }
 0x5a8   :  { %4502 = vrot.lane.b32.xlu0 %v16771_v23, %s11633_s16  ;;  %v3141_v26 = vmul.f32 %v11223_v3, %v13719_v60  ;;  %v16774_v3 = vld [vmem:[#allocation17_spill] sm:$0xff] }
 0x5a9   :  { %4870 = vrot.lane.b32.xlu1 %v16772_v63, %s11633_s16  ;;  %v11225_v52 = vpop.eup %11224 }
 0x5aa   :  { %10242 = vmatprep.mubr.msk.f32.mxu0 %vm1295_vm1, %v3141_v26  ;;  %v3147_v50 = vmul.f32 %v11225_v52, %v13723_v53  ;;  %v16776_v53 = vld [vmem:[#allocation45_spill] sm:$0xff]  ;;  %v16784_v26 = vld [vmem:[#allocation43_spill] sm:$0xff] }
 0x5ab   :  { %v11227_v27 = vpop.eup %11226  ;;  %10243 = vmatmul.mubr.msk.f32.vlgmr.msra.gmra.mxu0 %vm1295_vm1, %v3143_v48 }
 0x5ac   :  { %10283 = vmatpush3.msra.mxu0 %v13415_v28  ;;  %4693 = vrot.lane.b32.xlu0 %v16773_v6, %s11633_s16  ;;  %v3145_v18 = vmul.f32 %v11227_v27, %v13727_v13  ;;  %v16775_v28 = vld [vmem:[#allocation18_spill] sm:$0xff]  ;;  %v16785_v27 = vld [vmem:[#allocation29_spill] sm:$0xff] }
 0x5ad   :  { %10284 = vmatprep.subr.mxu0 %v13659_v56  ;;  %4508 = vrot.lane.b32.xlu1 %v16774_v3, %s11633_s16  ;;  %v11229_v60 = vpop.eup %11228 }
 0x5ae   :  { %10285 = vmatpush3.msra.mxu0 %v13659_v56  ;;  %10245 = vmatprep.mubr.msk.f32.mxu0 %vm1295_vm1, %v3145_v18  ;;  %v3151_v56 = vmul.f32 %v11229_v60, %v13731_v45  ;;  %v16778_v45 = vld [vmem:[#allocation21_spill] sm:$0xff] }
 0x5af   :  { %v11231_v48 = vpop.eup %11230  ;;  %10286 = vmatprep.subr.mxu0 %v13418_v33  ;;  %10246 = vmatmul.mubr.msk.f32.gmra.mxu0 %vm1295_vm1, %v3147_v50  ;;  %v16786_v50 = vld [vmem:[#allocation28_spill] sm:$0xff]  ;;  %v16788_v60 = vld [vmem:[#allocation65_spill] sm:$0xff] }
 0x5b0   :  { %10287 = vmatpush3.msra.mxu0 %v13418_v33  ;;  %4506 = vrot.lane.b32.xlu0 %v16775_v28, %s11633_s16  ;;  %v3149_v13 = vmul.f32 %v11231_v48, %v13735_v51  ;;  %v16777_v33 = vld [vmem:[#allocation35_spill] sm:$0xff]  ;;  %v16789_v48 = vld [vmem:[#allocation42_spill] sm:$0xff] }
 0x5b1   :  { %10288 = vmatprep.subr.mxu0 %v13676_v29  ;;  %4868 = vrot.lane.b32.xlu1 %v16776_v53, %s11633_s16  ;;  %v11233_v52 = vpop.eup %11232 }
 0x5b2   :  { %10289 = vmatpush3.msra.mxu0 %v13676_v29  ;;  %10248 = vmatprep.mubr.msk.f32.mxu0 %vm1295_vm1, %v3149_v13  ;;  %v3155_v29 = vmul.f32 %v11233_v52, %v13739_v35  ;;  %v16782_v35 = vld [vmem:[#allocation24_spill] sm:$0xff]  ;;  %v16790_v13 = vld [vmem:[#allocation30_spill] sm:$0xff] }
 0x5b3   :  { %v11235_v18 = vpop.eup %11234  ;;  %10290 = vmatprep.subr.mxu0 %v13422_v46  ;;  %10249 = vmatmul.mubr.msk.f32.gmra.mxu0 %vm1295_vm1, %v3151_v56  ;;  %v16791_v56 = vld [vmem:[#allocation37_spill] sm:$0xff]  ;;  %v16792_v52 = vld [vmem:[#allocation62_spill] sm:$0xff] }
 0x5b4   :  { %10291 = vmatpush3.msra.mxu0 %v13422_v46  ;;  %4691 = vrot.lane.b32.xlu0 %v16777_v33, %s11633_s16  ;;  %v3153_v51 = vmul.f32 %v11235_v18, %v13743_v19  ;;  %v16779_v46 = vld [vmem:[#allocation22_spill] sm:$0xff]  ;;  %v13950_v19 = vld [vmem:[#allocation7 + $0x38] sm:$0xff] }
 0x5b5   :  { %10292 = vmatprep.subr.mxu0 %v13693_v47  ;;  %4512 = vrot.lane.b32.xlu1 %v16778_v45, %s11633_s16 }
 0x5b6   :  { %10293 = vmatpush3.msra.mxu0 %v13693_v47  ;;  %10251 = vmatprep.mubr.msk.f32.mxu0 %vm1295_vm1, %v3153_v51  ;;  %v16781_v47 = vld [vmem:[#allocation33_spill] sm:$0xff] }
 0x5b7   :  { %10294 = vmatprep.subr.mxu0 %v13426_v14  ;;  %10252 = vmatmul.mubr.msk.f32.gmra.mxu0 %vm1295_vm1, %v3155_v29  ;;  %v16793_v51 = vld [vmem:[#allocation41_spill] sm:$0xff] }
 0x5b8   :  { %10295 = vmatpush3.msra.mxu0 %v13426_v14  ;;  %4510 = vrot.lane.b32.xlu0 %v16779_v46, %s11633_s16  ;;  %v16783_v14 = vld [vmem:[#allocation27_spill] sm:$0xff] }
 0x5b9   :  { %10296 = vmatprep.subr.mxu0 %v13697_v1  ;;  %4866 = vrot.lane.b32.xlu1 %v16780_v2, %s11633_s16 }
 0x5ba   :  { %10297 = vmatpush3.msra.mxu0 %v13697_v1  ;;  %v16787_v1 = vld [vmem:[#allocation31_spill] sm:$0xff] }
 0x5bb   :  { %10338 = vmatprep.subr.mxu0 %v13950_v19 }
 0x5bc   :  { %4689 = vrot.lane.b32.xlu0 %v16781_v47, %s11633_s16 }
 0x5bd   :  { %4516 = vrot.lane.b32.xlu1 %v16782_v35, %s11633_s16 }
 0x5c0   :  { %4514 = vrot.lane.b32.xlu0 %v16783_v14, %s11633_s16 }
 0x5c1   :  { %4864 = vrot.lane.b32.xlu1 %v16784_v26, %s11633_s16  ;;  %v16795_v26 = vld [vmem:[#allocation117_spill] sm:$0xff] }
 0x5c4   :  { %4687 = vrot.lane.b32.xlu0 %v16785_v27, %s11633_s16 }
 0x5c5   :  { %4673 = vrot.lane.b32.xlu1 %v16786_v50, %s11633_s16  ;;  %v16794_v50 = vld [vmem:[#allocation49_spill] sm:$0xff] }
 0x5c8   :  { %4671 = vrot.lane.b32.xlu0 %v16787_v1, %s11633_s16 }
 0x5c9   :  { %5039 = vrot.lane.b32.xlu1 %v16788_v60, %s11633_s16 }
 0x5cc   :  { %4862 = vrot.lane.b32.xlu0 %v16789_v48, %s11633_s16 }
 0x5cd   :  { %4677 = vrot.lane.b32.xlu1 %v16790_v13, %s11633_s16 }
 0x5d0   :  { %4675 = vrot.lane.b32.xlu0 %v16791_v56, %s11633_s16 }
 0x5d1   :  { %5037 = vrot.lane.b32.xlu1 %v16792_v52, %s11633_s16 }
 0x5d3   :  { %v3073_v18 = vpop.xlane.xlu0 %3072 }
 0x5d4   :  { %4860 = vrot.lane.b32.xlu0 %v16793_v51, %s11633_s16  ;;  %11236 = vrcp.f32 %v3073_v18 }
 0x5d5   :  { %v3070_v29 = vpop.xlane.xlu1 %3069  ;;  %4681 = vrot.lane.b32.xlu1 %v12239_v42, %s11633_s16 }
 0x5d6   :  { %11238 = vrcp.f32 %v3070_v29 }
 0x5d7   :  { %v3097_v60 = vpop.xlane.xlu0 %3096 }
 0x5d8   :  { %4679 = vrot.lane.b32.xlu0 %v16794_v50, %s11633_s16  ;;  %11240 = vrcp.f32 %v3097_v60 }
 0x5d9   :  { %v3094_v13 = vpop.xlane.xlu1 %3093  ;;  %5035 = vrot.lane.b32.xlu1 %v12381_v57, %s11633_s16 }
 0x5da   :  { %11242 = vrcp.f32 %v3094_v13 }
 0x5db   :  { %v3079_v52 = vpop.xlane.xlu0 %3078 }
 0x5dc   :  { %4858 = vrot.lane.b32.xlu0 %v12301_v38, %s11633_s16  ;;  %11244 = vrcp.f32 %v3079_v52 }
 0x5dd   :  { %v3076_v18 = vpop.xlane.xlu1 %3075  ;;  %4685 = vrot.lane.b32.xlu1 %v12265_v15, %s11633_s16 }
 0x5de   :  { %11246 = vrcp.f32 %v3076_v18 }
 0x5df   :  { %v3103_v29 = vpop.xlane.xlu0 %3102 }
 0x5e0   :  { %4683 = vrot.lane.b32.xlu0 %v12248_v32, %s11633_s16  ;;  %11248 = vrcp.f32 %v3103_v29 }
 0x5e1   :  { %v3100_v60 = vpop.xlane.xlu1 %3099  ;;  %5033 = vrot.lane.b32.xlu1 %v16639_v9, %s11633_s16  ;;  %v11237_v13 = vpop.eup %11236 }
 0x5e2   :  { %11250 = vrcp.f32 %v3100_v60  ;;  %v3159_v18 = vmul.f32 %v11237_v13, %v13758_v36  ;;  %v16797_v36 = vld [vmem:[#allocation131_spill] sm:$0xff] }
 0x5e3   :  { %v11239_v57 = vpop.eup %11238  ;;  %v3085_v42 = vpop.xlane.xlu0 %3084 }
 0x5e4   :  { %4856 = vrot.lane.b32.xlu0 %v12316_v25, %s11633_s16  ;;  %v3157_v52 = vmul.f32 %v11239_v57, %v13763_v12  ;;  %11252 = vrcp.f32 %v3085_v42  ;;  %v16796_v25 = vld [vmem:[#allocation40_spill] sm:$0xff] }
 0x5e5   :  { %v3082_v15 = vpop.xlane.xlu1 %3081  ;;  %4842 = vrot.lane.b32.xlu1 %v16641_v49, %s11633_s16  ;;  %v11241_v29 = vpop.eup %11240  ;;  %v16867_v49 = vld [vmem:[#allocation123_spill] sm:$0xff] }
 0x5e6   :  { %11254 = vrcp.f32 %v3082_v15  ;;  %10270 = vmatprep.mubr.msk.f32.mxu1 %vm1295_vm1, %v3157_v52  ;;  %v3175_v42 = vmul.f32 %v11241_v29, %v13768_v17  ;;  %v16798_v15 = vld [vmem:[#allocation66_spill] sm:$0xff]  ;;  %v16799_v52 = vld [vmem:[#allocation136_spill] sm:$0xff] }
 0x5e7   :  { %v11243_v9 = vpop.eup %11242  ;;  %10271 = vmatmul.mubr.msk.f32.vlgmr.msra.gmra.mxu1 %vm1295_vm1, %v3159_v18  ;;  %v3109_v60 = vpop.xlane.xlu0 %3108  ;;  %v16800_v17 = vld [vmem:[#allocation78_spill] sm:$0xff]  ;;  %v16801_v18 = vld [vmem:[#allocation120_spill] sm:$0xff] }
 0x5e8   :  { %10311 = vmatpush3.msra.mxu1 %v16795_v26  ;;  %4840 = vrot.lane.b32.xlu0 %v16796_v25, %s11633_s16  ;;  %v3173_v57 = vmul.f32 %v11243_v9, %v13773_v54  ;;  %11256 = vrcp.f32 %v3109_v60  ;;  %v16802_v60 = vld [vmem:[#allocation81_spill] sm:$0xff] }
 0x5e9   :  { %10312 = vmatprep.subr.mxu1 %v16797_v36  ;;  %v3106_v12 = vpop.xlane.xlu1 %3105  ;;  %4844 = vrot.lane.b32.xlu1 %v16798_v15, %s11633_s16  ;;  %v11245_v13 = vpop.eup %11244  ;;  %v16863_v15 = vld [vmem:[#allocation132_spill] sm:$0xff] }
 0x5ea   :  { %11258 = vrcp.f32 %v3106_v12  ;;  %10313 = vmatpush3.msra.mxu1 %v16797_v36  ;;  %10298 = vmatprep.mubr.msk.f32.mxu0 %vm1295_vm1, %v3173_v57  ;;  %v3163_v57 = vmul.f32 %v11245_v13, %v13778_v4  ;;  %v16803_v12 = vld [vmem:[#allocation68_spill] sm:$0xff] }
 0x5eb   :  { %v11247_v26 = vpop.eup %11246  ;;  %10314 = vmatprep.subr.mxu1 %v16799_v52  ;;  %10299 = vmatmul.mubr.msk.f32.vlgmr.msra.gmra.mxu0 %vm1295_vm1, %v3175_v42  ;;  %v3091_v9 = vpop.xlane.xlu0 %3090  ;;  %v16804_v13 = vld [vmem:[#allocation72_spill] sm:$0xff] }
 0x5ec   :  { %10315 = vmatpush3.msra.mxu1 %v16799_v52  ;;  %5031 = vrot.lane.b32.xlu0 %v16800_v17, %s11633_s16  ;;  %v3161_v54 = vmul.f32 %v11247_v26, %v13783_v34  ;;  %11260 = vrcp.f32 %v3091_v9 }
 0x5ed   :  { %10316 = vmatprep.subr.mxu1 %v16801_v18  ;;  %v3088_v29 = vpop.xlane.xlu1 %3087  ;;  %5029 = vrot.lane.b32.xlu1 %v16802_v60, %s11633_s16  ;;  %v11249_v36 = vpop.eup %11248 }
 0x5ee   :  { %11262 = vrcp.f32 %v3088_v29  ;;  %10317 = vmatpush3.msra.mxu1 %v16801_v18  ;;  %10273 = vmatprep.mubr.msk.f32.mxu1 %vm1295_vm1, %v3161_v54  ;;  %v3179_v52 = vmul.f32 %v11249_v36, %v13788_v55  ;;  %v16805_v18 = vld [vmem:[#allocation69_spill] sm:$0xff] }
 0x5ef   :  { %v11251_v42 = vpop.eup %11250  ;;  %10318 = vmatprep.subr.mxu1 %v13883_v5  ;;  %10274 = vmatmul.mubr.msk.f32.gmra.mxu1 %vm1295_vm1, %v3163_v57  ;;  %v3115_v34 = vpop.xlane.xlu0 %3114  ;;  %v3849_v57 = vld [vmem:[#allocation7 + $0x28] sm:$0xff] }
 0x5f0   :  { %10319 = vmatpush3.msra.mxu1 %v13883_v5  ;;  %4846 = vrot.lane.b32.xlu0 %v16803_v12, %s11633_s16  ;;  %v3177_v26 = vmul.f32 %v11251_v42, %v13793_v62  ;;  %11264 = vrcp.f32 %v3115_v34  ;;  %v3850_v5 = vld [vmem:[#allocation7 + $0x30] sm:$0xff]  ;;  %v16806_v36 = vld [vmem:[#allocation73_spill] sm:$0xff]  ;;  %v3848_v34 = vld [vmem:[#allocation7 + $0x20] sm:$0xff] }
 0x5f1   :  { %10320 = vmatprep.subr.mxu1 %v13879_v61  ;;  %v3112_v4 = vpop.xlane.xlu1 %3111  ;;  %4850 = vrot.lane.b32.xlu1 %v16804_v13, %s11633_s16  ;;  %v11253_v9 = vpop.eup %11252  ;;  %v16851_v13 = vld [vmem:[#allocation133_spill] sm:$0xff] }
 0x5f2   :  { %11266 = vrcp.f32 %v3112_v4  ;;  %10321 = vmatpush3.msra.mxu1 %v13879_v61  ;;  %10301 = vmatprep.mubr.msk.f32.mxu0 %vm1295_vm1, %v3177_v26  ;;  %v3167_v61 = vmul.f32 %v11253_v9, %v13798_v7 }
 0x5f3   :  { %v11255_v54 = vpop.eup %11254  ;;  %10302 = vmatmul.mubr.msk.f32.gmra.mxu0 %vm1295_vm1, %v3179_v52  ;;  %v3121_v62 = vpop.xlane.xlu0 %3120  ;;  %v16808_v52 = vld [vmem:[#allocation85_spill] sm:$0xff] }
 0x5f4   :  { %4848 = vrot.lane.b32.xlu0 %v16805_v18, %s11633_s16  ;;  %v3165_v29 = vmul.f32 %v11255_v54, %v13803_v41  ;;  %10339 = vmatpush3.msra.mxu0 %v13950_v19  ;;  %11268 = vrcp.f32 %v3121_v62  ;;  %v16807_v19 = vld [vmem:[#allocation84_spill] sm:$0xff]  ;;  %v16876_v18 = vld [vmem:[#allocation118_spill] sm:$0xff] }
 0x5f5   :  { %v3118_v55 = vpop.xlane.xlu1 %3117  ;;  %4852 = vrot.lane.b32.xlu1 %v16806_v36, %s11633_s16  ;;  %10340 = vmatprep.subr.mxu0 %v3850_v5  ;;  %v11257_v42 = vpop.eup %11256  ;;  %v16846_v36 = vld [vmem:[#allocation139_spill] sm:$0xff] }
 0x5f6   :  { %11270 = vrcp.f32 %v3118_v55  ;;  %10276 = vmatprep.mubr.msk.f32.mxu1 %vm1295_vm1, %v3165_v29  ;;  %10341 = vmatpush3.msra.mxu0 %v3850_v5  ;;  %v3183_v9 = vmul.f32 %v11257_v42, %v13808_v0  ;;  %v16810_v55 = vld [vmem:[#allocation87_spill] sm:$0xff] }
 0x5f7   :  { %v11259_v26 = vpop.eup %11258  ;;  %10277 = vmatmul.mubr.msk.f32.gmra.mxu1 %vm1295_vm1, %v3167_v61  ;;  %v3127_v41 = vpop.xlane.xlu0 %3126  ;;  %10342 = vmatprep.subr.mxu0 %v3849_v57 }
 0x5f8   :  { %5027 = vrot.lane.b32.xlu0 %v16807_v19, %s11633_s16  ;;  %v3181_v4 = vmul.f32 %v11259_v26, %v13813_v10  ;;  %10343 = vmatpush3.msra.mxu0 %v3849_v57  ;;  %11272 = vrcp.f32 %v3127_v41  ;;  %v16809_v10 = vld [vmem:[#allocation76_spill] sm:$0xff]  ;;  %v16811_v26 = vld [vmem:[#allocation54_spill] sm:$0xff]  ;;  %v16812_v41 = vld [vmem:[#allocation91_spill] sm:$0xff] }
 0x5f9   :  { %v3124_v7 = vpop.xlane.xlu1 %3123  ;;  %5025 = vrot.lane.b32.xlu1 %v16808_v52, %s11633_s16  ;;  %10344 = vmatprep.subr.mxu0 %v3848_v34  ;;  %v11261_v5 = vpop.eup %11260  ;;  %v16840_v52 = vld [vmem:[#allocation94_spill] sm:$0xff] }
 0x5fa   :  { %11274 = vrcp.f32 %v3124_v7  ;;  %10304 = vmatprep.mubr.msk.f32.mxu0 %vm1295_vm1, %v3181_v4  ;;  %10345 = vmatpush3.msra.mxu0 %v3848_v34  ;;  %v3171_v0 = vmul.f32 %v11261_v5, %v13818_v58 }
 0x5fb   :  { %v11263_v54 = vpop.eup %11262  ;;  %10305 = vmatmul.mubr.msk.f32.gmra.mxu0 %vm1295_vm1, %v3183_v9  ;;  %v3133_v62 = vpop.xlane.xlu0 %3132 }
 0x5fc   :  { %4854 = vrot.lane.b32.xlu0 %v16809_v10, %s11633_s16  ;;  %v3169_v29 = vmul.f32 %v11263_v54, %v13823_v39  ;;  %v16813_v54 = vld [vmem:[#allocation89_spill] sm:$0xff]  ;;  %v16875_v10 = vld [vmem:[#allocation122_spill] sm:$0xff] }
 0x5fd   :  { %v3130_v57 = vpop.xlane.xlu1 %3129  ;;  %5011 = vrot.lane.b32.xlu1 %v16810_v55, %s11633_s16  ;;  %v11265_v61 = vpop.eup %11264  ;;  %v16837_v55 = vld [vmem:[#allocation109_spill] sm:$0xff] }
 0x5fe   :  { %11276 = vrcp.f32 %v3130_v57  ;;  %10279 = vmatprep.mubr.msk.f32.mxu1 %vm1295_vm1, %v3169_v29  ;;  %v3187_v58 = vmul.f32 %v11265_v61, %v13828_v37 }
 0x5ff   :  { %v11267_v42 = vpop.eup %11266  ;;  %11278 = vrcp.f32 %v3133_v62  ;;  %10280 = vmatmul.mubr.msk.f32.gmra.mxu1 %vm1295_vm1, %v3171_v0  ;;  %v3139_v34 = vpop.xlane.xlu0 %3138  ;;  %v16814_v62 = vld [vmem:[#allocation95_spill] sm:$0xff] }
 0x600   :  { %5009 = vrot.lane.b32.xlu0 %v16811_v26, %s11633_s16  ;;  %v3185_v39 = vmul.f32 %v11267_v42, %v13833_v11  ;;  %v2167_v42 = vld [vmem:[#allocation7 + $0x18] sm:$0xff] }
 0x601   :  { %5015 = vrot.lane.b32.xlu1 %v16812_v41, %s11633_s16  ;;  %v3136_v4 = vpop.xlane.xlu1 %3135  ;;  %v11269_v7 = vpop.eup %11268  ;;  %v16836_v41 = vld [vmem:[#allocation90_spill] sm:$0xff] }
 0x602   :  { %11280 = vrcp.f32 %v3136_v4  ;;  %10307 = vmatprep.mubr.msk.f32.mxu0 %vm1295_vm1, %v3185_v39  ;;  %v3191_v57 = vmul.f32 %v11269_v7, %v13837_v24  ;;  %v16816_v24 = vld [vmem:[#allocation100_spill] sm:$0xff] }
 0x603   :  { %v11271_v9 = vpop.eup %11270  ;;  %11282 = vrcp.f32 %v3139_v34  ;;  %10308 = vmatmul.mubr.msk.f32.gmra.mxu0 %vm1295_vm1, %v3187_v58  ;;  %v3698_v5 = vpop.permute.xlu0 %3697  ;;  %v16815_v34 = vld [vmem:[#allocation93_spill] sm:$0xff]  ;;  %v2166_v58 = vld [vmem:[#allocation7 + $0x10] sm:$0xff] }
 0x604   :  { %5013 = vrot.lane.b32.xlu0 %v16813_v54, %s11633_s16  ;;  %10322 = vmatprep.subr.mxu1 %v3698_v5  ;;  %v3189_v11 = vmul.f32 %v11271_v9, %v13841_v30 }
 0x605   :  { %5019 = vrot.lane.b32.xlu1 %v16814_v62, %s11633_s16  ;;  %v3696_v29 = vpop.permute.xlu1 %3695  ;;  %10323 = vmatpush3.msra.mxu1 %v3698_v5  ;;  %v11273_v37 = vpop.eup %11272  ;;  %v16833_v62 = vld [vmem:[#allocation105_spill] sm:$0xff] }
 0x606   :  { %10324 = vmatprep.subr.mxu1 %v3696_v29  ;;  %10326 = vmatprep.mubr.msk.f32.mxu1 %vm1295_vm1, %v3189_v11  ;;  %v3195_v4 = vmul.f32 %v11273_v37, %v13845_v8  ;;  %v2164_v8 = vld [vmem:[#allocation7] sm:$0xff] }
 0x607   :  { %v11275_v0 = vpop.eup %11274  ;;  %10325 = vmatpush3.msra.mxu1 %v3696_v29  ;;  %v14080_v61 = vpop.permute.xlu0 %4532  ;;  %v2165_v29 = vld [vmem:[#allocation7 + $0x8] sm:$0xff] }
 0x608   :  { %5017 = vrot.lane.b32.xlu0 %v16815_v34, %s11633_s16  ;;  %10327 = vmatmul.mubr.msk.f32.vlgmr.msra.gmra.mxu1 %vm1295_vm1, %v3191_v57  ;;  %v3193_v30 = vmul.f32 %v11275_v0, %v13849_v43  ;;  %v16817_v43 = vld [vmem:[#allocation97_spill] sm:$0xff]  ;;  %v16818_v57 = vld [vmem:[#allocation67_spill] sm:$0xff] }
 0x609   :  { %10450 = vmatprep.subr.msk.mxu0 %vm682_vm0, %v14080_v61  ;;  %5023 = vrot.lane.b32.xlu1 %v16816_v24, %s11633_s16  ;;  %v14090_v39 = vpop.permute.xlu1 %4530  ;;  %v16832_v24 = vld [vmem:[#allocation86_spill] sm:$0xff]  ;;  %v16871_v34 = vld [vmem:[#allocation137_spill] sm:$0xff] }
 0x60a   :  { %10329 = vmatprep.mubr.msk.f32.mxu1 %vm1295_vm1, %v3193_v30  ;;  %10394 = vmatprep.subr.mxu1 %v2167_v42 }
 0x60b   :  { %v11277_v7 = vpop.eup %11276  ;;  %10395 = vmatpush3.msra.mxu1 %v2167_v42  ;;  %v14094_v9 = vpop.permute.xlu0 %4528 }
 0x60c   :  { %v11279_v5 = vpop.eup %11278  ;;  %5021 = vrot.lane.b32.xlu0 %v16817_v43, %s11633_s16  ;;  %10330 = vmatmul.mubr.msk.f32.gmra.mxu1 %vm1295_vm1, %v3195_v4  ;;  %v3197_v11 = vmul.f32 %v11277_v7, %v13857_v40  ;;  %v16819_v40 = vld [vmem:[#allocation63_spill] sm:$0xff]  ;;  %v16868_v43 = vld [vmem:[#allocation108_spill] sm:$0xff] }
 0x60d   :  { %10396 = vmatprep.subr.mxu1 %v2166_v58  ;;  %5542 = vrot.lane.b32.xlu1 %v16818_v57, %s11633_s16  ;;  %v14102_v0 = vpop.permute.xlu1 %4526  ;;  %v3199_v30 = vmul.f32 %v11279_v5, %v13853_v16  ;;  %v16829_v57 = vld [vmem:[#allocation114_spill] sm:$0xff] }
 0x60e   :  { %10397 = vmatpush3.msra.mxu1 %v2166_v58  ;;  %10332 = vmatprep.mubr.msk.f32.mxu1 %vm1295_vm1, %v3197_v11  ;;  %v16820_v11 = vld [vmem:[#allocation74_spill] sm:$0xff] }
 0x60f   :  { %v11281_v37 = vpop.eup %11280  ;;  %10398 = vmatprep.subr.mxu1 %v2165_v29  ;;  %v14105_v42 = vpop.permute.xlu0 %4524 }
 0x610   :  { %v11283_v4 = vpop.eup %11282  ;;  %10399 = vmatpush3.msra.mxu1 %v2165_v29  ;;  %5544 = vrot.lane.b32.xlu0 %v16819_v40, %s11633_s16  ;;  %v3201_v7 = vmul.f32 %v11281_v37, %v13865_v44  ;;  %v16821_v29 = vld [vmem:[#allocation70_spill] sm:$0xff]  ;;  %v16822_v37 = vld [vmem:[#allocation79_spill] sm:$0xff] }
 0x611   :  { %10333 = vmatmul.mubr.msk.f32.gmra.mxu1 %vm1295_vm1, %v3199_v30  ;;  %10400 = vmatprep.subr.mxu1 %v2164_v8  ;;  %v4702_v58 = vpop.permute.xlu1 %4701  ;;  %v3203_v5 = vmul.f32 %v11283_v4, %v13861_v21  ;;  %v16823_v30 = vld [vmem:[#allocation127_spill] sm:$0xff]  ;;  %v16826_v4 = vld [vmem:[#allocation82_spill] sm:$0xff] }
 0x612   :  { %5538 = vrot.lane.b32.xlu1 %v16820_v11, %s11633_s16  ;;  %10401 = vmatpush3.msra.mxu1 %v2164_v8  ;;  %v16825_v11 = vld [vmem:[#allocation56_spill] sm:$0xff] }
 0x613   :  { %10335 = vmatprep.mubr.msk.f32.mxu1 %vm1295_vm1, %v3201_v7  ;;  %10478 = vmatprep.subr.msk.mxu1 %vm682_vm0, %v4702_v58  ;;  %v14116_v16 = vpop.permute.xlu0 %4522  ;;  %v16824_v7 = vld [vmem:[#allocation77_spill] sm:$0xff] }
 0x614   :  { %5540 = vrot.lane.b32.xlu0 %v16821_v29, %s11633_s16  ;;  %v16859_v29 = vld [vmem:[#allocation125_spill] sm:$0xff] }
 0x615   :  { %10336 = vmatmul.mubr.msk.f32.gmra.mxu1 %vm1295_vm1, %v3203_v5  ;;  %v4700_v44 = vpop.permute.xlu1 %4699  ;;  %v16827_v5 = vld [vmem:[#allocation110_spill] sm:$0xff] }
 0x616   :  { %5534 = vrot.lane.b32.xlu1 %v16822_v37, %s11633_s16  ;;  %10402 = vmatprep.mubr.msk.f32.mxu1 %vm682_vm0, %v16823_v30  ;;  %v16828_v37 = vld [vmem:[#allocation80_spill] sm:$0xff] }
 0x617   :  { %v14126_v8 = vpop.permute.xlu0 %4520 }
 0x618   :  { %5536 = vrot.lane.b32.xlu0 %v16824_v7, %s11633_s16  ;;  %v16855_v7 = vld [vmem:[#allocation135_spill] sm:$0xff] }
 0x619   :  { %10403 = vmatmul.mubr.msk.f32.vlgmr.msra.gmra.mxu1 %vm682_vm0, %v16825_v11  ;;  %v4698_v21 = vpop.permute.xlu1 %4697 }
 0x61a   :  { %10479 = vmatpush3.xpose.msk.msra.mxu1 %vm682_vm0, %v4702_v58  ;;  %5530 = vrot.lane.b32.xlu1 %v16826_v4, %s11633_s16  ;;  %v16830_v58 = vld [vmem:[#allocation88_spill] sm:$0xff]  ;;  %v16831_v4 = vld [vmem:[#allocation113_spill] sm:$0xff] }
 0x61b   :  { %10405 = vmatprep.mubr.msk.f32.mxu1 %vm682_vm0, %v16827_v5  ;;  %10480 = vmatprep.subr.msk.mxu1 %vm682_vm0, %v4700_v44  ;;  %v14138_v30 = vpop.permute.xlu0 %4518 }
 0x61c   :  { %5532 = vrot.lane.b32.xlu0 %v16828_v37, %s11633_s16 }
 0x61d   :  { %10406 = vmatmul.mubr.msk.f32.gmra.mxu1 %vm682_vm0, %v16829_v57  ;;  %v4696_v11 = vpop.permute.xlu1 %4695 }
 0x61e   :  { %10481 = vmatpush3.xpose.msk.msra.mxu1 %vm682_vm0, %v4700_v44  ;;  %5695 = vrot.lane.b32.xlu1 %v16830_v58, %s11633_s16  ;;  %v16834_v44 = vld [vmem:[#allocation92_spill] sm:$0xff]  ;;  %v16835_v58 = vld [vmem:[#allocation106_spill] sm:$0xff] }
 0x61f   :  { %10408 = vmatprep.mubr.msk.f32.mxu1 %vm682_vm0, %v16831_v4  ;;  %10482 = vmatprep.subr.msk.mxu1 %vm682_vm0, %v4698_v21  ;;  %v14150_v5 = vpop.permute.xlu0 %4502 }
 0x620   :  { %5697 = vrot.lane.b32.xlu0 %v16832_v24, %s11633_s16  ;;  %v16844_v24 = vld [vmem:[#allocation99_spill] sm:$0xff] }
 0x621   :  { %10409 = vmatmul.mubr.msk.f32.gmra.mxu1 %vm682_vm0, %v16833_v62  ;;  %v14156_v57 = vpop.permute.xlu1 %4504 }
 0x622   :  { %10483 = vmatpush3.xpose.msk.msra.mxu1 %vm682_vm0, %v4698_v21  ;;  %5691 = vrot.lane.b32.xlu1 %v16834_v44, %s11633_s16  ;;  %v16838_v21 = vld [vmem:[#allocation96_spill] sm:$0xff]  ;;  %v16839_v44 = vld [vmem:[#allocation130_spill] sm:$0xff] }
 0x623   :  { %10411 = vmatprep.mubr.msk.f32.mxu1 %vm682_vm0, %v16835_v58  ;;  %10484 = vmatprep.subr.msk.mxu1 %vm682_vm0, %v4696_v11  ;;  %v4694_v4 = vpop.permute.xlu0 %4693 }
 0x624   :  { %5693 = vrot.lane.b32.xlu0 %v16836_v41, %s11633_s16  ;;  %v16841_v41 = vld [vmem:[#allocation115_spill] sm:$0xff] }
 0x625   :  { %10412 = vmatmul.mubr.msk.f32.gmra.mxu1 %vm682_vm0, %v16837_v55  ;;  %v14168_v62 = vpop.permute.xlu1 %4870 }
 0x626   :  { %10485 = vmatpush3.xpose.msk.msra.mxu1 %vm682_vm0, %v4696_v11  ;;  %5687 = vrot.lane.b32.xlu1 %v16838_v21, %s11633_s16  ;;  %v16842_v11 = vld [vmem:[#allocation101_spill] sm:$0xff] }
 0x627   :  { %10414 = vmatprep.mubr.msk.f32.mxu1 %vm682_vm0, %v16839_v44  ;;  %10486 = vmatprep.subr.msk.mxu1 %vm682_vm0, %v4694_v4  ;;  %v14176_v58 = vpop.permute.xlu0 %4506  ;;  %v16843_v21 = vld [vmem:[#allocation121_spill] sm:$0xff] }
 0x628   :  { %5689 = vrot.lane.b32.xlu0 %v16840_v52, %s11633_s16  ;;  %v16845_v52 = vld [vmem:[#allocation112_spill] sm:$0xff] }
 0x629   :  { %10415 = vmatmul.mubr.msk.f32.gmra.mxu1 %vm682_vm0, %v16841_v41  ;;  %v14182_v55 = vpop.permute.xlu1 %4508 }
 0x62a   :  { %10487 = vmatpush3.xpose.msk.msra.mxu1 %vm682_vm0, %v4694_v4  ;;  %5683 = vrot.lane.b32.xlu1 %v16842_v11, %s11633_s16  ;;  %v16847_v4 = vld [vmem:[#allocation128_spill] sm:$0xff]  ;;  %v16848_v11 = vld [vmem:[#allocation83_spill] sm:$0xff] }
 0x62b   :  { %10417 = vmatprep.mubr.msk.f32.mxu1 %vm682_vm0, %v16843_v21  ;;  %v4692_v44 = vpop.permute.xlu0 %4691 }
 0x62c   :  { %5685 = vrot.lane.b32.xlu0 %v16844_v24, %s11633_s16  ;;  %10488 = vmatprep.subr.msk.mxu1 %vm682_vm0, %v4692_v44  ;;  %v16849_v24 = vld [vmem:[#allocation119_spill] sm:$0xff] }
 0x62d   :  { %10418 = vmatmul.mubr.msk.f32.gmra.mxu1 %vm682_vm0, %v16845_v52  ;;  %v14194_v41 = vpop.permute.xlu1 %4868  ;;  %v16850_v52 = vld [vmem:[#allocation140_spill] sm:$0xff] }
 0x62e   :  { %5848 = vrot.lane.b32.xlu1 %v16846_v36, %s11633_s16  ;;  %10420 = vmatprep.mubr.msk.f32.mxu1 %vm682_vm0, %v16847_v4  ;;  %v16852_v4 = vld [vmem:[#allocation51_spill] sm:$0xff] }
 0x62f   :  { %10489 = vmatpush3.xpose.msk.msra.mxu1 %vm682_vm0, %v4692_v44  ;;  %v14201_v21 = vpop.permute.xlu0 %4510  ;;  %v16853_v44 = vld [vmem:[#allocation116_spill] sm:$0xff] }
 0x630   :  { %5850 = vrot.lane.b32.xlu0 %v16848_v11, %s11633_s16 }
 0x631   :  { %10421 = vmatmul.mubr.msk.f32.gmra.mxu1 %vm682_vm0, %v16849_v24  ;;  %v14207_v37 = vpop.permute.xlu1 %4512  ;;  %v16854_v24 = vld [vmem:[#allocation141_spill] sm:$0xff] }
 0x632   :  { %5844 = vrot.lane.b32.xlu1 %v16850_v52, %s11633_s16  ;;  %10423 = vmatprep.mubr.msk.f32.mxu1 %vm682_vm0, %v16851_v13  ;;  %v16856_v52 = vld [vmem:[#allocation48_spill] sm:$0xff] }
 0x633   :  { %v4690_v36 = vpop.permute.xlu0 %4689 }
 0x634   :  { %5846 = vrot.lane.b32.xlu0 %v16852_v4, %s11633_s16  ;;  %10490 = vmatprep.subr.msk.mxu1 %vm682_vm0, %v4690_v36  ;;  %v16857_v4 = vld [vmem:[#allocation104_spill] sm:$0xff] }
 0x635   :  { %10424 = vmatmul.mubr.msk.f32.gmra.mxu1 %vm682_vm0, %v16853_v44  ;;  %v14218_v11 = vpop.permute.xlu1 %4866  ;;  %v16858_v44 = vld [vmem:[#allocation142_spill] sm:$0xff] }
 0x636   :  { %5840 = vrot.lane.b32.xlu1 %v16854_v24, %s11633_s16  ;;  %10426 = vmatprep.mubr.msk.f32.mxu1 %vm682_vm0, %v16855_v7  ;;  %v16860_v7 = vld [vmem:[#allocation47_spill] sm:$0xff] }
 0x637   :  { %10491 = vmatpush3.xpose.msk.msra.mxu1 %vm682_vm0, %v4690_v36  ;;  %v14225_v13 = vpop.permute.xlu0 %4514  ;;  %v16861_v36 = vld [vmem:[#allocation107_spill] sm:$0xff] }
 0x638   :  { %5842 = vrot.lane.b32.xlu0 %v16856_v52, %s11633_s16 }
 0x639   :  { %10427 = vmatmul.mubr.msk.f32.gmra.mxu1 %vm682_vm0, %v16857_v4  ;;  %v14231_v60 = vpop.permute.xlu1 %4516  ;;  %v16862_v4 = vld [vmem:[#allocation103_spill] sm:$0xff] }
 0x63a   :  { %5836 = vrot.lane.b32.xlu1 %v16858_v44, %s11633_s16  ;;  %10429 = vmatprep.mubr.msk.f32.mxu1 %vm682_vm0, %v16859_v29  ;;  %v16864_v44 = vld [vmem:[#allocation102_spill] sm:$0xff] }
 0x63b   :  { %v4688_v24 = vpop.permute.xlu0 %4687 }
 0x63c   :  { %5838 = vrot.lane.b32.xlu0 %v16860_v7, %s11633_s16  ;;  %10492 = vmatprep.subr.msk.mxu1 %vm682_vm0, %v4688_v24  ;;  %v16865_v7 = vld [vmem:[#allocation111_spill] sm:$0xff] }
 0x63d   :  { %10430 = vmatmul.mubr.msk.f32.gmra.mxu1 %vm682_vm0, %v16861_v36  ;;  %v14242_v52 = vpop.permute.xlu1 %4864  ;;  %v16866_v36 = vld [vmem:[#allocation60_spill] sm:$0xff] }
 0x63e   :  { %6001 = vrot.lane.b32.xlu1 %v16862_v4, %s11633_s16  ;;  %10432 = vmatprep.mubr.msk.f32.mxu1 %vm682_vm0, %v16863_v15 }
 0x63f   :  { %10493 = vmatpush3.xpose.msk.msra.mxu1 %vm682_vm0, %v4688_v24  ;;  %v4672_v29 = vpop.permute.xlu0 %4671  ;;  %v16869_v24 = vld [vmem:[#allocation98_spill] sm:$0xff] }
 0x640   :  { %6003 = vrot.lane.b32.xlu0 %v16864_v44, %s11633_s16  ;;  %v16870_v44 = vld [vmem:[#allocation129_spill] sm:$0xff] }
 0x641   :  { %10433 = vmatmul.mubr.msk.f32.gmra.mxu1 %vm682_vm0, %v16865_v7  ;;  %v4674_v40 = vpop.permute.xlu1 %4673 }
 0x642   :  { %5999 = vrot.lane.b32.xlu1 %v16866_v36, %s11633_s16  ;;  %10435 = vmatprep.mubr.msk.f32.mxu1 %vm682_vm0, %v16867_v49  ;;  %v16872_v49 = vld [vmem:[#allocation126_spill] sm:$0xff] }
 0x643   :  { %v14257_v4 = vpop.permute.xlu0 %4862 }
 0x645   :  { %10436 = vmatmul.mubr.msk.f32.gmra.mxu1 %vm682_vm0, %v16868_v43  ;;  %v5040_v15 = vpop.permute.xlu1 %5039  ;;  %v16873_v43 = vld [vmem:[#allocation134_spill] sm:$0xff] }
 0x646   :  { %5997 = vrot.lane.b32.xlu1 %v16869_v24, %s11633_s16  ;;  %10438 = vmatprep.mubr.msk.f32.mxu1 %vm682_vm0, %v16870_v44  ;;  %v16874_v24 = vld [vmem:[#allocation138_spill] sm:$0xff] }
 0x647   :  { %10534 = vmatprep.subr.msk.mxu1 %vm682_vm0, %v5040_v15  ;;  %v4676_v7 = vpop.permute.xlu0 %4675 }
 0x649   :  { %10439 = vmatmul.mubr.msk.f32.gmra.mxu1 %vm682_vm0, %v16871_v34  ;;  %v4678_v36 = vpop.permute.xlu1 %4677 }
 0x64a   :  { %10441 = vmatprep.mubr.msk.f32.mxu1 %vm682_vm0, %v16872_v49  ;;  %v16877_v49 = vld [vmem:[#allocation124_spill] sm:$0xff] }
 0x64b   :  { %v14270_v54 = vpop.permute.xlu0 %4860 }
 0x64d   :  { %10442 = vmatmul.mubr.msk.f32.gmra.mxu1 %vm682_vm0, %v16873_v43  ;;  %v5038_v26 = vpop.permute.xlu1 %5037 }
 0x64e   :  { %10444 = vmatprep.mubr.msk.f32.mxu1 %vm682_vm0, %v16874_v24 }
 0x64f   :  { %v4680_v44 = vpop.permute.xlu0 %4679 }
 0x651   :  { %10445 = vmatmul.mubr.msk.f32.gmra.mxu1 %vm682_vm0, %v16875_v10  ;;  %v4682_v19 = vpop.permute.xlu1 %4681 }
 0x652   :  { %10447 = vmatprep.mubr.msk.f32.mxu1 %vm682_vm0, %v16876_v18 }
 0x653   :  { %v14280_v34 = vpop.permute.xlu0 %4858 }
 0x655   :  { %10448 = vmatmul.mubr.msk.f32.gmra.mxu1 %vm682_vm0, %v16877_v49  ;;  %v5036_v12 = vpop.permute.xlu1 %5035 }
 0x656   :  { %10494 = vmatprep.mubr.msk.f32.mxu1 %vm682_vm0, %v4672_v29 }
 0x657   :  { %v4684_v43 = vpop.permute.xlu0 %4683 }
 0x659   :  { %10495 = vmatmul.mubr.msk.f32.vlgmr.msra.gmra.mxu1 %vm682_vm0, %v4674_v40  ;;  %v4686_v24 = vpop.permute.xlu1 %4685 }
 0x65a   :  { %10535 = vmatpush3.xpose.msk.msra.mxu1 %vm682_vm0, %v5040_v15  ;;  %10497 = vmatprep.mubr.msk.f32.mxu1 %vm682_vm0, %v4676_v7 }
 0x65b   :  { %10536 = vmatprep.subr.msk.mxu1 %vm682_vm0, %v5038_v26  ;;  %v14289_v10 = vpop.permute.xlu0 %4856 }
 0x65d   :  { %10498 = vmatmul.mubr.msk.f32.gmra.mxu1 %vm682_vm0, %v4678_v36  ;;  %v5034_v18 = vpop.permute.xlu1 %5033 }
 0x65e   :  { %10537 = vmatpush3.xpose.msk.msra.mxu1 %vm682_vm0, %v5038_v26  ;;  %10500 = vmatprep.mubr.msk.f32.mxu1 %vm682_vm0, %v4680_v44 }
 0x65f   :  { %10538 = vmatprep.subr.msk.mxu1 %vm682_vm0, %v5036_v12  ;;  %v14295_v29 = vpop.permute.xlu0 %4840 }
 0x661   :  { %10501 = vmatmul.mubr.msk.f32.gmra.mxu1 %vm682_vm0, %v4682_v19  ;;  %v14298_v40 = vpop.permute.xlu1 %4842 }
 0x662   :  { %10539 = vmatpush3.xpose.msk.msra.mxu1 %vm682_vm0, %v5036_v12  ;;  %10503 = vmatprep.mubr.msk.f32.mxu1 %vm682_vm0, %v4684_v43 }
 0x663   :  { %10540 = vmatprep.subr.msk.mxu1 %vm682_vm0, %v5034_v18  ;;  %v5032_v36 = vpop.permute.xlu0 %5031 }
 0x665   :  { %10504 = vmatmul.mubr.msk.f32.gmra.mxu1 %vm682_vm0, %v4686_v24  ;;  %v14304_v26 = vpop.permute.xlu1 %4844 }
 0x666   :  { %10541 = vmatpush3.xpose.msk.msra.mxu1 %vm682_vm0, %v5034_v18 }
 0x667   :  { %10542 = vmatprep.subr.msk.mxu1 %vm682_vm0, %v5032_v36  ;;  %v14308_v15 = vpop.permute.xlu0 %4846 }
 0x669   :  { %v5030_v19 = vpop.permute.xlu1 %5029 }
 0x66a   :  { %10543 = vmatpush3.xpose.msk.msra.mxu1 %vm682_vm0, %v5032_v36 }
 0x66b   :  { %10544 = vmatprep.subr.msk.mxu1 %vm682_vm0, %v5030_v19  ;;  %v10244_v12 = vpop.f32.mrf.mxu0  ;;  %v14312_v7 = vpop.permute.xlu0 %4848 }
 0x66d   :  { %v14314_v44 = vpop.permute.xlu1 %4850  ;;  %v3326_v49 = vpop.f32.mrf.mxu0 }
 0x66e   :  { %10545 = vmatpush3.xpose.msk.msra.mxu1 %vm682_vm0, %v5030_v19  ;;  %10346 = vmatprep.mubr.msk.f32.mxu0 %vm682_vm0, %v3326_v49 }
 0x66f   :  { %v10247_v43 = vpop.f32.mrf.mxu0  ;;  %10347 = vmatmul.mubr.msk.f32.vlgmr.msra.gmra.mxu0 %vm682_vm0, %v10244_v12  ;;  %v5028_v24 = vpop.permute.xlu0 %5027 }
 0x670   :  { %10451 = vmatpush3.xpose.msk.msra.mxu0 %vm682_vm0, %v14080_v61  ;;  %10546 = vmatprep.subr.msk.mxu1 %vm682_vm0, %v5028_v24 }
 0x671   :  { %10452 = vmatprep.subr.msk.mxu0 %vm682_vm0, %v14090_v39  ;;  %v14324_v18 = vpop.permute.xlu1 %4852  ;;  %v3336_v36 = vpop.f32.mrf.mxu0 }
 0x672   :  { %10547 = vmatpush3.xpose.msk.msra.mxu1 %vm682_vm0, %v5028_v24  ;;  %10349 = vmatprep.mubr.msk.f32.mxu0 %vm682_vm0, %v3336_v36 }
 0x673   :  { %v10250_v19 = vpop.f32.mrf.mxu0  ;;  %10350 = vmatmul.mubr.msk.f32.gmra.mxu0 %vm682_vm0, %v10247_v43  ;;  %v14329_v12 = vpop.permute.xlu0 %4854 }
 0x674   :  { %10453 = vmatpush3.xpose.msk.msra.mxu0 %vm682_vm0, %v14090_v39 }
 0x675   :  { %10454 = vmatprep.subr.msk.mxu0 %vm682_vm0, %v14094_v9  ;;  %v5026_v61 = vpop.permute.xlu1 %5025  ;;  %v3346_v49 = vpop.f32.mrf.mxu0 }
 0x676   :  { %10352 = vmatprep.mubr.msk.f32.mxu0 %vm682_vm0, %v3346_v49  ;;  %10548 = vmatprep.subr.msk.mxu1 %vm682_vm0, %v5026_v61 }
 0x677   :  { %v10253_v24 = vpop.f32.mrf.mxu0  ;;  %10353 = vmatmul.mubr.msk.f32.gmra.mxu0 %vm682_vm0, %v10250_v19  ;;  %10549 = vmatpush3.xpose.msk.msra.mxu1 %vm682_vm0, %v5026_v61  ;;  %v5010_v43 = vpop.permute.xlu0 %5009 }
 0x678   :  { %10455 = vmatpush3.xpose.msk.msra.mxu0 %vm682_vm0, %v14094_v9  ;;  %10550 = vmatprep.mubr.msk.f32.mxu1 %vm682_vm0, %v5010_v43 }
 0x679   :  { %10456 = vmatprep.subr.msk.mxu0 %vm682_vm0, %v14102_v0  ;;  %v5012_v39 = vpop.permute.xlu1 %5011  ;;  %v3356_v36 = vpop.f32.mrf.mxu0 }
 0x67a   :  { %10355 = vmatprep.mubr.msk.f32.mxu0 %vm682_vm0, %v3356_v36  ;;  %10551 = vmatmul.mubr.msk.f32.vlgmr.msra.gmra.mxu1 %vm682_vm0, %v5012_v39 }
 0x67b   :  { %10356 = vmatmul.mubr.msk.f32.gmra.mxu0 %vm682_vm0, %v10253_v24  ;;  %v5014_v19 = vpop.permute.xlu0 %5013 }
 0x67c   :  { %10457 = vmatpush3.xpose.msk.msra.mxu0 %vm682_vm0, %v14102_v0  ;;  %10553 = vmatprep.mubr.msk.f32.mxu1 %vm682_vm0, %v5014_v19 }
 0x67d   :  { %10458 = vmatprep.subr.msk.mxu0 %vm682_vm0, %v14105_v42  ;;  %v5016_v9 = vpop.permute.xlu1 %5015 }
 0x67e   :  { %10554 = vmatmul.mubr.msk.f32.gmra.mxu1 %vm682_vm0, %v5016_v9 }
 0x67f   :  { %v5018_v61 = vpop.permute.xlu0 %5017 }
 0x680   :  { %10459 = vmatpush3.xpose.msk.msra.mxu0 %vm682_vm0, %v14105_v42  ;;  %10556 = vmatprep.mubr.msk.f32.mxu1 %vm682_vm0, %v5018_v61 }
 0x681   :  { %10460 = vmatprep.subr.msk.mxu0 %vm682_vm0, %v14116_v16  ;;  %v5020_v49 = vpop.permute.xlu1 %5019 }
 0x682   :  { %10557 = vmatmul.mubr.msk.f32.gmra.mxu1 %vm682_vm0, %v5020_v49 }
 0x683   :  { %v5022_v0 = vpop.permute.xlu0 %5021 }
 0x684   :  { %10461 = vmatpush3.xpose.msk.msra.mxu0 %vm682_vm0, %v14116_v16  ;;  %10559 = vmatprep.mubr.msk.f32.mxu1 %vm682_vm0, %v5022_v0 }
 0x685   :  { %10462 = vmatprep.subr.msk.mxu0 %vm682_vm0, %v14126_v8  ;;  %v5024_v24 = vpop.permute.xlu1 %5023 }
 0x686   :  { %10560 = vmatmul.mubr.msk.f32.gmra.mxu1 %vm682_vm0, %v5024_v24 }
 0x687   :  { %v14365_v42 = vpop.permute.xlu0 %5544 }
 0x688   :  { %10463 = vmatpush3.xpose.msk.msra.mxu0 %vm682_vm0, %v14126_v8 }
 0x689   :  { %10464 = vmatprep.subr.msk.mxu0 %vm682_vm0, %v14138_v30  ;;  %v14371_v43 = vpop.permute.xlu1 %5542 }
 0x68b   :  { %v14373_v39 = vpop.permute.xlu0 %5540 }
 0x68c   :  { %10465 = vmatpush3.xpose.msk.msra.mxu0 %vm682_vm0, %v14138_v30 }
 0x68d   :  { %10506 = vmatprep.subr.msk.mxu0 %vm682_vm0, %v14168_v62  ;;  %v14379_v16 = vpop.permute.xlu1 %5538 }
 0x68f   :  { %v14381_v36 = vpop.permute.xlu0 %5536 }
 0x691   :  { %v14383_v19 = vpop.permute.xlu1 %5534 }
 0x693   :  { %v14385_v8 = vpop.permute.xlu0 %5532 }
 0x695   :  { %v14387_v9 = vpop.permute.xlu1 %5530 }
 0x697   :  { %v5698_v61 = vpop.permute.xlu0 %5697 }
 0x698   :  { %10590 = vmatprep.subr.mxu1 %v5698_v61 }
 0x699   :  { %v5696_v49 = vpop.permute.xlu1 %5695  ;;  %10591 = vmatpush3.msra.mxu1 %v5698_v61 }
 0x69a   :  { %10592 = vmatprep.subr.mxu1 %v5696_v49 }
 0x69b   :  { %10593 = vmatpush3.msra.mxu1 %v5696_v49  ;;  %v5694_v30 = vpop.permute.xlu0 %5693 }
 0x69c   :  { %10594 = vmatprep.subr.mxu1 %v5694_v30 }
 0x69d   :  { %v5692_v0 = vpop.permute.xlu1 %5691  ;;  %10595 = vmatpush3.msra.mxu1 %v5694_v30 }
 0x69e   :  { %10596 = vmatprep.subr.mxu1 %v5692_v0 }
 0x69f   :  { %10597 = vmatpush3.msra.mxu1 %v5692_v0  ;;  %v5690_v24 = vpop.permute.xlu0 %5689 }
 0x6a0   :  { %10598 = vmatprep.subr.mxu1 %v5690_v24 }
 0x6a1   :  { %v5688_v17 = vpop.permute.xlu1 %5687  ;;  %10599 = vmatpush3.msra.mxu1 %v5690_v24 }
 0x6a2   :  { %10600 = vmatprep.subr.mxu1 %v5688_v17 }
 0x6a3   :  { %10601 = vmatpush3.msra.mxu1 %v5688_v17  ;;  %v5686_v25 = vpop.permute.xlu0 %5685 }
 0x6a4   :  { %10602 = vmatprep.subr.mxu1 %v5686_v25 }
 0x6a5   :  { %v5684_v35 = vpop.permute.xlu1 %5683  ;;  %10603 = vmatpush3.msra.mxu1 %v5686_v25 }
 0x6a6   :  { %10604 = vmatprep.subr.mxu1 %v5684_v35 }
 0x6a7   :  { %v10272_v61 = vpop.f32.mrf.mxu1  ;;  %10605 = vmatpush3.msra.mxu1 %v5684_v35  ;;  %v14389_v49 = vpop.permute.xlu0 %5850 }
 0x6a9   :  { %v3487_v32 = vpop.f32.mrf.mxu1 }
 0x6aa   :  { %10358 = vmatprep.mubr.msk.f32.mxu0 %vm682_vm0, %v3487_v32 }
 0x6ab   :  { %10359 = vmatmul.mubr.msk.f32.gmra.mxu0 %vm682_vm0, %v10272_v61  ;;  %v14393_v30 = vpop.permute.xlu0 %5846  ;;  %v10300_v32 = vpop.f32.mrf.mxu0 }
 0x6ad   :  { %v3648_v61 = vpop.f32.mrf.mxu0 }
 0x6af   :  { %v10275_v0 = vpop.f32.mrf.mxu1  ;;  %v14395_v24 = vpop.permute.xlu0 %5842 }
 0x6b0   :  { %16878 = vst [vmem:[#allocation23_spill] sm:$0xff] %v14395_v24 }
 0x6b1   :  { %v3497_v17 = vpop.f32.mrf.mxu1 }
 0x6b2   :  { %10361 = vmatprep.mubr.msk.f32.mxu0 %vm682_vm0, %v3497_v17 }
 0x6b3   :  { %10362 = vmatmul.mubr.msk.f32.gmra.mxu0 %vm682_vm0, %v10275_v0  ;;  %v14399_v25 = vpop.permute.xlu0 %5838  ;;  %v10303_v45 = vpop.f32.mrf.mxu0 }
 0x6b4   :  { %16879 = vst [vmem:[#allocation19_spill] sm:$0xff] %v14399_v25 }
 0x6b5   :  { %v3658_v0 = vpop.f32.mrf.mxu0 }
 0x6b7   :  { %v10278_v35 = vpop.f32.mrf.mxu1  ;;  %v14401_v2 = vpop.permute.xlu0 %6003 }
 0x6b8   :  { %10646 = vmatprep.subr.mxu1 %v14401_v2 }
 0x6b9   :  { %v3507_v38 = vpop.f32.mrf.mxu1 }
 0x6ba   :  { %10364 = vmatprep.mubr.msk.f32.mxu0 %vm682_vm0, %v3507_v38 }
 0x6bb   :  { %10365 = vmatmul.mubr.msk.f32.gmra.mxu0 %vm682_vm0, %v10278_v35  ;;  %v10306_v17 = vpop.f32.mrf.mxu0 }
 0x6bd   :  { %v3668_v38 = vpop.f32.mrf.mxu0 }
 0x6bf   :  { %v10281_v50 = vpop.f32.mrf.mxu1 }
 0x6c1   :  { %v3517_v53 = vpop.f32.mrf.mxu1 }
 0x6c2   :  { %10367 = vmatprep.mubr.msk.f32.mxu0 %vm682_vm0, %v3517_v53 }
 0x6c3   :  { %10368 = vmatmul.mubr.msk.f32.gmra.mxu0 %vm682_vm0, %v10281_v50  ;;  %v10309_v35 = vpop.f32.mrf.mxu0 }
 0x6c4   :  { %10370 = vmatprep.mubr.msk.f32.mxu0 %vm682_vm0, %v3648_v61 }
 0x6c5   :  { %v3678_v25 = vpop.f32.mrf.mxu0 }
 0x6c7   :  { %10371 = vmatmul.mubr.msk.f32.gmra.mxu0 %vm682_vm0, %v10300_v32 }
 0x6c8   :  { %v10328_v51 = vpop.f32.mrf.mxu1  ;;  %10373 = vmatprep.mubr.msk.f32.mxu0 %vm682_vm0, %v3658_v0 }
 0x6ca   :  { %v3809_v3 = vpop.f32.mrf.mxu1 }
 0x6cb   :  { %10374 = vmatmul.mubr.msk.f32.gmra.mxu0 %vm682_vm0, %v10303_v45 }
 0x6cc   :  { %v10331_v56 = vpop.f32.mrf.mxu1  ;;  %10376 = vmatprep.mubr.msk.f32.mxu0 %vm682_vm0, %v3668_v38 }
 0x6ce   :  { %v3819_v53 = vpop.f32.mrf.mxu1 }
 0x6cf   :  { %10377 = vmatmul.mubr.msk.f32.gmra.mxu0 %vm682_vm0, %v10306_v17 }
 0x6d0   :  { %10379 = vmatprep.mubr.msk.f32.mxu0 %vm682_vm0, %v3678_v25 }
 0x6d1   :  { %v10334_v50 = vpop.f32.mrf.mxu1 }
 0x6d3   :  { %v3829_v61 = vpop.f32.mrf.mxu1  ;;  %10380 = vmatmul.mubr.msk.f32.gmra.mxu0 %vm682_vm0, %v10309_v35 }
 0x6d4   :  { %10382 = vmatprep.mubr.msk.f32.mxu0 %vm682_vm0, %v3809_v3 }
 0x6d5   :  { %v10337_v32 = vpop.f32.mrf.mxu1 }
 0x6d7   :  { %v3839_v0 = vpop.f32.mrf.mxu1  ;;  %10383 = vmatmul.mubr.msk.f32.gmra.mxu0 %vm682_vm0, %v10328_v51 }
 0x6d8   :  { %10385 = vmatprep.mubr.msk.f32.mxu0 %vm682_vm0, %v3819_v53 }
 0x6d9   :  { %v14419_v45 = vpop.f32.mrf.mxu1 }
 0x6da   :  { %16880 = vst [vmem:[#allocation13_spill] sm:$0xff] %v14419_v45 }
 0x6db   :  { %v14421_v38 = vpop.f32.mrf.mxu1  ;;  %10386 = vmatmul.mubr.msk.f32.gmra.mxu0 %vm682_vm0, %v10331_v56 }
 0x6dc   :  { %16881 = vst [vmem:[#allocation12_spill] sm:$0xff] %v14421_v38  ;;  %10388 = vmatprep.mubr.msk.f32.mxu0 %vm682_vm0, %v3829_v61 }
 0x6dd   :  { %v14425_v25 = vpop.f32.mrf.mxu1 }
 0x6de   :  { %16882 = vst [vmem:[#allocation46_spill] sm:$0xff] %v14425_v25 }
 0x6df   :  { %v14427_v17 = vpop.f32.mrf.mxu1  ;;  %10389 = vmatmul.mubr.msk.f32.gmra.mxu0 %vm682_vm0, %v10334_v50 }
 0x6e0   :  { %16883 = vst [vmem:[#allocation39_spill] sm:$0xff] %v14427_v17  ;;  %10391 = vmatprep.mubr.msk.f32.mxu0 %vm682_vm0, %v3839_v0 }
 0x6e1   :  { %v14431_v3 = vpop.f32.mrf.mxu1 }
 0x6e2   :  { %16884 = vst [vmem:[#allocation18_spill] sm:$0xff] %v14431_v3 }
 0x6e3   :  { %v14433_v51 = vpop.f32.mrf.mxu1  ;;  %10392 = vmatmul.mubr.msk.f32.gmra.mxu0 %vm682_vm0, %v10337_v32 }
 0x6e4   :  { %16885 = vst [vmem:[#allocation35_spill] sm:$0xff] %v14433_v51  ;;  %10466 = vmatprep.mubr.msk.f32.mxu0 %vm682_vm0, %v14150_v5 }
 0x6e5   :  { %v14438_v56 = vpop.f32.mrf.mxu1 }
 0x6e6   :  { %16886 = vst [vmem:[#allocation22_spill] sm:$0xff] %v14438_v56 }
 0x6e7   :  { %v14440_v35 = vpop.f32.mrf.mxu1  ;;  %10467 = vmatmul.mubr.msk.f32.vlgmr.msra.gmra.mxu0 %vm682_vm0, %v14156_v57 }
 0x6e8   :  { %16887 = vst [vmem:[#allocation33_spill] sm:$0xff] %v14440_v35  ;;  %10507 = vmatpush3.xpose.msk.msra.mxu0 %vm682_vm0, %v14168_v62  ;;  %10469 = vmatprep.mubr.msk.f32.mxu0 %vm682_vm0, %v14176_v58 }
 0x6e9   :  { %v14448_v53 = vpop.f32.mrf.mxu1  ;;  %10508 = vmatprep.subr.msk.mxu0 %vm682_vm0, %v14194_v41 }
 0x6ea   :  { %16888 = vst [vmem:[#allocation27_spill] sm:$0xff] %v14448_v53 }
 0x6eb   :  { %v14452_v50 = vpop.f32.mrf.mxu1  ;;  %10470 = vmatmul.mubr.msk.f32.gmra.mxu0 %vm682_vm0, %v14182_v55 }
 0x6ec   :  { %16889 = vst [vmem:[#allocation117_spill] sm:$0xff] %v14452_v50  ;;  %10509 = vmatpush3.xpose.msk.msra.mxu0 %vm682_vm0, %v14194_v41  ;;  %10472 = vmatprep.mubr.msk.f32.mxu0 %vm682_vm0, %v14201_v21 }
 0x6ed   :  { %v14460_v5 = vpop.f32.mrf.mxu1  ;;  %10510 = vmatprep.subr.msk.mxu0 %vm682_vm0, %v14218_v11 }
 0x6ee   :  { %16890 = vst [vmem:[#allocation131_spill] sm:$0xff] %v14460_v5 }
 0x6ef   :  { %v14464_v57 = vpop.f32.mrf.mxu1  ;;  %10473 = vmatmul.mubr.msk.f32.gmra.mxu0 %vm682_vm0, %v14207_v37 }
 0x6f0   :  { %16891 = vst [vmem:[#allocation136_spill] sm:$0xff] %v14464_v57  ;;  %10511 = vmatpush3.xpose.msk.msra.mxu0 %vm682_vm0, %v14218_v11  ;;  %10475 = vmatprep.mubr.msk.f32.mxu0 %vm682_vm0, %v14225_v13 }
 0x6f1   :  { %v14472_v62 = vpop.f32.mrf.mxu1  ;;  %10512 = vmatprep.subr.msk.mxu0 %vm682_vm0, %v14242_v52 }
 0x6f2   :  { %16892 = vst [vmem:[#allocation120_spill] sm:$0xff] %v14472_v62 }
 0x6f3   :  { %v14476_v58 = vpop.f32.mrf.mxu1  ;;  %10476 = vmatmul.mubr.msk.f32.gmra.mxu0 %vm682_vm0, %v14231_v60 }
 0x6f4   :  { %16893 = vst [vmem:[#allocation127_spill] sm:$0xff] %v14476_v58  ;;  %10513 = vmatpush3.xpose.msk.msra.mxu0 %vm682_vm0, %v14242_v52  ;;  %10522 = vmatprep.mubr.msk.f32.mxu0 %vm682_vm0, %v14295_v29 }
 0x6f5   :  { %v14484_v37 = vpop.f32.mrf.mxu1  ;;  %10514 = vmatprep.subr.msk.mxu0 %vm682_vm0, %v14257_v4 }
 0x6f6   :  { %16894 = vst [vmem:[#allocation56_spill] sm:$0xff] %v14484_v37 }
 0x6f7   :  { %v14488_v55 = vpop.f32.mrf.mxu1 }
 0x6f8   :  { %16895 = vst [vmem:[#allocation110_spill] sm:$0xff] %v14488_v55  ;;  %10515 = vmatpush3.xpose.msk.msra.mxu0 %vm682_vm0, %v14257_v4 }
 0x6f9   :  { %v14492_v11 = vpop.f32.mrf.mxu1  ;;  %10516 = vmatprep.subr.msk.mxu0 %vm682_vm0, %v14270_v54 }
 0x6fa   :  { %16896 = vst [vmem:[#allocation114_spill] sm:$0xff] %v14492_v11  ;;  %v14713_v11 = vpop.permute.xlu1 %5848 }
 0x6fb   :  { %v14496_v60 = vpop.f32.mrf.mxu1 }
 0x6fc   :  { %16897 = vst [vmem:[#allocation113_spill] sm:$0xff] %v14496_v60  ;;  %10517 = vmatpush3.xpose.msk.msra.mxu0 %vm682_vm0, %v14270_v54 }
 0x6fd   :  { %v14500_v41 = vpop.f32.mrf.mxu1  ;;  %10518 = vmatprep.subr.msk.mxu0 %vm682_vm0, %v14280_v34 }
 0x6fe   :  { %16898 = vst [vmem:[#allocation105_spill] sm:$0xff] %v14500_v41 }
 0x6ff   :  { %v14504_v21 = vpop.f32.mrf.mxu1 }
 0x700   :  { %16899 = vst [vmem:[#allocation106_spill] sm:$0xff] %v14504_v21  ;;  %10519 = vmatpush3.xpose.msk.msra.mxu0 %vm682_vm0, %v14280_v34 }
 0x701   :  { %v14508_v52 = vpop.f32.mrf.mxu1  ;;  %10520 = vmatprep.subr.msk.mxu0 %vm682_vm0, %v14289_v10 }
 0x702   :  { %16900 = vst [vmem:[#allocation109_spill] sm:$0xff] %v14508_v52 }
 0x703   :  { %v14512_v13 = vpop.f32.mrf.mxu1 }
 0x704   :  { %16901 = vst [vmem:[#allocation130_spill] sm:$0xff] %v14512_v13  ;;  %10521 = vmatpush3.xpose.msk.msra.mxu0 %vm682_vm0, %v14289_v10 }
 0x705   :  { %v14516_v54 = vpop.f32.mrf.mxu1  ;;  %10562 = vmatprep.subr.mxu0 %v14365_v42 }
 0x706   :  { %16902 = vst [vmem:[#allocation115_spill] sm:$0xff] %v14516_v54 }
 0x707   :  { %v14519_v4 = vpop.f32.mrf.mxu1  ;;  %10523 = vmatmul.mubr.msk.f32.vlgmr.msra.gmra.mxu0 %vm682_vm0, %v14298_v40 }
 0x708   :  { %16903 = vst [vmem:[#allocation121_spill] sm:$0xff] %v14519_v4  ;;  %10525 = vmatprep.mubr.msk.f32.mxu0 %vm682_vm0, %v14304_v26  ;;  %10563 = vmatpush3.msra.mxu0 %v14365_v42  ;;  %v14575_v42 = vld [vmem:[%s16284_s3 + $0x80] sm:$0xff] }
 0x709   :  { %v14526_v34 = vpop.f32.mrf.mxu1  ;;  %10564 = vmatprep.subr.mxu0 %v14371_v43 }
 0x70a   :  { %16904 = vst [vmem:[#allocation112_spill] sm:$0xff] %v14526_v34  ;;  %10565 = vmatpush3.msra.mxu0 %v14371_v43 }
 0x70b   :  { %v14530_v10 = vpop.f32.mrf.mxu1  ;;  %10526 = vmatmul.mubr.msk.f32.gmra.mxu0 %vm682_vm0, %v14308_v15  ;;  %10566 = vmatprep.subr.mxu0 %v14373_v39 }
 0x70c   :  { %16905 = vst [vmem:[#allocation128_spill] sm:$0xff] %v14530_v10  ;;  %10528 = vmatprep.mubr.msk.f32.mxu0 %vm682_vm0, %v14312_v7  ;;  %10567 = vmatpush3.msra.mxu0 %v14373_v39 }
 0x70d   :  { %v14538_v29 = vpop.f32.mrf.mxu1  ;;  %10568 = vmatprep.subr.mxu0 %v14379_v16 }
 0x70e   :  { %16906 = vst [vmem:[#allocation119_spill] sm:$0xff] %v14538_v29  ;;  %10569 = vmatpush3.msra.mxu0 %v14379_v16  ;;  %v14583_v16 = vld [vmem:[%s16284_s3 + $0x98] sm:$0xff] }
 0x70f   :  { %v14542_v40 = vpop.f32.mrf.mxu1  ;;  %10529 = vmatmul.mubr.msk.f32.gmra.mxu0 %vm682_vm0, %v14314_v44  ;;  %10570 = vmatprep.subr.mxu0 %v14381_v36 }
 0x710   :  { %16907 = vst [vmem:[#allocation133_spill] sm:$0xff] %v14542_v40  ;;  %10531 = vmatprep.mubr.msk.f32.mxu0 %vm682_vm0, %v14324_v18  ;;  %10571 = vmatpush3.msra.mxu0 %v14381_v36  ;;  %v14570_v18 = vld [vmem:[%s16284_s3 + $0x88] sm:$0xff] }
 0x711   :  { %v14550_v26 = vpop.f32.mrf.mxu1  ;;  %10572 = vmatprep.subr.mxu0 %v14383_v19 }
 0x712   :  { %16908 = vst [vmem:[#allocation116_spill] sm:$0xff] %v14550_v26  ;;  %10573 = vmatpush3.msra.mxu0 %v14383_v19 }
 0x713   :  { %v14554_v15 = vpop.f32.mrf.mxu1  ;;  %10532 = vmatmul.mubr.msk.f32.gmra.mxu0 %vm682_vm0, %v14329_v12  ;;  %10574 = vmatprep.subr.mxu0 %v14385_v8 }
 0x714   :  { %16909 = vst [vmem:[#allocation135_spill] sm:$0xff] %v14554_v15  ;;  %10575 = vmatpush3.msra.mxu0 %v14385_v8 }
 0x715   :  { %v14560_v7 = vpop.f32.mrf.mxu1  ;;  %10576 = vmatprep.subr.mxu0 %v14387_v9 }
 0x716   :  { %16910 = vst [vmem:[#allocation104_spill] sm:$0xff] %v14560_v7  ;;  %10577 = vmatpush3.msra.mxu0 %v14387_v9  ;;  %v14593_v9 = vld [vmem:[%s16284_s3 + $0x90] sm:$0xff] }
 0x717   :  { %v14564_v44 = vpop.f32.mrf.mxu1  ;;  %10618 = vmatprep.subr.mxu0 %v14389_v49 }
 0x718   :  { %16911 = vst [vmem:[#allocation125_spill] sm:$0xff] %v14564_v44 }
 0x719   :  { %v10496_v12 = vpop.f32.mrf.mxu1 }
 0x71a   :  { %v14578_v43 = vadd.f32 %v10496_v12, %v14570_v18  ;;  %v14603_v12 = vld [vmem:[%s16284_s3 + $0xa8] sm:$0xff] }
 0x71b   :  { %v4801_v39 = vpop.f32.mrf.mxu1 }
 0x71c   :  { %v14586_v36 = vadd.f32 %v4801_v39, %v14575_v42  ;;  %v5205_v19 = vsel %vm1295_vm1, %v14578_v43, -inf }
 0x71d   :  { %5206 = vmax.xlane.f32.xlu1 %v5205_v19  ;;  %v10499_v8 = vpop.f32.mrf.mxu1 }
 0x71e   :  { %v14596_v61 = vadd.f32 %v10499_v8, %v14583_v16  ;;  %v5202_v32 = vsel %vm1295_vm1, %v14586_v36, -inf  ;;  %v14613_v8 = vld [vmem:[%s16284_s3 + $0xa0] sm:$0xff] }
 0x71f   :  { %5203 = vmax.xlane.f32.xlu0 %v5202_v32  ;;  %v4811_v0 = vpop.f32.mrf.mxu1 }
 0x720   :  { %v14606_v39 = vadd.f32 %v4811_v0, %v14593_v9  ;;  %v5211_v19 = vsel %vm1295_vm1, %v14596_v61, -inf  ;;  %v14623_v0 = vld [vmem:[%s16284_s3 + $0xb8] sm:$0xff] }
 0x721   :  { %5212 = vmax.xlane.f32.xlu1 %v5211_v19  ;;  %v10502_v40 = vpop.f32.mrf.mxu1 }
 0x722   :  { %v14616_v32 = vadd.f32 %v10502_v40, %v14603_v12  ;;  %v5208_v10 = vsel %vm1295_vm1, %v14606_v39, -inf  ;;  %v14633_v40 = vld [vmem:[%s16284_s3 + $0xb0] sm:$0xff] }
 0x723   :  { %5209 = vmax.xlane.f32.xlu0 %v5208_v10  ;;  %v4821_v4 = vpop.f32.mrf.mxu1 }
 0x724   :  { %v14626_v19 = vadd.f32 %v4821_v4, %v14613_v8  ;;  %v5217_v13 = vsel %vm1295_vm1, %v14616_v32, -inf }
 0x725   :  { %5218 = vmax.xlane.f32.xlu1 %v5217_v13  ;;  %v10505_v21 = vpop.f32.mrf.mxu1 }
 0x726   :  { %v14636_v10 = vadd.f32 %v10505_v21, %v14623_v0  ;;  %v5214_v60 = vsel %vm1295_vm1, %v14626_v19, -inf }
 0x727   :  { %5215 = vmax.xlane.f32.xlu0 %v5214_v60  ;;  %v4831_v57 = vpop.f32.mrf.mxu1 }
 0x728   :  { %v14641_v4 = vadd.f32 %v4831_v57, %v14633_v40  ;;  %v5223_v13 = vsel %vm1295_vm1, %v14636_v10, -inf }
 0x729   :  { %5224 = vmax.xlane.f32.xlu1 %v5223_v13 }
 0x72a   :  { %v5220_v50 = vsel %vm1295_vm1, %v14641_v4, -inf }
 0x72b   :  { %5221 = vmax.xlane.f32.xlu0 %v5220_v50 }
 0x73a   :  { %v10552_v35 = vpop.f32.mrf.mxu1 }
 0x73b   :  { %v14648_v21 = vadd.f32 %v10552_v35, %v14570_v18 }
 0x73c   :  { %v5139_v51 = vpop.f32.mrf.mxu1 }
 0x73d   :  { %v14651_v17 = vadd.f32 %v5139_v51, %v14575_v42  ;;  %v5253_v57 = vsel %vm1295_vm1, %v14648_v21, -inf }
 0x73e   :  { %5254 = vmax.xlane.f32.xlu1 %v5253_v57  ;;  %v10555_v60 = vpop.f32.mrf.mxu1 }
 0x73f   :  { %v14656_v38 = vadd.f32 %v10555_v60, %v14583_v16  ;;  %v5250_v13 = vsel %vm1295_vm1, %v14651_v17, -inf }
 0x740   :  { %5251 = vmax.xlane.f32.xlu0 %v5250_v13  ;;  %v5149_v50 = vpop.f32.mrf.mxu1 }
 0x741   :  { %v14661_v35 = vadd.f32 %v5149_v50, %v14593_v9  ;;  %v5259_v51 = vsel %vm1295_vm1, %v14656_v38, -inf }
 0x742   :  { %5260 = vmax.xlane.f32.xlu1 %v5259_v51  ;;  %v10558_v55 = vpop.f32.mrf.mxu1 }
 0x743   :  { %v14666_v58 = vadd.f32 %v10558_v55, %v14603_v12  ;;  %v5256_v57 = vsel %vm1295_vm1, %v14661_v35, -inf }
 0x744   :  { %5257 = vmax.xlane.f32.xlu0 %v5256_v57  ;;  %v5159_v60 = vpop.f32.mrf.mxu1 }
 0x745   :  { %v14671_v44 = vadd.f32 %v5159_v60, %v14613_v8  ;;  %v5265_v13 = vsel %vm1295_vm1, %v14666_v58, -inf }
 0x746   :  { %5266 = vmax.xlane.f32.xlu1 %v5265_v13  ;;  %v10561_v50 = vpop.f32.mrf.mxu1  ;;  %v14687_v13 = vpop.f32.mrf.mxu0 }
 0x747   :  { %v14676_v7 = vadd.f32 %v10561_v50, %v14623_v0  ;;  %v5262_v55 = vsel %vm1295_vm1, %v14671_v44, -inf  ;;  %16912 = vst [vmem:[#allocation107_spill] sm:$0xff] %v14687_v13 }
 0x748   :  { %5263 = vmax.xlane.f32.xlu0 %v5262_v55  ;;  %v5169_v51 = vpop.f32.mrf.mxu1  ;;  %v14689_v50 = vpop.f32.mrf.mxu0 }
 0x749   :  { %v14681_v15 = vadd.f32 %v5169_v51, %v14633_v40  ;;  %v5271_v57 = vsel %vm1295_vm1, %v14676_v7, -inf  ;;  %16913 = vst [vmem:[#allocation132_spill] sm:$0xff] %v14689_v50 }
 0x74a   :  { %5272 = vmax.xlane.f32.xlu1 %v5271_v57  ;;  %v14691_v26 = vpop.f32.mrf.mxu0 }
 0x74b   :  { %v5268_v60 = vsel %vm1295_vm1, %v14681_v15, -inf  ;;  %16914 = vst [vmem:[#allocation111_spill] sm:$0xff] %v14691_v26 }
 0x74c   :  { %5269 = vmax.xlane.f32.xlu0 %v5268_v60  ;;  %v14693_v29 = vpop.f32.mrf.mxu0 }
 0x74d   :  { %16915 = vst [vmem:[#allocation123_spill] sm:$0xff] %v14693_v29 }
 0x74e   :  { %v14695_v55 = vpop.f32.mrf.mxu0 }
 0x74f   :  { %16916 = vst [vmem:[#allocation108_spill] sm:$0xff] %v14695_v55 }
 0x750   :  { %v14697_v51 = vpop.f32.mrf.mxu0 }
 0x751   :  { %16917 = vst [vmem:[#allocation129_spill] sm:$0xff] %v14697_v51  ;;  %v14719_v51 = vpop.permute.xlu1 %5844 }
 0x752   :  { %v14699_v34 = vpop.f32.mrf.mxu0  ;;  %16927 = vst [vmem:[#allocation145_spill] sm:$0xff] %v14719_v51 }
 0x753   :  { %16918 = vst [vmem:[#allocation137_spill] sm:$0xff] %v14699_v34 }
 0x754   :  { %v14701_v54 = vpop.f32.mrf.mxu0 }
 0x755   :  { %16919 = vst [vmem:[#allocation126_spill] sm:$0xff] %v14701_v54 }
 0x76b   :  { %v14703_v57 = vpop.f32.mrf.mxu0 }
 0x76c   :  { %16920 = vst [vmem:[#allocation134_spill] sm:$0xff] %v14703_v57 }
 0x76d   :  { %v14705_v52 = vpop.f32.mrf.mxu0 }
 0x76e   :  { %16921 = vst [vmem:[#allocation138_spill] sm:$0xff] %v14705_v52  ;;  %v14727_v52 = vpop.permute.xlu1 %5840 }
 0x76f   :  { %16931 = vst [vmem:[#allocation149_spill] sm:$0xff] %v14727_v52 }
 0x772   :  { %v14735_v53 = vpop.permute.xlu1 %5836 }
 0x773   :  { %v14707_v60 = vpop.f32.mrf.mxu0  ;;  %16935 = vst [vmem:[#allocation153_spill] sm:$0xff] %v14735_v53 }
 0x774   :  { %16922 = vst [vmem:[#allocation122_spill] sm:$0xff] %v14707_v60 }
 0x775   :  { %v14709_v41 = vpop.f32.mrf.mxu0 }
 0x776   :  { %16923 = vst [vmem:[#allocation118_spill] sm:$0xff] %v14709_v41 }
 0x77b   :  { %v14711_v50 = vpop.f32.mrf.mxu0 }
 0x77c   :  { %16924 = vst [vmem:[#allocation124_spill] sm:$0xff] %v14711_v50 }
 0x77d   :  { %v14715_v29 = vpop.f32.mrf.mxu0 }
 0x77e   :  { %16925 = vst [vmem:[#allocation143_spill] sm:$0xff] %v14715_v29 }
 0x783   :  { %v14717_v37 = vpop.f32.mrf.mxu0 }
 0x784   :  { %16926 = vst [vmem:[#allocation144_spill] sm:$0xff] %v14717_v37 }
 0x785   :  { %v14721_v62 = vpop.f32.mrf.mxu0 }
 0x786   :  { %16928 = vst [vmem:[#allocation146_spill] sm:$0xff] %v14721_v62  ;;  %v14743_v62 = vpop.permute.xlu1 %6001 }
 0x787   :  { %v14723_v54 = vpop.f32.mrf.mxu0 }
 0x788   :  { %16929 = vst [vmem:[#allocation147_spill] sm:$0xff] %v14723_v54 }
 0x789   :  { %v14725_v5 = vpop.f32.mrf.mxu0 }
 0x78a   :  { %16930 = vst [vmem:[#allocation148_spill] sm:$0xff] %v14725_v5 }
 0x78b   :  { %v14729_v60 = vpop.f32.mrf.mxu0 }
 0x78c   :  { %16932 = vst [vmem:[#allocation150_spill] sm:$0xff] %v14729_v60  ;;  %v14751_v60 = vpop.permute.xlu1 %5999 }
 0x78d   :  { %v14731_v41 = vpop.f32.mrf.mxu0 }
 0x78e   :  { %16933 = vst [vmem:[#allocation151_spill] sm:$0xff] %v14731_v41 }
 0x78f   :  { %v14733_v50 = vpop.f32.mrf.mxu0 }
 0x790   :  { %16934 = vst [vmem:[#allocation152_spill] sm:$0xff] %v14733_v50 }
 0x791   :  { %v14737_v29 = vpop.f32.mrf.mxu0 }
 0x792   :  { %16936 = vst [vmem:[#allocation154_spill] sm:$0xff] %v14737_v29  ;;  %v14759_v29 = vpop.permute.xlu1 %5997 }
 0x793   :  { %v14739_v37 = vpop.f32.mrf.mxu0 }
 0x794   :  { %16937 = vst [vmem:[#allocation155_spill] sm:$0xff] %v14739_v37 }
 0x795   :  { %v14741_v57 = vpop.f32.mrf.mxu0 }
 0x796   :  { %16938 = vst [vmem:[#allocation156_spill] sm:$0xff] %v14741_v57 }
 0x797   :  { %v14745_v54 = vpop.f32.mrf.mxu0 }
 0x798   :  { %16939 = vst [vmem:[#allocation157_spill] sm:$0xff] %v14745_v54 }
 0x799   :  { %v14747_v5 = vpop.f32.mrf.mxu0 }
 0x79a   :  { %16940 = vst [vmem:[#allocation158_spill] sm:$0xff] %v14747_v5 }
 0x79b   :  { %v14749_v56 = vpop.f32.mrf.mxu0 }
 0x79c   :  { %16941 = vst [vmem:[#allocation159_spill] sm:$0xff] %v14749_v56 }
 0x79d   :  { %v14753_v41 = vpop.f32.mrf.mxu0 }
 0x79e   :  { %16942 = vst [vmem:[#allocation160_spill] sm:$0xff] %v14753_v41 }
 0x79f   :  { %v14755_v50 = vpop.f32.mrf.mxu0 }
 0x7a0   :  { %16943 = vst [vmem:[#allocation161_spill] sm:$0xff] %v14755_v50 }
 0x7a1   :  { %v14757_v34 = vpop.f32.mrf.mxu0 }
 0x7a2   :  { %16944 = vst [vmem:[#allocation162_spill] sm:$0xff] %v14757_v34 }
 0x7a3   :  { %v14761_v37 = vpop.f32.mrf.mxu0 }
 0x7a4   :  { %16945 = vst [vmem:[#allocation163_spill] sm:$0xff] %v14761_v37 }
 0x7a5   :  { %v14763_v57 = vpop.f32.mrf.mxu0 }
 0x7a6   :  { %16946 = vst [vmem:[#allocation164_spill] sm:$0xff] %v14763_v57  ;;  %v5207_v3 = vpop.xlane.xlu1 %5206 }
 0x7a7   :  { %v5283_v54 = vsub.f32 %v14578_v43, %v5207_v3  ;;  %v10468_v5 = vpop.f32.mrf.mxu0 }
 0x7a8   :  { %v14767_v56 = vadd.f32 %v10468_v5, %v14570_v18  ;;  %v5204_v55 = vpop.xlane.xlu0 %5203 }
 0x7a9   :  { %v5282_v41 = vsub.f32 %v14586_v36, %v5204_v55  ;;  %v4632_v25 = vpop.f32.mrf.mxu0  ;;  %v5324_v26 = vmul.f32 1.442695, %v5283_v54 }
 0x7aa   :  { %v14771_v50 = vadd.f32 %v4632_v25, %v14575_v42  ;;  %v5213_v34 = vpop.xlane.xlu1 %5212  ;;  %v5181_v37 = vsel %vm1295_vm1, %v14767_v56, -inf }
 0x7ab   :  { %v5322_v57 = vmul.f32 1.442695, %v5282_v41  ;;  %v10471_v45 = vpop.f32.mrf.mxu0  ;;  %5182 = vmax.xlane.f32.xlu1 %v5181_v37  ;;  %v5285_v3 = vsub.f32 %v14596_v61, %v5213_v34 }
 0x7ac   :  { %v14777_v5 = vadd.f32 %v10471_v45, %v14583_v16  ;;  %v5178_v43 = vsel %vm1295_vm1, %v14771_v50, -inf  ;;  %v5210_v34 = vpop.xlane.xlu0 %5209 }
 0x7ad   :  { %11284 = vpow2.f32 %v5322_v57  ;;  %v4642_v36 = vpop.f32.mrf.mxu0  ;;  %5179 = vmax.xlane.f32.xlu0 %v5178_v43  ;;  %v5328_v55 = vmul.f32 1.442695, %v5285_v3 }
 0x7ae   :  { %11286 = vpow2.f32 %v5324_v26  ;;  %v14782_v13 = vadd.f32 %v4642_v36, %v14593_v9  ;;  %v5187_v37 = vsel %vm1295_vm1, %v14777_v5, -inf  ;;  %v5284_v36 = vsub.f32 %v14606_v39, %v5210_v34 }
 0x7af   :  { %v10474_v25 = vpop.f32.mrf.mxu0  ;;  %11288 = vpow2.f32 %v5328_v55 }
 0x7b0   :  { %v14785_v41 = vadd.f32 %v10474_v25, %v14603_v12  ;;  %v5184_v3 = vsel %vm1295_vm1, %v14782_v13, -inf  ;;  %v5219_v25 = vpop.xlane.xlu1 %5218 }
 0x7b1   :  { %v4652_v45 = vpop.f32.mrf.mxu0  ;;  %5188 = vmax.xlane.f32.xlu0 %v5187_v37 }
 0x7b2   :  { %v5193_v54 = vsel %vm1295_vm1, %v14785_v41, -inf  ;;  %v14792_v26 = vadd.f32 %v4652_v45, %v14613_v8 }
 0x7b3   :  { %v10477_v61 = vpop.f32.mrf.mxu0  ;;  %5194 = vmax.xlane.f32.xlu1 %v5193_v54  ;;  %v5287_v54 = vsub.f32 %v14616_v32, %v5219_v25 }
 0x7b4   :  { %v14795_v57 = vadd.f32 %v10477_v61, %v14623_v0  ;;  %v5190_v45 = vsel %vm1295_vm1, %v14792_v26, -inf  ;;  %v5216_v61 = vpop.xlane.xlu0 %5215  ;;  %v5225_v52 = vpop.xlane.xlu1 %5224 }
 0x7b5   :  { %v4662_v43 = vpop.f32.mrf.mxu0  ;;  %5185 = vmax.xlane.f32.xlu0 %v5184_v3  ;;  %v5326_v3 = vmul.f32 1.442695, %v5284_v36  ;;  %v5332_v48 = vmul.f32 1.442695, %v5287_v54  ;;  %v5289_v25 = vsub.f32 %v14636_v10, %v5225_v52 }
 0x7b6   :  { %v5199_v37 = vsel %vm1295_vm1, %v14795_v57, -inf  ;;  %v14803_v55 = vadd.f32 %v4662_v43, %v14633_v40 }
 0x7b7   :  { %5200 = vmax.xlane.f32.xlu1 %v5199_v37  ;;  %v5286_v37 = vsub.f32 %v14626_v19, %v5216_v61  ;;  %11290 = vpow2.f32 %v5326_v3  ;;  %v5336_v19 = vmul.f32 1.442695, %v5289_v25 }
 0x7b8   :  { %v5196_v43 = vsel %vm1295_vm1, %v14803_v55, -inf  ;;  %11292 = vpow2.f32 %v5332_v48  ;;  %v5222_v1 = vpop.xlane.xlu0 %5221 }
 0x7b9   :  { %5191 = vmax.xlane.f32.xlu0 %v5190_v45  ;;  %v5330_v32 = vmul.f32 1.442695, %v5286_v37  ;;  %v5288_v54 = vsub.f32 %v14641_v4, %v5222_v1 }
 0x7ba   :  { %v14808_v53 = vpop.eup %11284 }
 0x7bb   :  { %v5394_v39 = vsel %vm1295_vm1, %v14808_v53, 0.0  ;;  %v14812_v34 = vpop.eup %11286  ;;  %11294 = vpow2.f32 %v5330_v32 }
 0x7bc   :  { %5395 = vadd.xlane.f32.xlu1 %v5394_v39  ;;  %v5397_v36 = vsel %vm1295_vm1, %v14812_v34, 0.0  ;;  %v14820_v45 = vpop.eup %11288  ;;  %11296 = vpow2.f32 %v5336_v19 }
 0x7bd   :  { %5197 = vmax.xlane.f32.xlu0 %v5196_v43  ;;  %v5403_v61 = vsel %vm1295_vm1, %v14820_v45, 0.0  ;;  %v5334_v43 = vmul.f32 1.442695, %v5288_v54 }
 0x7bf   :  { %11298 = vpow2.f32 %v5334_v43 }
 0x7c1   :  { %5398 = vadd.xlane.f32.xlu0 %v5397_v36 }
 0x7c4   :  { %v14833_v25 = vpop.eup %11290 }
 0x7c5   :  { %5404 = vadd.xlane.f32.xlu0 %v5403_v61 }
 0x7c7   :  { %v10524_v3 = vpop.f32.mrf.mxu0  ;;  %v5255_v39 = vpop.xlane.xlu1 %5254 }
 0x7c8   :  { %v14826_v52 = vadd.f32 %v10524_v3, %v14570_v18  ;;  %v5299_v4 = vsub.f32 %v14648_v21, %v5255_v39  ;;  %v14838_v3 = vpop.eup %11292 }
 0x7c9   :  { %v4970_v10 = vpop.f32.mrf.mxu0  ;;  %v5252_v37 = vpop.xlane.xlu0 %5251 }
 0x7ca   :  { %v14829_v48 = vadd.f32 %v4970_v10, %v14575_v42  ;;  %v5229_v32 = vsel %vm1295_vm1, %v14826_v52, -inf  ;;  %v5298_v42 = vsub.f32 %v14651_v17, %v5252_v37  ;;  %v5400_v10 = vsel %vm1295_vm1, %v14833_v25, 0.0  ;;  %v14846_v39 = vpop.eup %11294 }
 0x7cb   :  { %v10527_v36 = vpop.f32.mrf.mxu0  ;;  %5230 = vmax.xlane.f32.xlu1 %v5229_v32  ;;  %v5261_v1 = vpop.xlane.xlu1 %5260  ;;  %v5356_v24 = vmul.f32 1.442695, %v5299_v4  ;;  %v5409_v17 = vsel %vm1295_vm1, %v14838_v3, 0.0  ;;  %v5406_v4 = vsel %vm1295_vm1, %v14846_v39, 0.0 }
 0x7cc   :  { %v5226_v18 = vsel %vm1295_vm1, %v14829_v48, -inf  ;;  %v14842_v54 = vadd.f32 %v10527_v36, %v14583_v16  ;;  %v5301_v51 = vsub.f32 %v14656_v38, %v5261_v1  ;;  %v5354_v37 = vmul.f32 1.442695, %v5298_v42  ;;  %v14859_v38 = vpop.eup %11296 }
 0x7cd   :  { %v4980_v19 = vpop.f32.mrf.mxu0  ;;  %v5258_v61 = vpop.xlane.xlu0 %5257  ;;  %5227 = vmax.xlane.f32.xlu0 %v5226_v18  ;;  %11300 = vpow2.f32 %v5356_v24  ;;  %v5415_v24 = vsel %vm1295_vm1, %v14859_v38, 0.0 }
 0x7ce   :  { %v14850_v27 = vadd.f32 %v4980_v19, %v14593_v9  ;;  %v5300_v43 = vsub.f32 %v14661_v35, %v5258_v61  ;;  %v5235_v18 = vsel %vm1295_vm1, %v14842_v54, -inf  ;;  %v5360_v9 = vmul.f32 1.442695, %v5301_v51 }
 0x7cf   :  { %v10530_v32 = vpop.f32.mrf.mxu0  ;;  %5401 = vadd.xlane.f32.xlu1 %v5400_v10  ;;  %v5267_v21 = vpop.xlane.xlu1 %5266  ;;  %11302 = vpow2.f32 %v5354_v37 }
 0x7d0   :  { %v5303_v1 = vsub.f32 %v14666_v58, %v5267_v21  ;;  %v5232_v19 = vsel %vm1295_vm1, %v14850_v27, -inf  ;;  %v5358_v35 = vmul.f32 1.442695, %v5300_v43  ;;  %v14865_v61 = vadd.f32 %v10530_v32, %v14603_v12  ;;  %v14877_v37 = vpop.eup %11298 }
 0x7d1   :  { %v5264_v16 = vpop.xlane.xlu0 %5263  ;;  %v4990_v36 = vpop.f32.mrf.mxu0  ;;  %5410 = vadd.xlane.f32.xlu0 %v5409_v17  ;;  %11304 = vpow2.f32 %v5360_v9 }
 0x7d2   :  { %v5302_v42 = vsub.f32 %v14671_v44, %v5264_v16  ;;  %v5364_v58 = vmul.f32 1.442695, %v5303_v1  ;;  %v14871_v51 = vadd.f32 %v4990_v36, %v14613_v8  ;;  %11306 = vpow2.f32 %v5358_v35 }
 0x7d3   :  { %5236 = vmax.xlane.f32.xlu1 %v5235_v18  ;;  %v10533_v10 = vpop.f32.mrf.mxu0  ;;  %v5273_v17 = vpop.xlane.xlu1 %5272  ;;  %v5241_v16 = vsel %vm1295_vm1, %v14865_v61, -inf  ;;  %v5412_v36 = vsel %vm1295_vm1, %v14877_v37, 0.0 }
 0x7d4   :  { %v5305_v21 = vsub.f32 %v14676_v7, %v5273_v17  ;;  %v5362_v12 = vmul.f32 1.442695, %v5302_v42  ;;  %11308 = vpow2.f32 %v5364_v58  ;;  %v5238_v7 = vsel %vm1295_vm1, %v14871_v51, -inf }
 0x7d5   :  { %5233 = vmax.xlane.f32.xlu0 %v5232_v19  ;;  %v5270_v18 = vpop.xlane.xlu0 %5269  ;;  %v5000_v32 = vpop.f32.mrf.mxu0  ;;  %v14885_v8 = vadd.f32 %v10533_v10, %v14623_v0 }
 0x7d6   :  { %v5304_v44 = vsub.f32 %v14681_v15, %v5270_v18  ;;  %v5368_v43 = vmul.f32 1.442695, %v5305_v21  ;;  %11310 = vpow2.f32 %v5362_v12 }
 0x7d7   :  { %5407 = vadd.xlane.f32.xlu1 %v5406_v4  ;;  %v14880_v4 = vadd.f32 %v5000_v32, %v14633_v40  ;;  %v5247_v40 = vsel %vm1295_vm1, %v14885_v8, -inf }
 0x7d8   :  { %v5366_v15 = vmul.f32 1.442695, %v5304_v44  ;;  %11312 = vpow2.f32 %v5368_v43 }
 0x7d9   :  { %5416 = vadd.xlane.f32.xlu0 %v5415_v24  ;;  %v5244_v9 = vsel %vm1295_vm1, %v14880_v4, -inf }
 0x7da   :  { %v14891_v1 = vpop.eup %11300  ;;  %11314 = vpow2.f32 %v5366_v15 }
 0x7db   :  { %5242 = vmax.xlane.f32.xlu1 %v5241_v16  ;;  %v5445_v0 = vsel %vm1295_vm1, %v14891_v1, 0.0 }
 0x7dc   :  { %v14895_v19 = vpop.eup %11302 }
 0x7dd   :  { %5239 = vmax.xlane.f32.xlu0 %v5238_v7  ;;  %v5442_v42 = vsel %vm1295_vm1, %v14895_v19, 0.0 }
 0x7de   :  { %v14899_v35 = vpop.eup %11304 }
 0x7df   :  { %5413 = vadd.xlane.f32.xlu1 %v5412_v36  ;;  %v14903_v10 = vpop.eup %11306  ;;  %v5451_v17 = vsel %vm1295_vm1, %v14899_v35, 0.0 }
 0x7e0   :  { %v5448_v24 = vsel %vm1295_vm1, %v14903_v10, 0.0 }
 0x7e1   :  { %5245 = vmax.xlane.f32.xlu0 %v5244_v9  ;;  %v14907_v18 = vpop.eup %11308 }
 0x7e2   :  { %v5457_v21 = vsel %vm1295_vm1, %v14907_v18, 0.0 }
 0x7e3   :  { %5248 = vmax.xlane.f32.xlu1 %v5247_v40  ;;  %v14911_v58 = vpop.eup %11310 }
 0x7e4   :  { %v5454_v32 = vsel %vm1295_vm1, %v14911_v58, 0.0 }
 0x7e5   :  { %5446 = vadd.xlane.f32.xlu0 %v5445_v0  ;;  %v14915_v12 = vpop.eup %11312 }
 0x7e6   :  { %16947 = vst [vmem:[#allocation165_spill] sm:$0xff] %v14915_v12  ;;  %v5463_v16 = vsel %vm1295_vm1, %v14915_v12, 0.0 }
 0x7e7   :  { %5443 = vadd.xlane.f32.xlu1 %v5442_v42  ;;  %v14919_v44 = vpop.eup %11314 }
 0x7e8   :  { %v5460_v43 = vsel %vm1295_vm1, %v14919_v44, 0.0 }
 0x7e9   :  { %5452 = vadd.xlane.f32.xlu0 %v5451_v17 }
 0x7eb   :  { %5449 = vadd.xlane.f32.xlu1 %v5448_v24 }
 0x7ed   :  { %5458 = vadd.xlane.f32.xlu0 %v5457_v21 }
 0x7ef   :  { %5455 = vadd.xlane.f32.xlu1 %v5454_v32 }
 0x7f1   :  { %5464 = vadd.xlane.f32.xlu0 %v5463_v16 }
 0x7f3   :  { %5461 = vadd.xlane.f32.xlu1 %v5460_v43 }
 0x834   :  { %v5183_v7 = vpop.xlane.xlu1 %5182 }
 0x835   :  { %v5275_v15 = vsub.f32 %v14767_v56, %v5183_v7 }
 0x836   :  { %v5180_v36 = vpop.xlane.xlu0 %5179 }
 0x837   :  { %v5308_v9 = vmul.f32 1.442695, %v5275_v15  ;;  %v5274_v40 = vsub.f32 %v14771_v50, %v5180_v36 }
 0x839   :  { %11316 = vpow2.f32 %v5308_v9  ;;  %v5306_v0 = vmul.f32 1.442695, %v5274_v40 }
 0x83a   :  { %v5189_v42 = vpop.xlane.xlu0 %5188 }
 0x83b   :  { %11318 = vpow2.f32 %v5306_v0  ;;  %v5277_v17 = vsub.f32 %v14777_v5, %v5189_v42 }
 0x83c   :  { %v5195_v24 = vpop.xlane.xlu1 %5194 }
 0x83d   :  { %v5312_v21 = vmul.f32 1.442695, %v5277_v17  ;;  %v5279_v32 = vsub.f32 %v14785_v41, %v5195_v24 }
 0x83e   :  { %v5186_v16 = vpop.xlane.xlu0 %5185 }
 0x83f   :  { %11320 = vpow2.f32 %v5312_v21  ;;  %v5316_v43 = vmul.f32 1.442695, %v5279_v32  ;;  %v5276_v12 = vsub.f32 %v14782_v13, %v5186_v16 }
 0x840   :  { %v5201_v56 = vpop.xlane.xlu1 %5200 }
 0x841   :  { %11322 = vpow2.f32 %v5316_v43  ;;  %v5310_v7 = vmul.f32 1.442695, %v5276_v12  ;;  %v5281_v50 = vsub.f32 %v14795_v57, %v5201_v56 }
 0x842   :  { %v5192_v15 = vpop.xlane.xlu0 %5191 }
 0x843   :  { %11324 = vpow2.f32 %v5310_v7  ;;  %v5320_v36 = vmul.f32 1.442695, %v5281_v50  ;;  %v5278_v9 = vsub.f32 %v14792_v26, %v5192_v15 }
 0x845   :  { %11326 = vpow2.f32 %v5320_v36  ;;  %v5314_v5 = vmul.f32 1.442695, %v5278_v9  ;;  %v5396_v40 = vpop.xlane.xlu1 %5395 }
 0x846   :  { %v14932_v0 = vpop.eup %11316  ;;  %11328 = vrcp.f32 %v5396_v40  ;;  %v5198_v41 = vpop.xlane.xlu0 %5197 }
 0x847   :  { %11330 = vpow2.f32 %v5314_v5  ;;  %v5280_v13 = vsub.f32 %v14803_v55, %v5198_v41  ;;  %v5373_v12 = vsel %vm1295_vm1, %v14932_v0, 0.0 }
 0x848   :  { %v14937_v42 = vpop.eup %11318  ;;  %5374 = vadd.xlane.f32.xlu1 %v5373_v12 }
 0x849   :  { %v5318_v57 = vmul.f32 1.442695, %v5280_v13  ;;  %v5370_v26 = vsel %vm1295_vm1, %v14937_v42, 0.0 }
 0x84a   :  { %5371 = vadd.xlane.f32.xlu0 %v5370_v26  ;;  %v5399_v17 = vpop.xlane.xlu0 %5398 }
 0x84b   :  { %11332 = vpow2.f32 %v5318_v57 }
 0x84c   :  { %v14941_v24 = vpop.eup %11320  ;;  %11334 = vrcp.f32 %v5399_v17 }
 0x84d   :  { %v5379_v21 = vsel %vm1295_vm1, %v14941_v24, 0.0 }
 0x84e   :  { %v14945_v55 = vpop.eup %11322  ;;  %5380 = vadd.xlane.f32.xlu1 %v5379_v21  ;;  %v5405_v50 = vpop.xlane.xlu0 %5404 }
 0x84f   :  { %v5385_v16 = vsel %vm1295_vm1, %v14945_v55, 0.0  ;;  %11336 = vrcp.f32 %v5405_v50 }
 0x850   :  { %v14947_v32 = vpop.eup %11324 }
 0x851   :  { %v5376_v43 = vsel %vm1295_vm1, %v14947_v32, 0.0 }
 0x852   :  { %v14953_v56 = vpop.eup %11326  ;;  %5386 = vadd.xlane.f32.xlu1 %v5385_v16  ;;  %5377 = vadd.xlane.f32.xlu0 %v5376_v43 }
 0x853   :  { %v11329_v7 = vpop.eup %11328  ;;  %v5391_v5 = vsel %vm1295_vm1, %v14953_v56, 0.0 }
 0x854   :  { %v14955_v15 = vpop.eup %11330  ;;  %v14957_v36 = vpop.xlane.xlu1 %5230  ;;  %v5483_v9 = vmul.f32 %v11329_v7, %v14808_v53 }
 0x855   :  { %v5382_v40 = vsel %vm1295_vm1, %v14955_v15, 0.0 }
 0x856   :  { %10606 = vmatprep.mubr.msk.f32.mxu1 %vm1295_vm1, %v5483_v9  ;;  %5392 = vadd.xlane.f32.xlu1 %v5391_v5  ;;  %v5228_v41 = vpop.xlane.xlu0 %5227  ;;  %v16948_v9 = vld [vmem:[#allocation59_spill] sm:$0xff] }
 0x857   :  { %5383 = vadd.xlane.f32.xlu0 %v5382_v40 }
 0x858   :  { %v14965_v13 = vpop.eup %11332  ;;  %v5402_v12 = vpop.xlane.xlu1 %5401 }
 0x859   :  { %v11335_v57 = vpop.eup %11334  ;;  %v5388_v26 = vsel %vm1295_vm1, %v14965_v13, 0.0  ;;  %11338 = vrcp.f32 %v5402_v12 }
 0x85a   :  { %v5485_v53 = vmul.f32 %v11335_v57, %v14812_v34  ;;  %v5411_v17 = vpop.xlane.xlu0 %5410 }
 0x85b   :  { %5389 = vadd.xlane.f32.xlu0 %v5388_v26  ;;  %11340 = vrcp.f32 %v5411_v17 }
 0x85c   :  { %v5237_v21 = vpop.xlane.xlu1 %5236  ;;  %10607 = vmatmul.mubr.msk.f32.vlgmr.msra.gmra.mxu1 %vm1295_vm1, %v5485_v53  ;;  %v11337_v7 = vpop.eup %11336  ;;  %v16949_v53 = vld [vmem:[#allocation57_spill] sm:$0xff] }
 0x85d   :  { %10647 = vmatpush3.msra.mxu1 %v14401_v2  ;;  %v5489_v40 = vmul.f32 %v11337_v7, %v14820_v45 }
 0x85e   :  { %10648 = vmatprep.subr.mxu1 %v14743_v62  ;;  %v5234_v16 = vpop.xlane.xlu0 %5233 }
 0x85f   :  { %10649 = vmatpush3.msra.mxu1 %v14743_v62  ;;  %v5292_v7 = vsub.f32 %v14850_v27, %v5234_v16 }
 0x860   :  { %10650 = vmatprep.subr.mxu1 %v14751_v60  ;;  %v5408_v43 = vpop.xlane.xlu1 %5407 }
 0x861   :  { %10651 = vmatpush3.msra.mxu1 %v14751_v60  ;;  %11342 = vrcp.f32 %v5408_v43 }
 0x862   :  { %10652 = vmatprep.subr.mxu1 %v14759_v29  ;;  %v5417_v50 = vpop.xlane.xlu0 %5416 }
 0x863   :  { %10653 = vmatpush3.msra.mxu1 %v14759_v29  ;;  %11344 = vrcp.f32 %v5417_v50 }
 0x864   :  { %v5243_v34 = vpop.xlane.xlu1 %5242 }
 0x866   :  { %v11339_v2 = vpop.eup %11338 }
 0x867   :  { %5993 = vrot.lane.b32.xlu1 %v16948_v9, %s11633_s16  ;;  %v5487_v5 = vmul.f32 %v11339_v2, %v14833_v25  ;;  %v5290_v25 = vsub.f32 %v14829_v48, %v5228_v41  ;;  %v5240_v2 = vpop.xlane.xlu0 %5239  ;;  %v5342_v48 = vmul.f32 1.442695, %v5292_v7  ;;  %v16950_v7 = vld [vmem:[#allocation16_spill] sm:$0xff] }
 0x868   :  { %v5414_v62 = vpop.xlane.xlu1 %5413  ;;  %v11341_v29 = vpop.eup %11340  ;;  %v5294_v41 = vsub.f32 %v14871_v51, %v5240_v2 }
 0x869   :  { %11346 = vrcp.f32 %v5414_v62  ;;  %10609 = vmatprep.mubr.msk.f32.mxu1 %vm1295_vm1, %v5487_v5  ;;  %v5493_v17 = vmul.f32 %v11341_v29, %v14838_v3  ;;  %v5338_v43 = vmul.f32 1.442695, %v5290_v25 }
 0x86a   :  { %10610 = vmatmul.mubr.msk.f32.gmra.mxu1 %vm1295_vm1, %v5489_v40  ;;  %v5293_v40 = vsub.f32 %v14842_v54, %v5237_v21  ;;  %v5346_v27 = vmul.f32 1.442695, %v5294_v41 }
 0x86b   :  { %v5246_v2 = vpop.xlane.xlu0 %5245 }
 0x86c   :  { %v5249_v60 = vpop.xlane.xlu1 %5248 }
 0x86d   :  { %v5297_v51 = vsub.f32 %v14885_v8, %v5249_v60 }
 0x86e   :  { %v11343_v12 = vpop.eup %11342 }
 0x86f   :  { %v5491_v26 = vmul.f32 %v11343_v12, %v14846_v39  ;;  %v5291_v39 = vsub.f32 %v14826_v52, %v14957_v36  ;;  %v5344_v52 = vmul.f32 1.442695, %v5293_v40  ;;  %v5295_v36 = vsub.f32 %v14865_v61, %v5243_v34 }
 0x870   :  { %v5444_v57 = vpop.xlane.xlu1 %5443  ;;  %v11345_v45 = vpop.eup %11344  ;;  %v5352_v54 = vmul.f32 1.442695, %v5297_v51 }
 0x871   :  { %5995 = vrot.lane.b32.xlu0 %v16949_v53, %s11633_s16  ;;  %10612 = vmatprep.mubr.msk.f32.mxu1 %vm1295_vm1, %v5491_v26  ;;  %11348 = vrcp.f32 %v5444_v57  ;;  %v5497_v3 = vmul.f32 %v11345_v45, %v14859_v38  ;;  %v5340_v5 = vmul.f32 1.442695, %v5291_v39  ;;  %v5348_v16 = vmul.f32 1.442695, %v5295_v36  ;;  %v16952_v39 = vld [vmem:[#allocation25_spill] sm:$0xff]  ;;  %v16959_v36 = vld [vmem:[#allocation14_spill] sm:$0xff] }
 0x872   :  { %10613 = vmatmul.mubr.msk.f32.gmra.mxu1 %vm1295_vm1, %v5493_v17  ;;  %11350 = vpow2.f32 %v5338_v43 }
 0x873   :  { %11352 = vpow2.f32 %v5342_v48  ;;  %v16956_v48 = vld [vmem:[#allocation20_spill] sm:$0xff] }
 0x874   :  { %11354 = vpow2.f32 %v5340_v5  ;;  %v15058_v41 = vpop.xlane.xlu1 %5449  ;;  %v16958_v5 = vld [vmem:[#allocation15_spill] sm:$0xff] }
 0x875   :  { %11356 = vpow2.f32 %v5346_v27 }
 0x876   :  { %v11347_v50 = vpop.eup %11346  ;;  %11358 = vpow2.f32 %v5344_v52 }
 0x877   :  { %v5495_v62 = vmul.f32 %v11347_v50, %v14877_v37  ;;  %11360 = vpow2.f32 %v5348_v16  ;;  %v16951_v50 = vld [vmem:[#allocation55_spill] sm:$0xff]  ;;  %v5296_v16 = vsub.f32 %v14880_v4, %v5246_v2 }
 0x878   :  { %11362 = vpow2.f32 %v5352_v54  ;;  %v15068_v27 = vpop.xlane.xlu1 %5455 }
 0x879   :  { %10615 = vmatprep.mubr.msk.f32.mxu1 %vm1295_vm1, %v5495_v62  ;;  %v16953_v62 = vld [vmem:[#allocation38_spill] sm:$0xff] }
 0x87a   :  { %10616 = vmatmul.mubr.msk.f32.gmra.mxu1 %vm1295_vm1, %v5497_v3  ;;  %v15052_v3 = vpop.xlane.xlu0 %5446 }
 0x87e   :  { %v11349_v37 = vpop.eup %11348  ;;  %v15062_v40 = vpop.xlane.xlu0 %5452 }
 0x87f   :  { %v5515_v38 = vmul.f32 %v11349_v37, %v14895_v19  ;;  %v15004_v29 = vpop.eup %11350  ;;  %v15074_v37 = vpop.xlane.xlu1 %5461 }
 0x880   :  { %v5418_v21 = vsel %vm1295_vm1, %v15004_v29, 0.0  ;;  %v15008_v12 = vpop.eup %11352 }
 0x881   :  { %10662 = vmatprep.mubr.msk.f32.mxu1 %vm1295_vm1, %v5515_v38  ;;  %v15010_v61 = vpop.eup %11354  ;;  %v5424_v19 = vsel %vm1295_vm1, %v15008_v12, 0.0  ;;  %v16960_v38 = vld [vmem:[#allocation34_spill] sm:$0xff] }
 0x882   :  { %v15014_v34 = vpop.eup %11356  ;;  %v5421_v8 = vsel %vm1295_vm1, %v15010_v61, 0.0  ;;  %v15070_v52 = vpop.xlane.xlu0 %5458 }
 0x883   :  { %v15018_v60 = vpop.eup %11358  ;;  %v5430_v57 = vsel %vm1295_vm1, %v15014_v34, 0.0 }
 0x884   :  { %v5427_v26 = vsel %vm1295_vm1, %v15018_v60, 0.0  ;;  %v15024_v17 = vpop.eup %11360 }
 0x885   :  { %v5433_v25 = vsel %vm1295_vm1, %v15024_v17, 0.0  ;;  %v15028_v45 = vpop.eup %11362 }
 0x886   :  { %v5439_v43 = vsel %vm1295_vm1, %v15028_v45, 0.0  ;;  %v15079_v51 = vpop.xlane.xlu0 %5464 }
 0x88b   :  { %5419 = vadd.xlane.f32.xlu1 %v5418_v21 }
 0x88f   :  { %5425 = vadd.xlane.f32.xlu1 %v5424_v19 }
 0x890   :  { %5422 = vadd.xlane.f32.xlu0 %v5421_v8 }
 0x893   :  { %5431 = vadd.xlane.f32.xlu1 %v5430_v57 }
 0x894   :  { %5428 = vadd.xlane.f32.xlu0 %v5427_v26 }
 0x898   :  { %5434 = vadd.xlane.f32.xlu0 %v5433_v25 }
 0x89c   :  { %5440 = vadd.xlane.f32.xlu0 %v5439_v43 }
 0x8a4   :  { %5989 = vrot.lane.b32.xlu1 %v13136_v31, %s11633_s16 }
 0x8a8   :  { %6535 = vrot.lane.b32.xlu1 %v16758_v22, %s11634_s9  ;;  %v16954_v22 = vld [vmem:[#allocation26_spill] sm:$0xff] }
 0x8ac   :  { %6531 = vrot.lane.b32.xlu1 %v16760_v20, %s11634_s9  ;;  %v16955_v20 = vld [vmem:[#allocation36_spill] sm:$0xff] }
 0x8b0   :  { %6527 = vrot.lane.b32.xlu1 %v16950_v7, %s11634_s9  ;;  %v16961_v7 = vld [vmem:[#allocation29_spill] sm:$0xff] }
 0x8b2   :  { %5991 = vrot.lane.b32.xlu0 %v16951_v50, %s11633_s16 }
 0x8b4   :  { %6523 = vrot.lane.b32.xlu1 %v16769_v59, %s11634_s9  ;;  %v16957_v59 = vld [vmem:[#allocation32_spill] sm:$0xff] }
 0x8b6   :  { %6537 = vrot.lane.b32.xlu0 %v16952_v39, %s11634_s9 }
 0x8b8   :  { %6706 = vrot.lane.b32.xlu1 %v16953_v62, %s11634_s9 }
 0x8ba   :  { %6533 = vrot.lane.b32.xlu0 %v16954_v22, %s11634_s9  ;;  %v16963_v22 = vld [vmem:[#allocation23_spill] sm:$0xff] }
 0x8bc   :  { %6704 = vrot.lane.b32.xlu1 %v16955_v20, %s11634_s9 }
 0x8be   :  { %6529 = vrot.lane.b32.xlu0 %v16956_v48, %s11634_s9  ;;  %v16965_v48 = vld [vmem:[#allocation149_spill] sm:$0xff] }
 0x8c0   :  { %6700 = vrot.lane.b32.xlu1 %v16957_v59, %s11634_s9 }
 0x8c2   :  { %6525 = vrot.lane.b32.xlu0 %v16958_v5, %s11634_s9  ;;  %v16966_v5 = vld [vmem:[#allocation42_spill] sm:$0xff] }
 0x8c4   :  { %6875 = vrot.lane.b32.xlu1 %v16772_v63, %s11634_s9 }
 0x8c6   :  { %6507 = vrot.lane.b32.xlu0 %v16771_v23, %s11634_s9  ;;  %v5350_v23 = vmul.f32 1.442695, %v5296_v16  ;;  %v16968_v16 = vld [vmem:[#allocation153_spill] sm:$0xff] }
 0x8ca   :  { %6509 = vrot.lane.b32.xlu0 %v16959_v36, %s11634_s9  ;;  %v16967_v36 = vld [vmem:[#allocation19_spill] sm:$0xff] }
 0x8ce   :  { %6702 = vrot.lane.b32.xlu0 %v16960_v38, %s11634_s9  ;;  %v15129_v38 = vld [vmem:[#allocation7 + $0x58] sm:$0xff] }
 0x8d1   :  { %v5375_v63 = vpop.xlane.xlu1 %5374 }
 0x8d2   :  { %6698 = vrot.lane.b32.xlu0 %v16773_v6, %s11634_s9  ;;  %11364 = vrcp.f32 %v5375_v63  ;;  %v16969_v63 = vld [vmem:[#allocation37_spill] sm:$0xff] }
 0x8d3   :  { %v5372_v54 = vpop.xlane.xlu0 %5371 }
 0x8d4   :  { %11366 = vrcp.f32 %v5372_v54  ;;  %v16972_v54 = vld [vmem:[#allocation45_spill] sm:$0xff] }
 0x8d5   :  { %11368 = vpow2.f32 %v5350_v23  ;;  %v16971_v23 = vld [vmem:[#allocation41_spill] sm:$0xff] }
 0x8d6   :  { %6511 = vrot.lane.b32.xlu0 %v16775_v28, %s11634_s9 }
 0x8d7   :  { %v5381_v21 = vpop.xlane.xlu1 %5380 }
 0x8d8   :  { %11370 = vrcp.f32 %v5381_v21  ;;  %v16974_v21 = vld [vmem:[#allocation21_spill] sm:$0xff] }
 0x8da   :  { %6696 = vrot.lane.b32.xlu0 %v16777_v33, %s11634_s9 }
 0x8db   :  { %v5387_v19 = vpop.xlane.xlu1 %5386  ;;  %v5378_v4 = vpop.xlane.xlu0 %5377 }
 0x8dc   :  { %11372 = vrcp.f32 %v5378_v4  ;;  %v16976_v4 = vld [vmem:[#allocation44_spill] sm:$0xff] }
 0x8dd   :  { %11374 = vrcp.f32 %v5387_v19  ;;  %v16975_v19 = vld [vmem:[#allocation58_spill] sm:$0xff] }
 0x8de   :  { %6515 = vrot.lane.b32.xlu0 %v16779_v46, %s11634_s9 }
 0x8df   :  { %v11365_v6 = vpop.eup %11364  ;;  %v5393_v26 = vpop.xlane.xlu1 %5392 }
 0x8e0   :  { %v5384_v8 = vpop.xlane.xlu0 %5383  ;;  %v5469_v33 = vmul.f32 %v11365_v6, %v14932_v0  ;;  %v16977_v6 = vld [vmem:[#allocation52_spill] sm:$0xff] }
 0x8e1   :  { %v11367_v57 = vpop.eup %11366  ;;  %11376 = vrcp.f32 %v5384_v8  ;;  %v16978_v8 = vld [vmem:[#allocation24_spill] sm:$0xff] }
 0x8e2   :  { %6694 = vrot.lane.b32.xlu0 %v16781_v47, %s11634_s9  ;;  %v5467_v28 = vmul.f32 %v11367_v57, %v14937_v42  ;;  %v15093_v25 = vpop.eup %11368  ;;  %11378 = vrcp.f32 %v5393_v26  ;;  %v16979_v57 = vld [vmem:[#allocation61_spill] sm:$0xff]  ;;  %v16980_v26 = vld [vmem:[#allocation43_spill] sm:$0xff] }
 0x8e3   :  { %v5436_v46 = vsel %vm1295_vm1, %v15093_v25, 0.0 }
 0x8e4   :  { %v5390_v43 = vpop.xlane.xlu0 %5389  ;;  %10578 = vmatprep.mubr.msk.f32.mxu0 %vm1295_vm1, %v5467_v28  ;;  %v16981_v28 = vld [vmem:[#allocation40_spill] sm:$0xff] }
 0x8e5   :  { %11380 = vrcp.f32 %v5390_v43  ;;  %10579 = vmatmul.mubr.msk.f32.vlgmr.msra.gmra.mxu0 %vm1295_vm1, %v5469_v33  ;;  %v11371_v0 = vpop.eup %11370  ;;  %v16982_v33 = vld [vmem:[#allocation28_spill] sm:$0xff]  ;;  %v16983_v43 = vld [vmem:[#allocation78_spill] sm:$0xff] }
 0x8e6   :  { %6519 = vrot.lane.b32.xlu0 %v16783_v14, %s11634_s9  ;;  %10619 = vmatpush3.msra.mxu0 %v14389_v49  ;;  %v5994_v14 = vpop.permute.xlu1 %5993  ;;  %v16962_v49 = vld [vmem:[#allocation145_spill] sm:$0xff]  ;;  %v5473_v2 = vmul.f32 %v11371_v0, %v14941_v24  ;;  %v16985_v0 = vld [vmem:[#allocation68_spill] sm:$0xff] }
 0x8e7   :  { %10620 = vmatprep.subr.mxu0 %v14713_v11 }
 0x8e8   :  { %10621 = vmatpush3.msra.mxu0 %v14713_v11  ;;  %v5996_v47 = vpop.permute.xlu0 %5995  ;;  %5437 = vadd.xlane.f32.xlu1 %v5436_v46 }
 0x8e9   :  { %10622 = vmatprep.subr.mxu0 %v14393_v30  ;;  %10654 = vmatprep.subr.mxu1 %v5996_v47  ;;  %v11373_v42 = vpop.eup %11372 }
 0x8ea   :  { %6692 = vrot.lane.b32.xlu0 %v16961_v7, %s11634_s9  ;;  %10623 = vmatpush3.msra.mxu0 %v14393_v30  ;;  %v5471_v39 = vmul.f32 %v11373_v42, %v14947_v32  ;;  %v11375_v11 = vpop.eup %11374  ;;  %v16964_v30 = vld [vmem:[#allocation31_spill] sm:$0xff] }
 0x8eb   :  { %10655 = vmatpush3.msra.mxu1 %v5996_v47  ;;  %10624 = vmatprep.subr.mxu0 %v16962_v49  ;;  %v5477_v59 = vmul.f32 %v11375_v11, %v14945_v55  ;;  %v16984_v47 = vld [vmem:[#allocation65_spill] sm:$0xff] }
 0x8ec   :  { %10656 = vmatprep.subr.mxu1 %v5994_v14  ;;  %10625 = vmatpush3.msra.mxu0 %v16962_v49  ;;  %v16987_v49 = vld [vmem:[#allocation69_spill] sm:$0xff] }
 0x8ed   :  { %10657 = vmatpush3.msra.mxu1 %v5994_v14  ;;  %10581 = vmatprep.mubr.msk.f32.mxu0 %vm1295_vm1, %v5471_v39  ;;  %v16986_v14 = vld [vmem:[#allocation30_spill] sm:$0xff] }
 0x8ee   :  { %v11377_v62 = vpop.eup %11376  ;;  %10626 = vmatprep.subr.mxu0 %v16963_v22  ;;  %6676 = vrot.lane.b32.xlu0 %v16964_v30, %s11634_s9 }
 0x8ef   :  { %10582 = vmatmul.mubr.msk.f32.gmra.mxu0 %vm1295_vm1, %v5473_v2  ;;  %v5475_v20 = vmul.f32 %v11377_v62, %v14955_v15  ;;  %v11379_v32 = vpop.eup %11378  ;;  %v16988_v2 = vld [vmem:[#allocation62_spill] sm:$0xff]  ;;  %v16989_v62 = vld [vmem:[#allocation84_spill] sm:$0xff] }
 0x8f0   :  { %10627 = vmatpush3.msra.mxu0 %v16963_v22  ;;  %v5481_v55 = vmul.f32 %v11379_v32, %v14953_v56  ;;  %v16973_v56 = vld [vmem:[#allocation49_spill] sm:$0xff]  ;;  %v16991_v32 = vld [vmem:[#allocation76_spill] sm:$0xff] }
 0x8f1   :  { %10628 = vmatprep.subr.mxu0 %v16965_v48  ;;  %10584 = vmatprep.mubr.msk.f32.mxu0 %vm1295_vm1, %v5475_v20  ;;  %v16990_v20 = vld [vmem:[#allocation50_spill] sm:$0xff] }
 0x8f2   :  { %v11381_v24 = vpop.eup %11380  ;;  %10629 = vmatpush3.msra.mxu0 %v16965_v48  ;;  %6867 = vrot.lane.b32.xlu0 %v16966_v5, %s11634_s9  ;;  %v16993_v5 = vld [vmem:[#allocation54_spill] sm:$0xff] }
 0x8f3   :  { %10630 = vmatprep.subr.mxu0 %v16967_v36  ;;  %10585 = vmatmul.mubr.msk.f32.gmra.mxu0 %vm1295_vm1, %v5477_v59  ;;  %v5479_v15 = vmul.f32 %v11381_v24, %v14965_v13  ;;  %v16970_v13 = vld [vmem:[#allocation17_spill] sm:$0xff] }
 0x8f4   :  { %10631 = vmatpush3.msra.mxu0 %v16967_v36 }
 0x8f5   :  { %10632 = vmatprep.subr.mxu0 %v16968_v16  ;;  %10587 = vmatprep.mubr.msk.f32.mxu0 %vm1295_vm1, %v5479_v15 }
 0x8f6   :  { %10633 = vmatpush3.msra.mxu0 %v16968_v16  ;;  %6680 = vrot.lane.b32.xlu0 %v16969_v63, %s11634_s9  ;;  %v16994_v63 = vld [vmem:[#allocation53_spill] sm:$0xff] }
 0x8f7   :  { %10588 = vmatmul.mubr.msk.f32.gmra.mxu0 %vm1295_vm1, %v5481_v55  ;;  %10674 = vmatprep.subr.mxu0 %v15129_v38 }
 0x8f9   :  { %6513 = vrot.lane.b32.xlu1 %v16970_v13, %s11634_s9 }
 0x8fa   :  { %6865 = vrot.lane.b32.xlu0 %v16971_v23, %s11634_s9 }
 0x8fd   :  { %6873 = vrot.lane.b32.xlu1 %v16972_v54, %s11634_s9 }
 0x8fe   :  { %6684 = vrot.lane.b32.xlu0 %v16973_v56, %s11634_s9 }
 0x901   :  { %6517 = vrot.lane.b32.xlu1 %v16974_v21, %s11634_s9  ;;  %v16996_v21 = vld [vmem:[#allocation75_spill] sm:$0xff] }
 0x902   :  { %6863 = vrot.lane.b32.xlu0 %v16975_v19, %s11634_s9 }
 0x905   :  { %6871 = vrot.lane.b32.xlu1 %v16976_v4, %s11634_s9  ;;  %v16997_v4 = vld [vmem:[#allocation93_spill] sm:$0xff] }
 0x906   :  { %6688 = vrot.lane.b32.xlu0 %v16977_v6, %s11634_s9 }
 0x909   :  { %6521 = vrot.lane.b32.xlu1 %v16978_v8, %s11634_s9 }
 0x90a   :  { %6861 = vrot.lane.b32.xlu0 %v16979_v57, %s11634_s9  ;;  %v6144_v57 = vld [vmem:[#allocation7 + $0x50] sm:$0xff] }
 0x90d   :  { %6869 = vrot.lane.b32.xlu1 %v16980_v26, %s11634_s9  ;;  %v16998_v26 = vld [vmem:[#allocation97_spill] sm:$0xff] }
 0x90e   :  { %6845 = vrot.lane.b32.xlu0 %v16981_v28, %s11634_s9 }
 0x911   :  { %6678 = vrot.lane.b32.xlu1 %v16982_v33, %s11634_s9  ;;  %v16999_v33 = vld [vmem:[#allocation64_spill] sm:$0xff] }
 0x912   :  { %7036 = vrot.lane.b32.xlu0 %v16983_v43, %s11634_s9 }
 0x914   :  { %v5420_v46 = vpop.xlane.xlu1 %5419 }
 0x915   :  { %11382 = vrcp.f32 %v5420_v46  ;;  %7044 = vrot.lane.b32.xlu1 %v16984_v47, %s11634_s9 }
 0x916   :  { %6851 = vrot.lane.b32.xlu0 %v16985_v0, %s11634_s9  ;;  %v6143_v0 = vld [vmem:[#allocation7 + $0x48] sm:$0xff] }
 0x918   :  { %v5426_v42 = vpop.xlane.xlu1 %5425 }
 0x919   :  { %11384 = vrcp.f32 %v5426_v42  ;;  %v5423_v7 = vpop.xlane.xlu0 %5422  ;;  %6682 = vrot.lane.b32.xlu1 %v16986_v14, %s11634_s9 }
 0x91a   :  { %11386 = vrcp.f32 %v5423_v7  ;;  %6853 = vrot.lane.b32.xlu0 %v16987_v49, %s11634_s9 }
 0x91b   :  { %11388 = vrcp.f32 %v15052_v3 }
 0x91c   :  { %v5432_v39 = vpop.xlane.xlu1 %5431 }
 0x91d   :  { %11390 = vrcp.f32 %v5432_v39  ;;  %v5429_v11 = vpop.xlane.xlu0 %5428  ;;  %7042 = vrot.lane.b32.xlu1 %v16988_v2, %s11634_s9  ;;  %v17003_v2 = vld [vmem:[#allocation165_spill] sm:$0xff] }
 0x91e   :  { %11392 = vrcp.f32 %v5429_v11  ;;  %7032 = vrot.lane.b32.xlu0 %v16989_v62, %s11634_s9  ;;  %v6142_v11 = vld [vmem:[#allocation7 + $0x40] sm:$0xff] }
 0x91f   :  { %11394 = vrcp.f32 %v15058_v41  ;;  %v16992_v41 = vld [vmem:[#allocation71_spill] sm:$0xff] }
 0x920   :  { %v5990_v22 = vpop.permute.xlu1 %5989  ;;  %11396 = vrcp.f32 %v15062_v40 }
 0x921   :  { %v5435_v30 = vpop.xlane.xlu0 %5434  ;;  %6686 = vrot.lane.b32.xlu1 %v16990_v20, %s11634_s9  ;;  %v17005_v20 = vld [vmem:[#allocation77_spill] sm:$0xff] }
 0x922   :  { %v11383_v3 = vpop.eup %11382  ;;  %11398 = vrcp.f32 %v5435_v30  ;;  %6859 = vrot.lane.b32.xlu0 %v16991_v32, %s11634_s9 }
 0x923   :  { %11400 = vrcp.f32 %v15068_v27  ;;  %v5499_v48 = vmul.f32 %v11383_v3, %v15004_v29  ;;  %v17006_v3 = vld [vmem:[#allocation72_spill] sm:$0xff] }
 0x924   :  { %v6536_v59 = vpop.permute.xlu1 %6535  ;;  %11402 = vrcp.f32 %v15070_v52  ;;  %v16995_v52 = vld [vmem:[#allocation89_spill] sm:$0xff] }
 0x925   :  { %v15188_v24 = vpop.xlane.xlu0 %5440  ;;  %7040 = vrot.lane.b32.xlu1 %v16992_v41, %s11634_s9  ;;  %10634 = vmatprep.mubr.msk.f32.mxu0 %vm1295_vm1, %v5499_v48  ;;  %11404 = vrcp.f32 %v15074_v37  ;;  %v17008_v41 = vld [vmem:[#allocation73_spill] sm:$0xff] }
 0x926   :  { %v11385_v40 = vpop.eup %11384  ;;  %7014 = vrot.lane.b32.xlu0 %v16993_v5, %s11634_s9  ;;  %11406 = vrcp.f32 %v15079_v51  ;;  %v17009_v5 = vld [vmem:[#allocation86_spill] sm:$0xff] }
 0x927   :  { %v11387_v36 = vpop.eup %11386  ;;  %v5503_v27 = vmul.f32 %v11385_v40, %v15008_v12  ;;  %11408 = vrcp.f32 %v15188_v24 }
 0x928   :  { %v5501_v29 = vmul.f32 %v11387_v36, %v15010_v61  ;;  %v15199_v15 = vpop.permute.xlu1 %6531  ;;  %v11389_v16 = vpop.eup %11388  ;;  %v17010_v36 = vld [vmem:[#allocation85_spill] sm:$0xff] }
 0x929   :  { %v5992_v55 = vpop.permute.xlu0 %5991  ;;  %6690 = vrot.lane.b32.xlu1 %v16994_v63, %s11634_s9  ;;  %v5517_v51 = vmul.f32 %v11389_v16, %v14891_v1  ;;  %v17012_v16 = vld [vmem:[#allocation91_spill] sm:$0xff] }
 0x92a   :  { %v11391_v13 = vpop.eup %11390  ;;  %7018 = vrot.lane.b32.xlu0 %v16995_v52, %s11634_s9  ;;  %10635 = vmatmul.mubr.msk.f32.vlgmr.msra.gmra.mxu0 %vm1295_vm1, %v5501_v29  ;;  %v17011_v29 = vld [vmem:[#allocation87_spill] sm:$0xff]  ;;  %v17014_v52 = vld [vmem:[#allocation100_spill] sm:$0xff] }
 0x92b   :  { %v11393_v37 = vpop.eup %11392  ;;  %10658 = vmatprep.subr.mxu1 %v5992_v55  ;;  %10637 = vmatprep.mubr.msk.f32.mxu0 %vm1295_vm1, %v5503_v27  ;;  %v5507_v54 = vmul.f32 %v11391_v13, %v15014_v34  ;;  %v17013_v63 = vld [vmem:[#allocation95_spill] sm:$0xff] }
 0x92c   :  { %v11395_v12 = vpop.eup %11394  ;;  %10659 = vmatpush3.msra.mxu1 %v5992_v55  ;;  %v15208_v61 = vpop.permute.xlu1 %6527  ;;  %v5505_v23 = vmul.f32 %v11393_v37, %v15018_v60  ;;  %10675 = vmatpush3.msra.mxu0 %v15129_v38 }
 0x92d   :  { %10660 = vmatprep.subr.mxu1 %v5990_v22  ;;  %v6538_v56 = vpop.permute.xlu0 %6537  ;;  %7038 = vrot.lane.b32.xlu1 %v16996_v21, %s11634_s9  ;;  %v11397_v19 = vpop.eup %11396  ;;  %v5519_v34 = vmul.f32 %v11395_v12, %v14903_v10  ;;  %v17015_v12 = vld [vmem:[#allocation67_spill] sm:$0xff]  ;;  %v17018_v21 = vld [vmem:[#allocation82_spill] sm:$0xff] }
 0x92e   :  { %10661 = vmatpush3.msra.mxu1 %v5990_v22  ;;  %7022 = vrot.lane.b32.xlu0 %v16997_v4, %s11634_s9  ;;  %v5521_v10 = vmul.f32 %v11397_v19, %v14899_v35  ;;  %v17000_v35 = vld [vmem:[#allocation63_spill] sm:$0xff]  ;;  %v17019_v4 = vld [vmem:[#allocation88_spill] sm:$0xff] }
 0x92f   :  { %v11399_v6 = vpop.eup %11398  ;;  %10638 = vmatmul.mubr.msk.f32.gmra.mxu0 %vm1295_vm1, %v5505_v23  ;;  %10663 = vmatmul.mubr.msk.f32.vlgmr.msra.gmra.mxu1 %vm1295_vm1, %v5517_v51  ;;  %v17016_v23 = vld [vmem:[#allocation74_spill] sm:$0xff]  ;;  %v17017_v51 = vld [vmem:[#allocation79_spill] sm:$0xff] }
 0x930   :  { %v11401_v60 = vpop.eup %11400  ;;  %10730 = vmatprep.subr.msk.mxu1 %vm682_vm0, %v6538_v56  ;;  %10640 = vmatprep.mubr.msk.f32.mxu0 %vm1295_vm1, %v5507_v54  ;;  %v15223_v1 = vpop.permute.xlu1 %6523  ;;  %v5509_v38 = vmul.f32 %v11399_v6, %v15024_v17 }
 0x931   :  { %10665 = vmatprep.mubr.msk.f32.mxu1 %vm1295_vm1, %v5519_v34  ;;  %10731 = vmatpush3.xpose.msk.msra.mxu1 %vm682_vm0, %v6538_v56  ;;  %v6534_v8 = vpop.permute.xlu0 %6533  ;;  %v11403_v28 = vpop.eup %11402  ;;  %v5523_v17 = vmul.f32 %v11401_v60, %v14911_v58  ;;  %v17001_v58 = vld [vmem:[#allocation66_spill] sm:$0xff] }
 0x932   :  { %10732 = vmatprep.subr.msk.mxu1 %vm682_vm0, %v6536_v59  ;;  %7026 = vrot.lane.b32.xlu0 %v16998_v26, %s11634_s9  ;;  %v11405_v43 = vpop.eup %11404  ;;  %v5525_v42 = vmul.f32 %v11403_v28, %v14907_v18  ;;  %v17002_v18 = vld [vmem:[#allocation70_spill] sm:$0xff] }
 0x933   :  { %6847 = vrot.lane.b32.xlu1 %v16999_v33, %s11634_s9  ;;  %10641 = vmatmul.mubr.msk.f32.gmra.mxu0 %vm1295_vm1, %v5509_v38  ;;  %v11407_v7 = vpop.eup %11406  ;;  %v5527_v14 = vmul.f32 %v11405_v43, %v14919_v44  ;;  %v17004_v44 = vld [vmem:[#allocation81_spill] sm:$0xff] }
 0x934   :  { %10666 = vmatmul.mubr.msk.f32.gmra.mxu1 %vm1295_vm1, %v5521_v10  ;;  %v6707_v46 = vpop.permute.xlu1 %6706  ;;  %10676 = vmatprep.subr.mxu0 %v6144_v57  ;;  %v5529_v62 = vmul.f32 %v11407_v7, %v17003_v2  ;;  %v11409_v28 = vpop.eup %11408 }
 0x935   :  { %10668 = vmatprep.mubr.msk.f32.mxu1 %vm1295_vm1, %v5523_v17  ;;  %10733 = vmatpush3.xpose.msk.msra.mxu1 %vm682_vm0, %v6536_v59  ;;  %v6530_v47 = vpop.permute.xlu0 %6529  ;;  %v17007_v59 = vld [vmem:[#allocation80_spill] sm:$0xff] }
 0x936   :  { %10734 = vmatprep.subr.msk.mxu1 %vm682_vm0, %v6534_v8  ;;  %7549 = vrot.lane.b32.xlu0 %v17000_v35, %s11634_s9 }
 0x937   :  { %6849 = vrot.lane.b32.xlu1 %v17001_v58, %s11634_s9  ;;  %10677 = vmatpush3.msra.mxu0 %v6144_v57 }
 0x938   :  { %10669 = vmatmul.mubr.msk.f32.gmra.mxu1 %vm1295_vm1, %v5525_v42  ;;  %v6705_v49 = vpop.permute.xlu1 %6704  ;;  %10678 = vmatprep.subr.mxu0 %v6143_v0 }
 0x939   :  { %10671 = vmatprep.mubr.msk.f32.mxu1 %vm1295_vm1, %v5527_v14  ;;  %10735 = vmatpush3.xpose.msk.msra.mxu1 %vm682_vm0, %v6534_v8  ;;  %v6526_v39 = vpop.permute.xlu0 %6525 }
 0x93a   :  { %10736 = vmatprep.subr.msk.mxu1 %vm682_vm0, %v15199_v15  ;;  %7545 = vrot.lane.b32.xlu0 %v17002_v18, %s11634_s9 }
 0x93b   :  { %7034 = vrot.lane.b32.xlu1 %v17004_v44, %s11634_s9  ;;  %10679 = vmatpush3.msra.mxu0 %v6143_v0 }
 0x93c   :  { %10672 = vmatmul.mubr.msk.f32.gmra.mxu1 %vm1295_vm1, %v5529_v62  ;;  %v6701_v22 = vpop.permute.xlu1 %6700  ;;  %10680 = vmatprep.subr.mxu0 %v6142_v11 }
 0x93d   :  { %10737 = vmatpush3.xpose.msk.msra.mxu1 %vm682_vm0, %v15199_v15  ;;  %v6508_v30 = vpop.permute.xlu0 %6507  ;;  %10681 = vmatpush3.msra.mxu0 %v6142_v11 }
 0x93e   :  { %10738 = vmatprep.subr.msk.mxu1 %vm682_vm0, %v6530_v47  ;;  %7541 = vrot.lane.b32.xlu0 %v17005_v20, %s11634_s9 }
 0x93f   :  { %6855 = vrot.lane.b32.xlu1 %v17006_v3, %s11634_s9  ;;  %10746 = vmatprep.mubr.msk.f32.mxu1 %vm682_vm0, %v6508_v30 }
 0x940   :  { %v15265_v32 = vpop.permute.xlu1 %6875 }
 0x941   :  { %10739 = vmatpush3.xpose.msk.msra.mxu1 %vm682_vm0, %v6530_v47  ;;  %v6510_v48 = vpop.permute.xlu0 %6509  ;;  %10786 = vmatprep.subr.msk.mxu0 %vm682_vm0, %v15265_v32 }
 0x942   :  { %10740 = vmatprep.subr.msk.mxu1 %vm682_vm0, %v15208_v61  ;;  %7537 = vrot.lane.b32.xlu0 %v17007_v59, %s11634_s9  ;;  %v10608_v59 = vpop.f32.mrf.mxu1 }
 0x943   :  { %6857 = vrot.lane.b32.xlu1 %v17008_v41, %s11634_s9 }
 0x945   :  { %10741 = vmatpush3.xpose.msk.msra.mxu1 %vm682_vm0, %v15208_v61  ;;  %v6703_v40 = vpop.permute.xlu0 %6702 }
 0x946   :  { %10742 = vmatprep.subr.msk.mxu1 %vm682_vm0, %v6526_v39  ;;  %7702 = vrot.lane.b32.xlu0 %v17009_v5, %s11634_s9  ;;  %v5797_v5 = vpop.f32.mrf.mxu1 }
 0x947   :  { %7030 = vrot.lane.b32.xlu1 %v17010_v36, %s11634_s9 }
 0x949   :  { %10743 = vmatpush3.xpose.msk.msra.mxu1 %vm682_vm0, %v6526_v39  ;;  %v6699_v27 = vpop.permute.xlu0 %6698 }
 0x94a   :  { %10744 = vmatprep.subr.msk.mxu1 %vm682_vm0, %v15223_v1 }
 0x94b   :  { %7016 = vrot.lane.b32.xlu1 %v17011_v29, %s11634_s9 }
 0x94d   :  { %10745 = vmatpush3.xpose.msk.msra.mxu1 %vm682_vm0, %v15223_v1  ;;  %v6512_v15 = vpop.permute.xlu0 %6511 }
 0x94e   :  { %10758 = vmatprep.subr.msk.mxu1 %vm682_vm0, %v6707_v46 }
 0x94f   :  { %7020 = vrot.lane.b32.xlu1 %v17012_v16, %s11634_s9 }
 0x950   :  { %10747 = vmatmul.mubr.msk.f32.vlgmr.msra.gmra.mxu1 %vm682_vm0, %v6510_v48 }
 0x951   :  { %10749 = vmatprep.mubr.msk.f32.mxu1 %vm682_vm0, %v6512_v15  ;;  %10759 = vmatpush3.xpose.msk.msra.mxu1 %vm682_vm0, %v6707_v46  ;;  %v6697_v55 = vpop.permute.xlu0 %6696  ;;  %v5513_v46 = vmul.f32 %v11409_v28, %v15028_v45  ;;  %v10611_v15 = vpop.f32.mrf.mxu1 }
 0x952   :  { %10760 = vmatprep.subr.msk.mxu1 %vm682_vm0, %v6705_v49 }
 0x953   :  { %7024 = vrot.lane.b32.xlu1 %v17013_v63, %s11634_s9 }
 0x955   :  { %10761 = vmatpush3.xpose.msk.msra.mxu1 %vm682_vm0, %v6705_v49  ;;  %v6516_v13 = vpop.permute.xlu0 %6515 }
 0x956   :  { %10762 = vmatprep.subr.msk.mxu1 %vm682_vm0, %v6703_v40 }
 0x957   :  { %7028 = vrot.lane.b32.xlu1 %v17014_v52, %s11634_s9 }
 0x959   :  { %10763 = vmatpush3.xpose.msk.msra.mxu1 %vm682_vm0, %v6703_v40  ;;  %v6695_v37 = vpop.permute.xlu0 %6694 }
 0x95a   :  { %10764 = vmatprep.subr.msk.mxu1 %vm682_vm0, %v6701_v22 }
 0x95b   :  { %7547 = vrot.lane.b32.xlu1 %v17015_v12, %s11634_s9 }
 0x95d   :  { %10765 = vmatpush3.xpose.msk.msra.mxu1 %vm682_vm0, %v6701_v22  ;;  %v6520_v61 = vpop.permute.xlu0 %6519 }
 0x95e   :  { %10766 = vmatprep.subr.msk.mxu1 %vm682_vm0, %v6699_v27 }
 0x95f   :  { %7543 = vrot.lane.b32.xlu1 %v17016_v23, %s11634_s9 }
 0x961   :  { %10767 = vmatpush3.xpose.msk.msra.mxu1 %vm682_vm0, %v6699_v27  ;;  %v6693_v54 = vpop.permute.xlu0 %6692 }
 0x962   :  { %10768 = vmatprep.subr.msk.mxu1 %vm682_vm0, %v6697_v55 }
 0x963   :  { %7539 = vrot.lane.b32.xlu1 %v17017_v51, %s11634_s9 }
 0x965   :  { %10769 = vmatpush3.xpose.msk.msra.mxu1 %vm682_vm0, %v6697_v55  ;;  %v6677_v56 = vpop.permute.xlu0 %6676 }
 0x966   :  { %10770 = vmatprep.subr.msk.mxu1 %vm682_vm0, %v6695_v37 }
 0x967   :  { %7535 = vrot.lane.b32.xlu1 %v17018_v21, %s11634_s9 }
 0x969   :  { %10771 = vmatpush3.xpose.msk.msra.mxu1 %vm682_vm0, %v6695_v37  ;;  %v15320_v19 = vpop.permute.xlu0 %6867 }
 0x96a   :  { %10772 = vmatprep.subr.msk.mxu1 %vm682_vm0, %v6693_v54 }
 0x96b   :  { %7700 = vrot.lane.b32.xlu1 %v17019_v4, %s11634_s9 }
 0x96d   :  { %10773 = vmatpush3.xpose.msk.msra.mxu1 %vm682_vm0, %v6693_v54  ;;  %v6681_v6 = vpop.permute.xlu0 %6680 }
 0x971   :  { %v15327_v34 = vpop.permute.xlu0 %6865  ;;  %v5438_v60 = vpop.xlane.xlu1 %5437 }
 0x972   :  { %11410 = vrcp.f32 %v5438_v60 }
 0x975   :  { %v6685_v1 = vpop.permute.xlu0 %6684  ;;  %v6514_v38 = vpop.permute.xlu1 %6513 }
 0x976   :  { %10750 = vmatmul.mubr.msk.f32.gmra.mxu1 %vm682_vm0, %v6514_v38 }
 0x977   :  { %10752 = vmatprep.mubr.msk.f32.mxu1 %vm682_vm0, %v6516_v13  ;;  %v5807_v13 = vpop.f32.mrf.mxu1 }
 0x979   :  { %v15331_v8 = vpop.permute.xlu0 %6863  ;;  %v6874_v57 = vpop.permute.xlu1 %6873 }
 0x97a   :  { %v10614_v37 = vpop.f32.mrf.mxu1 }
 0x97d   :  { %v6689_v26 = vpop.permute.xlu0 %6688  ;;  %v6518_v10 = vpop.permute.xlu1 %6517 }
 0x97e   :  { %10753 = vmatmul.mubr.msk.f32.gmra.mxu1 %vm682_vm0, %v6518_v10 }
 0x97f   :  { %v11411_v33 = vpop.eup %11410  ;;  %10755 = vmatprep.mubr.msk.f32.mxu1 %vm682_vm0, %v6520_v61  ;;  %v5817_v61 = vpop.f32.mrf.mxu1 }
 0x980   :  { %v5511_v24 = vmul.f32 %v11411_v33, %v15093_v25 }
 0x981   :  { %v15336_v17 = vpop.permute.xlu0 %6861  ;;  %v6872_v43 = vpop.permute.xlu1 %6871 }
 0x982   :  { %10643 = vmatprep.mubr.msk.f32.mxu0 %vm1295_vm1, %v5511_v24  ;;  %v10617_v51 = vpop.f32.mrf.mxu1 }
 0x983   :  { %10644 = vmatmul.mubr.msk.f32.gmra.mxu0 %vm1295_vm1, %v5513_v46 }
 0x984   :  { %v5827_v21 = vpop.f32.mrf.mxu1 }
 0x985   :  { %v15341_v47 = vpop.permute.xlu0 %6845  ;;  %v6522_v0 = vpop.permute.xlu1 %6521 }
 0x986   :  { %10756 = vmatmul.mubr.msk.f32.gmra.mxu1 %vm682_vm0, %v6522_v0 }
 0x987   :  { %10774 = vmatprep.mubr.msk.f32.mxu1 %vm682_vm0, %v6677_v56 }
 0x989   :  { %v7037_v35 = vpop.permute.xlu0 %7036  ;;  %v6870_v42 = vpop.permute.xlu1 %6869 }
 0x98d   :  { %v6679_v7 = vpop.permute.xlu1 %6678  ;;  %v15345_v25 = vpop.permute.xlu0 %6851 }
 0x98e   :  { %10775 = vmatmul.mubr.msk.f32.vlgmr.msra.gmra.mxu1 %vm682_vm0, %v6679_v7  ;;  %v15447_v7 = vld [vmem:[%s16284_s3 + $0xc0] sm:$0xff] }
 0x98f   :  { %10777 = vmatprep.mubr.msk.f32.mxu1 %vm682_vm0, %v6681_v6 }
 0x991   :  { %v7045_v45 = vpop.permute.xlu1 %7044  ;;  %v15351_v58 = vpop.permute.xlu0 %6853 }
 0x992   :  { %10814 = vmatprep.subr.msk.mxu1 %vm682_vm0, %v7045_v45 }
 0x993   :  { %10815 = vmatpush3.xpose.msk.msra.mxu1 %vm682_vm0, %v7045_v45 }
 0x995   :  { %v6683_v14 = vpop.permute.xlu1 %6682  ;;  %v7033_v39 = vpop.permute.xlu0 %7032 }
 0x996   :  { %10778 = vmatmul.mubr.msk.f32.gmra.mxu1 %vm682_vm0, %v6683_v14 }
 0x997   :  { %10780 = vmatprep.mubr.msk.f32.mxu1 %vm682_vm0, %v6685_v1 }
 0x999   :  { %v7043_v49 = vpop.permute.xlu1 %7042  ;;  %v15359_v18 = vpop.permute.xlu0 %6859 }
 0x99a   :  { %10816 = vmatprep.subr.msk.mxu1 %vm682_vm0, %v7043_v49 }
 0x99b   :  { %10817 = vmatpush3.xpose.msk.msra.mxu1 %vm682_vm0, %v7043_v49 }
 0x99d   :  { %v6687_v11 = vpop.permute.xlu1 %6686  ;;  %v7015_v44 = vpop.permute.xlu0 %7014 }
 0x99e   :  { %10781 = vmatmul.mubr.msk.f32.gmra.mxu1 %vm682_vm0, %v6687_v11 }
 0x99f   :  { %10783 = vmatprep.mubr.msk.f32.mxu1 %vm682_vm0, %v6689_v26 }
 0x9a1   :  { %v7041_v2 = vpop.permute.xlu1 %7040  ;;  %v7019_v27 = vpop.permute.xlu0 %7018 }
 0x9a2   :  { %10818 = vmatprep.subr.msk.mxu1 %vm682_vm0, %v7041_v2 }
 0x9a3   :  { %10819 = vmatpush3.xpose.msk.msra.mxu1 %vm682_vm0, %v7041_v2  ;;  %v15462_v2 = vld [vmem:[%s16284_s3 + $0xd8] sm:$0xff] }
 0x9a5   :  { %v6691_v62 = vpop.permute.xlu1 %6690  ;;  %v10580_v22 = vpop.f32.mrf.mxu0 }
 0x9a6   :  { %10784 = vmatmul.mubr.msk.f32.gmra.mxu1 %vm682_vm0, %v6691_v62  ;;  %v7023_v52 = vpop.permute.xlu0 %7022 }
 0x9a7   :  { %10830 = vmatprep.mubr.msk.f32.mxu1 %vm682_vm0, %v7015_v44  ;;  %v5644_v30 = vpop.f32.mrf.mxu0  ;;  %v15467_v44 = vld [vmem:[%s16284_s3 + $0xd0] sm:$0xff] }
 0x9a8   :  { %10682 = vmatprep.mubr.msk.f32.mxu0 %vm682_vm0, %v5644_v30 }
 0x9a9   :  { %v7039_v20 = vpop.permute.xlu1 %7038  ;;  %10683 = vmatmul.mubr.msk.f32.vlgmr.msra.gmra.mxu0 %vm682_vm0, %v10580_v22 }
 0x9aa   :  { %10820 = vmatprep.subr.msk.mxu1 %vm682_vm0, %v7039_v20  ;;  %10787 = vmatpush3.xpose.msk.msra.mxu0 %vm682_vm0, %v15265_v32  ;;  %v7027_v23 = vpop.permute.xlu0 %7026 }
 0x9ab   :  { %10821 = vmatpush3.xpose.msk.msra.mxu1 %vm682_vm0, %v7039_v20  ;;  %10788 = vmatprep.subr.msk.mxu0 %vm682_vm0, %v6874_v57 }
 0x9ac   :  { %10822 = vmatprep.subr.msk.mxu1 %vm682_vm0, %v7037_v35 }
 0x9ad   :  { %v15373_v3 = vpop.permute.xlu1 %6847 }
 0x9ae   :  { %10789 = vmatpush3.xpose.msk.msra.mxu0 %vm682_vm0, %v6874_v57 }
 0x9af   :  { %v10583_v48 = vpop.f32.mrf.mxu0  ;;  %10823 = vmatpush3.xpose.msk.msra.mxu1 %vm682_vm0, %v7037_v35  ;;  %10790 = vmatprep.subr.msk.mxu0 %vm682_vm0, %v6872_v43  ;;  %v15442_v35 = vld [vmem:[%s16284_s3 + $0xc8] sm:$0xff] }
 0x9b1   :  { %v5654_v41 = vpop.f32.mrf.mxu0  ;;  %v15379_v32 = vpop.permute.xlu1 %6849 }
 0x9b2   :  { %10685 = vmatprep.mubr.msk.f32.mxu0 %vm682_vm0, %v5654_v41  ;;  %10791 = vmatpush3.xpose.msk.msra.mxu0 %vm682_vm0, %v6872_v43 }
 0x9b3   :  { %v10586_v40 = vpop.f32.mrf.mxu0  ;;  %10686 = vmatmul.mubr.msk.f32.gmra.mxu0 %vm682_vm0, %v10583_v48  ;;  %10792 = vmatprep.subr.msk.mxu0 %vm682_vm0, %v6870_v42 }
 0x9b5   :  { %v5664_v36 = vpop.f32.mrf.mxu0  ;;  %v7035_v29 = vpop.permute.xlu1 %7034 }
 0x9b6   :  { %10688 = vmatprep.mubr.msk.f32.mxu0 %vm682_vm0, %v5664_v36  ;;  %10824 = vmatprep.subr.msk.mxu1 %vm682_vm0, %v7035_v29 }
 0x9b7   :  { %v10589_v16 = vpop.f32.mrf.mxu0  ;;  %10689 = vmatmul.mubr.msk.f32.gmra.mxu0 %vm682_vm0, %v10586_v40  ;;  %10825 = vmatpush3.xpose.msk.msra.mxu1 %vm682_vm0, %v7035_v29 }
 0x9b8   :  { %10793 = vmatpush3.xpose.msk.msra.mxu0 %vm682_vm0, %v6870_v42  ;;  %10826 = vmatprep.subr.msk.mxu1 %vm682_vm0, %v7033_v39 }
 0x9b9   :  { %10794 = vmatprep.subr.msk.mxu0 %vm682_vm0, %v15320_v19  ;;  %v5674_v55 = vpop.f32.mrf.mxu0  ;;  %v15393_v63 = vpop.permute.xlu1 %6855 }
 0x9ba   :  { %10691 = vmatprep.mubr.msk.f32.mxu0 %vm682_vm0, %v5674_v55 }
 0x9bb   :  { %10692 = vmatmul.mubr.msk.f32.gmra.mxu0 %vm682_vm0, %v10589_v16  ;;  %10827 = vmatpush3.xpose.msk.msra.mxu1 %vm682_vm0, %v7033_v39 }
 0x9bc   :  { %10795 = vmatpush3.xpose.msk.msra.mxu0 %vm682_vm0, %v15320_v19  ;;  %10694 = vmatprep.mubr.msk.f32.mxu0 %vm682_vm0, %v5797_v5  ;;  %v15419_v19 = vpop.permute.xlu0 %7549  ;;  %v15487_v5 = vld [vmem:[%s16284_s3 + $0xe0] sm:$0xff] }
 0x9bd   :  { %10796 = vmatprep.subr.msk.mxu0 %vm682_vm0, %v15327_v34  ;;  %v15402_v12 = vpop.permute.xlu1 %6857 }
 0x9bf   :  { %10695 = vmatmul.mubr.msk.f32.gmra.mxu0 %vm682_vm0, %v10608_v59  ;;  %v15480_v59 = vld [vmem:[%s16284_s3 + $0xe8] sm:$0xff] }
 0x9c0   :  { %10797 = vmatpush3.xpose.msk.msra.mxu0 %vm682_vm0, %v15327_v34  ;;  %10697 = vmatprep.mubr.msk.f32.mxu0 %vm682_vm0, %v5807_v13  ;;  %v15502_v13 = vld [vmem:[%s16284_s3 + $0xf8] sm:$0xff] }
 0x9c1   :  { %10798 = vmatprep.subr.msk.mxu0 %vm682_vm0, %v15331_v8  ;;  %v7031_v54 = vpop.permute.xlu1 %7030 }
 0x9c2   :  { %10828 = vmatprep.subr.msk.mxu1 %vm682_vm0, %v7031_v54 }
 0x9c3   :  { %10698 = vmatmul.mubr.msk.f32.gmra.mxu0 %vm682_vm0, %v10611_v15  ;;  %10829 = vmatpush3.xpose.msk.msra.mxu1 %vm682_vm0, %v7031_v54 }
 0x9c4   :  { %10799 = vmatpush3.xpose.msk.msra.mxu0 %vm682_vm0, %v15331_v8  ;;  %10700 = vmatprep.mubr.msk.f32.mxu0 %vm682_vm0, %v5817_v61  ;;  %v15508_v61 = vld [vmem:[%s16284_s3 + $0xf0] sm:$0xff] }
 0x9c5   :  { %10800 = vmatprep.subr.msk.mxu0 %vm682_vm0, %v15336_v17  ;;  %v7017_v56 = vpop.permute.xlu1 %7016 }
 0x9c6   :  { %10831 = vmatmul.mubr.msk.f32.vlgmr.msra.gmra.mxu1 %vm682_vm0, %v7017_v56 }
 0x9c7   :  { %10701 = vmatmul.mubr.msk.f32.gmra.mxu0 %vm682_vm0, %v10614_v37  ;;  %10833 = vmatprep.mubr.msk.f32.mxu1 %vm682_vm0, %v7019_v27 }
 0x9c8   :  { %10801 = vmatpush3.xpose.msk.msra.mxu0 %vm682_vm0, %v15336_v17  ;;  %10703 = vmatprep.mubr.msk.f32.mxu0 %vm682_vm0, %v5827_v21 }
 0x9c9   :  { %10842 = vmatprep.subr.mxu0 %v15419_v19  ;;  %v7021_v4 = vpop.permute.xlu1 %7020 }
 0x9ca   :  { %10834 = vmatmul.mubr.msk.f32.gmra.mxu1 %vm682_vm0, %v7021_v4 }
 0x9cb   :  { %10704 = vmatmul.mubr.msk.f32.gmra.mxu0 %vm682_vm0, %v10617_v51  ;;  %10836 = vmatprep.mubr.msk.f32.mxu1 %vm682_vm0, %v7023_v52 }
 0x9cd   :  { %v7025_v6 = vpop.permute.xlu1 %7024 }
 0x9ce   :  { %10837 = vmatmul.mubr.msk.f32.gmra.mxu1 %vm682_vm0, %v7025_v6  ;;  %v7546_v6 = vpop.permute.xlu0 %7545 }
 0x9cf   :  { %10839 = vmatprep.mubr.msk.f32.mxu1 %vm682_vm0, %v7027_v23 }
 0x9d1   :  { %v7029_v34 = vpop.permute.xlu1 %7028 }
 0x9d2   :  { %10840 = vmatmul.mubr.msk.f32.gmra.mxu1 %vm682_vm0, %v7029_v34  ;;  %v17020_v34 = vld [vmem:[#allocation92_spill] sm:$0xff] }
 0x9d5   :  { %v7548_v4 = vpop.permute.xlu1 %7547 }
 0x9ea   :  { %v10636_v60 = vpop.f32.mrf.mxu0 }
 0x9ec   :  { %v5950_v1 = vpop.f32.mrf.mxu0 }
 0x9ed   :  { %10706 = vmatprep.mubr.msk.f32.mxu0 %vm682_vm0, %v5950_v1  ;;  %v7542_v1 = vpop.permute.xlu0 %7541 }
 0x9ee   :  { %10707 = vmatmul.mubr.msk.f32.gmra.mxu0 %vm682_vm0, %v10636_v60  ;;  %v7544_v60 = vpop.permute.xlu1 %7543 }
 0x9ef   :  { %v10639_v38 = vpop.f32.mrf.mxu0  ;;  %v10664_v57 = vpop.f32.mrf.mxu1 }
 0x9f1   :  { %v5960_v8 = vpop.f32.mrf.mxu0  ;;  %v6103_v28 = vpop.f32.mrf.mxu1 }
 0x9f2   :  { %10709 = vmatprep.mubr.msk.f32.mxu0 %vm682_vm0, %v5960_v8 }
 0x9f3   :  { %v10642_v26 = vpop.f32.mrf.mxu0  ;;  %10710 = vmatmul.mubr.msk.f32.gmra.mxu0 %vm682_vm0, %v10639_v38 }
 0x9f4   :  { %v10667_v33 = vpop.f32.mrf.mxu1 }
 0x9f5   :  { %v5970_v10 = vpop.f32.mrf.mxu0 }
 0x9f6   :  { %10712 = vmatprep.mubr.msk.f32.mxu0 %vm682_vm0, %v5970_v10  ;;  %v6113_v24 = vpop.f32.mrf.mxu1  ;;  %v17025_v10 = vld [vmem:[#allocation111_spill] sm:$0xff] }
 0x9f7   :  { %10713 = vmatmul.mubr.msk.f32.gmra.mxu0 %vm682_vm0, %v10642_v26 }
 0x9f8   :  { %v10670_v17 = vpop.f32.mrf.mxu1 }
 0x9fa   :  { %v6123_v43 = vpop.f32.mrf.mxu1 }
 0x9fc   :  { %v10673_v46 = vpop.f32.mrf.mxu1 }
 0x9fe   :  { %v6133_v0 = vpop.f32.mrf.mxu1 }
 0xa10   :  { %v10748_v42 = vpop.f32.mrf.mxu1 }
 0xa11   :  { %v15450_v45 = vadd.f32 %v10748_v42, %v15442_v35  ;;  %v17030_v42 = vld [vmem:[#allocation18_spill] sm:$0xff] }
 0xa12   :  { %v6637_v14 = vpop.f32.mrf.mxu1 }
 0xa13   :  { %v15453_v49 = vadd.f32 %v6637_v14, %v15447_v7  ;;  %v7186_v39 = vsel %vm1295_vm1, %v15450_v45, -inf }
 0xa14   :  { %7187 = vmax.xlane.f32.xlu1 %v7186_v39 }
 0xa15   :  { %v7183_v11 = vsel %vm1295_vm1, %v15453_v49, -inf }
 0xa16   :  { %7184 = vmax.xlane.f32.xlu0 %v7183_v11 }
 0xa36   :  { %v10751_v62 = vpop.f32.mrf.mxu1 }
 0xa37   :  { %v15470_v22 = vadd.f32 %v10751_v62, %v15462_v2 }
 0xa38   :  { %v6647_v30 = vpop.f32.mrf.mxu1 }
 0xa39   :  { %v15473_v20 = vadd.f32 %v6647_v30, %v15467_v44  ;;  %v7192_v48 = vsel %vm1295_vm1, %v15470_v22, -inf }
 0xa3a   :  { %7193 = vmax.xlane.f32.xlu0 %v7192_v48  ;;  %v17033_v48 = vld [vmem:[#allocation137_spill] sm:$0xff] }
 0xa3b   :  { %v7189_v41 = vsel %vm1295_vm1, %v15473_v20, -inf }
 0xa3e   :  { %7190 = vmax.xlane.f32.xlu0 %v7189_v41  ;;  %v10754_v40 = vpop.f32.mrf.mxu1  ;;  %v17034_v41 = vld [vmem:[#allocation22_spill] sm:$0xff] }
 0xa3f   :  { %v15490_v36 = vadd.f32 %v10754_v40, %v15480_v59  ;;  %v4371_v40 = vadd.f32 %v17034_v41, %v17033_v48 }
 0xa40   :  { %v6657_v27 = vpop.f32.mrf.mxu1 }
 0xa41   :  { %v15493_v29 = vadd.f32 %v6657_v27, %v15487_v5  ;;  %v7198_v15 = vsel %vm1295_vm1, %v15490_v36, -inf }
 0xa42   :  { %7199 = vmax.xlane.f32.xlu1 %v7198_v15 }
 0xa43   :  { %v10645_v16 = vpop.f32.mrf.mxu0  ;;  %v7195_v55 = vsel %vm1295_vm1, %v15493_v29, -inf }
 0xa44   :  { %7196 = vmax.xlane.f32.xlu0 %v7195_v55 }
 0xa45   :  { %v5980_v52 = vpop.f32.mrf.mxu0 }
 0xa46   :  { %10715 = vmatprep.mubr.msk.f32.mxu0 %vm682_vm0, %v5980_v52  ;;  %v10757_v37 = vpop.f32.mrf.mxu1 }
 0xa47   :  { %v15511_v23 = vadd.f32 %v10757_v37, %v15502_v13  ;;  %10716 = vmatmul.mubr.msk.f32.gmra.mxu0 %vm682_vm0, %v10645_v16 }
 0xa48   :  { %10718 = vmatprep.mubr.msk.f32.mxu0 %vm682_vm0, %v6103_v28  ;;  %v6667_v54 = vpop.f32.mrf.mxu1  ;;  %v17026_v28 = vld [vmem:[#allocation46_spill] sm:$0xff] }
 0xa49   :  { %v15516_v51 = vadd.f32 %v6667_v54, %v15508_v61  ;;  %v7204_v56 = vsel %vm1295_vm1, %v15511_v23, -inf  ;;  %v17037_v54 = vld [vmem:[#allocation134_spill] sm:$0xff] }
 0xa4a   :  { %7205 = vmax.xlane.f32.xlu1 %v7204_v56  ;;  %v17038_v56 = vld [vmem:[#allocation27_spill] sm:$0xff] }
 0xa4b   :  { %10719 = vmatmul.mubr.msk.f32.gmra.mxu0 %vm682_vm0, %v10664_v57  ;;  %v7201_v21 = vsel %vm1295_vm1, %v15516_v51, -inf }
 0xa4c   :  { %10721 = vmatprep.mubr.msk.f32.mxu0 %vm682_vm0, %v6113_v24  ;;  %7202 = vmax.xlane.f32.xlu0 %v7201_v21  ;;  %v4381_v21 = vadd.f32 %v17038_v56, %v17037_v54  ;;  %v17047_v56 = vld [vmem:[#allocation144_spill] sm:$0xff] }
 0xa4f   :  { %10722 = vmatmul.mubr.msk.f32.gmra.mxu0 %vm682_vm0, %v10667_v33 }
 0xa50   :  { %10724 = vmatprep.mubr.msk.f32.mxu0 %vm682_vm0, %v6123_v43 }
 0xa53   :  { %10725 = vmatmul.mubr.msk.f32.gmra.mxu0 %vm682_vm0, %v10670_v17 }
 0xa54   :  { %10727 = vmatprep.mubr.msk.f32.mxu0 %vm682_vm0, %v6133_v0  ;;  %v17029_v0 = vld [vmem:[#allocation108_spill] sm:$0xff] }
 0xa55   :  { %v4361_v14 = vadd.f32 %v17030_v42, %v17029_v0  ;;  %v17045_v0 = vld [vmem:[#allocation124_spill] sm:$0xff] }
 0xa56   :  { %v17046_v42 = vld [vmem:[#allocation120_spill] sm:$0xff] }
 0xa57   :  { %10728 = vmatmul.mubr.msk.f32.gmra.mxu0 %vm682_vm0, %v10673_v46 }
 0xa58   :  { %10802 = vmatprep.mubr.msk.f32.mxu0 %vm682_vm0, %v15341_v47  ;;  %v7540_v47 = vpop.permute.xlu1 %7539 }
 0xa5b   :  { %7696 = vrot.lane.b32.xlu1 %v17020_v34, %s11634_s9  ;;  %10803 = vmatmul.mubr.msk.f32.vlgmr.msra.gmra.mxu0 %vm682_vm0, %v15373_v3  ;;  %v17021_v3 = vld [vmem:[#allocation90_spill] sm:$0xff] }
 0xa5c   :  { %10843 = vmatpush3.msra.mxu0 %v15419_v19  ;;  %10805 = vmatprep.mubr.msk.f32.mxu0 %vm682_vm0, %v15379_v32  ;;  %v7538_v32 = vpop.permute.xlu0 %7537  ;;  %v17023_v19 = vld [vmem:[#allocation13_spill] sm:$0xff] }
 0xa5d   :  { %10844 = vmatprep.subr.mxu0 %v7548_v4 }
 0xa5e   :  { %10845 = vmatpush3.msra.mxu0 %v7548_v4 }
 0xa5f   :  { %10846 = vmatprep.subr.mxu0 %v7546_v6  ;;  %10806 = vmatmul.mubr.msk.f32.gmra.mxu0 %vm682_vm0, %v15345_v25  ;;  %v7536_v25 = vpop.permute.xlu1 %7535 }
 0xa60   :  { %10847 = vmatpush3.msra.mxu0 %v7546_v6  ;;  %10808 = vmatprep.mubr.msk.f32.mxu0 %vm682_vm0, %v15351_v58  ;;  %v17022_v58 = vld [vmem:[#allocation107_spill] sm:$0xff]  ;;  %v15552_v8 = vpop.permute.xlu0 %7702 }
 0xa61   :  { %10848 = vmatprep.subr.mxu0 %v7544_v60  ;;  %v4341_v38 = vadd.f32 %v17023_v19, %v17022_v58  ;;  %v17041_v58 = vld [vmem:[#allocation122_spill] sm:$0xff]  ;;  %v17042_v19 = vld [vmem:[#allocation131_spill] sm:$0xff] }
 0xa62   :  { %10849 = vmatpush3.msra.mxu0 %v7544_v60  ;;  %7698 = vrot.lane.b32.xlu0 %v17021_v3, %s11634_s9 }
 0xa63   :  { %10850 = vmatprep.subr.mxu0 %v7542_v1  ;;  %10809 = vmatmul.mubr.msk.f32.gmra.mxu0 %vm682_vm0, %v15393_v63 }
 0xa64   :  { %10851 = vmatpush3.msra.mxu0 %v7542_v1  ;;  %10811 = vmatprep.mubr.msk.f32.mxu0 %vm682_vm0, %v15402_v12  ;;  %v10776_v12 = vpop.f32.mrf.mxu1 }
 0xa65   :  { %10852 = vmatprep.subr.mxu0 %v7540_v47  ;;  %v15574_v27 = vadd.f32 %v10776_v12, %v15442_v35 }
 0xa66   :  { %10853 = vmatpush3.msra.mxu0 %v7540_v47  ;;  %v6806_v33 = vpop.f32.mrf.mxu1 }
 0xa67   :  { %10854 = vmatprep.subr.mxu0 %v7538_v32  ;;  %10812 = vmatmul.mubr.msk.f32.gmra.mxu0 %vm682_vm0, %v15359_v18  ;;  %v4351_v18 = vadd.f32 %v17026_v28, %v17025_v10  ;;  %v15577_v55 = vadd.f32 %v6806_v33, %v15447_v7  ;;  %v7210_v6 = vsel %vm1295_vm1, %v15574_v27, -inf }
 0xa68   :  { %10855 = vmatpush3.msra.mxu0 %v7538_v32  ;;  %v10779_v43 = vpop.f32.mrf.mxu1 }
 0xa69   :  { %10856 = vmatprep.subr.mxu0 %v7536_v25  ;;  %v10684_v63 = vpop.f32.mrf.mxu0  ;;  %v15586_v4 = vadd.f32 %v10779_v43, %v15462_v2  ;;  %v7207_v3 = vsel %vm1295_vm1, %v15577_v55, -inf }
 0xa6a   :  { %10857 = vmatpush3.msra.mxu0 %v7536_v25  ;;  %v15554_v57 = vadd.f32 %v10684_v63, %v4341_v38  ;;  %v6816_v62 = vpop.f32.mrf.mxu1  ;;  %v4391_v38 = vadd.f32 %v17042_v19, %v17041_v58 }
 0xa6b   :  { %10870 = vmatprep.subr.mxu0 %v15552_v8  ;;  %v15557_v26 = vpop.f32.mrf.mxu0  ;;  %v15591_v1 = vadd.f32 %v6816_v62, %v15467_v44  ;;  %v7216_v12 = vsel %vm1295_vm1, %v15586_v4, -inf }
 0xa6c   :  { %17024 = vst [vmem:[#allocation59_spill] sm:$0xff] %v15554_v57  ;;  %v10782_v15 = vpop.f32.mrf.mxu1 }
 0xa6d   :  { %v15602_v63 = vadd.f32 %v10782_v15, %v15480_v59  ;;  %v7213_v33 = vsel %vm1295_vm1, %v15591_v1, -inf }
 0xa6e   :  { %v6826_v34 = vpop.f32.mrf.mxu1 }
 0xa6f   :  { %v15607_v28 = vadd.f32 %v6826_v34, %v15487_v5  ;;  %v7222_v62 = vsel %vm1295_vm1, %v15602_v63, -inf }
 0xa70   :  { %v10785_v32 = vpop.f32.mrf.mxu1 }
 0xa71   :  { %v7219_v15 = vsel %vm1295_vm1, %v15607_v28, -inf }
 0xa73   :  { %v10687_v24 = vpop.f32.mrf.mxu0 }
 0xa74   :  { %v15561_v17 = vadd.f32 %v10687_v24, %v4351_v18  ;;  %v6836_v24 = vpop.f32.mrf.mxu1 }
 0xa75   :  { %v15563_v46 = vpop.f32.mrf.mxu0  ;;  %v15623_v41 = vadd.f32 %v6836_v24, %v15508_v61 }
 0xa76   :  { %17027 = vst [vmem:[#allocation57_spill] sm:$0xff] %v15561_v17  ;;  %17028 = vst [vmem:[#allocation16_spill] sm:$0xff] %v15563_v46  ;;  %v17088_v17 = vld [vmem:[#allocation83_spill] sm:$0xff] }
 0xa77   :  { %v10690_v39 = vpop.f32.mrf.mxu0 }
 0xa78   :  { %v15567_v11 = vadd.f32 %v10690_v39, %v4361_v14  ;;  %v4401_v14 = vadd.f32 %v17046_v42, %v17045_v0  ;;  %v15618_v39 = vadd.f32 %v10785_v32, %v15502_v13 }
 0xa79   :  { %v15569_v30 = vpop.f32.mrf.mxu0 }
 0xa7a   :  { %17031 = vst [vmem:[#allocation55_spill] sm:$0xff] %v15567_v11  ;;  %17032 = vst [vmem:[#allocation25_spill] sm:$0xff] %v15569_v30 }
 0xa7b   :  { %v10693_v16 = vpop.f32.mrf.mxu0 }
 0xa7c   :  { %v15579_v52 = vadd.f32 %v10693_v16, %v4371_v40 }
 0xa7d   :  { %v15581_v37 = vpop.f32.mrf.mxu0 }
 0xa7e   :  { %17035 = vst [vmem:[#allocation38_spill] sm:$0xff] %v15579_v52  ;;  %17036 = vst [vmem:[#allocation26_spill] sm:$0xff] %v15581_v37 }
 0xa7f   :  { %v10696_v60 = vpop.f32.mrf.mxu0  ;;  %7211 = vmax.xlane.f32.xlu1 %v7210_v6 }
 0xa80   :  { %v15593_v47 = vadd.f32 %v10696_v60, %v4381_v21  ;;  %v17048_v21 = vld [vmem:[#allocation56_spill] sm:$0xff]  ;;  %v7228_v60 = vsel %vm1295_vm1, %v15618_v39, -inf }
 0xa81   :  { %v15597_v25 = vpop.f32.mrf.mxu0  ;;  %7208 = vmax.xlane.f32.xlu0 %v7207_v3  ;;  %v4411_v6 = vadd.f32 %v17048_v21, %v17047_v56 }
 0xa82   :  { %17039 = vst [vmem:[#allocation36_spill] sm:$0xff] %v15593_v47  ;;  %17040 = vst [vmem:[#allocation20_spill] sm:$0xff] %v15597_v25 }
 0xa83   :  { %v10699_v10 = vpop.f32.mrf.mxu0  ;;  %7217 = vmax.xlane.f32.xlu1 %v7216_v12 }
 0xa84   :  { %v15609_v18 = vadd.f32 %v10699_v10, %v4391_v38  ;;  %v7225_v38 = vsel %vm1295_vm1, %v15623_v41, -inf }
 0xa85   :  { %v15613_v43 = vpop.f32.mrf.mxu0  ;;  %7214 = vmax.xlane.f32.xlu0 %v7213_v33 }
 0xa86   :  { %17043 = vst [vmem:[#allocation32_spill] sm:$0xff] %v15609_v18  ;;  %17044 = vst [vmem:[#allocation15_spill] sm:$0xff] %v15613_v43  ;;  %v10832_v16 = vpop.f32.mrf.mxu1 }
 0xa87   :  { %v10702_v48 = vpop.f32.mrf.mxu0  ;;  %7223 = vmax.xlane.f32.xlu1 %v7222_v62  ;;  %v15634_v34 = vadd.f32 %v10832_v16, %v15442_v35 }
 0xa88   :  { %v15625_v40 = vadd.f32 %v10702_v48, %v4401_v14  ;;  %v7144_v3 = vpop.f32.mrf.mxu1 }
 0xa89   :  { %v15629_v54 = vpop.f32.mrf.mxu0  ;;  %7220 = vmax.xlane.f32.xlu0 %v7219_v15  ;;  %v15639_v58 = vadd.f32 %v7144_v3, %v15447_v7  ;;  %v7258_v33 = vsel %vm1295_vm1, %v15634_v34, -inf }
 0xa8a   :  { %v10835_v12 = vpop.f32.mrf.mxu1 }
 0xa8b   :  { %v10705_v32 = vpop.f32.mrf.mxu0  ;;  %7229 = vmax.xlane.f32.xlu1 %v7228_v60  ;;  %v15646_v10 = vadd.f32 %v10835_v12, %v15462_v2  ;;  %v7255_v42 = vsel %vm1295_vm1, %v15639_v58, -inf  ;;  %v15675_v12 = vpop.permute.xlu1 %7700 }
 0xa8c   :  { %v15641_v19 = vadd.f32 %v10705_v32, %v4411_v6  ;;  %v7154_v24 = vpop.f32.mrf.mxu1 }
 0xa8d   :  { %7226 = vmax.xlane.f32.xlu0 %v7225_v38  ;;  %v15651_v0 = vadd.f32 %v7154_v24, %v15467_v44  ;;  %v7264_v48 = vsel %vm1295_vm1, %v15646_v10, -inf }
 0xa8e   :  { %v10838_v14 = vpop.f32.mrf.mxu1 }
 0xa8f   :  { %7259 = vmax.xlane.f32.xlu1 %v7258_v33  ;;  %v15656_v62 = vadd.f32 %v10838_v14, %v15480_v59  ;;  %v7261_v56 = vsel %vm1295_vm1, %v15651_v0, -inf }
 0xa90   :  { %v7164_v15 = vpop.f32.mrf.mxu1 }
 0xa91   :  { %7256 = vmax.xlane.f32.xlu0 %v7255_v42  ;;  %v15661_v16 = vadd.f32 %v7164_v15, %v15487_v5  ;;  %v7270_v60 = vsel %vm1295_vm1, %v15656_v62, -inf }
 0xa92   :  { %v10841_v21 = vpop.f32.mrf.mxu1 }
 0xa93   :  { %7265 = vmax.xlane.f32.xlu1 %v7264_v48  ;;  %v15666_v6 = vadd.f32 %v10841_v21, %v15502_v13  ;;  %v7267_v38 = vsel %vm1295_vm1, %v15661_v16, -inf }
 0xa94   :  { %v7174_v3 = vpop.f32.mrf.mxu1 }
 0xa95   :  { %7262 = vmax.xlane.f32.xlu0 %v7261_v56  ;;  %v15671_v32 = vadd.f32 %v7174_v3, %v15508_v61  ;;  %v7276_v33 = vsel %vm1295_vm1, %v15666_v6, -inf  ;;  %v17049_v3 = vld [vmem:[#allocation147_spill] sm:$0xff] }
 0xa97   :  { %7271 = vmax.xlane.f32.xlu1 %v7270_v60  ;;  %v7273_v24 = vsel %vm1295_vm1, %v15671_v32, -inf  ;;  %v15683_v60 = vpop.f32.mrf.mxu0 }
 0xa99   :  { %7268 = vmax.xlane.f32.xlu0 %v7267_v38  ;;  %v17050_v38 = vld [vmem:[#allocation114_spill] sm:$0xff] }
 0xa9a   :  { %v4421_v18 = vadd.f32 %v17050_v38, %v17049_v3  ;;  %v17057_v3 = vld [vmem:[#allocation152_spill] sm:$0xff]  ;;  %v17058_v38 = vld [vmem:[#allocation109_spill] sm:$0xff] }
 0xa9b   :  { %7277 = vmax.xlane.f32.xlu1 %v7276_v33 }
 0xa9d   :  { %v7188_v42 = vpop.xlane.xlu1 %7187  ;;  %7274 = vmax.xlane.f32.xlu0 %v7273_v24 }
 0xa9e   :  { %v7280_v14 = vsub.f32 %v15450_v45, %v7188_v42 }
 0xa9f   :  { %v7185_v48 = vpop.xlane.xlu0 %7184 }
 0xaa0   :  { %v7313_v15 = vmul.f32 1.442695, %v7280_v14  ;;  %v7279_v56 = vsub.f32 %v15453_v49, %v7185_v48  ;;  %v17053_v49 = vld [vmem:[#allocation150_spill] sm:$0xff]  ;;  %v17054_v14 = vld [vmem:[#allocation105_spill] sm:$0xff] }
 0xaa1   :  { %v4431_v48 = vadd.f32 %v17054_v14, %v17053_v49 }
 0xaa2   :  { %11412 = vpow2.f32 %v7313_v15  ;;  %v7311_v21 = vmul.f32 1.442695, %v7279_v56 }
 0xaa4   :  { %11414 = vpow2.f32 %v7311_v21 }
 0xaae   :  { %v10708_v33 = vpop.f32.mrf.mxu0 }
 0xaaf   :  { %v15687_v43 = vpop.eup %11412  ;;  %v15689_v47 = vadd.f32 %v10708_v33, %v4421_v18  ;;  %v4441_v33 = vadd.f32 %v17058_v38, %v17057_v3 }
 0xab0   :  { %v7378_v45 = vsel %vm1295_vm1, %v15687_v43, 0.0  ;;  %v15693_v24 = vpop.f32.mrf.mxu0 }
 0xab1   :  { %17051 = vst [vmem:[#allocation14_spill] sm:$0xff] %v15689_v47  ;;  %17052 = vst [vmem:[#allocation34_spill] sm:$0xff] %v15693_v24  ;;  %v15695_v42 = vpop.eup %11414  ;;  %7379 = vadd.xlane.f32.xlu1 %v7378_v45 }
 0xab2   :  { %v7375_v15 = vsel %vm1295_vm1, %v15695_v42, 0.0 }
 0xab3   :  { %7376 = vadd.xlane.f32.xlu0 %v7375_v15  ;;  %v10711_v56 = vpop.f32.mrf.mxu0 }
 0xab4   :  { %v15701_v21 = vadd.f32 %v10711_v56, %v4431_v48 }
 0xab5   :  { %v15703_v18 = vpop.f32.mrf.mxu0 }
 0xab6   :  { %17055 = vst [vmem:[#allocation29_spill] sm:$0xff] %v15701_v21  ;;  %17056 = vst [vmem:[#allocation145_spill] sm:$0xff] %v15703_v18 }
 0xab7   :  { %v10714_v47 = vpop.f32.mrf.mxu0 }
 0xab8   :  { %v15707_v24 = vadd.f32 %v10714_v47, %v4441_v33 }
 0xaba   :  { %17059 = vst [vmem:[#allocation23_spill] sm:$0xff] %v15707_v24 }
 0xac3   :  { %v7194_v25 = vpop.xlane.xlu0 %7193 }
 0xac4   :  { %v7282_v45 = vsub.f32 %v15470_v22, %v7194_v25 }
 0xac6   :  { %v7317_v52 = vmul.f32 1.442695, %v7282_v45 }
 0xac7   :  { %v7191_v49 = vpop.xlane.xlu0 %7190 }
 0xac8   :  { %11416 = vpow2.f32 %v7317_v52  ;;  %v7281_v14 = vsub.f32 %v15473_v20, %v7191_v49 }
 0xaca   :  { %v7315_v15 = vmul.f32 1.442695, %v7281_v14 }
 0xacb   :  { %v7200_v37 = vpop.xlane.xlu1 %7199 }
 0xacc   :  { %11418 = vpow2.f32 %v7315_v15  ;;  %v7284_v48 = vsub.f32 %v15490_v36, %v7200_v37 }
 0xacd   :  { %v7197_v56 = vpop.xlane.xlu0 %7196 }
 0xace   :  { %v7321_v21 = vmul.f32 1.442695, %v7284_v48  ;;  %v7283_v3 = vsub.f32 %v15493_v29, %v7197_v56 }
 0xad0   :  { %11420 = vpow2.f32 %v7321_v21  ;;  %v7319_v47 = vmul.f32 1.442695, %v7283_v3 }
 0xad2   :  { %11422 = vpow2.f32 %v7319_v47  ;;  %v15741_v47 = vpop.f32.mrf.mxu0 }
 0xad3   :  { %v7206_v38 = vpop.xlane.xlu1 %7205  ;;  %17060 = vst [vmem:[#allocation31_spill] sm:$0xff] %v15741_v47 }
 0xad4   :  { %v7286_v22 = vsub.f32 %v15511_v23, %v7206_v38  ;;  %v17061_v38 = vld [vmem:[#allocation155_spill] sm:$0xff] }
 0xad5   :  { %v15714_v25 = vpop.eup %11416  ;;  %v7203_v52 = vpop.xlane.xlu0 %7202 }
 0xad6   :  { %v7325_v33 = vmul.f32 1.442695, %v7286_v22  ;;  %v7285_v20 = vsub.f32 %v15516_v51, %v7203_v52  ;;  %v7384_v45 = vsel %vm1295_vm1, %v15714_v25, 0.0  ;;  %v17062_v22 = vld [vmem:[#allocation115_spill] sm:$0xff] }
 0xad7   :  { %7385 = vadd.xlane.f32.xlu1 %v7384_v45  ;;  %v15739_v3 = vpop.permute.xlu1 %7696  ;;  %v4451_v52 = vadd.f32 %v17062_v22, %v17061_v38 }
 0xad8   :  { %11424 = vpow2.f32 %v7325_v33  ;;  %v7323_v36 = vmul.f32 1.442695, %v7285_v20 }
 0xad9   :  { %v15719_v37 = vpop.eup %11418  ;;  %v15745_v33 = vpop.permute.xlu0 %7698 }
 0xada   :  { %11426 = vpow2.f32 %v7323_v36  ;;  %v7381_v29 = vsel %vm1295_vm1, %v15719_v37, 0.0 }
 0xadb   :  { %7382 = vadd.xlane.f32.xlu0 %v7381_v29 }
 0xadd   :  { %v15723_v23 = vpop.eup %11420 }
 0xade   :  { %v7390_v21 = vsel %vm1295_vm1, %v15723_v23, 0.0 }
 0xadf   :  { %v15727_v49 = vpop.eup %11422  ;;  %7391 = vadd.xlane.f32.xlu1 %v7390_v21 }
 0xae0   :  { %v7387_v51 = vsel %vm1295_vm1, %v15727_v49, 0.0 }
 0xae1   :  { %7388 = vadd.xlane.f32.xlu0 %v7387_v51  ;;  %v17065_v51 = vld [vmem:[#allocation157_spill] sm:$0xff] }
 0xae5   :  { %v15731_v14 = vpop.eup %11424 }
 0xae6   :  { %v7396_v15 = vsel %vm1295_vm1, %v15731_v14, 0.0 }
 0xae7   :  { %v15735_v48 = vpop.eup %11426  ;;  %7397 = vadd.xlane.f32.xlu1 %v7396_v15  ;;  %v17066_v15 = vld [vmem:[#allocation112_spill] sm:$0xff] }
 0xae8   :  { %v7393_v56 = vsel %vm1295_vm1, %v15735_v48, 0.0 }
 0xae9   :  { %7394 = vadd.xlane.f32.xlu0 %v7393_v56  ;;  %v4461_v56 = vadd.f32 %v17066_v15, %v17065_v51 }
 0xb07   :  { %v10717_v20 = vpop.f32.mrf.mxu0 }
 0xb08   :  { %v15747_v45 = vadd.f32 %v10717_v20, %v4451_v52  ;;  %v7212_v36 = vpop.xlane.xlu1 %7211 }
 0xb09   :  { %v7288_v29 = vsub.f32 %v15574_v27, %v7212_v36  ;;  %v15750_v21 = vpop.f32.mrf.mxu0  ;;  %v17069_v27 = vld [vmem:[#allocation159_spill] sm:$0xff] }
 0xb0a   :  { %17063 = vst [vmem:[#allocation149_spill] sm:$0xff] %v15747_v45  ;;  %17064 = vst [vmem:[#allocation42_spill] sm:$0xff] %v15750_v21  ;;  %v7209_v24 = vpop.xlane.xlu0 %7208  ;;  %v17070_v36 = vld [vmem:[#allocation119_spill] sm:$0xff] }
 0xb0b   :  { %v7329_v18 = vmul.f32 1.442695, %v7288_v29  ;;  %v7287_v47 = vsub.f32 %v15577_v55, %v7209_v24  ;;  %v10720_v11 = vpop.f32.mrf.mxu0  ;;  %v4471_v45 = vadd.f32 %v17070_v36, %v17069_v27 }
 0xb0c   :  { %v15755_v30 = vadd.f32 %v10720_v11, %v4461_v56  ;;  %v7218_v38 = vpop.xlane.xlu1 %7217  ;;  %v17074_v56 = vld [vmem:[#allocation116_spill] sm:$0xff] }
 0xb0d   :  { %11428 = vpow2.f32 %v7329_v18  ;;  %v7327_v22 = vmul.f32 1.442695, %v7287_v47  ;;  %v7290_v52 = vsub.f32 %v15586_v4, %v7218_v38  ;;  %v15758_v20 = vpop.f32.mrf.mxu0  ;;  %v17073_v4 = vld [vmem:[#allocation161_spill] sm:$0xff] }
 0xb0e   :  { %17067 = vst [vmem:[#allocation19_spill] sm:$0xff] %v15755_v30  ;;  %17068 = vst [vmem:[#allocation153_spill] sm:$0xff] %v15758_v20  ;;  %v7215_v21 = vpop.xlane.xlu0 %7214  ;;  %v4481_v38 = vadd.f32 %v17074_v56, %v17073_v4 }
 0xb0f   :  { %11430 = vpow2.f32 %v7327_v22  ;;  %v7333_v51 = vmul.f32 1.442695, %v7290_v52  ;;  %v7289_v29 = vsub.f32 %v15591_v1, %v7215_v21  ;;  %v10723_v15 = vpop.f32.mrf.mxu0  ;;  %v17075_v1 = vld [vmem:[#allocation162_spill] sm:$0xff]  ;;  %v17076_v21 = vld [vmem:[#allocation135_spill] sm:$0xff] }
 0xb10   :  { %v15763_v55 = vadd.f32 %v10723_v15, %v4471_v45  ;;  %v7224_v11 = vpop.xlane.xlu1 %7223  ;;  %v4476_v45 = vadd.f32 %v17076_v21, %v17075_v1 }
 0xb11   :  { %11432 = vpow2.f32 %v7333_v51  ;;  %v7331_v24 = vmul.f32 1.442695, %v7289_v29  ;;  %v7292_v18 = vsub.f32 %v15602_v63, %v7224_v11  ;;  %v15766_v47 = vpop.f32.mrf.mxu0  ;;  %v17078_v11 = vld [vmem:[#allocation163_spill] sm:$0xff] }
 0xb12   :  { %17071 = vst [vmem:[#allocation37_spill] sm:$0xff] %v15763_v55  ;;  %17072 = vst [vmem:[#allocation17_spill] sm:$0xff] %v15766_v47  ;;  %v7221_v30 = vpop.xlane.xlu0 %7220  ;;  %v17079_v55 = vld [vmem:[#allocation104_spill] sm:$0xff] }
 0xb13   :  { %11434 = vpow2.f32 %v7331_v24  ;;  %v7337_v27 = vmul.f32 1.442695, %v7292_v18  ;;  %v7291_v22 = vsub.f32 %v15607_v28, %v7221_v30  ;;  %v10726_v52 = vpop.f32.mrf.mxu0  ;;  %v4491_v4 = vadd.f32 %v17079_v55, %v17078_v11  ;;  %v17081_v28 = vld [vmem:[#allocation164_spill] sm:$0xff]  ;;  %v17082_v18 = vld [vmem:[#allocation125_spill] sm:$0xff] }
 0xb14   :  { %v15773_v36 = vadd.f32 %v10726_v52, %v4481_v38  ;;  %v7230_v51 = vpop.xlane.xlu1 %7229  ;;  %v4486_v47 = vadd.f32 %v17082_v18, %v17081_v28 }
 0xb15   :  { %11436 = vpow2.f32 %v7337_v27  ;;  %v7335_v29 = vmul.f32 1.442695, %v7291_v22  ;;  %v7294_v63 = vsub.f32 %v15618_v39, %v7230_v51  ;;  %v6448_v15 = vpop.f32.mrf.mxu0 }
 0xb16   :  { %17077 = vst [vmem:[#allocation41_spill] sm:$0xff] %v15773_v36  ;;  %v15778_v56 = vadd.f32 %v6448_v15, %v4476_v45  ;;  %v17087_v36 = vld [vmem:[#allocation99_spill] sm:$0xff] }
 0xb17   :  { %11438 = vpow2.f32 %v7335_v29  ;;  %v7341_v24 = vmul.f32 1.442695, %v7294_v63  ;;  %v10729_v30 = vpop.f32.mrf.mxu0  ;;  %v7227_v29 = vpop.xlane.xlu0 %7226 }
 0xb18   :  { %17080 = vst [vmem:[#allocation45_spill] sm:$0xff] %v15778_v56  ;;  %v15782_v1 = vadd.f32 %v10729_v30, %v4491_v4  ;;  %v7260_v4 = vpop.xlane.xlu1 %7259  ;;  %v7293_v56 = vsub.f32 %v15623_v41, %v7227_v29 }
 0xb19   :  { %11440 = vpow2.f32 %v7341_v24  ;;  %v6458_v38 = vpop.f32.mrf.mxu0 }
 0xb1a   :  { %17083 = vst [vmem:[#allocation49_spill] sm:$0xff] %v15782_v1  ;;  %v15784_v27 = vpop.eup %11428  ;;  %v15786_v22 = vadd.f32 %v6458_v38, %v4486_v47  ;;  %v7339_v20 = vmul.f32 1.442695, %v7293_v56 }
 0xb1b   :  { %v7402_v39 = vsel %vm1295_vm1, %v15784_v27, 0.0  ;;  %v15812_v28 = vpop.xlane.xlu0 %7256 }
 0xb1c   :  { %17084 = vst [vmem:[#allocation21_spill] sm:$0xff] %v15786_v22  ;;  %v15790_v55 = vpop.eup %11430  ;;  %7403 = vadd.xlane.f32.xlu0 %v7402_v39  ;;  %v15816_v38 = vpop.xlane.xlu1 %7265 }
 0xb1d   :  { %v7399_v52 = vsel %vm1295_vm1, %v15790_v55, 0.0 }
 0xb1e   :  { %v15794_v21 = vpop.eup %11432  ;;  %7400 = vadd.xlane.f32.xlu1 %v7399_v52 }
 0xb1f   :  { %v7408_v45 = vsel %vm1295_vm1, %v15794_v21, 0.0  ;;  %v15818_v39 = vpop.xlane.xlu0 %7262 }
 0xb20   :  { %v15798_v51 = vpop.eup %11434  ;;  %7409 = vadd.xlane.f32.xlu0 %v7408_v45  ;;  %v15820_v52 = vpop.xlane.xlu1 %7271 }
 0xb21   :  { %v7405_v47 = vsel %vm1295_vm1, %v15798_v51, 0.0 }
 0xb22   :  { %v15802_v63 = vpop.eup %11436  ;;  %7406 = vadd.xlane.f32.xlu1 %v7405_v47 }
 0xb23   :  { %v7414_v15 = vsel %vm1295_vm1, %v15802_v63, 0.0  ;;  %v15822_v45 = vpop.xlane.xlu0 %7268 }
 0xb24   :  { %v15806_v11 = vpop.eup %11438  ;;  %7415 = vadd.xlane.f32.xlu0 %v7414_v15  ;;  %v15824_v47 = vpop.xlane.xlu1 %7277  ;;  %v17085_v15 = vld [vmem:[#allocation96_spill] sm:$0xff] }
 0xb25   :  { %v7411_v24 = vsel %vm1295_vm1, %v15806_v11, 0.0 }
 0xb26   :  { %v15810_v30 = vpop.eup %11440  ;;  %7412 = vadd.xlane.f32.xlu1 %v7411_v24 }
 0xb27   :  { %v7420_v18 = vsel %vm1295_vm1, %v15810_v30, 0.0  ;;  %v15828_v22 = vpop.xlane.xlu0 %7274 }
 0xb28   :  { %7421 = vadd.xlane.f32.xlu0 %v7420_v18  ;;  %v17086_v18 = vld [vmem:[#allocation94_spill] sm:$0xff] }
 0xb37   :  { %7692 = vrot.lane.b32.xlu1 %v17085_v15, %s11634_s9 }
 0xb3a   :  { %v7380_v24 = vpop.xlane.xlu1 %7379 }
 0xb3b   :  { %11442 = vrcp.f32 %v7380_v24  ;;  %v7304_v24 = vsub.f32 %v15634_v34, %v7260_v4 }
 0xb3c   :  { %v7377_v1 = vpop.xlane.xlu0 %7376 }
 0xb3d   :  { %11444 = vrcp.f32 %v7377_v1  ;;  %v7361_v41 = vmul.f32 1.442695, %v7304_v24 }
 0xb3e   :  { %7694 = vrot.lane.b32.xlu0 %v17086_v18, %s11634_s9  ;;  %11446 = vpow2.f32 %v7339_v20  ;;  %v17090_v20 = vld [vmem:[#allocation139_spill] sm:$0xff] }
 0xb3f   :  { %11448 = vpow2.f32 %v7361_v41 }
 0xb42   :  { %7690 = vrot.lane.b32.xlu0 %v17087_v36, %s11634_s9 }
 0xb46   :  { %7855 = vrot.lane.b32.xlu0 %v17088_v17, %s11634_s9 }
 0xb48   :  { %v11443_v46 = vpop.eup %11442 }
 0xb49   :  { %v7474_v1 = vmul.f32 %v11443_v46, %v15687_v43 }
 0xb4a   :  { %v11445_v15 = vpop.eup %11444 }
 0xb4b   :  { %v7472_v57 = vmul.f32 %v11445_v15, %v15695_v42  ;;  %v15849_v17 = vpop.eup %11446 }
 0xb4d   :  { %10858 = vmatprep.mubr.msk.f32.mxu0 %vm1295_vm1, %v7472_v57  ;;  %v7417_v57 = vsel %vm1295_vm1, %v15849_v17, 0.0 }
 0xb4e   :  { %10859 = vmatmul.mubr.msk.f32.vlgmr.msra.gmra.mxu0 %vm1295_vm1, %v7474_v1 }
 0xb4f   :  { %10871 = vmatpush3.msra.mxu0 %v15552_v8  ;;  %v15853_v8 = vpop.eup %11448 }
 0xb50   :  { %10872 = vmatprep.subr.mxu0 %v15675_v12  ;;  %v7450_v34 = vsel %vm1295_vm1, %v15853_v8, 0.0 }
 0xb51   :  { %10873 = vmatpush3.msra.mxu0 %v15675_v12 }
 0xb52   :  { %10874 = vmatprep.subr.mxu0 %v15745_v33 }
 0xb53   :  { %10875 = vmatpush3.msra.mxu0 %v15745_v33 }
 0xb54   :  { %10876 = vmatprep.subr.mxu0 %v15739_v3 }
 0xb55   :  { %10877 = vmatpush3.msra.mxu0 %v15739_v3  ;;  %v17089_v3 = vld [vmem:[#allocation101_spill] sm:$0xff] }
 0xb5b   :  { %7418 = vadd.xlane.f32.xlu1 %v7417_v57  ;;  %v7303_v57 = vsub.f32 %v15639_v58, %v15812_v28 }
 0xb60   :  { %v7386_v46 = vpop.xlane.xlu1 %7385 }
 0xb61   :  { %11450 = vrcp.f32 %v7386_v46  ;;  %v17091_v46 = vld [vmem:[#allocation51_spill] sm:$0xff] }
 0xb64   :  { %v7383_v43 = vpop.xlane.xlu0 %7382 }
 0xb65   :  { %11452 = vrcp.f32 %v7383_v43  ;;  %7451 = vadd.xlane.f32.xlu0 %v7450_v34 }
 0xb68   :  { %v7392_v12 = vpop.xlane.xlu1 %7391 }
 0xb69   :  { %11454 = vrcp.f32 %v7392_v12  ;;  %v10804_v12 = vpop.f32.mrf.mxu0 }
 0xb6a   :  { %v7389_v42 = vpop.xlane.xlu0 %7388 }
 0xb6b   :  { %11456 = vrcp.f32 %v7389_v42  ;;  %v6975_v58 = vpop.f32.mrf.mxu0 }
 0xb6c   :  { %7688 = vrot.lane.b32.xlu1 %v17089_v3, %s11634_s9  ;;  %v7306_v3 = vsub.f32 %v15646_v10, %v15816_v38 }
 0xb6e   :  { %v11451_v36 = vpop.eup %11450 }
 0xb6f   :  { %v7478_v18 = vmul.f32 %v11451_v36, %v15714_v25 }
 0xb70   :  { %v7398_v33 = vpop.xlane.xlu1 %7397  ;;  %7853 = vrot.lane.b32.xlu1 %v17090_v20, %s11634_s9  ;;  %v7365_v20 = vmul.f32 1.442695, %v7306_v3 }
 0xb71   :  { %11458 = vrcp.f32 %v7398_v33 }
 0xb72   :  { %v11453_v56 = vpop.eup %11452  ;;  %v7395_v29 = vpop.xlane.xlu0 %7394 }
 0xb73   :  { %11460 = vrcp.f32 %v7395_v29  ;;  %v7476_v4 = vmul.f32 %v11453_v56, %v15719_v37  ;;  %v7359_v37 = vmul.f32 1.442695, %v7303_v57 }
 0xb75   :  { %10861 = vmatprep.mubr.msk.f32.mxu0 %vm1295_vm1, %v7476_v4  ;;  %11462 = vpow2.f32 %v7359_v37  ;;  %v7305_v37 = vsub.f32 %v15651_v0, %v15818_v39  ;;  %v15916_v39 = vadd.f32 %v10804_v12, %v15442_v35 }
 0xb76   :  { %10862 = vmatmul.mubr.msk.f32.gmra.mxu0 %vm1295_vm1, %v7478_v18  ;;  %v11455_v15 = vpop.eup %11454  ;;  %11464 = vpow2.f32 %v7365_v20 }
 0xb77   :  { %v7482_v41 = vmul.f32 %v11455_v15, %v15723_v23  ;;  %v10807_v23 = vpop.f32.mrf.mxu0  ;;  %v17092_v15 = vld [vmem:[#allocation140_spill] sm:$0xff] }
 0xb78   :  { %v11457_v24 = vpop.eup %11456 }
 0xb79   :  { %v7480_v1 = vmul.f32 %v11457_v24, %v15727_v49  ;;  %v6985_v28 = vpop.f32.mrf.mxu0 }
 0xb7a   :  { %v15887_v56 = vadd.f32 %v6985_v28, %v15467_v44 }
 0xb7b   :  { %7851 = vrot.lane.b32.xlu0 %v17091_v46, %s11634_s9  ;;  %10864 = vmatprep.mubr.msk.f32.mxu0 %vm1295_vm1, %v7480_v1  ;;  %v10810_v33 = vpop.f32.mrf.mxu0 }
 0xb7c   :  { %10865 = vmatmul.mubr.msk.f32.gmra.mxu0 %vm1295_vm1, %v7482_v41  ;;  %v7237_v38 = vsel %vm1295_vm1, %v15887_v56, -inf }
 0xb7d   :  { %v6995_v36 = vpop.f32.mrf.mxu0 }
 0xb7e   :  { %v11459_v25 = vpop.eup %11458  ;;  %v15892_v10 = vadd.f32 %v6995_v36, %v15487_v5 }
 0xb7f   :  { %v7486_v49 = vmul.f32 %v11459_v25, %v15731_v14  ;;  %v15884_v14 = vadd.f32 %v6975_v58, %v15447_v7  ;;  %v10813_v4 = vpop.f32.mrf.mxu0 }
 0xb80   :  { %v11461_v43 = vpop.eup %11460  ;;  %v7243_v44 = vsel %vm1295_vm1, %v15892_v10, -inf  ;;  %v15931_v35 = vadd.f32 %v10813_v4, %v15502_v13 }
 0xb81   :  { %v7484_v34 = vmul.f32 %v11461_v43, %v15735_v48  ;;  %v7231_v29 = vsel %vm1295_vm1, %v15884_v14, -inf  ;;  %v7005_v18 = vpop.f32.mrf.mxu0 }
 0xb82   :  { %v15877_v42 = vpop.eup %11462  ;;  %v15897_v7 = vadd.f32 %v7005_v18, %v15508_v61  ;;  %v15926_v18 = vadd.f32 %v10810_v33, %v15480_v59 }
 0xb83   :  { %10867 = vmatprep.mubr.msk.f32.mxu0 %vm1295_vm1, %v7484_v34  ;;  %v7447_v48 = vsel %vm1295_vm1, %v15877_v42, 0.0  ;;  %v15905_v1 = vpop.eup %11464 }
 0xb84   :  { %10868 = vmatmul.mubr.msk.f32.gmra.mxu0 %vm1295_vm1, %v7486_v49  ;;  %v7249_v5 = vsel %vm1295_vm1, %v15897_v7, -inf  ;;  %v7456_v61 = vsel %vm1295_vm1, %v15905_v1, 0.0  ;;  %v7363_v49 = vmul.f32 1.442695, %v7305_v37  ;;  %v7246_v12 = vsel %vm1295_vm1, %v15926_v18, -inf }
 0xb94   :  { %7448 = vadd.xlane.f32.xlu1 %v7447_v48 }
 0xb9a   :  { %7232 = vmax.xlane.f32.xlu0 %v7231_v29  ;;  %v15921_v29 = vadd.f32 %v10807_v23, %v15462_v2  ;;  %v7252_v2 = vsel %vm1295_vm1, %v15931_v35, -inf }
 0xb9e   :  { %7238 = vmax.xlane.f32.xlu0 %v7237_v38  ;;  %v7234_v38 = vsel %vm1295_vm1, %v15916_v39, -inf }
 0xba2   :  { %7244 = vmax.xlane.f32.xlu0 %v7243_v44  ;;  %v7240_v44 = vsel %vm1295_vm1, %v15921_v29, -inf }
 0xba5   :  { %7849 = vrot.lane.b32.xlu1 %v17092_v15, %s11634_s9  ;;  %v7404_v24 = vpop.xlane.xlu0 %7403 }
 0xba6   :  { %7250 = vmax.xlane.f32.xlu0 %v7249_v5 }
 0xba7   :  { %v7401_v41 = vpop.xlane.xlu1 %7400 }
 0xba8   :  { %11466 = vrcp.f32 %v7401_v41 }
 0xba9   :  { %v7410_v57 = vpop.xlane.xlu0 %7409  ;;  %11468 = vpow2.f32 %v7363_v49 }
 0xbaa   :  { %7457 = vadd.xlane.f32.xlu0 %v7456_v61  ;;  %11470 = vrcp.f32 %v7404_v24 }
 0xbab   :  { %v7407_v46 = vpop.xlane.xlu1 %7406 }
 0xbac   :  { %11472 = vrcp.f32 %v7407_v46 }
 0xbad   :  { %v7416_v25 = vpop.xlane.xlu0 %7415  ;;  %11474 = vrcp.f32 %v7410_v57 }
 0xbaf   :  { %v7413_v43 = vpop.xlane.xlu1 %7412 }
 0xbb0   :  { %11476 = vrcp.f32 %v7413_v43 }
 0xbb1   :  { %v7422_v34 = vpop.xlane.xlu0 %7421  ;;  %11478 = vrcp.f32 %v7416_v25 }
 0xbb2   :  { %11480 = vrcp.f32 %v7422_v34 }
 0xbb3   :  { %v7693_v48 = vpop.permute.xlu1 %7692 }
 0xbb5   :  { %v11467_v58 = vpop.eup %11466  ;;  %v7695_v28 = vpop.permute.xlu0 %7694 }
 0xbb6   :  { %10878 = vmatprep.subr.mxu0 %v7695_v28  ;;  %v7488_v3 = vmul.f32 %v11467_v58, %v15790_v55  ;;  %v15913_v0 = vpop.eup %11468 }
 0xbb7   :  { %10879 = vmatpush3.msra.mxu0 %v7695_v28  ;;  %v7453_v55 = vsel %vm1295_vm1, %v15913_v0, 0.0  ;;  %v11471_v23 = vpop.eup %11470 }
 0xbb8   :  { %10880 = vmatprep.subr.mxu0 %v7693_v48  ;;  %10886 = vmatprep.mubr.msk.f32.mxu0 %vm1295_vm1, %v7488_v3  ;;  %v7490_v4 = vmul.f32 %v11471_v23, %v15784_v27 }
 0xbb9   :  { %10881 = vmatpush3.msra.mxu0 %v7693_v48  ;;  %v7691_v20 = vpop.permute.xlu0 %7690  ;;  %v11473_v33 = vpop.eup %11472 }
 0xbba   :  { %10882 = vmatprep.subr.mxu0 %v7691_v20  ;;  %v11475_v15 = vpop.eup %11474  ;;  %v7492_v5 = vmul.f32 %v11473_v33, %v15798_v51 }
 0xbbb   :  { %10883 = vmatpush3.msra.mxu0 %v7691_v20  ;;  %v7494_v57 = vmul.f32 %v11475_v15, %v15794_v21 }
 0xbbd   :  { %v7856_v36 = vpop.permute.xlu0 %7855  ;;  %v11477_v41 = vpop.eup %11476 }
 0xbbe   :  { %10898 = vmatprep.subr.mxu1 %v7856_v36  ;;  %v11479_v61 = vpop.eup %11478  ;;  %v7496_v27 = vmul.f32 %v11477_v41, %v15806_v11 }
 0xbbf   :  { %10899 = vmatpush3.msra.mxu1 %v7856_v36  ;;  %v11481_v51 = vpop.eup %11480  ;;  %v7498_v25 = vmul.f32 %v11479_v61, %v15802_v63 }
 0xbc0   :  { %v7502_v34 = vmul.f32 %v11481_v51, %v15810_v30 }
 0xbc9   :  { %7454 = vadd.xlane.f32.xlu1 %v7453_v55 }
 0xbcd   :  { %7235 = vmax.xlane.f32.xlu1 %v7234_v38 }
 0xbd1   :  { %7241 = vmax.xlane.f32.xlu1 %v7240_v44 }
 0xbd5   :  { %7247 = vmax.xlane.f32.xlu1 %v7246_v12 }
 0xbd9   :  { %7253 = vmax.xlane.f32.xlu1 %v7252_v2 }
 0xbe4   :  { %v7419_v59 = vpop.xlane.xlu1 %7418 }
 0xbe5   :  { %11482 = vrcp.f32 %v7419_v59 }
 0xbe8   :  { %v7689_v13 = vpop.permute.xlu1 %7688 }
 0xbe9   :  { %10884 = vmatprep.subr.mxu0 %v7689_v13 }
 0xbea   :  { %10885 = vmatpush3.msra.mxu0 %v7689_v13 }
 0xbeb   :  { %10887 = vmatmul.mubr.msk.f32.vlgmr.msra.gmra.mxu0 %vm1295_vm1, %v7490_v4 }
 0xbec   :  { %v7854_v24 = vpop.permute.xlu1 %7853  ;;  %10889 = vmatprep.mubr.msk.f32.mxu0 %vm1295_vm1, %v7492_v5 }
 0xbed   :  { %10900 = vmatprep.subr.mxu1 %v7854_v24 }
 0xbee   :  { %10901 = vmatpush3.msra.mxu1 %v7854_v24  ;;  %v15942_v46 = vpop.xlane.xlu0 %7451 }
 0xbef   :  { %10890 = vmatmul.mubr.msk.f32.gmra.mxu0 %vm1295_vm1, %v7494_v57  ;;  %v7307_v57 = vsub.f32 %v15661_v16, %v15822_v45 }
 0xbf0   :  { %10892 = vmatprep.mubr.msk.f32.mxu0 %vm1295_vm1, %v7496_v27 }
 0xbf2   :  { %v11483_v37 = vpop.eup %11482  ;;  %v7852_v43 = vpop.permute.xlu0 %7851 }
 0xbf3   :  { %10893 = vmatmul.mubr.msk.f32.gmra.mxu0 %vm1295_vm1, %v7498_v25  ;;  %10902 = vmatprep.subr.mxu1 %v7852_v43  ;;  %v7500_v21 = vmul.f32 %v11483_v37, %v15849_v17  ;;  %v7367_v37 = vmul.f32 1.442695, %v7307_v57 }
 0xbf4   :  { %10903 = vmatpush3.msra.mxu1 %v7852_v43 }
 0xbf5   :  { %10895 = vmatprep.mubr.msk.f32.mxu0 %vm1295_vm1, %v7500_v21 }
 0xbf7   :  { %10896 = vmatmul.mubr.msk.f32.gmra.mxu0 %vm1295_vm1, %v7502_v34 }
 0xc1d   :  { %v7449_v11 = vpop.xlane.xlu1 %7448 }
 0xc1e   :  { %11484 = vrcp.f32 %v7449_v11 }
 0xc21   :  { %v7850_v49 = vpop.permute.xlu1 %7849 }
 0xc22   :  { %10904 = vmatprep.subr.mxu1 %v7850_v49 }
 0xc23   :  { %10905 = vmatpush3.msra.mxu1 %v7850_v49  ;;  %v7233_v63 = vpop.xlane.xlu0 %7232 }
 0xc24   :  { %v7295_v58 = vsub.f32 %v15884_v14, %v7233_v63 }
 0xc26   :  { %v7343_v28 = vmul.f32 1.442695, %v7295_v58 }
 0xc27   :  { %v7239_v3 = vpop.xlane.xlu0 %7238 }
 0xc28   :  { %11486 = vpow2.f32 %v7343_v28  ;;  %v7297_v17 = vsub.f32 %v15887_v56, %v7239_v3  ;;  %v17094_v3 = vld [vmem:[#allocation142_spill] sm:$0xff] }
 0xc2a   :  { %v7347_v48 = vmul.f32 1.442695, %v7297_v17  ;;  %v17095_v17 = vld [vmem:[#allocation48_spill] sm:$0xff] }
 0xc2b   :  { %v11485_v20 = vpop.eup %11484  ;;  %v7245_v36 = vpop.xlane.xlu0 %7244 }
 0xc2c   :  { %11488 = vpow2.f32 %v7347_v48  ;;  %v7299_v30 = vsub.f32 %v15892_v10, %v7245_v36  ;;  %v7520_v55 = vmul.f32 %v11485_v20, %v15877_v42  ;;  %v17093_v10 = vld [vmem:[#allocation141_spill] sm:$0xff]  ;;  %v7308_v48 = vsub.f32 %v15656_v62, %v15820_v52  ;;  %v17096_v62 = vld [vmem:[#allocation103_spill] sm:$0xff]  ;;  %v17098_v52 = vld [vmem:[#allocation60_spill] sm:$0xff] }
 0xc2d   :  { %v7309_v20 = vsub.f32 %v15671_v32, %v15828_v22  ;;  %v17097_v22 = vld [vmem:[#allocation47_spill] sm:$0xff] }
 0xc2e   :  { %v7351_v38 = vmul.f32 1.442695, %v7299_v30  ;;  %10942 = vmatprep.mubr.msk.f32.mxu0 %vm1295_vm1, %v7520_v55  ;;  %v7369_v36 = vmul.f32 1.442695, %v7308_v48 }
 0xc2f   :  { %v7251_v33 = vpop.xlane.xlu0 %7250  ;;  %v7371_v30 = vmul.f32 1.442695, %v7309_v20  ;;  %v16075_v20 = vld [vmem:[#allocation7 + $0x78] sm:$0xff] }
 0xc30   :  { %11490 = vpow2.f32 %v7351_v38  ;;  %v7301_v15 = vsub.f32 %v15897_v7, %v7251_v33 }
 0xc32   :  { %v7355_v61 = vmul.f32 1.442695, %v7301_v15 }
 0xc35   :  { %v15958_v44 = vpop.eup %11486 }
 0xc36   :  { %v7423_v14 = vsel %vm1295_vm1, %v15958_v44, 0.0 }
 0xc37   :  { %7424 = vadd.xlane.f32.xlu1 %v7423_v14 }
 0xc39   :  { %v15962_v12 = vpop.eup %11488 }
 0xc3a   :  { %v7429_v56 = vsel %vm1295_vm1, %v15962_v12, 0.0 }
 0xc3b   :  { %7430 = vadd.xlane.f32.xlu1 %v7429_v56 }
 0xc3d   :  { %v15966_v2 = vpop.eup %11490 }
 0xc3e   :  { %v7435_v42 = vsel %vm1295_vm1, %v15966_v2, 0.0 }
 0xc3f   :  { %7436 = vadd.xlane.f32.xlu1 %v7435_v42  ;;  %v17099_v42 = vld [vmem:[#allocation98_spill] sm:$0xff] }
 0xc50   :  { %7845 = vrot.lane.b32.xlu1 %v17093_v10, %s11634_s9  ;;  %v7310_v10 = vsub.f32 %v15666_v6, %v15824_v47  ;;  %v16041_v6 = vpop.xlane.xlu0 %7457 }
 0xc52   :  { %v15972_v59 = vpop.xlane.xlu1 %7454 }
 0xc56   :  { %v7236_v23 = vpop.xlane.xlu1 %7235 }
 0xc57   :  { %v7296_v13 = vsub.f32 %v15916_v39, %v7236_v23  ;;  %v7373_v23 = vmul.f32 1.442695, %v7310_v10 }
 0xc59   :  { %v7345_v4 = vmul.f32 1.442695, %v7296_v13 }
 0xc5a   :  { %v7242_v5 = vpop.xlane.xlu1 %7241 }
 0xc5b   :  { %11492 = vpow2.f32 %v7345_v4  ;;  %v7298_v41 = vsub.f32 %v15921_v29, %v7242_v5 }
 0xc5d   :  { %v7349_v24 = vmul.f32 1.442695, %v7298_v41 }
 0xc5e   :  { %v7248_v27 = vpop.xlane.xlu1 %7247 }
 0xc5f   :  { %11494 = vpow2.f32 %v7349_v24  ;;  %v7300_v51 = vsub.f32 %v15926_v18, %v7248_v27  ;;  %v16049_v27 = vpop.f32.mrf.mxu0 }
 0xc60   :  { %11496 = vpow2.f32 %v7355_v61 }
 0xc61   :  { %v7353_v25 = vmul.f32 1.442695, %v7300_v51  ;;  %v16051_v51 = vpop.f32.mrf.mxu0 }
 0xc62   :  { %v7254_v39 = vpop.xlane.xlu1 %7253 }
 0xc63   :  { %11498 = vpow2.f32 %v7353_v25  ;;  %v7302_v7 = vsub.f32 %v15931_v35, %v7254_v39  ;;  %v16053_v25 = vpop.f32.mrf.mxu0 }
 0xc64   :  { %11500 = vpow2.f32 %v7367_v37 }
 0xc65   :  { %v7357_v43 = vmul.f32 1.442695, %v7302_v7  ;;  %v16055_v37 = vpop.f32.mrf.mxu0 }
 0xc67   :  { %11502 = vpow2.f32 %v7357_v43 }
 0xc68   :  { %v15981_v29 = vpop.eup %11492  ;;  %11504 = vpow2.f32 %v7369_v36 }
 0xc69   :  { %v7426_v16 = vsel %vm1295_vm1, %v15981_v29, 0.0  ;;  %11506 = vpow2.f32 %v7371_v30 }
 0xc6a   :  { %7427 = vadd.xlane.f32.xlu0 %v7426_v16 }
 0xc6c   :  { %v15985_v45 = vpop.eup %11494 }
 0xc6d   :  { %v7432_v18 = vsel %vm1295_vm1, %v15985_v45, 0.0  ;;  %v15989_v21 = vpop.eup %11496 }
 0xc6e   :  { %7433 = vadd.xlane.f32.xlu0 %v7432_v18  ;;  %v7441_v49 = vsel %vm1295_vm1, %v15989_v21, 0.0 }
 0xc70   :  { %v15991_v34 = vpop.eup %11498 }
 0xc71   :  { %v7438_v35 = vsel %vm1295_vm1, %v15991_v34, 0.0  ;;  %v15995_v11 = vpop.eup %11500 }
 0xc72   :  { %7439 = vadd.xlane.f32.xlu0 %v7438_v35  ;;  %v7459_v28 = vsel %vm1295_vm1, %v15995_v11, 0.0 }
 0xc74   :  { %v15999_v63 = vpop.eup %11502  ;;  %7442 = vadd.xlane.f32.xlu1 %v7441_v49 }
 0xc75   :  { %v7444_v58 = vsel %vm1295_vm1, %v15999_v63, 0.0  ;;  %v16013_v55 = vpop.eup %11504 }
 0xc76   :  { %7445 = vadd.xlane.f32.xlu0 %v7444_v58  ;;  %v16015_v38 = vpop.eup %11506  ;;  %v7462_v14 = vsel %vm1295_vm1, %v16013_v55, 0.0 }
 0xc77   :  { %v7465_v56 = vsel %vm1295_vm1, %v16015_v38, 0.0 }
 0xc78   :  { %7460 = vadd.xlane.f32.xlu1 %v7459_v28 }
 0xc89   :  { %7841 = vrot.lane.b32.xlu1 %v17094_v3, %s11634_s9 }
 0xc8c   :  { %7847 = vrot.lane.b32.xlu0 %v17095_v17, %s11634_s9 }
 0xcab   :  { %7463 = vadd.xlane.f32.xlu0 %v7462_v14 }
 0xcad   :  { %7466 = vadd.xlane.f32.xlu1 %v7465_v56  ;;  %v16079_v56 = vld [vmem:[#allocation7 + $0x70] sm:$0xff] }
 0xcbe   :  { %8006 = vrot.lane.b32.xlu1 %v17096_v62, %s11634_s9 }
 0xcc0   :  { %v7425_v32 = vpop.xlane.xlu1 %7424 }
 0xcc1   :  { %11508 = vrcp.f32 %v7425_v32  ;;  %7843 = vrot.lane.b32.xlu0 %v17097_v22, %s11634_s9  ;;  %v16087_v22 = vld [vmem:[#allocation7 + $0x68] sm:$0xff] }
 0xcc2   :  { %8004 = vrot.lane.b32.xlu1 %v17098_v52, %s11634_s9  ;;  %11510 = vpow2.f32 %v7373_v23 }
 0xcc4   :  { %v7431_v41 = vpop.xlane.xlu1 %7430 }
 0xcc6   :  { %8002 = vrot.lane.b32.xlu1 %v17099_v42, %s11634_s9  ;;  %v16093_v42 = vld [vmem:[#allocation7 + $0x60] sm:$0xff] }
 0xcca   :  { %7998 = vrot.lane.b32.xlu1 %v16948_v9, %s11634_s9  ;;  %v17100_v9 = vld [vmem:[#allocation102_spill] sm:$0xff] }
 0xcce   :  { %v11509_v33 = vpop.eup %11508  ;;  %7994 = vrot.lane.b32.xlu1 %v13136_v31, %s11634_s9 }
 0xccf   :  { %v7504_v13 = vmul.f32 %v11509_v33, %v15958_v44  ;;  %v16037_v4 = vpop.eup %11510  ;;  %v7437_v44 = vpop.xlane.xlu1 %7436 }
 0xcd0   :  { %v7468_v15 = vsel %vm1295_vm1, %v16037_v4, 0.0 }
 0xcd1   :  { %10914 = vmatprep.mubr.msk.f32.mxu1 %vm1295_vm1, %v7504_v13 }
 0xcd3   :  { %v7846_v61 = vpop.permute.xlu1 %7845 }
 0xce0   :  { %7469 = vadd.xlane.f32.xlu0 %v7468_v15 }
 0xcf3   :  { %v7428_v47 = vpop.xlane.xlu0 %7427 }
 0xcf4   :  { %11512 = vrcp.f32 %v7428_v47 }
 0xcf5   :  { %11514 = vrcp.f32 %v7431_v41 }
 0xcf6   :  { %8008 = vrot.lane.b32.xlu0 %v17100_v9, %s11634_s9 }
 0xcf7   :  { %v7434_v5 = vpop.xlane.xlu0 %7433 }
 0xcf8   :  { %11516 = vrcp.f32 %v7434_v5 }
 0xcf9   :  { %11518 = vrcp.f32 %v7437_v44 }
 0xcfa   :  { %8000 = vrot.lane.b32.xlu0 %v16949_v53, %s11634_s9  ;;  %v16057_v53 = vpop.f32.mrf.mxu0 }
 0xcfb   :  { %v7440_v31 = vpop.xlane.xlu0 %7439 }
 0xcfc   :  { %v16059_v39 = vpop.f32.mrf.mxu0  ;;  %11520 = vrcp.f32 %v7440_v31 }
 0xcfd   :  { %v7443_v7 = vpop.xlane.xlu1 %7442 }
 0xcfe   :  { %7996 = vrot.lane.b32.xlu0 %v16951_v50, %s11634_s9  ;;  %v16061_v50 = vpop.f32.mrf.mxu0  ;;  %11522 = vrcp.f32 %v7443_v7 }
 0xcff   :  { %v7446_v24 = vpop.xlane.xlu0 %7445 }
 0xd00   :  { %v16063_v43 = vpop.f32.mrf.mxu0  ;;  %11524 = vrcp.f32 %v7446_v24 }
 0xd01   :  { %v16067_v18 = vpop.xlane.xlu1 %7460  ;;  %v11513_v58 = vpop.eup %11512  ;;  %11526 = vrcp.f32 %v15942_v46 }
 0xd02   :  { %v16065_v16 = vpop.f32.mrf.mxu0  ;;  %v11515_v3 = vpop.eup %11514  ;;  %v7506_v36 = vmul.f32 %v11513_v58, %v15981_v29  ;;  %11528 = vrcp.f32 %v15972_v59 }
 0xd03   :  { %v7848_v57 = vpop.permute.xlu0 %7847  ;;  %v7508_v14 = vmul.f32 %v11515_v3, %v15962_v12  ;;  %11530 = vrcp.f32 %v16041_v6 }
 0xd04   :  { %10906 = vmatprep.subr.mxu1 %v7848_v57  ;;  %v16071_v49 = vpop.f32.mrf.mxu0  ;;  %11532 = vrcp.f32 %v16067_v18 }
 0xd05   :  { %10907 = vmatpush3.msra.mxu1 %v7848_v57  ;;  %v7842_v48 = vpop.permute.xlu1 %7841  ;;  %v11517_v30 = vpop.eup %11516 }
 0xd06   :  { %10908 = vmatprep.subr.mxu1 %v7846_v61  ;;  %v16073_v17 = vpop.f32.mrf.mxu0  ;;  %v11519_v62 = vpop.eup %11518  ;;  %v7510_v29 = vmul.f32 %v11517_v30, %v15985_v45  ;;  %v17103_v30 = vld [vmem:[#allocation146_spill] sm:$0xff] }
 0xd07   :  { %10909 = vmatpush3.msra.mxu1 %v7846_v61  ;;  %v7512_v52 = vmul.f32 %v11519_v62, %v15966_v2 }
 0xd08   :  { %v16081_v32 = vpop.f32.mrf.mxu0 }
 0xd09   :  { %v11521_v12 = vpop.eup %11520 }
 0xd0a   :  { %v10894_v23 = vpop.f32.mrf.mxu0  ;;  %v7514_v45 = vmul.f32 %v11521_v12, %v15991_v34 }
 0xd0b   :  { %v11523_v10 = vpop.eup %11522 }
 0xd0c   :  { %v7516_v2 = vmul.f32 %v11523_v10, %v15989_v21  ;;  %v7822_v13 = vpop.f32.mrf.mxu0 }
 0xd0d   :  { %v11525_v33 = vpop.eup %11524 }
 0xd0e   :  { %v7518_v15 = vmul.f32 %v11525_v33, %v15999_v63  ;;  %v10897_v47 = vpop.f32.mrf.mxu0  ;;  %v11527_v59 = vpop.eup %11526 }
 0xd0f   :  { %v11529_v6 = vpop.eup %11528  ;;  %v7522_v61 = vmul.f32 %v11527_v59, %v15853_v8 }
 0xd10   :  { %v7832_v34 = vpop.f32.mrf.mxu0  ;;  %v11531_v7 = vpop.eup %11530  ;;  %v7524_v18 = vmul.f32 %v11529_v6, %v15913_v0 }
 0xd11   :  { %v7526_v58 = vmul.f32 %v11531_v7, %v15905_v1 }
 0xd34   :  { %v16069_v35 = vpop.xlane.xlu0 %7463 }
 0xd35   :  { %11534 = vrcp.f32 %v16069_v35  ;;  %v11533_v35 = vpop.eup %11532 }
 0xd36   :  { %v7467_v21 = vpop.xlane.xlu1 %7466  ;;  %v7528_v8 = vmul.f32 %v11533_v35, %v15995_v11  ;;  %v17111_v35 = vld [vmem:[#allocation57_spill] sm:$0xff] }
 0xd37   :  { %11536 = vrcp.f32 %v7467_v21 }
 0xd38   :  { %v7844_v28 = vpop.permute.xlu0 %7843 }
 0xd39   :  { %10910 = vmatprep.subr.mxu1 %v7844_v28 }
 0xd3a   :  { %10911 = vmatpush3.msra.mxu1 %v7844_v28  ;;  %v8007_v9 = vpop.permute.xlu1 %8006 }
 0xd3b   :  { %10912 = vmatprep.subr.mxu1 %v7842_v48 }
 0xd3c   :  { %10913 = vmatpush3.msra.mxu1 %v7842_v48 }
 0xd3d   :  { %10915 = vmatmul.mubr.msk.f32.vlgmr.msra.gmra.mxu1 %vm1295_vm1, %v7506_v36  ;;  %11010 = vmatprep.subr.mxu1 %v16075_v20 }
 0xd3e   :  { %10917 = vmatprep.mubr.msk.f32.mxu1 %vm1295_vm1, %v7508_v14  ;;  %11014 = vmatpush3.msra.mxu1 %v16075_v20  ;;  %v8005_v5 = vpop.permute.xlu1 %8004  ;;  %v17104_v14 = vld [vmem:[#allocation110_spill] sm:$0xff] }
 0xd3f   :  { %11011 = vmatprep.subr.mxu1 %v16079_v56 }
 0xd40   :  { %11015 = vmatpush3.msra.mxu1 %v16079_v56 }
 0xd41   :  { %10918 = vmatmul.mubr.msk.f32.gmra.mxu1 %vm1295_vm1, %v7510_v29  ;;  %11012 = vmatprep.subr.mxu1 %v16087_v22 }
 0xd42   :  { %10920 = vmatprep.mubr.msk.f32.mxu1 %vm1295_vm1, %v7512_v52  ;;  %11016 = vmatpush3.msra.mxu1 %v16087_v22  ;;  %v8003_v31 = vpop.permute.xlu1 %8002  ;;  %v11535_v28 = vpop.eup %11534 }
 0xd43   :  { %11013 = vmatprep.subr.mxu1 %v16093_v42  ;;  %v7530_v0 = vmul.f32 %v11535_v28, %v16013_v55 }
 0xd44   :  { %11017 = vmatpush3.msra.mxu1 %v16093_v42  ;;  %v11537_v3 = vpop.eup %11536 }
 0xd45   :  { %10921 = vmatmul.mubr.msk.f32.gmra.mxu1 %vm1295_vm1, %v7514_v45  ;;  %v7532_v48 = vmul.f32 %v11537_v3, %v16015_v38 }
 0xd46   :  { %10923 = vmatprep.mubr.msk.f32.mxu1 %vm1295_vm1, %v7516_v2  ;;  %v7999_v46 = vpop.permute.xlu1 %7998 }
 0xd49   :  { %10924 = vmatmul.mubr.msk.f32.gmra.mxu1 %vm1295_vm1, %v7518_v15 }
 0xd4a   :  { %10980 = vmatprep.mubr.msk.f32.mxu1 %vm682_vm0, %v7822_v13  ;;  %v7995_v57 = vpop.permute.xlu1 %7994 }
 0xd4d   :  { %10981 = vmatmul.mubr.msk.f32.vlgmr.msra.gmra.mxu1 %vm682_vm0, %v10894_v23 }
 0xd4e   :  { %10983 = vmatprep.mubr.msk.f32.mxu1 %vm682_vm0, %v7832_v34  ;;  %v17106_v34 = vld [vmem:[#allocation12_spill] sm:$0xff] }
 0xd51   :  { %10984 = vmatmul.mubr.msk.f32.gmra.mxu1 %vm682_vm0, %v10897_v47  ;;  %v17105_v47 = vld [vmem:[#allocation132_spill] sm:$0xff] }
 0xd52   :  { %v4336_v21 = vadd.f32 %v17106_v34, %v17105_v47 }
 0xd69   :  { %v7470_v41 = vpop.xlane.xlu0 %7469 }
 0xd6a   :  { %11538 = vrcp.f32 %v7470_v41  ;;  %v17107_v41 = vld [vmem:[#allocation59_spill] sm:$0xff] }
 0xd6d   :  { %v8009_v63 = vpop.permute.xlu0 %8008 }
 0xd6e   :  { %10926 = vmatprep.subr.mxu0 %v8009_v63 }
 0xd6f   :  { %10927 = vmatpush3.msra.mxu0 %v8009_v63 }
 0xd70   :  { %10928 = vmatprep.subr.mxu0 %v8007_v9 }
 0xd71   :  { %10929 = vmatpush3.msra.mxu0 %v8007_v9  ;;  %v8001_v44 = vpop.permute.xlu0 %8000 }
 0xd72   :  { %10930 = vmatprep.subr.mxu0 %v8005_v5 }
 0xd73   :  { %10931 = vmatpush3.msra.mxu0 %v8005_v5  ;;  %v6467_v5 = vadd.f32 %v15557_v26, %v4336_v21  ;;  %v17113_v26 = vld [vmem:[#allocation35_spill] sm:$0xff]  ;;  %v17127_v21 = vld [vmem:[#allocation32_spill] sm:$0xff] }
 0xd74   :  { %10932 = vmatprep.subr.mxu0 %v8003_v31 }
 0xd75   :  { %10933 = vmatpush3.msra.mxu0 %v8003_v31  ;;  %v7997_v24 = vpop.permute.xlu0 %7996 }
 0xd76   :  { %10934 = vmatprep.subr.mxu0 %v8001_v44 }
 0xd77   :  { %10935 = vmatpush3.msra.mxu0 %v8001_v44  ;;  %v11539_v1 = vpop.eup %11538  ;;  %v17108_v44 = vld [vmem:[#allocation123_spill] sm:$0xff] }
 0xd78   :  { %10936 = vmatprep.subr.mxu0 %v7999_v46  ;;  %v7534_v11 = vmul.f32 %v11539_v1, %v16037_v4 }
 0xd79   :  { %10937 = vmatpush3.msra.mxu0 %v7999_v46  ;;  %v17109_v46 = vld [vmem:[#allocation39_spill] sm:$0xff] }
 0xd7a   :  { %10938 = vmatprep.subr.mxu0 %v7997_v24  ;;  %v4346_v59 = vadd.f32 %v17109_v46, %v17108_v44  ;;  %v17128_v44 = vld [vmem:[#allocation148_spill] sm:$0xff]  ;;  %v17129_v46 = vld [vmem:[#allocation113_spill] sm:$0xff] }
 0xd7b   :  { %10939 = vmatpush3.msra.mxu0 %v7997_v24 }
 0xd7c   :  { %10940 = vmatprep.subr.mxu0 %v7995_v57 }
 0xd7d   :  { %10941 = vmatpush3.msra.mxu0 %v7995_v57 }
 0xd7e   :  { %10943 = vmatmul.mubr.msk.f32.vlgmr.msra.gmra.mxu0 %vm1295_vm1, %v7522_v61  ;;  %10954 = vmatprep.subr.mxu0 %v16075_v20  ;;  %v17110_v61 = vld [vmem:[#allocation16_spill] sm:$0xff] }
 0xd7f   :  { %10945 = vmatprep.mubr.msk.f32.mxu0 %vm1295_vm1, %v7524_v18  ;;  %10955 = vmatpush3.msra.mxu0 %v16075_v20  ;;  %v6469_v7 = vadd.f32 %v17110_v61, %v4346_v59  ;;  %v4416_v59 = vadd.f32 %v17129_v46, %v17128_v44  ;;  %v17131_v61 = vld [vmem:[#allocation14_spill] sm:$0xff]  ;;  %v17150_v44 = vld [vmem:[#allocation17_spill] sm:$0xff] }
 0xd80   :  { %10956 = vmatprep.subr.mxu0 %v16079_v56 }
 0xd81   :  { %10957 = vmatpush3.msra.mxu0 %v16079_v56  ;;  %v4406_v56 = vadd.f32 %v17104_v14, %v17103_v30 }
 0xd82   :  { %10946 = vmatmul.mubr.msk.f32.gmra.mxu0 %vm1295_vm1, %v7526_v58  ;;  %10958 = vmatprep.subr.mxu0 %v16087_v22 }
 0xd83   :  { %10948 = vmatprep.mubr.msk.f32.mxu0 %vm1295_vm1, %v7528_v8  ;;  %10959 = vmatpush3.msra.mxu0 %v16087_v22  ;;  %v6481_v29 = vadd.f32 %v15683_v60, %v4406_v56  ;;  %v17112_v8 = vld [vmem:[#allocation129_spill] sm:$0xff]  ;;  %v17120_v56 = vld [vmem:[#allocation138_spill] sm:$0xff] }
 0xd84   :  { %10960 = vmatprep.subr.mxu0 %v16093_v42  ;;  %v4356_v3 = vadd.f32 %v17113_v26, %v17112_v8 }
 0xd85   :  { %10961 = vmatpush3.msra.mxu0 %v16093_v42 }
 0xd86   :  { %10949 = vmatmul.mubr.msk.f32.gmra.mxu0 %vm1295_vm1, %v7530_v0 }
 0xd87   :  { %10951 = vmatprep.mubr.msk.f32.mxu0 %vm1295_vm1, %v7532_v48 }
 0xd8a   :  { %10952 = vmatmul.mubr.msk.f32.gmra.mxu0 %vm1295_vm1, %v7534_v11  ;;  %v17114_v11 = vld [vmem:[#allocation25_spill] sm:$0xff] }
 0xd8b   :  { %10962 = vmatprep.mubr.msk.f32.mxu0 %vm682_vm0, %v16051_v51 }
 0xd8e   :  { %10963 = vmatmul.mubr.msk.f32.vlgmr.msra.gmra.mxu0 %vm682_vm0, %v16049_v27 }
 0xd8f   :  { %10965 = vmatprep.mubr.msk.f32.mxu0 %vm682_vm0, %v16055_v37 }
 0xd92   :  { %10966 = vmatmul.mubr.msk.f32.gmra.mxu0 %vm682_vm0, %v16053_v25 }
 0xd93   :  { %10968 = vmatprep.mubr.msk.f32.mxu0 %vm682_vm0, %v16059_v39  ;;  %v17101_v39 = vld [vmem:[#allocation143_spill] sm:$0xff] }
 0xd96   :  { %10969 = vmatmul.mubr.msk.f32.gmra.mxu0 %vm682_vm0, %v16057_v53 }
 0xd97   :  { %10971 = vmatprep.mubr.msk.f32.mxu0 %vm682_vm0, %v16063_v43 }
 0xd9a   :  { %10972 = vmatmul.mubr.msk.f32.gmra.mxu0 %vm682_vm0, %v16061_v50  ;;  %v17102_v50 = vld [vmem:[#allocation127_spill] sm:$0xff] }
 0xd9b   :  { %10974 = vmatprep.mubr.msk.f32.mxu0 %vm682_vm0, %v16071_v49  ;;  %v4396_v43 = vadd.f32 %v17102_v50, %v17101_v39  ;;  %v16174_v49 = vld [vmem:[%s16286_s5] ss:$0 sm:$0xff]  ;;  %s11635_s5 = smov [#allocation8]  }
 0xd9c   :  { %s8580_s23 = sshll.u32 %s11635_s5, 4  ;;  %s8581_s23 = int_to_ptr.vmem [resolvable:$true] %s8580_s23 }
 0xd9d   :  { %s11600_s24 = scalar_lea.vmem %s8581_s23, 4096  ;;  %p11605_p2 = scmp.lt.s32.totalorder %s8581_s23, %s8581_s23 }
 0xd9e   :  { %10975 = vmatmul.mubr.msk.f32.gmra.mxu0 %vm682_vm0, %v16065_v16  ;;  %p11601_p1 = scmp.ne.s32.totalorder %s8581_s23, %s11600_s24  ;;  %p11606_p3 = scmp.lt.s32.totalorder %s11600_s24, %s11600_s24 }
 0xd9f   :  { %10977 = vmatprep.mubr.msk.f32.mxu0 %vm682_vm0, %v16081_v32 }
 0xda0   :  { %p11607_p4 = por %p11606_p3, %p11605_p2 }
 0xda2   :  { %10978 = vmatmul.mubr.msk.f32.gmra.mxu0 %vm682_vm0, %v16073_v17  ;;  %v6479_v17 = vadd.f32 %v15629_v54, %v4396_v43  ;;  %p11608_p5 = pnand %p11607_p4, %p11601_p1 }
 0xdfd   :  { %v10916_v55 = vpop.f32.mrf.mxu1 }
 0xdff   :  { %v7955_v38 = vpop.f32.mrf.mxu1 }
 0xe00   :  { %10986 = vmatprep.mubr.msk.f32.mxu1 %vm682_vm0, %v7955_v38 }
 0xe01   :  { %v10919_v4 = vpop.f32.mrf.mxu1  ;;  %10987 = vmatmul.mubr.msk.f32.gmra.mxu1 %vm682_vm0, %v10916_v55  ;;  %v6471_v55 = vadd.f32 %v17114_v11, %v4356_v3  ;;  %v17135_v11 = vld [vmem:[#allocation29_spill] sm:$0xff] }
 0xe03   :  { %v7965_v27 = vpop.f32.mrf.mxu1 }
 0xe04   :  { %10989 = vmatprep.mubr.msk.f32.mxu1 %vm682_vm0, %v7965_v27 }
 0xe05   :  { %v10922_v51 = vpop.f32.mrf.mxu1  ;;  %10990 = vmatmul.mubr.msk.f32.gmra.mxu1 %vm682_vm0, %v10919_v4  ;;  %v17115_v4 = vld [vmem:[#allocation55_spill] sm:$0xff] }
 0xe07   :  { %v7975_v25 = vpop.f32.mrf.mxu1 }
 0xe08   :  { %10992 = vmatprep.mubr.msk.f32.mxu1 %vm682_vm0, %v7975_v25  ;;  %v17116_v25 = vld [vmem:[#allocation126_spill] sm:$0xff] }
 0xe09   :  { %v10925_v37 = vpop.f32.mrf.mxu1  ;;  %10993 = vmatmul.mubr.msk.f32.gmra.mxu1 %vm682_vm0, %v10922_v51 }
 0xe0b   :  { %v7985_v53 = vpop.f32.mrf.mxu1 }
 0xe0c   :  { %10995 = vmatprep.mubr.msk.f32.mxu1 %vm682_vm0, %v7985_v53 }
 0xe0d   :  { %v10982_v16 = vpop.f32.mrf.mxu1  ;;  %10996 = vmatmul.mubr.msk.f32.gmra.mxu1 %vm682_vm0, %v10925_v37  ;;  %v17117_v37 = vld [vmem:[#allocation33_spill] sm:$0xff] }
 0xe0e   :  { %v8485_v20 = vadd.f32 %v10982_v16, %v15625_v40  ;;  %v4366_v53 = vadd.f32 %v17117_v37, %v17116_v25  ;;  %v17118_v16 = vld [vmem:[#allocation26_spill] sm:$0xff] }
 0xe0f   :  { %v8373_v36 = vpop.f32.mrf.mxu1 }
 0xe10   :  { %v8524_v62 = vadd.f32 %v16174_v49, %v8485_v20  ;;  %v8484_v32 = vadd.f32 %v8373_v36, %v6479_v17  ;;  %v6473_v17 = vadd.f32 %v17118_v16, %v4366_v53  ;;  %v17119_v36 = vld [vmem:[#allocation38_spill] sm:$0xff]  ;;  %v17139_v16 = vld [vmem:[#allocation23_spill] sm:$0xff] }
 0xe11   :  { %v10985_v22 = vpop.f32.mrf.mxu1 }
 0xe12   :  { %8556 = vst [vmem:[#allocation8 + $0x68] sm:$0xff] %v8524_v62  ;;  %v8523_v12 = vadd.f32 %v16174_v49, %v8484_v32  ;;  %v8487_v52 = vadd.f32 %v10985_v22, %v15641_v19  ;;  %v17121_v62 = vld [vmem:[#allocation117_spill] sm:$0xff] }
 0xe13   :  { %v8383_v42 = vpop.f32.mrf.mxu1  ;;  %v4376_v32 = vadd.f32 %v17121_v62, %v17120_v56 }
 0xe14   :  { %8555 = vst [vmem:[#allocation8 + $0x60] sm:$0xff] %v8523_v12  ;;  %v8526_v54 = vadd.f32 %v16174_v49, %v8487_v52  ;;  %v8486_v40 = vadd.f32 %v8383_v42, %v6481_v29  ;;  %v17122_v52 = vld [vmem:[#allocation20_spill] sm:$0xff] }
 0xe15   :  { %v6475_v42 = vadd.f32 %v17122_v52, %v4376_v32  ;;  %v17143_v52 = vld [vmem:[#allocation149_spill] sm:$0xff] }
 0xe16   :  { %8558 = vst [vmem:[#allocation8 + $0x78] sm:$0xff] %v8526_v54  ;;  %v8525_v10 = vadd.f32 %v16174_v49, %v8486_v40  ;;  %v17123_v40 = vld [vmem:[#allocation36_spill] sm:$0xff] }
 0xe18   :  { %8557 = vst [vmem:[#allocation8 + $0x70] sm:$0xff] %v8525_v10 }
 0xe3e   :  { %v10944_v23 = vpop.f32.mrf.mxu0 }
 0xe40   :  { %v8108_v45 = vpop.f32.mrf.mxu0 }
 0xe41   :  { %10998 = vmatprep.mubr.msk.f32.mxu1 %vm682_vm0, %v8108_v45  ;;  %v17124_v45 = vld [vmem:[#allocation118_spill] sm:$0xff] }
 0xe42   :  { %v10947_v33 = vpop.f32.mrf.mxu0  ;;  %10999 = vmatmul.mubr.msk.f32.gmra.mxu1 %vm682_vm0, %v10944_v23 }
 0xe44   :  { %v8118_v60 = vpop.f32.mrf.mxu0 }
 0xe45   :  { %11001 = vmatprep.mubr.msk.f32.mxu1 %vm682_vm0, %v8118_v60 }
 0xe46   :  { %v10950_v19 = vpop.f32.mrf.mxu0  ;;  %11002 = vmatmul.mubr.msk.f32.gmra.mxu1 %vm682_vm0, %v10947_v33  ;;  %v17125_v33 = vld [vmem:[#allocation136_spill] sm:$0xff] }
 0xe47   :  { %v4386_v60 = vadd.f32 %v17125_v33, %v17124_v45  ;;  %v17144_v45 = vld [vmem:[#allocation158_spill] sm:$0xff]  ;;  %v17145_v33 = vld [vmem:[#allocation128_spill] sm:$0xff] }
 0xe48   :  { %v8128_v2 = vpop.f32.mrf.mxu0 }
 0xe49   :  { %11004 = vmatprep.mubr.msk.f32.mxu1 %vm682_vm0, %v8128_v2 }
 0xe4a   :  { %v10953_v13 = vpop.f32.mrf.mxu0  ;;  %11005 = vmatmul.mubr.msk.f32.gmra.mxu1 %vm682_vm0, %v10950_v19 }
 0xe4c   :  { %v8138_v15 = vpop.f32.mrf.mxu0 }
 0xe4d   :  { %11007 = vmatprep.mubr.msk.f32.mxu1 %vm682_vm0, %v8138_v15  ;;  %v17126_v15 = vld [vmem:[#allocation15_spill] sm:$0xff] }
 0xe4e   :  { %v10964_v9 = vpop.f32.mrf.mxu0  ;;  %11008 = vmatmul.mubr.msk.f32.gmra.mxu1 %vm682_vm0, %v10953_v13  ;;  %v6477_v47 = vadd.f32 %v17126_v15, %v4386_v60  ;;  %v4456_v60 = vadd.f32 %v17145_v33, %v17144_v45  ;;  %v17147_v15 = vld [vmem:[#allocation19_spill] sm:$0xff] }
 0xe4f   :  { %v8473_v63 = vadd.f32 %v10964_v9, %v17107_v41 }
 0xe50   :  { %v8313_v31 = vpop.f32.mrf.mxu0 }
 0xe51   :  { %v8512_v24 = vadd.f32 %v16174_v49, %v8473_v63  ;;  %v8472_v6 = vadd.f32 %v8313_v31, %v6467_v5 }
 0xe52   :  { %v10967_v57 = vpop.f32.mrf.mxu0 }
 0xe53   :  { %8544 = vst [vmem:[#allocation8 + $0x8] sm:$0xff] %v8512_v24  ;;  %v8511_v18 = vadd.f32 %v16174_v49, %v8472_v6  ;;  %v8475_v58 = vadd.f32 %v10967_v57, %v17111_v35  ;;  %v17130_v6 = vld [vmem:[#allocation34_spill] sm:$0xff]  ;;  %v17132_v35 = vld [vmem:[#allocation151_spill] sm:$0xff] }
 0xe54   :  { %v8323_v28 = vpop.f32.mrf.mxu0  ;;  %v6483_v57 = vadd.f32 %v17130_v6, %v4416_v59 }
 0xe55   :  { %8543 = vst [vmem:[#allocation8] sm:$0xff] %v8511_v18  ;;  %v8514_v0 = vadd.f32 %v16174_v49, %v8475_v58  ;;  %v8474_v1 = vadd.f32 %v8323_v28, %v6469_v7  ;;  %v17133_v58 = vld [vmem:[#allocation106_spill] sm:$0xff] }
 0xe56   :  { %v10970_v48 = vpop.f32.mrf.mxu0  ;;  %v4426_v28 = vadd.f32 %v17133_v58, %v17132_v35  ;;  %v17152_v58 = vld [vmem:[#allocation41_spill] sm:$0xff] }
 0xe57   :  { %8546 = vst [vmem:[#allocation8 + $0x18] sm:$0xff] %v8514_v0  ;;  %v8513_v38 = vadd.f32 %v16174_v49, %v8474_v1  ;;  %v8477_v27 = vadd.f32 %v10970_v48, %v17115_v4  ;;  %v17134_v0 = vld [vmem:[#allocation145_spill] sm:$0xff]  ;;  %v17136_v4 = vld [vmem:[#allocation154_spill] sm:$0xff] }
 0xe58   :  { %v8333_v51 = vpop.f32.mrf.mxu0  ;;  %v6485_v1 = vadd.f32 %v17134_v0, %v4426_v28 }
 0xe59   :  { %8545 = vst [vmem:[#allocation8 + $0x10] sm:$0xff] %v8513_v38  ;;  %v8516_v39 = vadd.f32 %v16174_v49, %v8477_v27  ;;  %v8476_v50 = vadd.f32 %v8333_v51, %v6471_v55  ;;  %v17137_v27 = vld [vmem:[#allocation130_spill] sm:$0xff] }
 0xe5a   :  { %v10973_v43 = vpop.f32.mrf.mxu0  ;;  %v4436_v51 = vadd.f32 %v17137_v27, %v17136_v4  ;;  %v17155_v27 = vld [vmem:[#allocation21_spill] sm:$0xff] }
 0xe5b   :  { %8548 = vst [vmem:[#allocation8 + $0x28] sm:$0xff] %v8516_v39  ;;  %v8515_v20 = vadd.f32 %v16174_v49, %v8476_v50  ;;  %v8479_v30 = vadd.f32 %v10973_v43, %v17119_v36  ;;  %v17138_v39 = vld [vmem:[#allocation31_spill] sm:$0xff]  ;;  %v17140_v36 = vld [vmem:[#allocation156_spill] sm:$0xff] }
 0xe5c   :  { %v8343_v14 = vpop.f32.mrf.mxu0  ;;  %v6487_v50 = vadd.f32 %v17138_v39, %v4436_v51 }
 0xe5d   :  { %8547 = vst [vmem:[#allocation8 + $0x20] sm:$0xff] %v8515_v20  ;;  %v8518_v22 = vadd.f32 %v16174_v49, %v8479_v30  ;;  %v8478_v29 = vadd.f32 %v8343_v14, %v6473_v17  ;;  %v17141_v30 = vld [vmem:[#allocation121_spill] sm:$0xff] }
 0xe5e   :  { %v10976_v12 = vpop.f32.mrf.mxu0  ;;  %v4446_v14 = vadd.f32 %v17141_v30, %v17140_v36 }
 0xe5f   :  { %8550 = vst [vmem:[#allocation8 + $0x38] sm:$0xff] %v8518_v22  ;;  %v8517_v54 = vadd.f32 %v16174_v49, %v8478_v29  ;;  %v8481_v10 = vadd.f32 %v10976_v12, %v17123_v40  ;;  %v17142_v22 = vld [vmem:[#allocation42_spill] sm:$0xff] }
 0xe60   :  { %v8353_v23 = vpop.f32.mrf.mxu0  ;;  %v6489_v29 = vadd.f32 %v17142_v22, %v4446_v14 }
 0xe61   :  { %8549 = vst [vmem:[#allocation8 + $0x30] sm:$0xff] %v8517_v54  ;;  %v8520_v19 = vadd.f32 %v16174_v49, %v8481_v10  ;;  %v8480_v2 = vadd.f32 %v8353_v23, %v6475_v42 }
 0xe62   :  { %v10979_v13 = vpop.f32.mrf.mxu0 }
 0xe63   :  { %8552 = vst [vmem:[#allocation8 + $0x48] sm:$0xff] %v8520_v19  ;;  %v8519_v34 = vadd.f32 %v16174_v49, %v8480_v2  ;;  %v8483_v9 = vadd.f32 %v10979_v13, %v17127_v21  ;;  %v17146_v2 = vld [vmem:[#allocation153_spill] sm:$0xff]  ;;  %v17148_v21 = vld [vmem:[#allocation160_spill] sm:$0xff] }
 0xe64   :  { %v8363_v5 = vpop.f32.mrf.mxu0  ;;  %v6491_v13 = vadd.f32 %v17146_v2, %v4456_v60 }
 0xe65   :  { %8551 = vst [vmem:[#allocation8 + $0x40] sm:$0xff] %v8519_v34  ;;  %v8522_v41 = vadd.f32 %v16174_v49, %v8483_v9  ;;  %v8482_v63 = vadd.f32 %v8363_v5, %v6477_v47  ;;  %v17149_v9 = vld [vmem:[#allocation133_spill] sm:$0xff] }
 0xe66   :  { %v4466_v5 = vadd.f32 %v17149_v9, %v17148_v21 }
 0xe67   :  { %8554 = vst [vmem:[#allocation8 + $0x58] sm:$0xff] %v8522_v41  ;;  %v8521_v31 = vadd.f32 %v16174_v49, %v8482_v63 }
 0xe68   :  { %v6493_v46 = vadd.f32 %v17150_v44, %v4466_v5 }
 0xe69   :  { %8553 = vst [vmem:[#allocation8 + $0x50] sm:$0xff] %v8521_v31 }
 0xec1   :  { %v10988_v24 = vpop.f32.mrf.mxu1 }
 0xec2   :  { %v8489_v7 = vadd.f32 %v10988_v24, %v17131_v61  ;;  %v17151_v24 = vld [vmem:[#allocation37_spill] sm:$0xff] }
 0xec3   :  { %v8393_v18 = vpop.f32.mrf.mxu1 }
 0xec4   :  { %v8528_v8 = vadd.f32 %v16174_v49, %v8489_v7  ;;  %v8488_v26 = vadd.f32 %v8393_v18, %v6483_v57 }
 0xec5   :  { %v10991_v3 = vpop.f32.mrf.mxu1 }
 0xec6   :  { %8560 = vst [vmem:[#allocation8 + $0x88] sm:$0xff] %v8528_v8  ;;  %v8527_v48 = vadd.f32 %v16174_v49, %v8488_v26  ;;  %v8491_v55 = vadd.f32 %v10991_v3, %v17135_v11  ;;  %v17153_v3 = vld [vmem:[#allocation45_spill] sm:$0xff] }
 0xec7   :  { %v8403_v38 = vpop.f32.mrf.mxu1  ;;  %v17154_v11 = vld [vmem:[#allocation49_spill] sm:$0xff] }
 0xec8   :  { %8559 = vst [vmem:[#allocation8 + $0x80] sm:$0xff] %v8527_v48  ;;  %v8530_v25 = vadd.f32 %v16174_v49, %v8491_v55  ;;  %v8490_v37 = vadd.f32 %v8403_v38, %v6485_v1 }
 0xec9   :  { %v10994_v53 = vpop.f32.mrf.mxu1 }
 0xeca   :  { %8562 = vst [vmem:[#allocation8 + $0x98] sm:$0xff] %v8530_v25  ;;  %v8529_v43 = vadd.f32 %v16174_v49, %v8490_v37  ;;  %v8493_v17 = vadd.f32 %v10994_v53, %v17139_v16 }
 0xecb   :  { %v8413_v20 = vpop.f32.mrf.mxu1 }
 0xecc   :  { %8561 = vst [vmem:[#allocation8 + $0x90] sm:$0xff] %v8529_v43  ;;  %v8532_v56 = vadd.f32 %v16174_v49, %v8493_v17  ;;  %v8492_v62 = vadd.f32 %v8413_v20, %v6487_v50 }
 0xecd   :  { %v10997_v32 = vpop.f32.mrf.mxu1 }
 0xece   :  { %8564 = vst [vmem:[#allocation8 + $0xa8] sm:$0xff] %v8532_v56  ;;  %v8531_v12 = vadd.f32 %v16174_v49, %v8492_v62  ;;  %v8495_v42 = vadd.f32 %v10997_v32, %v17143_v52 }
 0xecf   :  { %v8423_v54 = vpop.f32.mrf.mxu1 }
 0xed0   :  { %8563 = vst [vmem:[#allocation8 + $0xa0] sm:$0xff] %v8531_v12  ;;  %v8534_v40 = vadd.f32 %v16174_v49, %v8495_v42  ;;  %v8494_v10 = vadd.f32 %v8423_v54, %v6489_v29 }
 0xed2   :  { %8566 = vst [vmem:[#allocation8 + $0xb8] sm:$0xff] %v8534_v40  ;;  %v8533_v23 = vadd.f32 %v16174_v49, %v8494_v10 }
 0xed4   :  { %8565 = vst [vmem:[#allocation8 + $0xb0] sm:$0xff] %v8533_v23 }
 0xf02   :  { %v11000_v19 = vpop.f32.mrf.mxu1 }
 0xf03   :  { %v8497_v47 = vadd.f32 %v11000_v19, %v17147_v15 }
 0xf04   :  { %v8433_v34 = vpop.f32.mrf.mxu1 }
 0xf05   :  { %v8536_v41 = vadd.f32 %v16174_v49, %v8497_v47  ;;  %v8496_v63 = vadd.f32 %v8433_v34, %v6491_v13 }
 0xf06   :  { %v11003_v31 = vpop.f32.mrf.mxu1 }
 0xf07   :  { %8568 = vst [vmem:[#allocation8 + $0xc8] sm:$0xff] %v8536_v41  ;;  %v8535_v59 = vadd.f32 %v16174_v49, %v8496_v63  ;;  %v8499_v6 = vadd.f32 %v11003_v31, %v17151_v24 }
 0xf08   :  { %v8443_v57 = vpop.f32.mrf.mxu1 }
 0xf09   :  { %8567 = vst [vmem:[#allocation8 + $0xc0] sm:$0xff] %v8535_v59  ;;  %v8538_v61 = vadd.f32 %v16174_v49, %v8499_v6  ;;  %v8498_v7 = vadd.f32 %v8443_v57, %v6493_v46 }
 0xf0a   :  { %v11006_v18 = vpop.f32.mrf.mxu1 }
 0xf0b   :  { %8570 = vst [vmem:[#allocation8 + $0xd8] sm:$0xff] %v8538_v61  ;;  %v8537_v35 = vadd.f32 %v16174_v49, %v8498_v7  ;;  %v8501_v28 = vadd.f32 %v11006_v18, %v17152_v58 }
 0xf0c   :  { %v8453_v8 = vpop.f32.mrf.mxu1 }
 0xf0d   :  { %8569 = vst [vmem:[#allocation8 + $0xd0] sm:$0xff] %v8537_v35  ;;  %v8540_v26 = vadd.f32 %v16174_v49, %v8501_v28  ;;  %v8500_v0 = vadd.f32 %v8453_v8, %v17153_v3 }
 0xf0e   :  { %v11009_v1 = vpop.f32.mrf.mxu1 }
 0xf0f   :  { %8572 = vst [vmem:[#allocation8 + $0xe8] sm:$0xff] %v8540_v26  ;;  %v8539_v48 = vadd.f32 %v16174_v49, %v8500_v0  ;;  %v8503_v55 = vadd.f32 %v11009_v1, %v17154_v11 }
 0xf10   :  { %v8463_v38 = vpop.f32.mrf.mxu1 }
 0xf11   :  { %8571 = vst [vmem:[#allocation8 + $0xe0] sm:$0xff] %v8539_v48  ;;  %v8542_v4 = vadd.f32 %v16174_v49, %v8503_v55  ;;  %v8502_v51 = vadd.f32 %v8463_v38, %v17155_v27 }
 0xf13   :  { %8574 = vst [vmem:[#allocation8 + $0xf8] sm:$0xff] %v8542_v4  ;;  %v8541_v25 = vadd.f32 %v16174_v49, %v8502_v51 }
 0xf15   :  { %8573 = vst [vmem:[#allocation8 + $0xf0] sm:$0xff] %v8541_v25 }
 0xf16   :  { %11611 = shalt.err (!%p11608_p5)
}
 0xf17   :  { %8586 = dma.vmem_to_hbm [thread:$0]  %s8581_s23, 4096, %s16287_s6, [#allocation4], %s11628_s30, %s11628_s30, %s11629_s7  }
 0xf18   :  { %11624 = dma.done.wait [#allocation4], 4096  }
 0xf19   :  { %11625 = vsyncadd [#allocation4], 4294963200 }
 0xf1a   :  { %8590 = vsyncpa [#allocation3], 1 }
 0xf1b   :  { %8591 = vsyncpa [#allocation6], 1 }
 0xf1c   :  { %8592 = vsyncpa [#allocation4], 1 }

</bundles_post_ra>
